<compile_context>
chip_gen: v7x
topology: tpu7x:2x2x1
jax: 0.10.0
libtpu: 0.0.40
codegen_flags: <defaults>
</compile_context>

<pallas_src>
import jax
import jax.numpy as jnp
import numpy as np
from jax.experimental import pallas as pl
from jax.experimental.pallas import tpu as pltpu

IN_DIM = 512
INNER = 2048
OUT_DIM = 512


def ffn_kernel(x_ref, w1_ref, b1_ref, w2_ref, b2_ref, o_ref):
    # x_ref : (tile_n, IN_DIM)  f32   (cast to bf16 here, on the VPU)
    # w1_ref: (IN_DIM, INNER)   bf16  (resident)   b1_ref: (1, INNER)  f32
    # w2_ref: (INNER, OUT_DIM)  bf16  (resident)   b2_ref: (1, OUT_DIM) f32
    x = x_ref[...].astype(jnp.bfloat16)
    # Linear 1 (bf16 MXU, f32 accumulate) + bias + ReLU in f32 on the VPU.
    h = jnp.dot(x, w1_ref[...], preferred_element_type=jnp.float32)
    h = jnp.maximum(h + b1_ref[...], 0.0)
    # Linear 2 (bf16 MXU, f32 accumulate) + bias.
    y = jnp.dot(h.astype(jnp.bfloat16), w2_ref[...],
                preferred_element_type=jnp.float32)
    o_ref[...] = (y + b2_ref[...]).astype(o_ref.dtype)


def _round_up(x, m):
    return ((x + m - 1) // m) * m


def _pick_tile_n(n, tile_n):
    """Row-tile size: big tiles to amortize step overhead, but keep >=2 tiles
    for moderate n so v7x's second TensorCore engages on the parallel axis."""
    n8 = _round_up(n, 8)
    t = min(tile_n, n8)
    half = _round_up(-(-n8 // 2), 8)
    if n8 >= 512 and t > half:
        t = half
    return max(t, 8)


def _resident_spec(shape, weight_buffers):
    """Constant-index (resident) block; optionally single-buffered."""
    if weight_buffers is None:
        return pl.BlockSpec(shape, lambda i: (0, 0))
    return pl.BlockSpec(shape, lambda i: (0, 0),
                        pipeline_mode=pl.Buffered(weight_buffers))


def _build_ffn(n, tile_n, weight_buffers):
    grid = (pl.cdiv(n, tile_n),)
    return pl.pallas_call(
        ffn_kernel,
        out_shape=jax.ShapeDtypeStruct((n, OUT_DIM), jnp.float32),
        grid_spec=pltpu.PrefetchScalarGridSpec(
            num_scalar_prefetch=0,
            grid=grid,
            in_specs=[
                pl.BlockSpec((tile_n, IN_DIM), lambda i: (i, 0)),  # x row tile (f32)
                _resident_spec((IN_DIM, INNER), weight_buffers),   # W1 (bf16)
                _resident_spec((1, INNER), weight_buffers),        # b1 (f32)
                _resident_spec((INNER, OUT_DIM), weight_buffers),  # W2 (bf16)
                _resident_spec((1, OUT_DIM), weight_buffers),      # b2 (f32)
            ],
            out_specs=pl.BlockSpec((tile_n, OUT_DIM), lambda i: (i, 0)),
        ),
        compiler_params=pltpu.CompilerParams(
            dimension_semantics=("parallel",),  # independent row tiles (v7x 2-TC)
            vmem_limit_bytes=48 << 20,          # < v7x 64 MiB physical VMEM
        ),
    )


def neural_network(x, w1, b1, w2, b2, *, tile_n=512):
    """Forward pass of the PyTorch NeuralNetwork module.

    x : (n, 512) float32
    w1: (512, 2048) (stored transposed so forward is x @ w1 + b1), b1: (1, 2048)
    w2: (2048, 512), b2: (1, 512)
    Weights are expected in bf16 (see make_params); biases stay f32.
    """
    n, d = x.shape
    assert d == IN_DIM
    tile_n = _pick_tile_n(n, tile_n)

    # Weights should already be stored in bf16; these are no-ops then and only a
    # fallback for f32-weight callers (which would add an extra HBM pass).
    w1_bf = w1 if w1.dtype == jnp.bfloat16 else w1.astype(jnp.bfloat16)
    w2_bf = w2 if w2.dtype == jnp.bfloat16 else w2.astype(jnp.bfloat16)
    b1_f = b1.astype(jnp.float32)
    b2_f = b2.astype(jnp.float32)

    try:
        # Single-buffer the resident weights/biases (constant index_map => never
        # re-fetched); frees ~4 MiB of VMEM, which matters on v7x (64 MiB/TC).
        return _build_ffn(n, tile_n, 1)(x, w1_bf, b1_f, w2_bf, b2_f)
    except Exception:
        # Fallback for Pallas versions without BlockSpec pipeline_mode support.
        return _build_ffn(n, tile_n, None)(x, w1_bf, b1_f, w2_bf, b2_f)


def make_params(key):
    """PyTorch nn.Linear default init U(-1/sqrt(fan_in), 1/sqrt(fan_in)).
    Weights are stored transposed and in bf16 (cast once, at rest); biases f32."""
    ks = jax.random.split(key, 4)
    u = jax.random.uniform
    b_in = 1.0 / np.sqrt(IN_DIM)
    w1 = u(ks[0], (IN_DIM, INNER), jnp.float32, -b_in, b_in).astype(jnp.bfloat16)
    b1 = u(ks[1], (1, INNER), jnp.float32, -b_in, b_in)
    b_inner = 1.0 / np.sqrt(INNER)
    w2 = u(ks[2], (INNER, OUT_DIM), jnp.float32, -b_inner, b_inner).astype(jnp.bfloat16)
    b2 = u(ks[3], (1, OUT_DIM), jnp.float32, -b_inner, b_inner)
    return w1, b1, w2, b2


def reference(x, w1, b1, w2, b2):
    """Pure-JAX f32 mirror of the PyTorch forward (weights upcast to f32)."""
    h = jnp.maximum(x @ w1.astype(jnp.float32) + b1, 0.0)
    return h @ w2.astype(jnp.float32) + b2


if __name__ == "__main__":
    key = jax.random.PRNGKey(0)
    k_params, kx = jax.random.split(key)
    n = 8  # small batch of rows
    x = jax.random.normal(kx, (n, IN_DIM), jnp.float32)
    w1, b1, w2, b2 = make_params(k_params)

    out = neural_network(x, w1, b1, w2, b2)
    jax.block_until_ready(out)

    ref = reference(x, w1, b1, w2, b2)
    # bf16 MXU operands with f32 accumulation: loose-ish tolerance.
    np.testing.assert_allclose(np.asarray(out), np.asarray(ref),
                               rtol=2e-2, atol=2e-2)
    print("KERNEL_OK")
</pallas_src>

<mosaic_0001>
module attributes {stable_mosaic.version = 11 : i64} {
  func.func @ffn_kernel(%arg0: i32, %arg1: memref<8x512xf32, #tpu.memory_space<vmem>>, %arg2: memref<512x2048xbf16, #tpu.memory_space<vmem>>, %arg3: memref<1x2048xf32, #tpu.memory_space<vmem>>, %arg4: memref<2048x512xbf16, #tpu.memory_space<vmem>>, %arg5: memref<1x512xf32, #tpu.memory_space<vmem>>, %arg6: memref<8x512xf32, #tpu.memory_space<vmem>>) attributes {dimension_semantics = [#tpu.dimension_semantics<parallel>], iteration_bounds = array<i64: 1>, scalar_prefetch = 0 : i64, scratch_operands = 0 : i64, tpu.core_type = #tpu.core_type<tc>, window_params = [{transform_indices = @transform_0, window_bounds = array<i64: 8, 512>}, {pipeline_mode = #tpu.pipeline_mode<synchronous>, transform_indices = @transform_1, window_bounds = array<i64: 512, 2048>}, {pipeline_mode = #tpu.pipeline_mode<synchronous>, transform_indices = @transform_2, window_bounds = array<i64: 1, 2048>}, {pipeline_mode = #tpu.pipeline_mode<synchronous>, transform_indices = @transform_3, window_bounds = array<i64: 2048, 512>}, {pipeline_mode = #tpu.pipeline_mode<synchronous>, transform_indices = @transform_4, window_bounds = array<i64: 1, 512>}, {transform_indices = @transform_5, window_bounds = array<i64: 8, 512>}]} {
    %c0 = arith.constant 0 : index
    %c0_0 = arith.constant 0 : index
    %0 = vector.load %arg1[%c0, %c0_0] : memref<8x512xf32, #tpu.memory_space<vmem>>, vector<8x512xf32>
    %1 = arith.truncf %0 : vector<8x512xf32> to vector<8x512xbf16>
    %c0_1 = arith.constant 0 : index
    %c0_2 = arith.constant 0 : index
    %2 = vector.load %arg2[%c0_1, %c0_2] : memref<512x2048xbf16, #tpu.memory_space<vmem>>, vector<512x2048xbf16>
    %cst = arith.constant dense<0.000000e+00> : vector<8x2048xf32>
    %3 = tpu.matmul %1, %2, %cst {dimension_numbers = #tpu.dot_dimension_numbers<[1], [0], [0], [1], [0, 0, 1, 1], [], []>} : vector<8x512xbf16>, vector<512x2048xbf16>, vector<8x2048xf32> -> vector<8x2048xf32>
    %c0_3 = arith.constant 0 : index
    %c0_4 = arith.constant 0 : index
    %4 = vector.load %arg3[%c0_3, %c0_4] : memref<1x2048xf32, #tpu.memory_space<vmem>>, vector<1x2048xf32>
    %5 = vector.broadcast %4 : vector<1x2048xf32> to vector<8x2048xf32>
    %6 = arith.addf %3, %5 : vector<8x2048xf32>
    %cst_5 = arith.constant 0.000000e+00 : f32
    %7 = vector.broadcast %cst_5 : f32 to vector<8x2048xf32>
    %8 = arith.maximumf %6, %7 : vector<8x2048xf32>
    %9 = arith.truncf %8 : vector<8x2048xf32> to vector<8x2048xbf16>
    %c0_6 = arith.constant 0 : index
    %c0_7 = arith.constant 0 : index
    %10 = vector.load %arg4[%c0_6, %c0_7] : memref<2048x512xbf16, #tpu.memory_space<vmem>>, vector<2048x512xbf16>
    %cst_8 = arith.constant dense<0.000000e+00> : vector<8x512xf32>
    %11 = tpu.matmul %9, %10, %cst_8 {dimension_numbers = #tpu.dot_dimension_numbers<[1], [0], [0], [1], [0, 0, 1, 1], [], []>} : vector<8x2048xbf16>, vector<2048x512xbf16>, vector<8x512xf32> -> vector<8x512xf32>
    %c0_9 = arith.constant 0 : index
    %c0_10 = arith.constant 0 : index
    %12 = vector.load %arg5[%c0_9, %c0_10] : memref<1x512xf32, #tpu.memory_space<vmem>>, vector<1x512xf32>
    %13 = vector.broadcast %12 : vector<1x512xf32> to vector<8x512xf32>
    %14 = arith.addf %11, %13 : vector<8x512xf32>
    %c0_11 = arith.constant 0 : index
    %c0_12 = arith.constant 0 : index
    %15 = vector.load %arg6[%c0_11, %c0_12] : memref<8x512xf32, #tpu.memory_space<vmem>>, vector<8x512xf32>
    tpu.vector_store %arg6[%c0_11, %c0_12], %14 {strides = array<i32>} : memref<8x512xf32, #tpu.memory_space<vmem>>, vector<8x512xf32>,
    return
  }
  func.func @transform_0(%arg0: i32) -> (i32, i32) {
    %c0_i32 = arith.constant 0 : i32
    %c0_i32_0 = arith.constant 0 : i32
    return %arg0, %c0_i32 : i32, i32
  }
  func.func @transform_1(%arg0: i32) -> (i32, i32) {
    %c0_i32 = arith.constant 0 : i32
    %c0_i32_0 = arith.constant 0 : i32
    %c0_i32_1 = arith.constant 0 : i32
    return %c0_i32, %c0_i32_0 : i32, i32
  }
  func.func @transform_2(%arg0: i32) -> (i32, i32) {
    %c0_i32 = arith.constant 0 : i32
    %c0_i32_0 = arith.constant 0 : i32
    %c0_i32_1 = arith.constant 0 : i32
    return %c0_i32, %c0_i32_0 : i32, i32
  }
  func.func @transform_3(%arg0: i32) -> (i32, i32) {
    %c0_i32 = arith.constant 0 : i32
    %c0_i32_0 = arith.constant 0 : i32
    %c0_i32_1 = arith.constant 0 : i32
    return %c0_i32, %c0_i32_0 : i32, i32
  }
  func.func @transform_4(%arg0: i32) -> (i32, i32) {
    %c0_i32 = arith.constant 0 : i32
    %c0_i32_0 = arith.constant 0 : i32
    %c0_i32_1 = arith.constant 0 : i32
    return %c0_i32, %c0_i32_0 : i32, i32
  }
  func.func @transform_5(%arg0: i32) -> (i32, i32) {
    %c0_i32 = arith.constant 0 : i32
    %c0_i32_0 = arith.constant 0 : i32
    return %arg0, %c0_i32 : i32, i32
  }
}

module attributes {stable_mosaic.version = 11 : i64} {
  func.func @ffn_kernel(%arg0: i32, %arg1: memref<8x512xf32, #tpu.memory_space<vmem>>, %arg2: memref<512x2048xbf16, #tpu.memory_space<vmem>>, %arg3: memref<1x2048xf32, #tpu.memory_space<vmem>>, %arg4: memref<2048x512xbf16, #tpu.memory_space<vmem>>, %arg5: memref<1x512xf32, #tpu.memory_space<vmem>>, %arg6: memref<8x512xf32, #tpu.memory_space<vmem>>) attributes {dimension_semantics = [#tpu.dimension_semantics<parallel>], iteration_bounds = array<i64: 1>, scalar_prefetch = 0 : i64, scratch_operands = 0 : i64, tpu.core_type = #tpu.core_type<tc>, window_params = [{transform_indices = @transform_0, window_bounds = array<i64: 8, 512>}, {pipeline_mode = #tpu.pipeline_mode<synchronous>, transform_indices = @transform_1, window_bounds = array<i64: 512, 2048>}, {pipeline_mode = #tpu.pipeline_mode<synchronous>, transform_indices = @transform_2, window_bounds = array<i64: 1, 2048>}, {pipeline_mode = #tpu.pipeline_mode<synchronous>, transform_indices = @transform_3, window_bounds = array<i64: 2048, 512>}, {pipeline_mode = #tpu.pipeline_mode<synchronous>, transform_indices = @transform_4, window_bounds = array<i64: 1, 512>}, {transform_indices = @transform_5, window_bounds = array<i64: 8, 512>}]} {
    %c0 = arith.constant 0 : index
    %c0_0 = arith.constant 0 : index
    %0 = vector.load %arg1[%c0, %c0_0] : memref<8x512xf32, #tpu.memory_space<vmem>>, vector<8x512xf32>
    %1 = arith.truncf %0 : vector<8x512xf32> to vector<8x512xbf16>
    %c0_1 = arith.constant 0 : index
    %c0_2 = arith.constant 0 : index
    %2 = vector.load %arg2[%c0_1, %c0_2] : memref<512x2048xbf16, #tpu.memory_space<vmem>>, vector<512x2048xbf16>
    %cst = arith.constant dense<0.000000e+00> : vector<8x2048xf32>
    %3 = tpu.matmul %1, %2, %cst {dimension_numbers = #tpu.dot_dimension_numbers<[1], [0], [0], [1], [0, 0, 1, 1], [], []>} : vector<8x512xbf16>, vector<512x2048xbf16>, vector<8x2048xf32> -> vector<8x2048xf32>
    %c0_3 = arith.constant 0 : index
    %c0_4 = arith.constant 0 : index
    %4 = vector.load %arg3[%c0_3, %c0_4] : memref<1x2048xf32, #tpu.memory_space<vmem>>, vector<1x2048xf32>
    %5 = vector.broadcast %4 : vector<1x2048xf32> to vector<8x2048xf32>
    %6 = arith.addf %3, %5 : vector<8x2048xf32>
    %cst_5 = arith.constant 0.000000e+00 : f32
    %7 = vector.broadcast %cst_5 : f32 to vector<8x2048xf32>
    %8 = arith.maximumf %6, %7 : vector<8x2048xf32>
    %9 = arith.truncf %8 : vector<8x2048xf32> to vector<8x2048xbf16>
    %c0_6 = arith.constant 0 : index
    %c0_7 = arith.constant 0 : index
    %10 = vector.load %arg4[%c0_6, %c0_7] : memref<2048x512xbf16, #tpu.memory_space<vmem>>, vector<2048x512xbf16>
    %cst_8 = arith.constant dense<0.000000e+00> : vector<8x512xf32>
    %11 = tpu.matmul %9, %10, %cst_8 {dimension_numbers = #tpu.dot_dimension_numbers<[1], [0], [0], [1], [0, 0, 1, 1], [], []>} : vector<8x2048xbf16>, vector<2048x512xbf16>, vector<8x512xf32> -> vector<8x512xf32>
    %c0_9 = arith.constant 0 : index
    %c0_10 = arith.constant 0 : index
    %12 = vector.load %arg5[%c0_9, %c0_10] : memref<1x512xf32, #tpu.memory_space<vmem>>, vector<1x512xf32>
    %13 = vector.broadcast %12 : vector<1x512xf32> to vector<8x512xf32>
    %14 = arith.addf %11, %13 : vector<8x512xf32>
    %c0_11 = arith.constant 0 : index
    %c0_12 = arith.constant 0 : index
    %15 = vector.load %arg6[%c0_11, %c0_12] : memref<8x512xf32, #tpu.memory_space<vmem>>, vector<8x512xf32>
    tpu.vector_store %arg6[%c0_11, %c0_12], %14 {strides = array<i32>} : memref<8x512xf32, #tpu.memory_space<vmem>>, vector<8x512xf32>,
    return
  }
  func.func @transform_0(%arg0: i32) -> (i32, i32) {
    %c0_i32 = arith.constant 0 : i32
    %c0_i32_0 = arith.constant 0 : i32
    return %arg0, %c0_i32 : i32, i32
  }
  func.func @transform_1(%arg0: i32) -> (i32, i32) {
    %c0_i32 = arith.constant 0 : i32
    %c0_i32_0 = arith.constant 0 : i32
    %c0_i32_1 = arith.constant 0 : i32
    return %c0_i32, %c0_i32_0 : i32, i32
  }
  func.func @transform_2(%arg0: i32) -> (i32, i32) {
    %c0_i32 = arith.constant 0 : i32
    %c0_i32_0 = arith.constant 0 : i32
    %c0_i32_1 = arith.constant 0 : i32
    return %c0_i32, %c0_i32_0 : i32, i32
  }
  func.func @transform_3(%arg0: i32) -> (i32, i32) {
    %c0_i32 = arith.constant 0 : i32
    %c0_i32_0 = arith.constant 0 : i32
    %c0_i32_1 = arith.constant 0 : i32
    return %c0_i32, %c0_i32_0 : i32, i32
  }
  func.func @transform_4(%arg0: i32) -> (i32, i32) {
    %c0_i32 = arith.constant 0 : i32
    %c0_i32_0 = arith.constant 0 : i32
    %c0_i32_1 = arith.constant 0 : i32
    return %c0_i32, %c0_i32_0 : i32, i32
  }
  func.func @transform_5(%arg0: i32) -> (i32, i32) {
    %c0_i32 = arith.constant 0 : i32
    %c0_i32_0 = arith.constant 0 : i32
    return %arg0, %c0_i32 : i32, i32
  }
}

</mosaic_0001>

<bundles_post_ra>
// kernel: tpu_custom_call.1
= control target key start
LH: loop header
LB: loop body
LE: loop exit
PB: predicated region body
PF: predicated region fallthrough
CT: control target
= control target key end

     0   :  { %10 = vsyncpa [#allocation3], 0  ;;  %s10022_s0 = inlined_call_operand.hbm [shape: f32[8,512], index: 0, kind: input, shape index: {}]   ;;  %s10023_s1 = inlined_call_operand.hbm [shape: bf16[512,2048], index: 1, kind: input, shape index: {}]   ;;  %s10024_s2 = inlined_call_operand.hbm [shape: f32[1,2048], index: 2, kind: input, shape index: {}]   ;;  %s10025_s3 = inlined_call_operand.hbm [shape: bf16[2048,512], index: 3, kind: input, shape index: {}]   ;;  %s10026_s4 = inlined_call_operand.hbm [shape: f32[1,512], index: 4, kind: input, shape index: {}]   ;;  %s10027_s5 = inlined_call_operand.hbm [shape: f32[8,512], index: 5, kind: output, shape index: {}]  }
   0x1   :  { %11 = vsyncpa [#allocation6], 0 }
   0x2   :  { %12 = vsyncpa [#allocation9], 0 }
   0x3   :  { %13 = vsyncpa [#allocation4], 0  ;;  %s9758_s18 = smov [#allocation5]   ;;  %s9618_s22 = scalar_lea.hbm %s10023_s1, 65536 }
   0x4   :  { %s29_s19 = sshll.u32 %s9758_s18, 4  ;;  %p9619_p0 = scmp.ne.s32.totalorder %s10023_s1, %s9618_s22  ;;  %s30_s19 = int_to_ptr.vmem [resolvable:$true] %s29_s19 }
   0x5   :  { %p9622_p1 = scmp.lt.u32.totalorder %s9618_s22, %s10023_s1 }
   0x7   :  { %p9624_p2 = pnand %p9622_p1, %p9619_p0 }
   0x9   :  { %9627 = shalt.err (!%p9624_p2)
}
   0xa   :  { %s9628_s27 = scalar_lea.vmem %s30_s19, 65536  ;;  %p9633_p4 = scmp.lt.s32.totalorder %s30_s19, %s30_s19 }
   0xb   :  { %p9629_p3 = scmp.ne.s32.totalorder %s30_s19, %s9628_s27  ;;  %p9634_p5 = scmp.lt.s32.totalorder %s9628_s27, %s9628_s27 }
   0xd   :  { %p9635_p6 = por %p9634_p5, %p9633_p4 }
   0xf   :  { %p9636_p7 = pnand %p9635_p6, %p9629_p3 }
  0x11   :  { %9639 = shalt.err (!%p9636_p7)
}
  0x12   :  { %s9759_s28 = smov 1024   ;;  %s9760_s29 = smov 64  }
  0x13   :  { %35 = dma.hbm_to_vmem [thread:$0]  %s10023_s1, 65536, %s30_s19, [#allocation6], %s9759_s28, %s9759_s28, %s9760_s29  }
  0x14   :  { %s9761_s7 = smov [#allocation8]   ;;  %s9640_s11 = scalar_lea.hbm %s10025_s3, 65536 }
  0x15   :  { %s51_s8 = sshll.u32 %s9761_s7, 4  ;;  %p9641_p8 = scmp.ne.s32.totalorder %s10025_s3, %s9640_s11  ;;  %s52_s8 = int_to_ptr.vmem [resolvable:$true] %s51_s8 }
  0x16   :  { %p9644_p9 = scmp.lt.u32.totalorder %s9640_s11, %s10025_s3 }
  0x18   :  { %p9646_p10 = pnand %p9644_p9, %p9641_p8 }
  0x1a   :  { %9649 = shalt.err (!%p9646_p10)
}
  0x1b   :  { %s9650_s16 = scalar_lea.vmem %s52_s8, 65536  ;;  %p9655_p12 = scmp.lt.s32.totalorder %s52_s8, %s52_s8 }
  0x1c   :  { %p9651_p11 = scmp.ne.s32.totalorder %s52_s8, %s9650_s16  ;;  %p9656_p13 = scmp.lt.s32.totalorder %s9650_s16, %s9650_s16 }
  0x1e   :  { %p9657_p0 = por %p9656_p13, %p9655_p12 }
  0x20   :  { %p9658_p1 = pnand %p9657_p0, %p9651_p11 }
  0x22   :  { %9661 = shalt.err (!%p9658_p1)
}
  0x23   :  { %s9762_s1 = smov 256   ;;  %s9763_s17 = smov 16  }
  0x24   :  { %57 = dma.hbm_to_vmem [thread:$0]  %s10025_s3, 65536, %s52_s8, [#allocation9], %s9762_s1, %s9762_s1, %s9763_s17  }
  0x25   :  { %s9764_s20 = smov [#allocation2]   ;;  %s9765_s22 = smov [#allocation7]  }
  0x26   :  { %s20_s21 = sshll.u32 %s9764_s20, 4  ;;  %s42_s23 = sshll.u32 %s9765_s22, 4  ;;  %s21_s21 = int_to_ptr.vmem [resolvable:$true] %s20_s21  ;;  %s43_s23 = int_to_ptr.vmem [resolvable:$true] %s42_s23 }
  0x27   :  { %s9662_s26 = scalar_lea.hbm %s10022_s0, 512 }
  0x28   :  { %p9663_p2 = scmp.ne.s32.totalorder %s10022_s0, %s9662_s26  ;;  %p9666_p3 = scmp.lt.u32.totalorder %s9662_s26, %s10022_s0 }
  0x2a   :  { %p9668_p4 = pnand %p9666_p3, %p9663_p2 }
  0x2c   :  { %9671 = shalt.err (!%p9668_p4)
}
  0x2d   :  { %s9672_s3 = scalar_lea.vmem %s21_s21, 512  ;;  %p9677_p6 = scmp.lt.s32.totalorder %s21_s21, %s21_s21 }
  0x2e   :  { %p9673_p5 = scmp.ne.s32.totalorder %s21_s21, %s9672_s3  ;;  %p9678_p7 = scmp.lt.s32.totalorder %s9672_s3, %s9672_s3 }
  0x30   :  { %p9679_p8 = por %p9678_p7, %p9677_p6 }
  0x32   :  { %p9680_p9 = pnand %p9679_p8, %p9673_p5 }
  0x34   :  { %9683 = shalt.err (!%p9680_p9)
}
  0x35   :  { %23 = dma.hbm_to_vmem [thread:$0]  %s10022_s0, 512, %s21_s21, [#allocation3]  }
  0x36   :  { %s9684_s10 = scalar_lea.hbm %s10024_s2, 256 }
  0x37   :  { %p9685_p10 = scmp.ne.s32.totalorder %s10024_s2, %s9684_s10  ;;  %p9688_p11 = scmp.lt.u32.totalorder %s9684_s10, %s10024_s2 }
  0x39   :  { %p9690_p12 = pnand %p9688_p11, %p9685_p10 }
  0x3b   :  { %9693 = shalt.err (!%p9690_p12)
}
  0x3c   :  { %s9694_s15 = scalar_lea.vmem %s43_s23, 256  ;;  %p9699_p0 = scmp.lt.s32.totalorder %s43_s23, %s43_s23 }
  0x3d   :  { %p9695_p13 = scmp.ne.s32.totalorder %s43_s23, %s9694_s15  ;;  %p9700_p1 = scmp.lt.s32.totalorder %s9694_s15, %s9694_s15 }
  0x3f   :  { %p9701_p2 = por %p9700_p1, %p9699_p0 }
  0x41   :  { %p9702_p3 = pnand %p9701_p2, %p9695_p13 }
  0x43   :  { %9705 = shalt.err (!%p9702_p3)
}
  0x44   :  { %45 = dma.hbm_to_vmem [thread:$0]  %s10024_s2, 256, %s43_s23, [#allocation6]  }
  0x45   :  { %s9766_s1 = smov [#allocation10]   ;;  %s9706_s20 = scalar_lea.hbm %s10026_s4, 64 }
  0x46   :  { %s64_s17 = sshll.u32 %s9766_s1, 4  ;;  %p9707_p4 = scmp.ne.s32.totalorder %s10026_s4, %s9706_s20  ;;  %s65_s17 = int_to_ptr.vmem [resolvable:$true] %s64_s17 }
  0x47   :  { %p9710_p5 = scmp.lt.u32.totalorder %s9706_s20, %s10026_s4 }
  0x49   :  { %p9712_p6 = pnand %p9710_p5, %p9707_p4 }
  0x4b   :  { %9715 = shalt.err (!%p9712_p6)
}
  0x4c   :  { %s9716_s26 = scalar_lea.vmem %s65_s17, 64  ;;  %p9721_p8 = scmp.lt.s32.totalorder %s65_s17, %s65_s17 }
  0x4d   :  { %p9717_p7 = scmp.ne.s32.totalorder %s65_s17, %s9716_s26  ;;  %p9722_p9 = scmp.lt.s32.totalorder %s9716_s26, %s9716_s26 }
  0x4f   :  { %p9723_p10 = por %p9722_p9, %p9721_p8 }
  0x51   :  { %p9724_p11 = pnand %p9723_p10, %p9717_p7 }
  0x53   :  { %9727 = shalt.err (!%p9724_p11)
}
  0x54   :  { %67 = dma.hbm_to_vmem [thread:$0]  %s10026_s4, 64, %s65_s17, [#allocation9]  }
  0x55   :  { %9750 = dma.done.wait [#allocation3], 512  }
  0x56   :  { %9751 = vsyncadd [#allocation3], 4294966784 }
  0x57   :  { %9752 = dma.done.wait [#allocation6], 65792  }
  0x58   :  { %9753 = vsyncadd [#allocation6], 4294901504 }
  0x59   :  { %9754 = dma.done.wait [#allocation9], 65600  }
  0x5a   :  { %9755 = vsyncadd [#allocation9], 4294901696  ;;  %v91_v0 = vld [vmem:[#allocation5] sm:$0xff]  ;;  %v92_v2 = vld [vmem:[#allocation5 + $0x8] sm:$0xff]  ;;  %s9767_s4 = smov [#allocation11]  }
  0x5b   :  { %v99_v1 = vld [vmem:[#allocation5 + $0x40] sm:$0xff]  ;;  %v100_v4 = vld [vmem:[#allocation5 + $0x48] sm:$0xff]  ;;  %s7695_s27 = sshll.u32 %s9767_s4, 4  ;;  %s7696_s27 = int_to_ptr.vmem [resolvable:$true] %s7695_s27 }
  0x5c   :  { %v7707_v3 = vcombine.high %v91_v0, %v99_v1  ;;  %v7706_v5 = vcombine.low %v91_v0, %v99_v1  ;;  %v107_v6 = vld [vmem:[#allocation5 + $0x80] sm:$0xff]  ;;  %v7709_v8 = vcombine.high %v92_v2, %v100_v4  ;;  %v7708_v9 = vcombine.low %v92_v2, %v100_v4  ;;  %v108_v11 = vld [vmem:[#allocation5 + $0x88] sm:$0xff]  ;;  %s9728_s28 = scalar_lea.vmem %s7696_s27, 512  ;;  %p9733_p13 = scmp.lt.s32.totalorder %s7696_s27, %s7696_s27 }
  0x5d   :  { %v115_v7 = vld [vmem:[#allocation5 + $0xc0] sm:$0xff]  ;;  %v116_v12 = vld [vmem:[#allocation5 + $0xc8] sm:$0xff]  ;;  %p9729_p12 = scmp.ne.s32.totalorder %s7696_s27, %s9728_s28  ;;  %p9734_p0 = scmp.lt.s32.totalorder %s9728_s28, %s9728_s28 }
  0x5e   :  { %v7723_v10 = vcombine.high %v107_v6, %v115_v7  ;;  %v123_v13 = vld [vmem:[#allocation5 + $0x100] sm:$0xff]  ;;  %3247 = vmatprep.subr.bf16.mxu0 %v7707_v3  ;;  %v7725_v14 = vcombine.high %v108_v11, %v116_v12  ;;  %v124_v16 = vld [vmem:[#allocation5 + $0x108] sm:$0xff]  ;;  %3329 = vmatprep.subr.bf16.mxu1 %v7709_v8  ;;  %v7722_v18 = vcombine.low %v107_v6, %v115_v7 }
  0x5f   :  { %v131_v15 = vld [vmem:[#allocation5 + $0x140] sm:$0xff]  ;;  %v132_v17 = vld [vmem:[#allocation5 + $0x148] sm:$0xff]  ;;  %3248 = vmatpush1.bf16.msra.mxu0 %v7706_v5  ;;  %3330 = vmatpush1.bf16.msra.mxu1 %v7708_v9  ;;  %v7724_v19 = vcombine.low %v108_v11, %v116_v12  ;;  %p9735_p1 = por %p9734_p0, %p9733_p13 }
  0x60   :  { %3249 = vmatprep.subr.bf16.mxu0 %v7723_v10  ;;  %v7739_v20 = vcombine.high %v123_v13, %v131_v15  ;;  %3331 = vmatprep.subr.bf16.mxu1 %v7725_v14  ;;  %v7741_v21 = vcombine.high %v124_v16, %v132_v17  ;;  %v139_v22 = vld [vmem:[#allocation5 + $0x180] sm:$0xff]  ;;  %v140_v24 = vld [vmem:[#allocation5 + $0x188] sm:$0xff]  ;;  %v7738_v26 = vcombine.low %v123_v13, %v131_v15 }
  0x61   :  { %v147_v23 = vld [vmem:[#allocation5 + $0x1c0] sm:$0xff]  ;;  %v148_v25 = vld [vmem:[#allocation5 + $0x1c8] sm:$0xff]  ;;  %v7740_v27 = vcombine.low %v124_v16, %v132_v17  ;;  %p9736_p2 = pnand %p9735_p1, %p9729_p12 }
  0x62   :  { %v7755_v28 = vcombine.high %v139_v22, %v147_v23  ;;  %v7757_v29 = vcombine.high %v140_v24, %v148_v25  ;;  %v155_v30 = vld [vmem:[#allocation5 + $0x200] sm:$0xff]  ;;  %v156_v32 = vld [vmem:[#allocation5 + $0x208] sm:$0xff]  ;;  %v7754_v34 = vcombine.low %v139_v22, %v147_v23  ;;  %v7756_v35 = vcombine.low %v140_v24, %v148_v25 }
  0x63   :  { %3250 = vmatpush1.bf16.msra.mxu0 %v7722_v18  ;;  %3332 = vmatpush1.bf16.msra.mxu1 %v7724_v19  ;;  %v163_v31 = vld [vmem:[#allocation5 + $0x240] sm:$0xff]  ;;  %v164_v33 = vld [vmem:[#allocation5 + $0x248] sm:$0xff] }
  0x64   :  { %3251 = vmatprep.subr.bf16.mxu0 %v7739_v20  ;;  %3333 = vmatprep.subr.bf16.mxu1 %v7741_v21  ;;  %v7771_v36 = vcombine.high %v155_v30, %v163_v31  ;;  %v7773_v37 = vcombine.high %v156_v32, %v164_v33  ;;  %v171_v38 = vld [vmem:[#allocation5 + $0x280] sm:$0xff]  ;;  %v172_v40 = vld [vmem:[#allocation5 + $0x288] sm:$0xff]  ;;  %v7770_v42 = vcombine.low %v155_v30, %v163_v31 }
  0x65   :  { %v179_v39 = vld [vmem:[#allocation5 + $0x2c0] sm:$0xff]  ;;  %v180_v41 = vld [vmem:[#allocation5 + $0x2c8] sm:$0xff]  ;;  %v7772_v43 = vcombine.low %v156_v32, %v164_v33 }
  0x66   :  { %v7787_v44 = vcombine.high %v171_v38, %v179_v39  ;;  %v7789_v45 = vcombine.high %v172_v40, %v180_v41  ;;  %v187_v46 = vld [vmem:[#allocation5 + $0x300] sm:$0xff]  ;;  %v188_v48 = vld [vmem:[#allocation5 + $0x308] sm:$0xff]  ;;  %v7786_v50 = vcombine.low %v171_v38, %v179_v39  ;;  %v7788_v51 = vcombine.low %v172_v40, %v180_v41 }
  0x67   :  { %3252 = vmatpush1.bf16.msra.mxu0 %v7738_v26  ;;  %3334 = vmatpush1.bf16.msra.mxu1 %v7740_v27  ;;  %v195_v47 = vld [vmem:[#allocation5 + $0x340] sm:$0xff]  ;;  %v196_v49 = vld [vmem:[#allocation5 + $0x348] sm:$0xff] }
  0x68   :  { %3253 = vmatprep.subr.bf16.mxu0 %v7755_v28  ;;  %3335 = vmatprep.subr.bf16.mxu1 %v7757_v29  ;;  %v7803_v52 = vcombine.high %v187_v46, %v195_v47  ;;  %v84_v53 = vld [vmem:[#allocation2 + $0x8] sm:$0xff]  ;;  %v7805_v54 = vcombine.high %v188_v48, %v196_v49  ;;  %v203_v55 = vld [vmem:[#allocation5 + $0x380] sm:$0xff]  ;;  %v7802_v60 = vcombine.low %v187_v46, %v195_v47 }
  0x69   :  { %v211_v56 = vld [vmem:[#allocation5 + $0x3c0] sm:$0xff]  ;;  %v9858_v57 = vpack.c.bf16 %v84_v53, %v84_v53  ;;  %v204_v58 = vld [vmem:[#allocation5 + $0x388] sm:$0xff]  ;;  %v7804_v61 = vcombine.low %v188_v48, %v196_v49 }
  0x6a   :  { %v212_v59 = vld [vmem:[#allocation5 + $0x3c8] sm:$0xff]  ;;  %v7819_v62 = vcombine.high %v203_v55, %v211_v56  ;;  %v219_v0 = vld [vmem:[#allocation5 + $0x400] sm:$0xff]  ;;  %v7818_v4 = vcombine.low %v203_v55, %v211_v56 }
  0x6b   :  { %3254 = vmatpush1.bf16.msra.mxu0 %v7754_v34  ;;  %3336 = vmatpush1.bf16.msra.mxu1 %v7756_v35  ;;  %v7821_v63 = vcombine.high %v204_v58, %v212_v59  ;;  %v227_v1 = vld [vmem:[#allocation5 + $0x440] sm:$0xff]  ;;  %v220_v2 = vld [vmem:[#allocation5 + $0x408] sm:$0xff]  ;;  %v7820_v5 = vcombine.low %v204_v58, %v212_v59 }
  0x6c   :  { %3255 = vmatprep.subr.bf16.mxu0 %v7771_v36  ;;  %3337 = vmatprep.subr.bf16.mxu1 %v7773_v37  ;;  %v228_v3 = vld [vmem:[#allocation5 + $0x448] sm:$0xff]  ;;  %v7835_v6 = vcombine.high %v219_v0, %v227_v1  ;;  %v235_v8 = vld [vmem:[#allocation5 + $0x480] sm:$0xff]  ;;  %v7834_v12 = vcombine.low %v219_v0, %v227_v1 }
  0x6d   :  { %3279 = vmatprep.mubr.bf16.mxu0 %v9858_v57  ;;  %3361 = vmatprep.mubr.bf16.mxu1 %v9858_v57  ;;  %v7837_v7 = vcombine.high %v220_v2, %v228_v3  ;;  %v243_v9 = vld [vmem:[#allocation5 + $0x4c0] sm:$0xff]  ;;  %v236_v10 = vld [vmem:[#allocation5 + $0x488] sm:$0xff]  ;;  %v7836_v13 = vcombine.low %v220_v2, %v228_v3 }
  0x6e   :  { %v244_v11 = vld [vmem:[#allocation5 + $0x4c8] sm:$0xff]  ;;  %v7851_v14 = vcombine.high %v235_v8, %v243_v9  ;;  %v251_v16 = vld [vmem:[#allocation5 + $0x500] sm:$0xff]  ;;  %v7850_v20 = vcombine.low %v235_v8, %v243_v9 }
  0x6f   :  { %3256 = vmatpush1.bf16.msra.mxu0 %v7770_v42  ;;  %3338 = vmatpush1.bf16.msra.mxu1 %v7772_v43  ;;  %v7853_v15 = vcombine.high %v236_v10, %v244_v11  ;;  %v259_v17 = vld [vmem:[#allocation5 + $0x540] sm:$0xff]  ;;  %v252_v18 = vld [vmem:[#allocation5 + $0x508] sm:$0xff]  ;;  %v7852_v21 = vcombine.low %v236_v10, %v244_v11 }
  0x70   :  { %3257 = vmatprep.subr.bf16.mxu0 %v7787_v44  ;;  %3339 = vmatprep.subr.bf16.mxu1 %v7789_v45  ;;  %v260_v19 = vld [vmem:[#allocation5 + $0x548] sm:$0xff]  ;;  %v7867_v22 = vcombine.high %v251_v16, %v259_v17  ;;  %v267_v24 = vld [vmem:[#allocation5 + $0x580] sm:$0xff]  ;;  %v7866_v28 = vcombine.low %v251_v16, %v259_v17 }
  0x71   :  { %v7869_v23 = vcombine.high %v252_v18, %v260_v19  ;;  %v275_v25 = vld [vmem:[#allocation5 + $0x5c0] sm:$0xff]  ;;  %v268_v26 = vld [vmem:[#allocation5 + $0x588] sm:$0xff]  ;;  %v7868_v29 = vcombine.low %v252_v18, %v260_v19 }
  0x72   :  { %v276_v27 = vld [vmem:[#allocation5 + $0x5c8] sm:$0xff]  ;;  %v7883_v30 = vcombine.high %v267_v24, %v275_v25  ;;  %v283_v32 = vld [vmem:[#allocation5 + $0x600] sm:$0xff]  ;;  %v7882_v36 = vcombine.low %v267_v24, %v275_v25 }
  0x73   :  { %3258 = vmatpush1.bf16.msra.mxu0 %v7786_v50  ;;  %3340 = vmatpush1.bf16.msra.mxu1 %v7788_v51  ;;  %v7885_v31 = vcombine.high %v268_v26, %v276_v27  ;;  %v291_v33 = vld [vmem:[#allocation5 + $0x640] sm:$0xff]  ;;  %v284_v34 = vld [vmem:[#allocation5 + $0x608] sm:$0xff]  ;;  %v7884_v37 = vcombine.low %v268_v26, %v276_v27 }
  0x74   :  { %3259 = vmatprep.subr.bf16.mxu0 %v7803_v52  ;;  %3341 = vmatprep.subr.bf16.mxu1 %v7805_v54  ;;  %v292_v35 = vld [vmem:[#allocation5 + $0x648] sm:$0xff]  ;;  %v7899_v38 = vcombine.high %v283_v32, %v291_v33  ;;  %v299_v40 = vld [vmem:[#allocation5 + $0x680] sm:$0xff]  ;;  %v7898_v44 = vcombine.low %v283_v32, %v291_v33 }
  0x75   :  { %v7901_v39 = vcombine.high %v284_v34, %v292_v35  ;;  %v307_v41 = vld [vmem:[#allocation5 + $0x6c0] sm:$0xff]  ;;  %v300_v42 = vld [vmem:[#allocation5 + $0x688] sm:$0xff]  ;;  %v7900_v45 = vcombine.low %v284_v34, %v292_v35 }
  0x76   :  { %v308_v43 = vld [vmem:[#allocation5 + $0x6c8] sm:$0xff]  ;;  %v7915_v46 = vcombine.high %v299_v40, %v307_v41  ;;  %v315_v48 = vld [vmem:[#allocation5 + $0x700] sm:$0xff]  ;;  %v7914_v52 = vcombine.low %v299_v40, %v307_v41 }
  0x77   :  { %3260 = vmatpush1.bf16.msra.mxu0 %v7802_v60  ;;  %3342 = vmatpush1.bf16.msra.mxu1 %v7804_v61  ;;  %v7917_v47 = vcombine.high %v300_v42, %v308_v43  ;;  %v323_v49 = vld [vmem:[#allocation5 + $0x740] sm:$0xff]  ;;  %v316_v50 = vld [vmem:[#allocation5 + $0x708] sm:$0xff]  ;;  %v7916_v53 = vcombine.low %v300_v42, %v308_v43 }
  0x78   :  { %3261 = vmatprep.subr.bf16.mxu0 %v7819_v62  ;;  %3343 = vmatprep.subr.bf16.mxu1 %v7821_v63  ;;  %v324_v51 = vld [vmem:[#allocation5 + $0x748] sm:$0xff]  ;;  %v7931_v54 = vcombine.high %v315_v48, %v323_v49  ;;  %v331_v56 = vld [vmem:[#allocation5 + $0x780] sm:$0xff]  ;;  %v7930_v61 = vcombine.low %v315_v48, %v323_v49 }
  0x79   :  { %v7933_v55 = vcombine.high %v316_v50, %v324_v51  ;;  %v339_v58 = vld [vmem:[#allocation5 + $0x7c0] sm:$0xff]  ;;  %v332_v59 = vld [vmem:[#allocation5 + $0x788] sm:$0xff]  ;;  %v7932_v62 = vcombine.low %v316_v50, %v324_v51 }
  0x7a   :  { %v340_v60 = vld [vmem:[#allocation5 + $0x7c8] sm:$0xff]  ;;  %v7947_v63 = vcombine.high %v331_v56, %v339_v58  ;;  %v347_v1 = vld [vmem:[#allocation5 + $0x800] sm:$0xff] }
  0x7b   :  { %3262 = vmatpush1.bf16.msra.mxu0 %v7818_v4  ;;  %3344 = vmatpush1.bf16.msra.mxu1 %v7820_v5  ;;  %v7949_v0 = vcombine.high %v332_v59, %v340_v60  ;;  %v355_v2 = vld [vmem:[#allocation5 + $0x840] sm:$0xff]  ;;  %v348_v3 = vld [vmem:[#allocation5 + $0x808] sm:$0xff]  ;;  %v7946_v5 = vcombine.low %v331_v56, %v339_v58 }
  0x7c   :  { %3263 = vmatprep.subr.bf16.mxu0 %v7835_v6  ;;  %3345 = vmatprep.subr.bf16.mxu1 %v7837_v7  ;;  %v356_v4 = vld [vmem:[#allocation5 + $0x848] sm:$0xff]  ;;  %v83_v6 = vld [vmem:[#allocation2] sm:$0xff]  ;;  %v7948_v7 = vcombine.low %v332_v59, %v340_v60  ;;  %v7963_v8 = vcombine.high %v347_v1, %v355_v2  ;;  %v7962_v16 = vcombine.low %v347_v1, %v355_v2 }
  0x7d   :  { %v7965_v9 = vcombine.high %v348_v3, %v356_v4  ;;  %v363_v10 = vld [vmem:[#allocation5 + $0x880] sm:$0xff]  ;;  %v7964_v17 = vcombine.low %v348_v3, %v356_v4  ;;  %v404_v32 = vld [vmem:[#allocation5 + $0x9c8] sm:$0xff] }
  0x7e   :  { %v371_v11 = vld [vmem:[#allocation5 + $0x8c0] sm:$0xff]  ;;  %v420_v40 = vld [vmem:[#allocation5 + $0xa48] sm:$0xff] }
  0x7f   :  { %3264 = vmatpush1.bf16.msra.mxu0 %v7834_v12  ;;  %3346 = vmatpush1.bf16.msra.mxu1 %v7836_v13  ;;  %v9862_v12 = vpack.c.bf16 %v83_v6, %v83_v6  ;;  %v364_v13 = vld [vmem:[#allocation5 + $0x888] sm:$0xff]  ;;  %v7979_v18 = vcombine.high %v363_v10, %v371_v11  ;;  %v379_v19 = vld [vmem:[#allocation5 + $0x900] sm:$0xff]  ;;  %v7978_v25 = vcombine.low %v363_v10, %v371_v11 }
  0x80   :  { %3265 = vmatprep.subr.bf16.mxu0 %v7851_v14  ;;  %3347 = vmatprep.subr.bf16.mxu1 %v7853_v15  ;;  %v372_v14 = vld [vmem:[#allocation5 + $0x8c8] sm:$0xff]  ;;  %v86_v15 = vld [vmem:[#allocation2 + $0x18] sm:$0xff]  ;;  %v483_v6 = vld [vmem:[#allocation5 + $0xc40] sm:$0xff] }
  0x81   :  { %v9864_v24 = vpack.c.bf16 %v86_v15, %v86_v15  ;;  %v7980_v26 = vcombine.low %v364_v13, %v372_v14  ;;  %v436_v48 = vld [vmem:[#allocation5 + $0xac8] sm:$0xff]  ;;  %v499_v15 = vld [vmem:[#allocation5 + $0xcc0] sm:$0xff] }
  0x82   :  { %v452_v56 = vld [vmem:[#allocation5 + $0xb48] sm:$0xff] }
  0x83   :  { %3266 = vmatpush1.bf16.msra.mxu0 %v7850_v20  ;;  %3348 = vmatpush1.bf16.msra.mxu1 %v7852_v21  ;;  %v387_v20 = vld [vmem:[#allocation5 + $0x940] sm:$0xff]  ;;  %v7981_v21 = vcombine.high %v364_v13, %v372_v14  ;;  %v468_v1 = vld [vmem:[#allocation5 + $0xbc8] sm:$0xff] }
  0x84   :  { %3267 = vmatprep.subr.bf16.mxu0 %v7867_v22  ;;  %3349 = vmatprep.subr.bf16.mxu1 %v7869_v23  ;;  %v380_v22 = vld [vmem:[#allocation5 + $0x908] sm:$0xff]  ;;  %v7995_v27 = vcombine.high %v379_v19, %v387_v20  ;;  %v7994_v33 = vcombine.low %v379_v19, %v387_v20  ;;  %v491_v14 = vld [vmem:[#allocation5 + $0xc80] sm:$0xff] }
  0x85   :  { %v388_v23 = vld [vmem:[#allocation5 + $0x948] sm:$0xff] }
  0x86   :  { %v7996_v34 = vcombine.low %v380_v22, %v388_v23 }
  0x87   :  { %3268 = vmatpush1.bf16.msra.mxu0 %v7866_v28  ;;  %3350 = vmatpush1.bf16.msra.mxu1 %v7868_v29  ;;  %v395_v28 = vld [vmem:[#allocation5 + $0x980] sm:$0xff] }
  0x88   :  { %3269 = vmatprep.subr.bf16.mxu0 %v7883_v30  ;;  %3351 = vmatprep.subr.bf16.mxu1 %v7885_v31  ;;  %v403_v29 = vld [vmem:[#allocation5 + $0x9c0] sm:$0xff]  ;;  %v396_v30 = vld [vmem:[#allocation5 + $0x988] sm:$0xff]  ;;  %v7997_v31 = vcombine.high %v380_v22, %v388_v23 }
  0x89   :  { %v8011_v35 = vcombine.high %v395_v28, %v403_v29  ;;  %v8010_v41 = vcombine.low %v395_v28, %v403_v29  ;;  %v8012_v42 = vcombine.low %v396_v30, %v404_v32  ;;  %v507_v22 = vld [vmem:[#allocation5 + $0xd00] sm:$0xff]  ;;  %v8106_v28 = vcombine.low %v491_v14, %v499_v15 }
  0x8a   :  { %v515_v23 = vld [vmem:[#allocation5 + $0xd40] sm:$0xff] }
  0x8b   :  { %3270 = vmatpush1.bf16.msra.mxu0 %v7882_v36  ;;  %3352 = vmatpush1.bf16.msra.mxu1 %v7884_v37  ;;  %v411_v36 = vld [vmem:[#allocation5 + $0xa00] sm:$0xff] }
  0x8c   :  { %3271 = vmatprep.subr.bf16.mxu0 %v7899_v38  ;;  %3353 = vmatprep.subr.bf16.mxu1 %v7901_v39  ;;  %v419_v37 = vld [vmem:[#allocation5 + $0xa40] sm:$0xff]  ;;  %v412_v38 = vld [vmem:[#allocation5 + $0xa08] sm:$0xff]  ;;  %v8013_v39 = vcombine.high %v396_v30, %v404_v32  ;;  %v8123_v30 = vcombine.high %v507_v22, %v515_v23 }
  0x8d   :  { %v8027_v43 = vcombine.high %v411_v36, %v419_v37  ;;  %v8026_v49 = vcombine.low %v411_v36, %v419_v37  ;;  %v8028_v50 = vcombine.low %v412_v38, %v420_v40  ;;  %v531_v32 = vld [vmem:[#allocation5 + $0xdc0] sm:$0xff]  ;;  %v8122_v36 = vcombine.low %v507_v22, %v515_v23  ;;  %v118_v22 = vld [vmem:[#allocation5 + $0xd8] sm:$0xff] }
  0x8f   :  { %3272 = vmatpush1.bf16.msra.mxu0 %v7898_v44  ;;  %3354 = vmatpush1.bf16.msra.mxu1 %v7900_v45  ;;  %v427_v44 = vld [vmem:[#allocation5 + $0xa80] sm:$0xff] }
  0x90   :  { %3273 = vmatprep.subr.bf16.mxu0 %v7915_v46  ;;  %3355 = vmatprep.subr.bf16.mxu1 %v7917_v47  ;;  %v435_v45 = vld [vmem:[#allocation5 + $0xac0] sm:$0xff]  ;;  %v428_v46 = vld [vmem:[#allocation5 + $0xa88] sm:$0xff]  ;;  %v8029_v47 = vcombine.high %v412_v38, %v420_v40 }
  0x91   :  { %v8043_v51 = vcombine.high %v427_v44, %v435_v45  ;;  %v8042_v58 = vcombine.low %v427_v44, %v435_v45  ;;  %v8044_v59 = vcombine.low %v428_v46, %v436_v48  ;;  %v547_v40 = vld [vmem:[#allocation5 + $0xe40] sm:$0xff] }
  0x93   :  { %3274 = vmatpush1.bf16.msra.mxu0 %v7914_v52  ;;  %3356 = vmatpush1.bf16.msra.mxu1 %v7916_v53  ;;  %v443_v52 = vld [vmem:[#allocation5 + $0xb00] sm:$0xff] }
  0x94   :  { %3275 = vmatprep.subr.bf16.mxu0 %v7931_v54  ;;  %3357 = vmatprep.subr.bf16.mxu1 %v7933_v55  ;;  %v451_v53 = vld [vmem:[#allocation5 + $0xb40] sm:$0xff]  ;;  %v444_v54 = vld [vmem:[#allocation5 + $0xb08] sm:$0xff]  ;;  %v8045_v55 = vcombine.high %v428_v46, %v436_v48 }
  0x95   :  { %v8059_v60 = vcombine.high %v443_v52, %v451_v53  ;;  %v8058_v2 = vcombine.low %v443_v52, %v451_v53  ;;  %v8060_v3 = vcombine.low %v444_v54, %v452_v56  ;;  %v563_v48 = vld [vmem:[#allocation5 + $0xec0] sm:$0xff] }
  0x97   :  { %3276 = vmatpush1.bf16.msra.mxu0 %v7930_v61  ;;  %3358 = vmatpush1.bf16.msra.mxu1 %v7932_v62  ;;  %v459_v61 = vld [vmem:[#allocation5 + $0xb80] sm:$0xff] }
  0x98   :  { %3277 = vmatprep.subr.bf16.mxu0 %v7947_v63  ;;  %3359 = vmatprep.subr.bf16.mxu1 %v7949_v0  ;;  %v467_v62 = vld [vmem:[#allocation5 + $0xbc0] sm:$0xff]  ;;  %v460_v63 = vld [vmem:[#allocation5 + $0xb88] sm:$0xff]  ;;  %v8061_v0 = vcombine.high %v444_v54, %v452_v56 }
  0x99   :  { %v8075_v4 = vcombine.high %v459_v61, %v467_v62  ;;  %v8074_v10 = vcombine.low %v459_v61, %v467_v62  ;;  %v8076_v11 = vcombine.low %v460_v63, %v468_v1  ;;  %v579_v56 = vld [vmem:[#allocation5 + $0xf40] sm:$0xff] }
  0x9b   :  { %3278 = vmatpush1.bf16.msra.mxu0 %v7946_v5  ;;  %3360 = vmatpush1.bf16.msra.mxu1 %v7948_v7  ;;  %v475_v5 = vld [vmem:[#allocation5 + $0xc00] sm:$0xff]  ;;  %v476_v7 = vld [vmem:[#allocation5 + $0xc08] sm:$0xff] }
  0x9c   :  { %3288 = vmatprep.subr.bf16.mxu0 %v7963_v8  ;;  %3370 = vmatprep.subr.bf16.mxu1 %v7965_v9  ;;  %v8077_v8 = vcombine.high %v460_v63, %v468_v1  ;;  %v484_v9 = vld [vmem:[#allocation5 + $0xc48] sm:$0xff]  ;;  %v8091_v13 = vcombine.high %v475_v5, %v483_v6  ;;  %v8090_v19 = vcombine.low %v475_v5, %v483_v6  ;;  %v595_v1 = vld [vmem:[#allocation5 + $0xfc0] sm:$0xff] }
  0x9d   :  { %v8092_v20 = vcombine.low %v476_v7, %v484_v9 }
  0x9e   :  { %3280 = vmatmul.mubr.bf16.vlgmr.msra.gmra.mrb[0].mxu0 %v9862_v12  ;;  %3362 = vmatmul.mubr.bf16.vlgmr.msra.gmra.mrb[0].mxu1 %v9862_v12 }
  0x9f   :  { %3289 = vmatpush1.bf16.msra.mxu0 %v7962_v16  ;;  %3371 = vmatpush1.bf16.msra.mxu1 %v7964_v17  ;;  %v492_v16 = vld [vmem:[#allocation5 + $0xc88] sm:$0xff]  ;;  %v8093_v17 = vcombine.high %v476_v7, %v484_v9  ;;  %v101_v9 = vld [vmem:[#allocation5 + $0x50] sm:$0xff] }
  0xa0   :  { %3290 = vmatprep.subr.bf16.mxu0 %v7979_v18  ;;  %3372 = vmatprep.subr.bf16.mxu1 %v7981_v21  ;;  %v500_v18 = vld [vmem:[#allocation5 + $0xcc8] sm:$0xff]  ;;  %v8107_v21 = vcombine.high %v491_v14, %v499_v15  ;;  %v102_v14 = vld [vmem:[#allocation5 + $0x58] sm:$0xff] }
  0xa1   :  { %3320 = vmatprep.mubr.bf16.mxu0 %v9864_v24  ;;  %3402 = vmatprep.mubr.bf16.mxu1 %v9864_v24  ;;  %v8108_v29 = vcombine.low %v492_v16, %v500_v18 }
  0xa3   :  { %3291 = vmatpush1.bf16.msra.mxu0 %v7978_v25  ;;  %3373 = vmatpush1.bf16.msra.mxu1 %v7980_v26  ;;  %v508_v25 = vld [vmem:[#allocation5 + $0xd08] sm:$0xff]  ;;  %v8109_v26 = vcombine.high %v492_v16, %v500_v18  ;;  %v109_v18 = vld [vmem:[#allocation5 + $0x90] sm:$0xff] }
  0xa4   :  { %3292 = vmatprep.subr.bf16.mxu0 %v7995_v27  ;;  %3374 = vmatprep.subr.bf16.mxu1 %v7997_v31  ;;  %v516_v27 = vld [vmem:[#allocation5 + $0xd48] sm:$0xff]  ;;  %v523_v31 = vld [vmem:[#allocation5 + $0xd80] sm:$0xff] }
  0xa5   :  { %v8124_v37 = vcombine.low %v508_v25, %v516_v27  ;;  %v8139_v38 = vcombine.high %v523_v31, %v531_v32  ;;  %v8138_v44 = vcombine.low %v523_v31, %v531_v32  ;;  %v134_v32 = vld [vmem:[#allocation5 + $0x158] sm:$0xff] }
  0xa7   :  { %3293 = vmatpush1.bf16.msra.mxu0 %v7994_v33  ;;  %3375 = vmatpush1.bf16.msra.mxu1 %v7996_v34  ;;  %v524_v33 = vld [vmem:[#allocation5 + $0xd88] sm:$0xff]  ;;  %v8125_v34 = vcombine.high %v508_v25, %v516_v27 }
  0xa8   :  { %3294 = vmatprep.subr.bf16.mxu0 %v8011_v35  ;;  %3376 = vmatprep.subr.bf16.mxu1 %v8013_v39  ;;  %v532_v35 = vld [vmem:[#allocation5 + $0xdc8] sm:$0xff]  ;;  %v539_v39 = vld [vmem:[#allocation5 + $0xe00] sm:$0xff] }
  0xa9   :  { %v8140_v45 = vcombine.low %v524_v33, %v532_v35  ;;  %v8155_v46 = vcombine.high %v539_v39, %v547_v40  ;;  %v8154_v52 = vcombine.low %v539_v39, %v547_v40  ;;  %v150_v40 = vld [vmem:[#allocation5 + $0x1d8] sm:$0xff] }
  0xab   :  { %3295 = vmatpush1.bf16.msra.mxu0 %v8010_v41  ;;  %3377 = vmatpush1.bf16.msra.mxu1 %v8012_v42  ;;  %v540_v41 = vld [vmem:[#allocation5 + $0xe08] sm:$0xff]  ;;  %v8141_v42 = vcombine.high %v524_v33, %v532_v35 }
  0xac   :  { %3296 = vmatprep.subr.bf16.mxu0 %v8027_v43  ;;  %3378 = vmatprep.subr.bf16.mxu1 %v8029_v47  ;;  %v548_v43 = vld [vmem:[#allocation5 + $0xe48] sm:$0xff]  ;;  %v555_v47 = vld [vmem:[#allocation5 + $0xe80] sm:$0xff] }
  0xad   :  { %v8156_v53 = vcombine.low %v540_v41, %v548_v43  ;;  %v8171_v54 = vcombine.high %v555_v47, %v563_v48  ;;  %v8170_v61 = vcombine.low %v555_v47, %v563_v48  ;;  %v166_v48 = vld [vmem:[#allocation5 + $0x258] sm:$0xff] }
  0xaf   :  { %3297 = vmatpush1.bf16.msra.mxu0 %v8026_v49  ;;  %3379 = vmatpush1.bf16.msra.mxu1 %v8028_v50  ;;  %v556_v49 = vld [vmem:[#allocation5 + $0xe88] sm:$0xff]  ;;  %v8157_v50 = vcombine.high %v540_v41, %v548_v43 }
  0xb0   :  { %3298 = vmatprep.subr.bf16.mxu0 %v8043_v51  ;;  %3380 = vmatprep.subr.bf16.mxu1 %v8045_v55  ;;  %v564_v51 = vld [vmem:[#allocation5 + $0xec8] sm:$0xff]  ;;  %v571_v55 = vld [vmem:[#allocation5 + $0xf00] sm:$0xff] }
  0xb1   :  { %v8172_v62 = vcombine.low %v556_v49, %v564_v51  ;;  %v8187_v63 = vcombine.high %v571_v55, %v579_v56  ;;  %v8186_v5 = vcombine.low %v571_v55, %v579_v56  ;;  %v182_v56 = vld [vmem:[#allocation5 + $0x2d8] sm:$0xff] }
  0xb3   :  { %3299 = vmatpush1.bf16.msra.mxu0 %v8042_v58  ;;  %3381 = vmatpush1.bf16.msra.mxu1 %v8044_v59  ;;  %v572_v58 = vld [vmem:[#allocation5 + $0xf08] sm:$0xff]  ;;  %v8173_v59 = vcombine.high %v556_v49, %v564_v51 }
  0xb4   :  { %3300 = vmatprep.subr.bf16.mxu0 %v8059_v60  ;;  %3382 = vmatprep.subr.bf16.mxu1 %v8061_v0  ;;  %v580_v60 = vld [vmem:[#allocation5 + $0xf48] sm:$0xff]  ;;  %v587_v0 = vld [vmem:[#allocation5 + $0xf80] sm:$0xff] }
  0xb5   :  { %v8188_v6 = vcombine.low %v572_v58, %v580_v60  ;;  %v8203_v7 = vcombine.high %v587_v0, %v595_v1  ;;  %v8202_v15 = vcombine.low %v587_v0, %v595_v1  ;;  %v198_v1 = vld [vmem:[#allocation5 + $0x358] sm:$0xff] }
  0xb7   :  { %3301 = vmatpush1.bf16.msra.mxu0 %v8058_v2  ;;  %3383 = vmatpush1.bf16.msra.mxu1 %v8060_v3  ;;  %v588_v2 = vld [vmem:[#allocation5 + $0xf88] sm:$0xff]  ;;  %v8189_v3 = vcombine.high %v572_v58, %v580_v60 }
  0xb8   :  { %3302 = vmatprep.subr.bf16.mxu0 %v8075_v4  ;;  %3384 = vmatprep.subr.bf16.mxu1 %v8077_v8  ;;  %v596_v4 = vld [vmem:[#allocation5 + $0xfc8] sm:$0xff]  ;;  %v93_v8 = vld [vmem:[#allocation5 + $0x10] sm:$0xff] }
  0xb9   :  { %v8204_v16 = vcombine.low %v588_v2, %v596_v4  ;;  %v7710_v25 = vcombine.low %v93_v8, %v101_v9 }
  0xbb   :  { %3303 = vmatpush1.bf16.msra.mxu0 %v8074_v10  ;;  %3385 = vmatpush1.bf16.msra.mxu1 %v8076_v11  ;;  %v94_v10 = vld [vmem:[#allocation5 + $0x18] sm:$0xff]  ;;  %v8205_v11 = vcombine.high %v588_v2, %v596_v4 }
  0xbc   :  { %3304 = vmatprep.subr.bf16.mxu0 %v8091_v13  ;;  %3386 = vmatprep.subr.bf16.mxu1 %v8093_v17  ;;  %v85_v13 = vld [vmem:[#allocation2 + $0x10] sm:$0xff]  ;;  %v7711_v17 = vcombine.high %v93_v8, %v101_v9  ;;  %v214_v9 = vld [vmem:[#allocation5 + $0x3d8] sm:$0xff] }
  0xbd   :  { %v9870_v23 = vpack.c.bf16 %v85_v13, %v85_v13 }
  0xbf   :  { %3305 = vmatpush1.bf16.msra.mxu0 %v8090_v19  ;;  %3387 = vmatpush1.bf16.msra.mxu1 %v8092_v20  ;;  %v117_v19 = vld [vmem:[#allocation5 + $0xd0] sm:$0xff]  ;;  %v110_v20 = vld [vmem:[#allocation5 + $0x98] sm:$0xff] }
  0xc0   :  { %3306 = vmatprep.subr.bf16.mxu0 %v8107_v21  ;;  %3388 = vmatprep.subr.bf16.mxu1 %v8109_v26  ;;  %v7713_v21 = vcombine.high %v94_v10, %v102_v14  ;;  %v7712_v26 = vcombine.low %v94_v10, %v102_v14  ;;  %v7727_v27 = vcombine.high %v109_v18, %v117_v19  ;;  %v221_v14 = vld [vmem:[#allocation5 + $0x410] sm:$0xff] }
  0xc1   :  { %v7729_v31 = vcombine.high %v110_v20, %v118_v22  ;;  %v7726_v33 = vcombine.low %v109_v18, %v117_v19  ;;  %v230_v18 = vld [vmem:[#allocation5 + $0x458] sm:$0xff] }
  0xc3   :  { %3307 = vmatpush1.bf16.msra.mxu0 %v8106_v28  ;;  %3389 = vmatpush1.bf16.msra.mxu1 %v8108_v29  ;;  %v125_v28 = vld [vmem:[#allocation5 + $0x110] sm:$0xff] }
  0xc4   :  { %3308 = vmatprep.subr.bf16.mxu0 %v8123_v30  ;;  %3390 = vmatprep.subr.bf16.mxu1 %v8125_v34  ;;  %v133_v29 = vld [vmem:[#allocation5 + $0x150] sm:$0xff]  ;;  %v126_v30 = vld [vmem:[#allocation5 + $0x118] sm:$0xff]  ;;  %v7728_v34 = vcombine.low %v110_v20, %v118_v22 }
  0xc5   :  { %v7743_v35 = vcombine.high %v125_v28, %v133_v29  ;;  %v7745_v39 = vcombine.high %v126_v30, %v134_v32  ;;  %v7742_v41 = vcombine.low %v125_v28, %v133_v29  ;;  %v237_v22 = vld [vmem:[#allocation5 + $0x490] sm:$0xff]  ;;  %v246_v28 = vld [vmem:[#allocation5 + $0x4d8] sm:$0xff] }
  0xc7   :  { %3309 = vmatpush1.bf16.msra.mxu0 %v8122_v36  ;;  %3391 = vmatpush1.bf16.msra.mxu1 %v8124_v37  ;;  %v141_v36 = vld [vmem:[#allocation5 + $0x190] sm:$0xff] }
  0xc8   :  { %3310 = vmatprep.subr.bf16.mxu0 %v8139_v38  ;;  %3392 = vmatprep.subr.bf16.mxu1 %v8141_v42  ;;  %v149_v37 = vld [vmem:[#allocation5 + $0x1d0] sm:$0xff]  ;;  %v142_v38 = vld [vmem:[#allocation5 + $0x198] sm:$0xff]  ;;  %v7744_v42 = vcombine.low %v126_v30, %v134_v32 }
  0xc9   :  { %v7759_v43 = vcombine.high %v141_v36, %v149_v37  ;;  %v7761_v47 = vcombine.high %v142_v38, %v150_v40  ;;  %v7758_v49 = vcombine.low %v141_v36, %v149_v37  ;;  %v253_v32 = vld [vmem:[#allocation5 + $0x510] sm:$0xff]  ;;  %v262_v36 = vld [vmem:[#allocation5 + $0x558] sm:$0xff] }
  0xcb   :  { %3311 = vmatpush1.bf16.msra.mxu0 %v8138_v44  ;;  %3393 = vmatpush1.bf16.msra.mxu1 %v8140_v45  ;;  %v157_v44 = vld [vmem:[#allocation5 + $0x210] sm:$0xff] }
  0xcc   :  { %3312 = vmatprep.subr.bf16.mxu0 %v8155_v46  ;;  %3394 = vmatprep.subr.bf16.mxu1 %v8157_v50  ;;  %v165_v45 = vld [vmem:[#allocation5 + $0x250] sm:$0xff]  ;;  %v158_v46 = vld [vmem:[#allocation5 + $0x218] sm:$0xff]  ;;  %v7760_v50 = vcombine.low %v142_v38, %v150_v40 }
  0xcd   :  { %v7775_v51 = vcombine.high %v157_v44, %v165_v45  ;;  %v7777_v55 = vcombine.high %v158_v46, %v166_v48  ;;  %v7774_v58 = vcombine.low %v157_v44, %v165_v45  ;;  %v269_v40 = vld [vmem:[#allocation5 + $0x590] sm:$0xff]  ;;  %v278_v44 = vld [vmem:[#allocation5 + $0x5d8] sm:$0xff] }
  0xcf   :  { %3313 = vmatpush1.bf16.msra.mxu0 %v8154_v52  ;;  %3395 = vmatpush1.bf16.msra.mxu1 %v8156_v53  ;;  %v173_v52 = vld [vmem:[#allocation5 + $0x290] sm:$0xff] }
  0xd0   :  { %3314 = vmatprep.subr.bf16.mxu0 %v8171_v54  ;;  %3396 = vmatprep.subr.bf16.mxu1 %v8173_v59  ;;  %v181_v53 = vld [vmem:[#allocation5 + $0x2d0] sm:$0xff]  ;;  %v174_v54 = vld [vmem:[#allocation5 + $0x298] sm:$0xff]  ;;  %v7776_v59 = vcombine.low %v158_v46, %v166_v48 }
  0xd1   :  { %v7791_v60 = vcombine.high %v173_v52, %v181_v53  ;;  %v7793_v0 = vcombine.high %v174_v54, %v182_v56  ;;  %v7790_v2 = vcombine.low %v173_v52, %v181_v53  ;;  %v285_v48 = vld [vmem:[#allocation5 + $0x610] sm:$0xff]  ;;  %v294_v52 = vld [vmem:[#allocation5 + $0x658] sm:$0xff] }
  0xd3   :  { %3315 = vmatpush1.bf16.msra.mxu0 %v8170_v61  ;;  %3397 = vmatpush1.bf16.msra.mxu1 %v8172_v62  ;;  %v189_v61 = vld [vmem:[#allocation5 + $0x310] sm:$0xff] }
  0xd4   :  { %3316 = vmatprep.subr.bf16.mxu0 %v8187_v63  ;;  %3398 = vmatprep.subr.bf16.mxu1 %v8189_v3  ;;  %v197_v62 = vld [vmem:[#allocation5 + $0x350] sm:$0xff]  ;;  %v190_v63 = vld [vmem:[#allocation5 + $0x318] sm:$0xff]  ;;  %v7792_v3 = vcombine.low %v174_v54, %v182_v56 }
  0xd5   :  { %v7807_v4 = vcombine.high %v189_v61, %v197_v62  ;;  %v7809_v8 = vcombine.high %v190_v63, %v198_v1  ;;  %v7806_v10 = vcombine.low %v189_v61, %v197_v62  ;;  %v301_v56 = vld [vmem:[#allocation5 + $0x690] sm:$0xff]  ;;  %v310_v61 = vld [vmem:[#allocation5 + $0x6d8] sm:$0xff] }
  0xd7   :  { %3317 = vmatpush1.bf16.msra.mxu0 %v8186_v5  ;;  %3399 = vmatpush1.bf16.msra.mxu1 %v8188_v6  ;;  %v205_v5 = vld [vmem:[#allocation5 + $0x390] sm:$0xff] }
  0xd8   :  { %3318 = vmatprep.subr.bf16.mxu0 %v8203_v7  ;;  %3400 = vmatprep.subr.bf16.mxu1 %v8205_v11  ;;  %v213_v6 = vld [vmem:[#allocation5 + $0x3d0] sm:$0xff]  ;;  %v206_v7 = vld [vmem:[#allocation5 + $0x398] sm:$0xff]  ;;  %v7808_v11 = vcombine.low %v190_v63, %v198_v1 }
  0xd9   :  { %v7823_v13 = vcombine.high %v205_v5, %v213_v6  ;;  %v7822_v19 = vcombine.low %v205_v5, %v213_v6  ;;  %v7824_v20 = vcombine.low %v206_v7, %v214_v9  ;;  %v317_v1 = vld [vmem:[#allocation5 + $0x710] sm:$0xff]  ;;  %v326_v5 = vld [vmem:[#allocation5 + $0x758] sm:$0xff] }
  0xdb   :  { %3319 = vmatpush1.bf16.msra.mxu0 %v8202_v15  ;;  %3401 = vmatpush1.bf16.msra.mxu1 %v8204_v16  ;;  %v229_v15 = vld [vmem:[#allocation5 + $0x450] sm:$0xff]  ;;  %v222_v16 = vld [vmem:[#allocation5 + $0x418] sm:$0xff] }
  0xdc   :  { %3411 = vmatprep.subr.bf16.mxu0 %v7711_v17  ;;  %3493 = vmatprep.subr.bf16.mxu1 %v7713_v21  ;;  %v7825_v17 = vcombine.high %v206_v7, %v214_v9  ;;  %v7839_v21 = vcombine.high %v221_v14, %v229_v15  ;;  %v7838_v29 = vcombine.low %v221_v14, %v229_v15  ;;  %v333_v9 = vld [vmem:[#allocation5 + $0x790] sm:$0xff]  ;;  %v342_v14 = vld [vmem:[#allocation5 + $0x7d8] sm:$0xff] }
  0xdd   :  { %v7840_v30 = vcombine.low %v222_v16, %v230_v18 }
  0xde   :  { %3321 = vmatmul.mubr.bf16.vlgmr.msra.gmra.mrb[0].mxu0 %v9870_v23  ;;  %3403 = vmatmul.mubr.bf16.vlgmr.msra.gmra.mrb[0].mxu1 %v9870_v23 }
  0xdf   :  { %3412 = vmatpush1.bf16.msra.mxu0 %v7710_v25  ;;  %3494 = vmatpush1.bf16.msra.mxu1 %v7712_v26  ;;  %v245_v25 = vld [vmem:[#allocation5 + $0x4d0] sm:$0xff]  ;;  %v238_v26 = vld [vmem:[#allocation5 + $0x498] sm:$0xff] }
  0xe0   :  { %3413 = vmatprep.subr.bf16.mxu0 %v7727_v27  ;;  %3495 = vmatprep.subr.bf16.mxu1 %v7729_v31  ;;  %v7841_v27 = vcombine.high %v222_v16, %v230_v18  ;;  %v7855_v31 = vcombine.high %v237_v22, %v245_v25  ;;  %v7854_v37 = vcombine.low %v237_v22, %v245_v25  ;;  %v349_v18 = vld [vmem:[#allocation5 + $0x810] sm:$0xff]  ;;  %v358_v22 = vld [vmem:[#allocation5 + $0x858] sm:$0xff] }
  0xe1   :  { %3443 = vmatprep.mubr.bf16.mxu0 %v9858_v57  ;;  %3525 = vmatprep.mubr.bf16.mxu1 %v9858_v57  ;;  %v7856_v38 = vcombine.low %v238_v26, %v246_v28 }
  0xe3   :  { %3414 = vmatpush1.bf16.msra.mxu0 %v7726_v33  ;;  %3496 = vmatpush1.bf16.msra.mxu1 %v7728_v34  ;;  %v261_v33 = vld [vmem:[#allocation5 + $0x550] sm:$0xff]  ;;  %v254_v34 = vld [vmem:[#allocation5 + $0x518] sm:$0xff] }
  0xe4   :  { %3415 = vmatprep.subr.bf16.mxu0 %v7743_v35  ;;  %3497 = vmatprep.subr.bf16.mxu1 %v7745_v39  ;;  %v7857_v35 = vcombine.high %v238_v26, %v246_v28  ;;  %v7871_v39 = vcombine.high %v253_v32, %v261_v33  ;;  %v7870_v45 = vcombine.low %v253_v32, %v261_v33  ;;  %v365_v28 = vld [vmem:[#allocation5 + $0x890] sm:$0xff]  ;;  %v374_v32 = vld [vmem:[#allocation5 + $0x8d8] sm:$0xff] }
  0xe5   :  { %v7872_v46 = vcombine.low %v254_v34, %v262_v36 }
  0xe7   :  { %3416 = vmatpush1.bf16.msra.mxu0 %v7742_v41  ;;  %3498 = vmatpush1.bf16.msra.mxu1 %v7744_v42  ;;  %v277_v41 = vld [vmem:[#allocation5 + $0x5d0] sm:$0xff]  ;;  %v270_v42 = vld [vmem:[#allocation5 + $0x598] sm:$0xff] }
  0xe8   :  { %3417 = vmatprep.subr.bf16.mxu0 %v7759_v43  ;;  %3499 = vmatprep.subr.bf16.mxu1 %v7761_v47  ;;  %v7873_v43 = vcombine.high %v254_v34, %v262_v36  ;;  %v7887_v47 = vcombine.high %v269_v40, %v277_v41  ;;  %v7886_v53 = vcombine.low %v269_v40, %v277_v41  ;;  %v381_v36 = vld [vmem:[#allocation5 + $0x910] sm:$0xff]  ;;  %v390_v40 = vld [vmem:[#allocation5 + $0x958] sm:$0xff] }
  0xe9   :  { %v7888_v54 = vcombine.low %v270_v42, %v278_v44 }
  0xeb   :  { %3418 = vmatpush1.bf16.msra.mxu0 %v7758_v49  ;;  %3500 = vmatpush1.bf16.msra.mxu1 %v7760_v50  ;;  %v293_v49 = vld [vmem:[#allocation5 + $0x650] sm:$0xff]  ;;  %v286_v50 = vld [vmem:[#allocation5 + $0x618] sm:$0xff] }
  0xec   :  { %3419 = vmatprep.subr.bf16.mxu0 %v7775_v51  ;;  %3501 = vmatprep.subr.bf16.mxu1 %v7777_v55  ;;  %v7889_v51 = vcombine.high %v270_v42, %v278_v44  ;;  %v7903_v55 = vcombine.high %v285_v48, %v293_v49  ;;  %v7902_v62 = vcombine.low %v285_v48, %v293_v49  ;;  %v397_v44 = vld [vmem:[#allocation5 + $0x990] sm:$0xff]  ;;  %v406_v48 = vld [vmem:[#allocation5 + $0x9d8] sm:$0xff] }
  0xed   :  { %v7904_v63 = vcombine.low %v286_v50, %v294_v52 }
  0xef   :  { %3420 = vmatpush1.bf16.msra.mxu0 %v7774_v58  ;;  %3502 = vmatpush1.bf16.msra.mxu1 %v7776_v59  ;;  %v309_v58 = vld [vmem:[#allocation5 + $0x6d0] sm:$0xff]  ;;  %v302_v59 = vld [vmem:[#allocation5 + $0x698] sm:$0xff] }
  0xf0   :  { %3421 = vmatprep.subr.bf16.mxu0 %v7791_v60  ;;  %3503 = vmatprep.subr.bf16.mxu1 %v7793_v0  ;;  %v7905_v60 = vcombine.high %v286_v50, %v294_v52  ;;  %v7919_v0 = vcombine.high %v301_v56, %v309_v58  ;;  %v7918_v6 = vcombine.low %v301_v56, %v309_v58  ;;  %v413_v52 = vld [vmem:[#allocation5 + $0xa10] sm:$0xff]  ;;  %v422_v56 = vld [vmem:[#allocation5 + $0xa58] sm:$0xff] }
  0xf1   :  { %v7920_v7 = vcombine.low %v302_v59, %v310_v61 }
  0xf3   :  { %3422 = vmatpush1.bf16.msra.mxu0 %v7790_v2  ;;  %3504 = vmatpush1.bf16.msra.mxu1 %v7792_v3  ;;  %v325_v2 = vld [vmem:[#allocation5 + $0x750] sm:$0xff]  ;;  %v318_v3 = vld [vmem:[#allocation5 + $0x718] sm:$0xff] }
  0xf4   :  { %3423 = vmatprep.subr.bf16.mxu0 %v7807_v4  ;;  %3505 = vmatprep.subr.bf16.mxu1 %v7809_v8  ;;  %v7921_v4 = vcombine.high %v302_v59, %v310_v61  ;;  %v7935_v8 = vcombine.high %v317_v1, %v325_v2  ;;  %v7934_v15 = vcombine.low %v317_v1, %v325_v2  ;;  %v429_v61 = vld [vmem:[#allocation5 + $0xa90] sm:$0xff]  ;;  %v438_v1 = vld [vmem:[#allocation5 + $0xad8] sm:$0xff] }
  0xf5   :  { %v7936_v16 = vcombine.low %v318_v3, %v326_v5 }
  0xf7   :  { %3424 = vmatpush1.bf16.msra.mxu0 %v7806_v10  ;;  %3506 = vmatpush1.bf16.msra.mxu1 %v7808_v11  ;;  %v341_v10 = vld [vmem:[#allocation5 + $0x7d0] sm:$0xff]  ;;  %v334_v11 = vld [vmem:[#allocation5 + $0x798] sm:$0xff] }
  0xf8   :  { %3425 = vmatprep.subr.bf16.mxu0 %v7823_v13  ;;  %3507 = vmatprep.subr.bf16.mxu1 %v7825_v17  ;;  %v7937_v13 = vcombine.high %v318_v3, %v326_v5  ;;  %v7951_v17 = vcombine.high %v333_v9, %v341_v10  ;;  %v7950_v25 = vcombine.low %v333_v9, %v341_v10  ;;  %v445_v5 = vld [vmem:[#allocation5 + $0xb10] sm:$0xff]  ;;  %v454_v9 = vld [vmem:[#allocation5 + $0xb58] sm:$0xff] }
  0xf9   :  { %v7952_v26 = vcombine.low %v334_v11, %v342_v14 }
  0xfb   :  { %3426 = vmatpush1.bf16.msra.mxu0 %v7822_v19  ;;  %3508 = vmatpush1.bf16.msra.mxu1 %v7824_v20  ;;  %v357_v19 = vld [vmem:[#allocation5 + $0x850] sm:$0xff]  ;;  %v350_v20 = vld [vmem:[#allocation5 + $0x818] sm:$0xff] }
  0xfc   :  { %3427 = vmatprep.subr.bf16.mxu0 %v7839_v21  ;;  %3509 = vmatprep.subr.bf16.mxu1 %v7841_v27  ;;  %v7953_v21 = vcombine.high %v334_v11, %v342_v14  ;;  %v7967_v27 = vcombine.high %v349_v18, %v357_v19  ;;  %v7966_v33 = vcombine.low %v349_v18, %v357_v19  ;;  %v461_v14 = vld [vmem:[#allocation5 + $0xb90] sm:$0xff]  ;;  %v470_v18 = vld [vmem:[#allocation5 + $0xbd8] sm:$0xff] }
  0xfd   :  { %v7968_v34 = vcombine.low %v350_v20, %v358_v22 }
  0xff   :  { %3428 = vmatpush1.bf16.msra.mxu0 %v7838_v29  ;;  %3510 = vmatpush1.bf16.msra.mxu1 %v7840_v30  ;;  %v373_v29 = vld [vmem:[#allocation5 + $0x8d0] sm:$0xff]  ;;  %v366_v30 = vld [vmem:[#allocation5 + $0x898] sm:$0xff] }
 0x100   :  { %3429 = vmatprep.subr.bf16.mxu0 %v7855_v31  ;;  %3511 = vmatprep.subr.bf16.mxu1 %v7857_v35  ;;  %v7969_v31 = vcombine.high %v350_v20, %v358_v22  ;;  %v7983_v35 = vcombine.high %v365_v28, %v373_v29  ;;  %v7982_v41 = vcombine.low %v365_v28, %v373_v29  ;;  %v477_v22 = vld [vmem:[#allocation5 + $0xc10] sm:$0xff]  ;;  %v486_v28 = vld [vmem:[#allocation5 + $0xc58] sm:$0xff] }
 0x101   :  { %v7984_v42 = vcombine.low %v366_v30, %v374_v32 }
 0x103   :  { %3430 = vmatpush1.bf16.msra.mxu0 %v7854_v37  ;;  %3512 = vmatpush1.bf16.msra.mxu1 %v7856_v38  ;;  %v389_v37 = vld [vmem:[#allocation5 + $0x950] sm:$0xff]  ;;  %v382_v38 = vld [vmem:[#allocation5 + $0x918] sm:$0xff] }
 0x104   :  { %3431 = vmatprep.subr.bf16.mxu0 %v7871_v39  ;;  %3513 = vmatprep.subr.bf16.mxu1 %v7873_v43  ;;  %v7985_v39 = vcombine.high %v366_v30, %v374_v32  ;;  %v7999_v43 = vcombine.high %v381_v36, %v389_v37  ;;  %v7998_v49 = vcombine.low %v381_v36, %v389_v37  ;;  %v493_v32 = vld [vmem:[#allocation5 + $0xc90] sm:$0xff]  ;;  %v502_v36 = vld [vmem:[#allocation5 + $0xcd8] sm:$0xff] }
 0x105   :  { %v8000_v50 = vcombine.low %v382_v38, %v390_v40 }
 0x107   :  { %3432 = vmatpush1.bf16.msra.mxu0 %v7870_v45  ;;  %3514 = vmatpush1.bf16.msra.mxu1 %v7872_v46  ;;  %v405_v45 = vld [vmem:[#allocation5 + $0x9d0] sm:$0xff]  ;;  %v398_v46 = vld [vmem:[#allocation5 + $0x998] sm:$0xff] }
 0x108   :  { %3433 = vmatprep.subr.bf16.mxu0 %v7887_v47  ;;  %3515 = vmatprep.subr.bf16.mxu1 %v7889_v51  ;;  %v8001_v47 = vcombine.high %v382_v38, %v390_v40  ;;  %v8015_v51 = vcombine.high %v397_v44, %v405_v45  ;;  %v8014_v58 = vcombine.low %v397_v44, %v405_v45  ;;  %v509_v40 = vld [vmem:[#allocation5 + $0xd10] sm:$0xff]  ;;  %v518_v44 = vld [vmem:[#allocation5 + $0xd58] sm:$0xff] }
 0x109   :  { %v8016_v59 = vcombine.low %v398_v46, %v406_v48 }
 0x10b   :  { %3434 = vmatpush1.bf16.msra.mxu0 %v7886_v53  ;;  %3516 = vmatpush1.bf16.msra.mxu1 %v7888_v54  ;;  %v421_v53 = vld [vmem:[#allocation5 + $0xa50] sm:$0xff]  ;;  %v414_v54 = vld [vmem:[#allocation5 + $0xa18] sm:$0xff] }
 0x10c   :  { %3435 = vmatprep.subr.bf16.mxu0 %v7903_v55  ;;  %3517 = vmatprep.subr.bf16.mxu1 %v7905_v60  ;;  %v8017_v55 = vcombine.high %v398_v46, %v406_v48  ;;  %v8031_v60 = vcombine.high %v413_v52, %v421_v53  ;;  %v8030_v2 = vcombine.low %v413_v52, %v421_v53  ;;  %v525_v48 = vld [vmem:[#allocation5 + $0xd90] sm:$0xff]  ;;  %v534_v52 = vld [vmem:[#allocation5 + $0xdd8] sm:$0xff] }
 0x10d   :  { %v8032_v3 = vcombine.low %v414_v54, %v422_v56 }
 0x10f   :  { %3436 = vmatpush1.bf16.msra.mxu0 %v7902_v62  ;;  %3518 = vmatpush1.bf16.msra.mxu1 %v7904_v63  ;;  %v437_v62 = vld [vmem:[#allocation5 + $0xad0] sm:$0xff]  ;;  %v430_v63 = vld [vmem:[#allocation5 + $0xa98] sm:$0xff] }
 0x110   :  { %3437 = vmatprep.subr.bf16.mxu0 %v7919_v0  ;;  %3519 = vmatprep.subr.bf16.mxu1 %v7921_v4  ;;  %v8033_v0 = vcombine.high %v414_v54, %v422_v56  ;;  %v8047_v4 = vcombine.high %v429_v61, %v437_v62  ;;  %v8046_v10 = vcombine.low %v429_v61, %v437_v62  ;;  %v541_v56 = vld [vmem:[#allocation5 + $0xe10] sm:$0xff]  ;;  %v550_v61 = vld [vmem:[#allocation5 + $0xe58] sm:$0xff] }
 0x111   :  { %v8048_v11 = vcombine.low %v430_v63, %v438_v1 }
 0x113   :  { %3438 = vmatpush1.bf16.msra.mxu0 %v7918_v6  ;;  %3520 = vmatpush1.bf16.msra.mxu1 %v7920_v7  ;;  %v453_v6 = vld [vmem:[#allocation5 + $0xb50] sm:$0xff]  ;;  %v446_v7 = vld [vmem:[#allocation5 + $0xb18] sm:$0xff] }
 0x114   :  { %3439 = vmatprep.subr.bf16.mxu0 %v7935_v8  ;;  %3521 = vmatprep.subr.bf16.mxu1 %v7937_v13  ;;  %v8049_v8 = vcombine.high %v430_v63, %v438_v1  ;;  %v8063_v13 = vcombine.high %v445_v5, %v453_v6  ;;  %v8062_v19 = vcombine.low %v445_v5, %v453_v6  ;;  %v557_v1 = vld [vmem:[#allocation5 + $0xe90] sm:$0xff]  ;;  %v566_v5 = vld [vmem:[#allocation5 + $0xed8] sm:$0xff] }
 0x115   :  { %v8064_v20 = vcombine.low %v446_v7, %v454_v9 }
 0x117   :  { %3440 = vmatpush1.bf16.msra.mxu0 %v7934_v15  ;;  %3522 = vmatpush1.bf16.msra.mxu1 %v7936_v16  ;;  %v469_v15 = vld [vmem:[#allocation5 + $0xbd0] sm:$0xff]  ;;  %v8065_v16 = vcombine.high %v446_v7, %v454_v9 }
 0x118   :  { %3441 = vmatprep.subr.bf16.mxu0 %v7951_v17  ;;  %3523 = vmatprep.subr.bf16.mxu1 %v7953_v21  ;;  %v462_v17 = vld [vmem:[#allocation5 + $0xb98] sm:$0xff]  ;;  %v8079_v21 = vcombine.high %v461_v14, %v469_v15  ;;  %v8078_v29 = vcombine.low %v461_v14, %v469_v15  ;;  %v573_v9 = vld [vmem:[#allocation5 + $0xf10] sm:$0xff] }
 0x119   :  { %v8080_v30 = vcombine.low %v462_v17, %v470_v18  ;;  %v582_v14 = vld [vmem:[#allocation5 + $0xf58] sm:$0xff] }
 0x11b   :  { %3442 = vmatpush1.bf16.msra.mxu0 %v7950_v25  ;;  %3524 = vmatpush1.bf16.msra.mxu1 %v7952_v26  ;;  %v485_v25 = vld [vmem:[#allocation5 + $0xc50] sm:$0xff]  ;;  %v478_v26 = vld [vmem:[#allocation5 + $0xc18] sm:$0xff] }
 0x11c   :  { %3452 = vmatprep.subr.bf16.mxu0 %v7967_v27  ;;  %3534 = vmatprep.subr.bf16.mxu1 %v7969_v31  ;;  %v8081_v27 = vcombine.high %v462_v17, %v470_v18  ;;  %v8095_v31 = vcombine.high %v477_v22, %v485_v25  ;;  %v8094_v37 = vcombine.low %v477_v22, %v485_v25  ;;  %v589_v18 = vld [vmem:[#allocation5 + $0xf90] sm:$0xff]  ;;  %v598_v22 = vld [vmem:[#allocation5 + $0xfd8] sm:$0xff] }
 0x11d   :  { %v8096_v38 = vcombine.low %v478_v26, %v486_v28 }
 0x11e   :  { %3444 = vmatmul.mubr.bf16.vlgmr.msra.gmra.mrb[4].mxu0 %v9862_v12  ;;  %3526 = vmatmul.mubr.bf16.vlgmr.msra.gmra.mrb[4].mxu1 %v9862_v12 }
 0x11f   :  { %3453 = vmatpush1.bf16.msra.mxu0 %v7966_v33  ;;  %3535 = vmatpush1.bf16.msra.mxu1 %v7968_v34  ;;  %v501_v33 = vld [vmem:[#allocation5 + $0xcd0] sm:$0xff]  ;;  %v494_v34 = vld [vmem:[#allocation5 + $0xc98] sm:$0xff] }
 0x120   :  { %3454 = vmatprep.subr.bf16.mxu0 %v7983_v35  ;;  %3536 = vmatprep.subr.bf16.mxu1 %v7985_v39  ;;  %v8097_v35 = vcombine.high %v478_v26, %v486_v28  ;;  %v8111_v39 = vcombine.high %v493_v32, %v501_v33  ;;  %v8110_v45 = vcombine.low %v493_v32, %v501_v33  ;;  %v95_v28 = vld [vmem:[#allocation5 + $0x20] sm:$0xff]  ;;  %v104_v32 = vld [vmem:[#allocation5 + $0x68] sm:$0xff] }
 0x121   :  { %3484 = vmatprep.mubr.bf16.mxu0 %v9864_v24  ;;  %3566 = vmatprep.mubr.bf16.mxu1 %v9864_v24  ;;  %v8112_v46 = vcombine.low %v494_v34, %v502_v36 }
 0x123   :  { %3455 = vmatpush1.bf16.msra.mxu0 %v7982_v41  ;;  %3537 = vmatpush1.bf16.msra.mxu1 %v7984_v42  ;;  %v517_v41 = vld [vmem:[#allocation5 + $0xd50] sm:$0xff]  ;;  %v510_v42 = vld [vmem:[#allocation5 + $0xd18] sm:$0xff] }
 0x124   :  { %3456 = vmatprep.subr.bf16.mxu0 %v7999_v43  ;;  %3538 = vmatprep.subr.bf16.mxu1 %v8001_v47  ;;  %v8113_v43 = vcombine.high %v494_v34, %v502_v36  ;;  %v8127_v47 = vcombine.high %v509_v40, %v517_v41  ;;  %v8126_v53 = vcombine.low %v509_v40, %v517_v41  ;;  %v111_v36 = vld [vmem:[#allocation5 + $0xa0] sm:$0xff]  ;;  %v120_v40 = vld [vmem:[#allocation5 + $0xe8] sm:$0xff] }
 0x125   :  { %v8128_v54 = vcombine.low %v510_v42, %v518_v44 }
 0x127   :  { %3457 = vmatpush1.bf16.msra.mxu0 %v7998_v49  ;;  %3539 = vmatpush1.bf16.msra.mxu1 %v8000_v50  ;;  %v533_v49 = vld [vmem:[#allocation5 + $0xdd0] sm:$0xff]  ;;  %v526_v50 = vld [vmem:[#allocation5 + $0xd98] sm:$0xff] }
 0x128   :  { %3458 = vmatprep.subr.bf16.mxu0 %v8015_v51  ;;  %3540 = vmatprep.subr.bf16.mxu1 %v8017_v55  ;;  %v8129_v51 = vcombine.high %v510_v42, %v518_v44  ;;  %v8143_v55 = vcombine.high %v525_v48, %v533_v49  ;;  %v8142_v62 = vcombine.low %v525_v48, %v533_v49  ;;  %v127_v44 = vld [vmem:[#allocation5 + $0x120] sm:$0xff]  ;;  %v136_v48 = vld [vmem:[#allocation5 + $0x168] sm:$0xff] }
 0x129   :  { %v8144_v63 = vcombine.low %v526_v50, %v534_v52 }
 0x12b   :  { %3459 = vmatpush1.bf16.msra.mxu0 %v8014_v58  ;;  %3541 = vmatpush1.bf16.msra.mxu1 %v8016_v59  ;;  %v549_v58 = vld [vmem:[#allocation5 + $0xe50] sm:$0xff]  ;;  %v542_v59 = vld [vmem:[#allocation5 + $0xe18] sm:$0xff] }
 0x12c   :  { %3460 = vmatprep.subr.bf16.mxu0 %v8031_v60  ;;  %3542 = vmatprep.subr.bf16.mxu1 %v8033_v0  ;;  %v8145_v60 = vcombine.high %v526_v50, %v534_v52  ;;  %v8159_v0 = vcombine.high %v541_v56, %v549_v58  ;;  %v8158_v6 = vcombine.low %v541_v56, %v549_v58  ;;  %v143_v52 = vld [vmem:[#allocation5 + $0x1a0] sm:$0xff]  ;;  %v152_v56 = vld [vmem:[#allocation5 + $0x1e8] sm:$0xff] }
 0x12d   :  { %v8160_v7 = vcombine.low %v542_v59, %v550_v61 }
 0x12f   :  { %3461 = vmatpush1.bf16.msra.mxu0 %v8030_v2  ;;  %3543 = vmatpush1.bf16.msra.mxu1 %v8032_v3  ;;  %v565_v2 = vld [vmem:[#allocation5 + $0xed0] sm:$0xff]  ;;  %v558_v3 = vld [vmem:[#allocation5 + $0xe98] sm:$0xff] }
 0x130   :  { %3462 = vmatprep.subr.bf16.mxu0 %v8047_v4  ;;  %3544 = vmatprep.subr.bf16.mxu1 %v8049_v8  ;;  %v8161_v4 = vcombine.high %v542_v59, %v550_v61  ;;  %v8175_v8 = vcombine.high %v557_v1, %v565_v2  ;;  %v8174_v15 = vcombine.low %v557_v1, %v565_v2  ;;  %v159_v61 = vld [vmem:[#allocation5 + $0x220] sm:$0xff]  ;;  %v168_v1 = vld [vmem:[#allocation5 + $0x268] sm:$0xff] }
 0x133   :  { %3463 = vmatpush1.bf16.msra.mxu0 %v8046_v10  ;;  %3545 = vmatpush1.bf16.msra.mxu1 %v8048_v11  ;;  %v581_v10 = vld [vmem:[#allocation5 + $0xf50] sm:$0xff]  ;;  %v574_v11 = vld [vmem:[#allocation5 + $0xf18] sm:$0xff] }
 0x134   :  { %3464 = vmatprep.subr.bf16.mxu0 %v8063_v13  ;;  %3546 = vmatprep.subr.bf16.mxu1 %v8065_v16  ;;  %v8177_v13 = vcombine.high %v558_v3, %v566_v5  ;;  %v8176_v16 = vcombine.low %v558_v3, %v566_v5  ;;  %v8191_v17 = vcombine.high %v573_v9, %v581_v10  ;;  %v175_v5 = vld [vmem:[#allocation5 + $0x2a0] sm:$0xff] }
 0x135   :  { %v8190_v25 = vcombine.low %v573_v9, %v581_v10  ;;  %v8192_v26 = vcombine.low %v574_v11, %v582_v14  ;;  %v184_v9 = vld [vmem:[#allocation5 + $0x2e8] sm:$0xff] }
 0x137   :  { %3465 = vmatpush1.bf16.msra.mxu0 %v8062_v19  ;;  %3547 = vmatpush1.bf16.msra.mxu1 %v8064_v20  ;;  %v597_v19 = vld [vmem:[#allocation5 + $0xfd0] sm:$0xff]  ;;  %v590_v20 = vld [vmem:[#allocation5 + $0xf98] sm:$0xff] }
 0x138   :  { %3466 = vmatprep.subr.bf16.mxu0 %v8079_v21  ;;  %3548 = vmatprep.subr.bf16.mxu1 %v8081_v27  ;;  %v8193_v21 = vcombine.high %v574_v11, %v582_v14  ;;  %v8207_v27 = vcombine.high %v589_v18, %v597_v19  ;;  %v8206_v33 = vcombine.low %v589_v18, %v597_v19  ;;  %v191_v14 = vld [vmem:[#allocation5 + $0x320] sm:$0xff]  ;;  %v200_v18 = vld [vmem:[#allocation5 + $0x368] sm:$0xff] }
 0x139   :  { %v8208_v34 = vcombine.low %v590_v20, %v598_v22 }
 0x13b   :  { %3467 = vmatpush1.bf16.msra.mxu0 %v8078_v29  ;;  %3549 = vmatpush1.bf16.msra.mxu1 %v8080_v30  ;;  %v103_v29 = vld [vmem:[#allocation5 + $0x60] sm:$0xff]  ;;  %v96_v30 = vld [vmem:[#allocation5 + $0x28] sm:$0xff] }
 0x13c   :  { %3468 = vmatprep.subr.bf16.mxu0 %v8095_v31  ;;  %3550 = vmatprep.subr.bf16.mxu1 %v8097_v35  ;;  %v8209_v31 = vcombine.high %v590_v20, %v598_v22  ;;  %v7715_v35 = vcombine.high %v95_v28, %v103_v29  ;;  %v7714_v41 = vcombine.low %v95_v28, %v103_v29  ;;  %v207_v22 = vld [vmem:[#allocation5 + $0x3a0] sm:$0xff]  ;;  %v216_v28 = vld [vmem:[#allocation5 + $0x3e8] sm:$0xff] }
 0x13d   :  { %v7716_v42 = vcombine.low %v96_v30, %v104_v32 }
 0x13f   :  { %3469 = vmatpush1.bf16.msra.mxu0 %v8094_v37  ;;  %3551 = vmatpush1.bf16.msra.mxu1 %v8096_v38  ;;  %v119_v37 = vld [vmem:[#allocation5 + $0xe0] sm:$0xff]  ;;  %v112_v38 = vld [vmem:[#allocation5 + $0xa8] sm:$0xff] }
 0x140   :  { %3470 = vmatprep.subr.bf16.mxu0 %v8111_v39  ;;  %3552 = vmatprep.subr.bf16.mxu1 %v8113_v43  ;;  %v7717_v39 = vcombine.high %v96_v30, %v104_v32  ;;  %v7731_v43 = vcombine.high %v111_v36, %v119_v37  ;;  %v7730_v49 = vcombine.low %v111_v36, %v119_v37  ;;  %v223_v32 = vld [vmem:[#allocation5 + $0x420] sm:$0xff]  ;;  %v232_v36 = vld [vmem:[#allocation5 + $0x468] sm:$0xff] }
 0x141   :  { %v7732_v50 = vcombine.low %v112_v38, %v120_v40 }
 0x143   :  { %3471 = vmatpush1.bf16.msra.mxu0 %v8110_v45  ;;  %3553 = vmatpush1.bf16.msra.mxu1 %v8112_v46  ;;  %v135_v45 = vld [vmem:[#allocation5 + $0x160] sm:$0xff]  ;;  %v128_v46 = vld [vmem:[#allocation5 + $0x128] sm:$0xff] }
 0x144   :  { %3472 = vmatprep.subr.bf16.mxu0 %v8127_v47  ;;  %3554 = vmatprep.subr.bf16.mxu1 %v8129_v51  ;;  %v7733_v47 = vcombine.high %v112_v38, %v120_v40  ;;  %v7747_v51 = vcombine.high %v127_v44, %v135_v45  ;;  %v7746_v58 = vcombine.low %v127_v44, %v135_v45  ;;  %v239_v40 = vld [vmem:[#allocation5 + $0x4a0] sm:$0xff]  ;;  %v248_v44 = vld [vmem:[#allocation5 + $0x4e8] sm:$0xff] }
 0x145   :  { %v7748_v59 = vcombine.low %v128_v46, %v136_v48 }
 0x147   :  { %3473 = vmatpush1.bf16.msra.mxu0 %v8126_v53  ;;  %3555 = vmatpush1.bf16.msra.mxu1 %v8128_v54  ;;  %v151_v53 = vld [vmem:[#allocation5 + $0x1e0] sm:$0xff]  ;;  %v144_v54 = vld [vmem:[#allocation5 + $0x1a8] sm:$0xff] }
 0x148   :  { %3474 = vmatprep.subr.bf16.mxu0 %v8143_v55  ;;  %3556 = vmatprep.subr.bf16.mxu1 %v8145_v60  ;;  %v7749_v55 = vcombine.high %v128_v46, %v136_v48  ;;  %v7763_v60 = vcombine.high %v143_v52, %v151_v53  ;;  %v7762_v2 = vcombine.low %v143_v52, %v151_v53  ;;  %v255_v48 = vld [vmem:[#allocation5 + $0x520] sm:$0xff]  ;;  %v264_v52 = vld [vmem:[#allocation5 + $0x568] sm:$0xff] }
 0x149   :  { %v7764_v3 = vcombine.low %v144_v54, %v152_v56 }
 0x14b   :  { %3475 = vmatpush1.bf16.msra.mxu0 %v8142_v62  ;;  %3557 = vmatpush1.bf16.msra.mxu1 %v8144_v63  ;;  %v167_v62 = vld [vmem:[#allocation5 + $0x260] sm:$0xff]  ;;  %v160_v63 = vld [vmem:[#allocation5 + $0x228] sm:$0xff] }
 0x14c   :  { %3476 = vmatprep.subr.bf16.mxu0 %v8159_v0  ;;  %3558 = vmatprep.subr.bf16.mxu1 %v8161_v4  ;;  %v7765_v0 = vcombine.high %v144_v54, %v152_v56  ;;  %v7779_v4 = vcombine.high %v159_v61, %v167_v62  ;;  %v7778_v10 = vcombine.low %v159_v61, %v167_v62  ;;  %v271_v56 = vld [vmem:[#allocation5 + $0x5a0] sm:$0xff]  ;;  %v280_v61 = vld [vmem:[#allocation5 + $0x5e8] sm:$0xff] }
 0x14d   :  { %v7780_v11 = vcombine.low %v160_v63, %v168_v1 }
 0x14f   :  { %3477 = vmatpush1.bf16.msra.mxu0 %v8158_v6  ;;  %3559 = vmatpush1.bf16.msra.mxu1 %v8160_v7  ;;  %v183_v6 = vld [vmem:[#allocation5 + $0x2e0] sm:$0xff]  ;;  %v176_v7 = vld [vmem:[#allocation5 + $0x2a8] sm:$0xff] }
 0x150   :  { %3478 = vmatprep.subr.bf16.mxu0 %v8175_v8  ;;  %3560 = vmatprep.subr.bf16.mxu1 %v8177_v13  ;;  %v7781_v8 = vcombine.high %v160_v63, %v168_v1  ;;  %v7795_v13 = vcombine.high %v175_v5, %v183_v6  ;;  %v7794_v19 = vcombine.low %v175_v5, %v183_v6  ;;  %v287_v1 = vld [vmem:[#allocation5 + $0x620] sm:$0xff]  ;;  %v296_v5 = vld [vmem:[#allocation5 + $0x668] sm:$0xff] }
 0x151   :  { %v7796_v20 = vcombine.low %v176_v7, %v184_v9 }
 0x153   :  { %3479 = vmatpush1.bf16.msra.mxu0 %v8174_v15  ;;  %3561 = vmatpush1.bf16.msra.mxu1 %v8176_v16  ;;  %v199_v15 = vld [vmem:[#allocation5 + $0x360] sm:$0xff]  ;;  %v192_v16 = vld [vmem:[#allocation5 + $0x328] sm:$0xff] }
 0x154   :  { %3480 = vmatprep.subr.bf16.mxu0 %v8191_v17  ;;  %3562 = vmatprep.subr.bf16.mxu1 %v8193_v21  ;;  %v7797_v17 = vcombine.high %v176_v7, %v184_v9  ;;  %v7811_v21 = vcombine.high %v191_v14, %v199_v15  ;;  %v7810_v29 = vcombine.low %v191_v14, %v199_v15  ;;  %v303_v9 = vld [vmem:[#allocation5 + $0x6a0] sm:$0xff]  ;;  %v312_v14 = vld [vmem:[#allocation5 + $0x6e8] sm:$0xff] }
 0x155   :  { %v7812_v30 = vcombine.low %v192_v16, %v200_v18 }
 0x157   :  { %3481 = vmatpush1.bf16.msra.mxu0 %v8190_v25  ;;  %3563 = vmatpush1.bf16.msra.mxu1 %v8192_v26  ;;  %v215_v25 = vld [vmem:[#allocation5 + $0x3e0] sm:$0xff]  ;;  %v208_v26 = vld [vmem:[#allocation5 + $0x3a8] sm:$0xff] }
 0x158   :  { %3482 = vmatprep.subr.bf16.mxu0 %v8207_v27  ;;  %3564 = vmatprep.subr.bf16.mxu1 %v8209_v31  ;;  %v7813_v27 = vcombine.high %v192_v16, %v200_v18  ;;  %v7827_v31 = vcombine.high %v207_v22, %v215_v25  ;;  %v7826_v37 = vcombine.low %v207_v22, %v215_v25  ;;  %v319_v18 = vld [vmem:[#allocation5 + $0x720] sm:$0xff]  ;;  %v328_v22 = vld [vmem:[#allocation5 + $0x768] sm:$0xff] }
 0x159   :  { %v7828_v38 = vcombine.low %v208_v26, %v216_v28 }
 0x15b   :  { %3483 = vmatpush1.bf16.msra.mxu0 %v8206_v33  ;;  %3565 = vmatpush1.bf16.msra.mxu1 %v8208_v34  ;;  %v231_v33 = vld [vmem:[#allocation5 + $0x460] sm:$0xff]  ;;  %v224_v34 = vld [vmem:[#allocation5 + $0x428] sm:$0xff] }
 0x15c   :  { %3575 = vmatprep.subr.bf16.mxu0 %v7715_v35  ;;  %3657 = vmatprep.subr.bf16.mxu1 %v7717_v39  ;;  %v7829_v35 = vcombine.high %v208_v26, %v216_v28  ;;  %v7843_v39 = vcombine.high %v223_v32, %v231_v33  ;;  %v7842_v45 = vcombine.low %v223_v32, %v231_v33  ;;  %v335_v28 = vld [vmem:[#allocation5 + $0x7a0] sm:$0xff]  ;;  %v344_v32 = vld [vmem:[#allocation5 + $0x7e8] sm:$0xff] }
 0x15d   :  { %v7844_v46 = vcombine.low %v224_v34, %v232_v36 }
 0x15e   :  { %3485 = vmatmul.mubr.bf16.vlgmr.msra.gmra.mrb[4].mxu0 %v9870_v23  ;;  %3567 = vmatmul.mubr.bf16.vlgmr.msra.gmra.mrb[4].mxu1 %v9870_v23 }
 0x15f   :  { %3576 = vmatpush1.bf16.msra.mxu0 %v7714_v41  ;;  %3658 = vmatpush1.bf16.msra.mxu1 %v7716_v42  ;;  %v247_v41 = vld [vmem:[#allocation5 + $0x4e0] sm:$0xff]  ;;  %v240_v42 = vld [vmem:[#allocation5 + $0x4a8] sm:$0xff] }
 0x160   :  { %3577 = vmatprep.subr.bf16.mxu0 %v7731_v43  ;;  %3659 = vmatprep.subr.bf16.mxu1 %v7733_v47  ;;  %v7845_v43 = vcombine.high %v224_v34, %v232_v36  ;;  %v7859_v47 = vcombine.high %v239_v40, %v247_v41  ;;  %v7858_v53 = vcombine.low %v239_v40, %v247_v41  ;;  %v351_v36 = vld [vmem:[#allocation5 + $0x820] sm:$0xff]  ;;  %v360_v40 = vld [vmem:[#allocation5 + $0x868] sm:$0xff] }
 0x161   :  { %3607 = vmatprep.mubr.bf16.mxu0 %v9858_v57  ;;  %3689 = vmatprep.mubr.bf16.mxu1 %v9858_v57  ;;  %v7860_v54 = vcombine.low %v240_v42, %v248_v44 }
 0x163   :  { %3578 = vmatpush1.bf16.msra.mxu0 %v7730_v49  ;;  %3660 = vmatpush1.bf16.msra.mxu1 %v7732_v50  ;;  %v263_v49 = vld [vmem:[#allocation5 + $0x560] sm:$0xff]  ;;  %v256_v50 = vld [vmem:[#allocation5 + $0x528] sm:$0xff] }
 0x164   :  { %3579 = vmatprep.subr.bf16.mxu0 %v7747_v51  ;;  %3661 = vmatprep.subr.bf16.mxu1 %v7749_v55  ;;  %v7861_v51 = vcombine.high %v240_v42, %v248_v44  ;;  %v7875_v55 = vcombine.high %v255_v48, %v263_v49  ;;  %v7874_v62 = vcombine.low %v255_v48, %v263_v49  ;;  %v367_v44 = vld [vmem:[#allocation5 + $0x8a0] sm:$0xff]  ;;  %v376_v48 = vld [vmem:[#allocation5 + $0x8e8] sm:$0xff] }
 0x165   :  { %v7876_v63 = vcombine.low %v256_v50, %v264_v52 }
 0x167   :  { %3580 = vmatpush1.bf16.msra.mxu0 %v7746_v58  ;;  %3662 = vmatpush1.bf16.msra.mxu1 %v7748_v59  ;;  %v279_v58 = vld [vmem:[#allocation5 + $0x5e0] sm:$0xff]  ;;  %v272_v59 = vld [vmem:[#allocation5 + $0x5a8] sm:$0xff] }
 0x168   :  { %3581 = vmatprep.subr.bf16.mxu0 %v7763_v60  ;;  %3663 = vmatprep.subr.bf16.mxu1 %v7765_v0  ;;  %v7877_v60 = vcombine.high %v256_v50, %v264_v52  ;;  %v7891_v0 = vcombine.high %v271_v56, %v279_v58  ;;  %v7890_v6 = vcombine.low %v271_v56, %v279_v58  ;;  %v383_v52 = vld [vmem:[#allocation5 + $0x920] sm:$0xff]  ;;  %v392_v56 = vld [vmem:[#allocation5 + $0x968] sm:$0xff] }
 0x169   :  { %v7892_v7 = vcombine.low %v272_v59, %v280_v61 }
 0x16b   :  { %3582 = vmatpush1.bf16.msra.mxu0 %v7762_v2  ;;  %3664 = vmatpush1.bf16.msra.mxu1 %v7764_v3  ;;  %v295_v2 = vld [vmem:[#allocation5 + $0x660] sm:$0xff]  ;;  %v288_v3 = vld [vmem:[#allocation5 + $0x628] sm:$0xff] }
 0x16c   :  { %3583 = vmatprep.subr.bf16.mxu0 %v7779_v4  ;;  %3665 = vmatprep.subr.bf16.mxu1 %v7781_v8  ;;  %v7893_v4 = vcombine.high %v272_v59, %v280_v61  ;;  %v7907_v8 = vcombine.high %v287_v1, %v295_v2  ;;  %v7906_v15 = vcombine.low %v287_v1, %v295_v2  ;;  %v408_v1 = vld [vmem:[#allocation5 + $0x9e8] sm:$0xff] }
 0x16d   :  { %v7908_v16 = vcombine.low %v288_v3, %v296_v5 }
 0x16f   :  { %3584 = vmatpush1.bf16.msra.mxu0 %v7778_v10  ;;  %3666 = vmatpush1.bf16.msra.mxu1 %v7780_v11  ;;  %v311_v10 = vld [vmem:[#allocation5 + $0x6e0] sm:$0xff]  ;;  %v304_v11 = vld [vmem:[#allocation5 + $0x6a8] sm:$0xff] }
 0x170   :  { %3585 = vmatprep.subr.bf16.mxu0 %v7795_v13  ;;  %3667 = vmatprep.subr.bf16.mxu1 %v7797_v17  ;;  %v7909_v13 = vcombine.high %v288_v3, %v296_v5  ;;  %v7923_v17 = vcombine.high %v303_v9, %v311_v10  ;;  %v7922_v25 = vcombine.low %v303_v9, %v311_v10  ;;  %v424_v9 = vld [vmem:[#allocation5 + $0xa68] sm:$0xff] }
 0x171   :  { %v7924_v26 = vcombine.low %v304_v11, %v312_v14 }
 0x173   :  { %3586 = vmatpush1.bf16.msra.mxu0 %v7794_v19  ;;  %3668 = vmatpush1.bf16.msra.mxu1 %v7796_v20  ;;  %v327_v19 = vld [vmem:[#allocation5 + $0x760] sm:$0xff]  ;;  %v320_v20 = vld [vmem:[#allocation5 + $0x728] sm:$0xff] }
 0x174   :  { %3587 = vmatprep.subr.bf16.mxu0 %v7811_v21  ;;  %3669 = vmatprep.subr.bf16.mxu1 %v7813_v27  ;;  %v7925_v21 = vcombine.high %v304_v11, %v312_v14  ;;  %v7939_v27 = vcombine.high %v319_v18, %v327_v19  ;;  %v7938_v33 = vcombine.low %v319_v18, %v327_v19  ;;  %v440_v18 = vld [vmem:[#allocation5 + $0xae8] sm:$0xff] }
 0x175   :  { %v7940_v34 = vcombine.low %v320_v20, %v328_v22 }
 0x177   :  { %3588 = vmatpush1.bf16.msra.mxu0 %v7810_v29  ;;  %3670 = vmatpush1.bf16.msra.mxu1 %v7812_v30  ;;  %v343_v29 = vld [vmem:[#allocation5 + $0x7e0] sm:$0xff]  ;;  %v336_v30 = vld [vmem:[#allocation5 + $0x7a8] sm:$0xff] }
 0x178   :  { %3589 = vmatprep.subr.bf16.mxu0 %v7827_v31  ;;  %3671 = vmatprep.subr.bf16.mxu1 %v7829_v35  ;;  %v7941_v31 = vcombine.high %v320_v20, %v328_v22  ;;  %v7955_v35 = vcombine.high %v335_v28, %v343_v29  ;;  %v7954_v41 = vcombine.low %v335_v28, %v343_v29  ;;  %v456_v28 = vld [vmem:[#allocation5 + $0xb68] sm:$0xff] }
 0x179   :  { %v7956_v42 = vcombine.low %v336_v30, %v344_v32 }
 0x17b   :  { %3590 = vmatpush1.bf16.msra.mxu0 %v7826_v37  ;;  %3672 = vmatpush1.bf16.msra.mxu1 %v7828_v38  ;;  %v359_v37 = vld [vmem:[#allocation5 + $0x860] sm:$0xff]  ;;  %v352_v38 = vld [vmem:[#allocation5 + $0x828] sm:$0xff] }
 0x17c   :  { %3591 = vmatprep.subr.bf16.mxu0 %v7843_v39  ;;  %3673 = vmatprep.subr.bf16.mxu1 %v7845_v43  ;;  %v7957_v39 = vcombine.high %v336_v30, %v344_v32  ;;  %v7971_v43 = vcombine.high %v351_v36, %v359_v37  ;;  %v7970_v49 = vcombine.low %v351_v36, %v359_v37 }
 0x17d   :  { %v7972_v50 = vcombine.low %v352_v38, %v360_v40 }
 0x17f   :  { %3592 = vmatpush1.bf16.msra.mxu0 %v7842_v45  ;;  %3674 = vmatpush1.bf16.msra.mxu1 %v7844_v46  ;;  %v375_v45 = vld [vmem:[#allocation5 + $0x8e0] sm:$0xff]  ;;  %v368_v46 = vld [vmem:[#allocation5 + $0x8a8] sm:$0xff] }
 0x180   :  { %3593 = vmatprep.subr.bf16.mxu0 %v7859_v47  ;;  %3675 = vmatprep.subr.bf16.mxu1 %v7861_v51  ;;  %v7973_v47 = vcombine.high %v352_v38, %v360_v40  ;;  %v7987_v51 = vcombine.high %v367_v44, %v375_v45  ;;  %v7986_v58 = vcombine.low %v367_v44, %v375_v45  ;;  %v464_v38 = vld [vmem:[#allocation5 + $0xba8] sm:$0xff] }
 0x181   :  { %v7988_v59 = vcombine.low %v368_v46, %v376_v48 }
 0x183   :  { %3594 = vmatpush1.bf16.msra.mxu0 %v7858_v53  ;;  %3676 = vmatpush1.bf16.msra.mxu1 %v7860_v54  ;;  %v7989_v53 = vcombine.high %v368_v46, %v376_v48  ;;  %v391_v54 = vld [vmem:[#allocation5 + $0x960] sm:$0xff] }
 0x184   :  { %3595 = vmatprep.subr.bf16.mxu0 %v7875_v55  ;;  %3677 = vmatprep.subr.bf16.mxu1 %v7877_v60  ;;  %v384_v55 = vld [vmem:[#allocation5 + $0x928] sm:$0xff]  ;;  %v8003_v60 = vcombine.high %v383_v52, %v391_v54  ;;  %v8002_v2 = vcombine.low %v383_v52, %v391_v54 }
 0x185   :  { %v8005_v61 = vcombine.high %v384_v55, %v392_v56  ;;  %v8004_v3 = vcombine.low %v384_v55, %v392_v56  ;;  %v488_v52 = vld [vmem:[#allocation5 + $0xc68] sm:$0xff] }
 0x187   :  { %3596 = vmatpush1.bf16.msra.mxu0 %v7874_v62  ;;  %3678 = vmatpush1.bf16.msra.mxu1 %v7876_v63  ;;  %v399_v62 = vld [vmem:[#allocation5 + $0x9a0] sm:$0xff] }
 0x188   :  { %3597 = vmatprep.subr.bf16.mxu0 %v7891_v0  ;;  %3679 = vmatprep.subr.bf16.mxu1 %v7893_v4  ;;  %v407_v63 = vld [vmem:[#allocation5 + $0x9e0] sm:$0xff]  ;;  %v400_v0 = vld [vmem:[#allocation5 + $0x9a8] sm:$0xff] }
 0x189   :  { %v8019_v4 = vcombine.high %v399_v62, %v407_v63  ;;  %v8021_v5 = vcombine.high %v400_v0, %v408_v1  ;;  %v8018_v10 = vcombine.low %v399_v62, %v407_v63  ;;  %v8020_v11 = vcombine.low %v400_v0, %v408_v1 }
 0x18b   :  { %3598 = vmatpush1.bf16.msra.mxu0 %v7890_v6  ;;  %3680 = vmatpush1.bf16.msra.mxu1 %v7892_v7  ;;  %v415_v6 = vld [vmem:[#allocation5 + $0xa20] sm:$0xff] }
 0x18c   :  { %3599 = vmatprep.subr.bf16.mxu0 %v7907_v8  ;;  %3681 = vmatprep.subr.bf16.mxu1 %v7909_v13  ;;  %v423_v7 = vld [vmem:[#allocation5 + $0xa60] sm:$0xff]  ;;  %v416_v8 = vld [vmem:[#allocation5 + $0xa28] sm:$0xff] }
 0x18d   :  { %v8035_v13 = vcombine.high %v415_v6, %v423_v7  ;;  %v8037_v14 = vcombine.high %v416_v8, %v424_v9  ;;  %v8034_v19 = vcombine.low %v415_v6, %v423_v7  ;;  %v8036_v20 = vcombine.low %v416_v8, %v424_v9 }
 0x18f   :  { %3600 = vmatpush1.bf16.msra.mxu0 %v7906_v15  ;;  %3682 = vmatpush1.bf16.msra.mxu1 %v7908_v16  ;;  %v431_v15 = vld [vmem:[#allocation5 + $0xaa0] sm:$0xff] }
 0x190   :  { %3601 = vmatprep.subr.bf16.mxu0 %v7923_v17  ;;  %3683 = vmatprep.subr.bf16.mxu1 %v7925_v21  ;;  %v439_v16 = vld [vmem:[#allocation5 + $0xae0] sm:$0xff]  ;;  %v432_v17 = vld [vmem:[#allocation5 + $0xaa8] sm:$0xff] }
 0x191   :  { %v8051_v21 = vcombine.high %v431_v15, %v439_v16  ;;  %v8053_v22 = vcombine.high %v432_v17, %v440_v18  ;;  %v8050_v29 = vcombine.low %v431_v15, %v439_v16  ;;  %v8052_v30 = vcombine.low %v432_v17, %v440_v18 }
 0x193   :  { %3602 = vmatpush1.bf16.msra.mxu0 %v7922_v25  ;;  %3684 = vmatpush1.bf16.msra.mxu1 %v7924_v26  ;;  %v447_v25 = vld [vmem:[#allocation5 + $0xb20] sm:$0xff] }
 0x194   :  { %3603 = vmatprep.subr.bf16.mxu0 %v7939_v27  ;;  %3685 = vmatprep.subr.bf16.mxu1 %v7941_v31  ;;  %v455_v26 = vld [vmem:[#allocation5 + $0xb60] sm:$0xff]  ;;  %v448_v27 = vld [vmem:[#allocation5 + $0xb28] sm:$0xff] }
 0x195   :  { %v8067_v31 = vcombine.high %v447_v25, %v455_v26  ;;  %v8068_v45 = vcombine.low %v448_v27, %v456_v28 }
 0x197   :  { %3604 = vmatpush1.bf16.msra.mxu0 %v7938_v33  ;;  %3686 = vmatpush1.bf16.msra.mxu1 %v7940_v34  ;;  %v8069_v33 = vcombine.high %v448_v27, %v456_v28  ;;  %v463_v34 = vld [vmem:[#allocation5 + $0xba0] sm:$0xff] }
 0x198   :  { %3605 = vmatprep.subr.bf16.mxu0 %v7955_v35  ;;  %3687 = vmatprep.subr.bf16.mxu1 %v7957_v39  ;;  %v471_v35 = vld [vmem:[#allocation5 + $0xbe0] sm:$0xff]  ;;  %v472_v39 = vld [vmem:[#allocation5 + $0xbe8] sm:$0xff] }
 0x199   :  { %v8083_v46 = vcombine.high %v463_v34, %v471_v35  ;;  %v8085_v48 = vcombine.high %v464_v38, %v472_v39  ;;  %v8084_v54 = vcombine.low %v464_v38, %v472_v39 }
 0x19b   :  { %3606 = vmatpush1.bf16.msra.mxu0 %v7954_v41  ;;  %3688 = vmatpush1.bf16.msra.mxu1 %v7956_v42  ;;  %v8066_v42 = vcombine.low %v447_v25, %v455_v26 }
 0x19c   :  { %3616 = vmatprep.subr.bf16.mxu0 %v7971_v43  ;;  %3698 = vmatprep.subr.bf16.mxu1 %v7973_v47 }
 0x19e   :  { %3608 = vmatmul.mubr.bf16.vlgmr.msra.gmra.mrb[8].mxu0 %v9862_v12  ;;  %3690 = vmatmul.mubr.bf16.vlgmr.msra.gmra.mrb[8].mxu1 %v9862_v12 }
 0x19f   :  { %3617 = vmatpush1.bf16.msra.mxu0 %v7970_v49  ;;  %3699 = vmatpush1.bf16.msra.mxu1 %v7972_v50  ;;  %v479_v49 = vld [vmem:[#allocation5 + $0xc20] sm:$0xff] }
 0x1a0   :  { %3618 = vmatprep.subr.bf16.mxu0 %v7987_v51  ;;  %3700 = vmatprep.subr.bf16.mxu1 %v7989_v53  ;;  %v487_v50 = vld [vmem:[#allocation5 + $0xc60] sm:$0xff]  ;;  %v480_v51 = vld [vmem:[#allocation5 + $0xc28] sm:$0xff]  ;;  %v8082_v53 = vcombine.low %v463_v34, %v471_v35 }
 0x1a1   :  { %3648 = vmatprep.mubr.bf16.mxu0 %v9864_v24  ;;  %3730 = vmatprep.mubr.bf16.mxu1 %v9864_v24  ;;  %v8099_v55 = vcombine.high %v479_v49, %v487_v50  ;;  %v8101_v56 = vcombine.high %v480_v51, %v488_v52  ;;  %v8098_v62 = vcombine.low %v479_v49, %v487_v50  ;;  %v591_v49 = vld [vmem:[#allocation5 + $0xfa0] sm:$0xff] }
 0x1a2   :  { %v8100_v63 = vcombine.low %v480_v51, %v488_v52  ;;  %v599_v50 = vld [vmem:[#allocation5 + $0xfe0] sm:$0xff]  ;;  %v592_v51 = vld [vmem:[#allocation5 + $0xfa8] sm:$0xff] }
 0x1a3   :  { %3619 = vmatpush1.bf16.msra.mxu0 %v7986_v58  ;;  %3701 = vmatpush1.bf16.msra.mxu1 %v7988_v59  ;;  %v495_v58 = vld [vmem:[#allocation5 + $0xca0] sm:$0xff]  ;;  %v600_v52 = vld [vmem:[#allocation5 + $0xfe8] sm:$0xff] }
 0x1a4   :  { %3620 = vmatprep.subr.bf16.mxu0 %v8003_v60  ;;  %3702 = vmatprep.subr.bf16.mxu1 %v8005_v61  ;;  %v503_v59 = vld [vmem:[#allocation5 + $0xce0] sm:$0xff]  ;;  %v496_v60 = vld [vmem:[#allocation5 + $0xca8] sm:$0xff] }
 0x1a5   :  { %v504_v61 = vld [vmem:[#allocation5 + $0xce8] sm:$0xff]  ;;  %v8115_v0 = vcombine.high %v495_v58, %v503_v59  ;;  %v8114_v6 = vcombine.low %v495_v58, %v503_v59  ;;  %v97_v58 = vld [vmem:[#allocation5 + $0x30] sm:$0xff] }
 0x1a6   :  { %v8117_v1 = vcombine.high %v496_v60, %v504_v61  ;;  %v8116_v7 = vcombine.low %v496_v60, %v504_v61  ;;  %v105_v59 = vld [vmem:[#allocation5 + $0x70] sm:$0xff]  ;;  %v98_v60 = vld [vmem:[#allocation5 + $0x38] sm:$0xff] }
 0x1a7   :  { %3621 = vmatpush1.bf16.msra.mxu0 %v8002_v2  ;;  %3703 = vmatpush1.bf16.msra.mxu1 %v8004_v3  ;;  %v511_v2 = vld [vmem:[#allocation5 + $0xd20] sm:$0xff]  ;;  %v106_v61 = vld [vmem:[#allocation5 + $0x78] sm:$0xff] }
 0x1a8   :  { %3622 = vmatprep.subr.bf16.mxu0 %v8019_v4  ;;  %3704 = vmatprep.subr.bf16.mxu1 %v8021_v5  ;;  %v519_v3 = vld [vmem:[#allocation5 + $0xd60] sm:$0xff]  ;;  %v512_v4 = vld [vmem:[#allocation5 + $0xd28] sm:$0xff] }
 0x1a9   :  { %v520_v5 = vld [vmem:[#allocation5 + $0xd68] sm:$0xff]  ;;  %v8131_v8 = vcombine.high %v511_v2, %v519_v3  ;;  %v8130_v15 = vcombine.low %v511_v2, %v519_v3  ;;  %v113_v2 = vld [vmem:[#allocation5 + $0xb0] sm:$0xff] }
 0x1aa   :  { %v8133_v9 = vcombine.high %v512_v4, %v520_v5  ;;  %v8132_v16 = vcombine.low %v512_v4, %v520_v5  ;;  %v121_v3 = vld [vmem:[#allocation5 + $0xf0] sm:$0xff]  ;;  %v114_v4 = vld [vmem:[#allocation5 + $0xb8] sm:$0xff] }
 0x1ab   :  { %3623 = vmatpush1.bf16.msra.mxu0 %v8018_v10  ;;  %3705 = vmatpush1.bf16.msra.mxu1 %v8020_v11  ;;  %v527_v10 = vld [vmem:[#allocation5 + $0xda0] sm:$0xff]  ;;  %v122_v5 = vld [vmem:[#allocation5 + $0xf8] sm:$0xff] }
 0x1ac   :  { %3624 = vmatprep.subr.bf16.mxu0 %v8035_v13  ;;  %3706 = vmatprep.subr.bf16.mxu1 %v8037_v14  ;;  %v535_v11 = vld [vmem:[#allocation5 + $0xde0] sm:$0xff]  ;;  %v528_v13 = vld [vmem:[#allocation5 + $0xda8] sm:$0xff] }
 0x1ad   :  { %v536_v14 = vld [vmem:[#allocation5 + $0xde8] sm:$0xff]  ;;  %v8147_v17 = vcombine.high %v527_v10, %v535_v11  ;;  %v8146_v25 = vcombine.low %v527_v10, %v535_v11  ;;  %v129_v10 = vld [vmem:[#allocation5 + $0x130] sm:$0xff] }
 0x1ae   :  { %v8149_v18 = vcombine.high %v528_v13, %v536_v14  ;;  %v8148_v26 = vcombine.low %v528_v13, %v536_v14  ;;  %v137_v11 = vld [vmem:[#allocation5 + $0x170] sm:$0xff]  ;;  %v130_v13 = vld [vmem:[#allocation5 + $0x138] sm:$0xff] }
 0x1af   :  { %3625 = vmatpush1.bf16.msra.mxu0 %v8034_v19  ;;  %3707 = vmatpush1.bf16.msra.mxu1 %v8036_v20  ;;  %v543_v19 = vld [vmem:[#allocation5 + $0xe20] sm:$0xff]  ;;  %v138_v14 = vld [vmem:[#allocation5 + $0x178] sm:$0xff] }
 0x1b0   :  { %3626 = vmatprep.subr.bf16.mxu0 %v8051_v21  ;;  %3708 = vmatprep.subr.bf16.mxu1 %v8053_v22  ;;  %v551_v20 = vld [vmem:[#allocation5 + $0xe60] sm:$0xff]  ;;  %v544_v21 = vld [vmem:[#allocation5 + $0xe28] sm:$0xff] }
 0x1b1   :  { %v9888_v32 = vpop.f32.mrb[0].mxu0  ;;  %v9890_v36 = vpop.f32.mrb[0].mxu1  ;;  %v552_v22 = vld [vmem:[#allocation5 + $0xe68] sm:$0xff]  ;;  %v8163_v27 = vcombine.high %v543_v19, %v551_v20  ;;  %v8162_v34 = vcombine.low %v543_v19, %v551_v20  ;;  %v145_v19 = vld [vmem:[#allocation5 + $0x1b0] sm:$0xff] }
 0x1b2   :  { %v9892_v37 = vpop.f32.mrb[1].mxu0  ;;  %v9894_v40 = vpop.f32.mrb[1].mxu1  ;;  %v8165_v28 = vcombine.high %v544_v21, %v552_v22  ;;  %v8164_v35 = vcombine.low %v544_v21, %v552_v22  ;;  %v153_v20 = vld [vmem:[#allocation5 + $0x1f0] sm:$0xff]  ;;  %v146_v21 = vld [vmem:[#allocation5 + $0x1b8] sm:$0xff] }
 0x1b3   :  { %v3326_v41 = vpop.f32.mrb[2].mxu0  ;;  %3627 = vmatpush1.bf16.msra.mxu0 %v8050_v29  ;;  %v3408_v43 = vpop.f32.mrb[2].mxu1  ;;  %3709 = vmatpush1.bf16.msra.mxu1 %v8052_v30  ;;  %v559_v29 = vld [vmem:[#allocation5 + $0xea0] sm:$0xff]  ;;  %v154_v22 = vld [vmem:[#allocation5 + $0x1f8] sm:$0xff] }
 0x1b4   :  { %v3327_v44 = vpop.f32.mrb[3].mxu0  ;;  %3628 = vmatprep.subr.bf16.mxu0 %v8067_v31  ;;  %v3409_v47 = vpop.f32.mrb[3].mxu1  ;;  %3710 = vmatprep.subr.bf16.mxu1 %v8069_v33  ;;  %v567_v30 = vld [vmem:[#allocation5 + $0xee0] sm:$0xff]  ;;  %v560_v31 = vld [vmem:[#allocation5 + $0xea8] sm:$0xff] }
 0x1b5   :  { %v568_v33 = vld [vmem:[#allocation5 + $0xee8] sm:$0xff]  ;;  %v8179_v38 = vcombine.high %v559_v29, %v567_v30  ;;  %v575_v41 = vld [vmem:[#allocation5 + $0xf20] sm:$0xff] }
 0x1b6   :  { %v8181_v39 = vcombine.high %v560_v31, %v568_v33  ;;  %v576_v43 = vld [vmem:[#allocation5 + $0xf28] sm:$0xff] }
 0x1b7   :  { %3629 = vmatpush1.bf16.msra.mxu0 %v8066_v42  ;;  %3711 = vmatpush1.bf16.msra.mxu1 %v8068_v45  ;;  %v583_v42 = vld [vmem:[#allocation5 + $0xf60] sm:$0xff]  ;;  %v584_v44 = vld [vmem:[#allocation5 + $0xf68] sm:$0xff]  ;;  %v8178_v45 = vcombine.low %v559_v29, %v567_v30  ;;  %v161_v29 = vld [vmem:[#allocation5 + $0x230] sm:$0xff] }
 0x1b8   :  { %3630 = vmatprep.subr.bf16.mxu0 %v8083_v46  ;;  %3712 = vmatprep.subr.bf16.mxu1 %v8085_v48  ;;  %v8180_v46 = vcombine.low %v560_v31, %v568_v33  ;;  %v8195_v47 = vcombine.high %v575_v41, %v583_v42  ;;  %v8197_v48 = vcombine.high %v576_v43, %v584_v44  ;;  %v169_v30 = vld [vmem:[#allocation5 + $0x270] sm:$0xff]  ;;  %v162_v31 = vld [vmem:[#allocation5 + $0x238] sm:$0xff] }
 0x1b9   :  { %v170_v33 = vld [vmem:[#allocation5 + $0x278] sm:$0xff] }
 0x1bb   :  { %3631 = vmatpush1.bf16.msra.mxu0 %v8082_v53  ;;  %3713 = vmatpush1.bf16.msra.mxu1 %v8084_v54  ;;  %v8194_v53 = vcombine.low %v575_v41, %v583_v42  ;;  %v8196_v54 = vcombine.low %v576_v43, %v584_v44  ;;  %v185_v41 = vld [vmem:[#allocation5 + $0x2f0] sm:$0xff]  ;;  %v178_v42 = vld [vmem:[#allocation5 + $0x2b8] sm:$0xff]  ;;  %v7782_v44 = vcombine.low %v161_v29, %v169_v30 }
 0x1bc   :  { %3632 = vmatprep.subr.bf16.mxu0 %v8099_v55  ;;  %3714 = vmatprep.subr.bf16.mxu1 %v8101_v56  ;;  %v8211_v55 = vcombine.high %v591_v49, %v599_v50  ;;  %v8213_v56 = vcombine.high %v592_v51, %v600_v52  ;;  %v186_v43 = vld [vmem:[#allocation5 + $0x2f8] sm:$0xff] }
 0x1bf   :  { %3633 = vmatpush1.bf16.msra.mxu0 %v8098_v62  ;;  %3715 = vmatpush1.bf16.msra.mxu1 %v8100_v63  ;;  %v8210_v62 = vcombine.low %v591_v49, %v599_v50  ;;  %v8212_v63 = vcombine.low %v592_v51, %v600_v52  ;;  %v201_v49 = vld [vmem:[#allocation5 + $0x370] sm:$0xff]  ;;  %v194_v50 = vld [vmem:[#allocation5 + $0x338] sm:$0xff] }
 0x1c0   :  { %3634 = vmatprep.subr.bf16.mxu0 %v8115_v0  ;;  %3716 = vmatprep.subr.bf16.mxu1 %v8117_v1  ;;  %v7719_v0 = vcombine.high %v97_v58, %v105_v59  ;;  %v7721_v1 = vcombine.high %v98_v60, %v106_v61  ;;  %v202_v51 = vld [vmem:[#allocation5 + $0x378] sm:$0xff] }
 0x1c3   :  { %3635 = vmatpush1.bf16.msra.mxu0 %v8114_v6  ;;  %3717 = vmatpush1.bf16.msra.mxu1 %v8116_v7  ;;  %v7718_v6 = vcombine.low %v97_v58, %v105_v59  ;;  %v7720_v7 = vcombine.low %v98_v60, %v106_v61  ;;  %v217_v58 = vld [vmem:[#allocation5 + $0x3f0] sm:$0xff]  ;;  %v210_v59 = vld [vmem:[#allocation5 + $0x3b8] sm:$0xff] }
 0x1c4   :  { %3636 = vmatprep.subr.bf16.mxu0 %v8131_v8  ;;  %3718 = vmatprep.subr.bf16.mxu1 %v8133_v9  ;;  %v7735_v8 = vcombine.high %v113_v2, %v121_v3  ;;  %v7737_v9 = vcombine.high %v114_v4, %v122_v5  ;;  %v218_v60 = vld [vmem:[#allocation5 + $0x3f8] sm:$0xff] }
 0x1c7   :  { %3637 = vmatpush1.bf16.msra.mxu0 %v8130_v15  ;;  %3719 = vmatpush1.bf16.msra.mxu1 %v8132_v16  ;;  %v7734_v15 = vcombine.low %v113_v2, %v121_v3  ;;  %v7736_v16 = vcombine.low %v114_v4, %v122_v5  ;;  %v233_v2 = vld [vmem:[#allocation5 + $0x470] sm:$0xff]  ;;  %v226_v3 = vld [vmem:[#allocation5 + $0x438] sm:$0xff] }
 0x1c8   :  { %3638 = vmatprep.subr.bf16.mxu0 %v8147_v17  ;;  %3720 = vmatprep.subr.bf16.mxu1 %v8149_v18  ;;  %v7751_v17 = vcombine.high %v129_v10, %v137_v11  ;;  %v7753_v18 = vcombine.high %v130_v13, %v138_v14  ;;  %v234_v4 = vld [vmem:[#allocation5 + $0x478] sm:$0xff] }
 0x1cb   :  { %3639 = vmatpush1.bf16.msra.mxu0 %v8146_v25  ;;  %3721 = vmatpush1.bf16.msra.mxu1 %v8148_v26  ;;  %v7750_v25 = vcombine.low %v129_v10, %v137_v11  ;;  %v7752_v26 = vcombine.low %v130_v13, %v138_v14  ;;  %v249_v10 = vld [vmem:[#allocation5 + $0x4f0] sm:$0xff]  ;;  %v242_v11 = vld [vmem:[#allocation5 + $0x4b8] sm:$0xff] }
 0x1cc   :  { %3640 = vmatprep.subr.bf16.mxu0 %v8163_v27  ;;  %3722 = vmatprep.subr.bf16.mxu1 %v8165_v28  ;;  %v7767_v27 = vcombine.high %v145_v19, %v153_v20  ;;  %v7769_v28 = vcombine.high %v146_v21, %v154_v22  ;;  %v250_v13 = vld [vmem:[#allocation5 + $0x4f8] sm:$0xff] }
 0x1cf   :  { %3641 = vmatpush1.bf16.msra.mxu0 %v8162_v34  ;;  %3723 = vmatpush1.bf16.msra.mxu1 %v8164_v35  ;;  %v7766_v34 = vcombine.low %v145_v19, %v153_v20  ;;  %v7768_v35 = vcombine.low %v146_v21, %v154_v22  ;;  %v265_v19 = vld [vmem:[#allocation5 + $0x570] sm:$0xff]  ;;  %v258_v20 = vld [vmem:[#allocation5 + $0x538] sm:$0xff] }
 0x1d0   :  { %3642 = vmatprep.subr.bf16.mxu0 %v8179_v38  ;;  %3724 = vmatprep.subr.bf16.mxu1 %v8181_v39  ;;  %v7783_v38 = vcombine.high %v161_v29, %v169_v30  ;;  %v177_v39 = vld [vmem:[#allocation5 + $0x2b0] sm:$0xff]  ;;  %v266_v21 = vld [vmem:[#allocation5 + $0x578] sm:$0xff] }
 0x1d1   :  { %v7798_v52 = vcombine.low %v177_v39, %v185_v41  ;;  %v281_v29 = vld [vmem:[#allocation5 + $0x5f0] sm:$0xff]  ;;  %v274_v30 = vld [vmem:[#allocation5 + $0x5b8] sm:$0xff] }
 0x1d3   :  { %3643 = vmatpush1.bf16.msra.mxu0 %v8178_v45  ;;  %3725 = vmatpush1.bf16.msra.mxu1 %v8180_v46  ;;  %v7784_v45 = vcombine.low %v162_v31, %v170_v33  ;;  %v7799_v46 = vcombine.high %v177_v39, %v185_v41  ;;  %v297_v39 = vld [vmem:[#allocation5 + $0x670] sm:$0xff]  ;;  %v290_v41 = vld [vmem:[#allocation5 + $0x638] sm:$0xff] }
 0x1d4   :  { %3644 = vmatprep.subr.bf16.mxu0 %v8195_v47  ;;  %3726 = vmatprep.subr.bf16.mxu1 %v8197_v48  ;;  %v7801_v47 = vcombine.high %v178_v42, %v186_v43  ;;  %v193_v48 = vld [vmem:[#allocation5 + $0x330] sm:$0xff] }
 0x1d5   :  { %v7814_v61 = vcombine.low %v193_v48, %v201_v49 }
 0x1d7   :  { %3645 = vmatpush1.bf16.msra.mxu0 %v8194_v53  ;;  %3727 = vmatpush1.bf16.msra.mxu1 %v8196_v54  ;;  %v7800_v53 = vcombine.low %v178_v42, %v186_v43  ;;  %v7815_v54 = vcombine.high %v193_v48, %v201_v49  ;;  %v298_v42 = vld [vmem:[#allocation5 + $0x678] sm:$0xff]  ;;  %v313_v48 = vld [vmem:[#allocation5 + $0x6f0] sm:$0xff] }
 0x1d8   :  { %3646 = vmatprep.subr.bf16.mxu0 %v8211_v55  ;;  %3728 = vmatprep.subr.bf16.mxu1 %v8213_v56  ;;  %v7817_v55 = vcombine.high %v194_v50, %v202_v51  ;;  %v209_v56 = vld [vmem:[#allocation5 + $0x3b0] sm:$0xff]  ;;  %v306_v49 = vld [vmem:[#allocation5 + $0x6b8] sm:$0xff] }
 0x1d9   :  { %v7830_v5 = vcombine.low %v209_v56, %v217_v58 }
 0x1db   :  { %3647 = vmatpush1.bf16.msra.mxu0 %v8210_v62  ;;  %3729 = vmatpush1.bf16.msra.mxu1 %v8212_v63  ;;  %v7816_v62 = vcombine.low %v194_v50, %v202_v51  ;;  %v7831_v63 = vcombine.high %v209_v56, %v217_v58  ;;  %v314_v50 = vld [vmem:[#allocation5 + $0x6f8] sm:$0xff]  ;;  %v329_v56 = vld [vmem:[#allocation5 + $0x770] sm:$0xff] }
 0x1dc   :  { %3739 = vmatprep.subr.bf16.mxu0 %v7719_v0  ;;  %3821 = vmatprep.subr.bf16.mxu1 %v7721_v1  ;;  %v7833_v0 = vcombine.high %v210_v59, %v218_v60  ;;  %v225_v1 = vld [vmem:[#allocation5 + $0x430] sm:$0xff]  ;;  %v322_v58 = vld [vmem:[#allocation5 + $0x738] sm:$0xff] }
 0x1dd   :  { %v7846_v14 = vcombine.low %v225_v1, %v233_v2 }
 0x1de   :  { %3649 = vmatmul.mubr.bf16.vlgmr.msra.gmra.mrb[8].mxu0 %v9870_v23  ;;  %3731 = vmatmul.mubr.bf16.vlgmr.msra.gmra.mrb[8].mxu1 %v9870_v23 }
 0x1df   :  { %3740 = vmatpush1.bf16.msra.mxu0 %v7718_v6  ;;  %3822 = vmatpush1.bf16.msra.mxu1 %v7720_v7  ;;  %v7832_v6 = vcombine.low %v210_v59, %v218_v60  ;;  %v7847_v7 = vcombine.high %v225_v1, %v233_v2  ;;  %v330_v59 = vld [vmem:[#allocation5 + $0x778] sm:$0xff]  ;;  %v345_v1 = vld [vmem:[#allocation5 + $0x7f0] sm:$0xff] }
 0x1e0   :  { %3741 = vmatprep.subr.bf16.mxu0 %v7735_v8  ;;  %3823 = vmatprep.subr.bf16.mxu1 %v7737_v9  ;;  %v7849_v8 = vcombine.high %v226_v3, %v234_v4  ;;  %v241_v9 = vld [vmem:[#allocation5 + $0x4b0] sm:$0xff]  ;;  %v338_v2 = vld [vmem:[#allocation5 + $0x7b8] sm:$0xff] }
 0x1e1   :  { %3771 = vmatprep.mubr.bf16.mxu0 %v9858_v57  ;;  %3853 = vmatprep.mubr.bf16.mxu1 %v9858_v57  ;;  %v7785_v57 = vcombine.high %v162_v31, %v170_v33  ;;  %v7862_v22 = vcombine.low %v241_v9, %v249_v10  ;;  %v282_v31 = vld [vmem:[#allocation5 + $0x5f8] sm:$0xff] }
 0x1e3   :  { %3742 = vmatpush1.bf16.msra.mxu0 %v7734_v15  ;;  %3824 = vmatpush1.bf16.msra.mxu1 %v7736_v16  ;;  %v7848_v15 = vcombine.low %v226_v3, %v234_v4  ;;  %v7863_v16 = vcombine.high %v241_v9, %v249_v10  ;;  %v346_v3 = vld [vmem:[#allocation5 + $0x7f8] sm:$0xff]  ;;  %v361_v9 = vld [vmem:[#allocation5 + $0x870] sm:$0xff] }
 0x1e4   :  { %3743 = vmatprep.subr.bf16.mxu0 %v7751_v17  ;;  %3825 = vmatprep.subr.bf16.mxu1 %v7753_v18  ;;  %v7865_v17 = vcombine.high %v242_v11, %v250_v13  ;;  %v257_v18 = vld [vmem:[#allocation5 + $0x530] sm:$0xff]  ;;  %v354_v10 = vld [vmem:[#allocation5 + $0x838] sm:$0xff] }
 0x1e5   :  { %v7878_v33 = vcombine.low %v257_v18, %v265_v19 }
 0x1e7   :  { %3744 = vmatpush1.bf16.msra.mxu0 %v7750_v25  ;;  %3826 = vmatpush1.bf16.msra.mxu1 %v7752_v26  ;;  %v7864_v25 = vcombine.low %v242_v11, %v250_v13  ;;  %v7879_v26 = vcombine.high %v257_v18, %v265_v19  ;;  %v362_v11 = vld [vmem:[#allocation5 + $0x878] sm:$0xff]  ;;  %v377_v18 = vld [vmem:[#allocation5 + $0x8f0] sm:$0xff] }
 0x1e8   :  { %3745 = vmatprep.subr.bf16.mxu0 %v7767_v27  ;;  %3827 = vmatprep.subr.bf16.mxu1 %v7769_v28  ;;  %v7881_v27 = vcombine.high %v258_v20, %v266_v21  ;;  %v273_v28 = vld [vmem:[#allocation5 + $0x5b0] sm:$0xff]  ;;  %v370_v19 = vld [vmem:[#allocation5 + $0x8b8] sm:$0xff] }
 0x1e9   :  { %v7894_v43 = vcombine.low %v273_v28, %v281_v29 }
 0x1eb   :  { %3746 = vmatpush1.bf16.msra.mxu0 %v7766_v34  ;;  %3828 = vmatpush1.bf16.msra.mxu1 %v7768_v35  ;;  %v7880_v34 = vcombine.low %v258_v20, %v266_v21  ;;  %v7895_v35 = vcombine.high %v273_v28, %v281_v29  ;;  %v378_v20 = vld [vmem:[#allocation5 + $0x8f8] sm:$0xff]  ;;  %v393_v28 = vld [vmem:[#allocation5 + $0x970] sm:$0xff] }
 0x1ec   :  { %3747 = vmatprep.subr.bf16.mxu0 %v7783_v38  ;;  %3829 = vmatprep.subr.bf16.mxu1 %v7785_v57  ;;  %v7897_v38 = vcombine.high %v274_v30, %v282_v31  ;;  %v289_v57 = vld [vmem:[#allocation5 + $0x630] sm:$0xff]  ;;  %v386_v29 = vld [vmem:[#allocation5 + $0x938] sm:$0xff] }
 0x1ed   :  { %v7910_v51 = vcombine.low %v289_v57, %v297_v39 }
 0x1ef   :  { %3748 = vmatpush1.bf16.msra.mxu0 %v7782_v44  ;;  %3830 = vmatpush1.bf16.msra.mxu1 %v7784_v45  ;;  %v7896_v44 = vcombine.low %v274_v30, %v282_v31  ;;  %v7911_v45 = vcombine.high %v289_v57, %v297_v39  ;;  %v394_v30 = vld [vmem:[#allocation5 + $0x978] sm:$0xff]  ;;  %v409_v57 = vld [vmem:[#allocation5 + $0x9f0] sm:$0xff] }
 0x1f0   :  { %3749 = vmatprep.subr.bf16.mxu0 %v7799_v46  ;;  %3831 = vmatprep.subr.bf16.mxu1 %v7801_v47  ;;  %v7913_v46 = vcombine.high %v290_v41, %v298_v42  ;;  %v305_v47 = vld [vmem:[#allocation5 + $0x6b0] sm:$0xff]  ;;  %v402_v39 = vld [vmem:[#allocation5 + $0x9b8] sm:$0xff] }
 0x1f1   :  { %v7926_v60 = vcombine.low %v305_v47, %v313_v48 }
 0x1f3   :  { %3750 = vmatpush1.bf16.msra.mxu0 %v7798_v52  ;;  %3832 = vmatpush1.bf16.msra.mxu1 %v7800_v53  ;;  %v7912_v52 = vcombine.low %v290_v41, %v298_v42  ;;  %v7927_v53 = vcombine.high %v305_v47, %v313_v48  ;;  %v410_v41 = vld [vmem:[#allocation5 + $0x9f8] sm:$0xff] }
 0x1f4   :  { %3751 = vmatprep.subr.bf16.mxu0 %v7815_v54  ;;  %3833 = vmatprep.subr.bf16.mxu1 %v7817_v55  ;;  %v7929_v54 = vcombine.high %v306_v49, %v314_v50  ;;  %v321_v55 = vld [vmem:[#allocation5 + $0x730] sm:$0xff]  ;;  %v418_v47 = vld [vmem:[#allocation5 + $0xa38] sm:$0xff] }
 0x1f5   :  { %v7942_v4 = vcombine.low %v321_v55, %v329_v56  ;;  %v426_v48 = vld [vmem:[#allocation5 + $0xa78] sm:$0xff] }
 0x1f7   :  { %3752 = vmatpush1.bf16.msra.mxu0 %v7814_v61  ;;  %3834 = vmatpush1.bf16.msra.mxu1 %v7816_v62  ;;  %v7928_v61 = vcombine.low %v306_v49, %v314_v50  ;;  %v7943_v62 = vcombine.high %v321_v55, %v329_v56  ;;  %v8024_v50 = vcombine.low %v402_v39, %v410_v41  ;;  %v442_v55 = vld [vmem:[#allocation5 + $0xaf8] sm:$0xff] }
 0x1f8   :  { %3753 = vmatprep.subr.bf16.mxu0 %v7831_v63  ;;  %3835 = vmatprep.subr.bf16.mxu1 %v7833_v0  ;;  %v7945_v63 = vcombine.high %v322_v58, %v330_v59  ;;  %v337_v0 = vld [vmem:[#allocation5 + $0x7b0] sm:$0xff] }
 0x1f9   :  { %v7958_v13 = vcombine.low %v337_v0, %v345_v1 }
 0x1fb   :  { %3754 = vmatpush1.bf16.msra.mxu0 %v7830_v5  ;;  %3836 = vmatpush1.bf16.msra.mxu1 %v7832_v6  ;;  %v7944_v5 = vcombine.low %v322_v58, %v330_v59  ;;  %v7959_v6 = vcombine.high %v337_v0, %v345_v1  ;;  %v8040_v58 = vcombine.low %v418_v47, %v426_v48  ;;  %v458_v0 = vld [vmem:[#allocation5 + $0xb78] sm:$0xff] }
 0x1fc   :  { %3755 = vmatprep.subr.bf16.mxu0 %v7847_v7  ;;  %3837 = vmatprep.subr.bf16.mxu1 %v7849_v8  ;;  %v7961_v7 = vcombine.high %v338_v2, %v346_v3  ;;  %v353_v8 = vld [vmem:[#allocation5 + $0x830] sm:$0xff] }
 0x1fd   :  { %v7974_v21 = vcombine.low %v353_v8, %v361_v9 }
 0x1ff   :  { %3756 = vmatpush1.bf16.msra.mxu0 %v7846_v14  ;;  %3838 = vmatpush1.bf16.msra.mxu1 %v7848_v15  ;;  %v7960_v14 = vcombine.low %v338_v2, %v346_v3  ;;  %v7975_v15 = vcombine.high %v353_v8, %v361_v9 }
 0x200   :  { %3757 = vmatprep.subr.bf16.mxu0 %v7863_v16  ;;  %3839 = vmatprep.subr.bf16.mxu1 %v7865_v17  ;;  %v7977_v16 = vcombine.high %v354_v10, %v362_v11  ;;  %v369_v17 = vld [vmem:[#allocation5 + $0x8b0] sm:$0xff] }
 0x201   :  { %v7990_v31 = vcombine.low %v369_v17, %v377_v18 }
 0x203   :  { %3758 = vmatpush1.bf16.msra.mxu0 %v7862_v22  ;;  %3840 = vmatpush1.bf16.msra.mxu1 %v7864_v25  ;;  %v7976_v22 = vcombine.low %v354_v10, %v362_v11  ;;  %v7991_v25 = vcombine.high %v369_v17, %v377_v18  ;;  %v466_v10 = vld [vmem:[#allocation5 + $0xbb8] sm:$0xff] }
 0x204   :  { %3759 = vmatprep.subr.bf16.mxu0 %v7879_v26  ;;  %3841 = vmatprep.subr.bf16.mxu1 %v7881_v27  ;;  %v7993_v26 = vcombine.high %v370_v19, %v378_v20  ;;  %v385_v27 = vld [vmem:[#allocation5 + $0x930] sm:$0xff]  ;;  %v474_v11 = vld [vmem:[#allocation5 + $0xbf8] sm:$0xff] }
 0x205   :  { %v8006_v42 = vcombine.low %v385_v27, %v393_v28 }
 0x207   :  { %3760 = vmatpush1.bf16.msra.mxu0 %v7878_v33  ;;  %3842 = vmatpush1.bf16.msra.mxu1 %v7880_v34  ;;  %v7992_v33 = vcombine.low %v370_v19, %v378_v20  ;;  %v8007_v34 = vcombine.high %v385_v27, %v393_v28  ;;  %v490_v27 = vld [vmem:[#allocation5 + $0xc78] sm:$0xff] }
 0x208   :  { %3761 = vmatprep.subr.bf16.mxu0 %v7895_v35  ;;  %3843 = vmatprep.subr.bf16.mxu1 %v7897_v38  ;;  %v8009_v35 = vcombine.high %v386_v29, %v394_v30  ;;  %v401_v38 = vld [vmem:[#allocation5 + $0x9b0] sm:$0xff] }
 0x209   :  { %v8022_v49 = vcombine.low %v401_v38, %v409_v57 }
 0x20b   :  { %3762 = vmatpush1.bf16.msra.mxu0 %v7894_v43  ;;  %3844 = vmatpush1.bf16.msra.mxu1 %v7896_v44  ;;  %v8023_v43 = vcombine.high %v401_v38, %v409_v57  ;;  %v8025_v44 = vcombine.high %v402_v39, %v410_v41  ;;  %v506_v38 = vld [vmem:[#allocation5 + $0xcf8] sm:$0xff] }
 0x20c   :  { %3763 = vmatprep.subr.bf16.mxu0 %v7911_v45  ;;  %3845 = vmatprep.subr.bf16.mxu1 %v7913_v46  ;;  %v417_v45 = vld [vmem:[#allocation5 + $0xa30] sm:$0xff] }
 0x20d   :  { %v425_v46 = vld [vmem:[#allocation5 + $0xa70] sm:$0xff] }
 0x20e   :  { %v8038_v56 = vcombine.low %v417_v45, %v425_v46 }
 0x20f   :  { %3764 = vmatpush1.bf16.msra.mxu0 %v7910_v51  ;;  %3846 = vmatpush1.bf16.msra.mxu1 %v7912_v52  ;;  %v8039_v51 = vcombine.high %v417_v45, %v425_v46  ;;  %v433_v52 = vld [vmem:[#allocation5 + $0xab0] sm:$0xff]  ;;  %v522_v45 = vld [vmem:[#allocation5 + $0xd78] sm:$0xff] }
 0x210   :  { %3765 = vmatprep.subr.bf16.mxu0 %v7927_v53  ;;  %3847 = vmatprep.subr.bf16.mxu1 %v7929_v54  ;;  %v441_v53 = vld [vmem:[#allocation5 + $0xaf0] sm:$0xff]  ;;  %v434_v54 = vld [vmem:[#allocation5 + $0xab8] sm:$0xff] }
 0x211   :  { %v8055_v59 = vcombine.high %v433_v52, %v441_v53  ;;  %v8054_v1 = vcombine.low %v433_v52, %v441_v53  ;;  %v8056_v2 = vcombine.low %v434_v54, %v442_v55  ;;  %v538_v52 = vld [vmem:[#allocation5 + $0xdf8] sm:$0xff] }
 0x213   :  { %3766 = vmatpush1.bf16.msra.mxu0 %v7926_v60  ;;  %3848 = vmatpush1.bf16.msra.mxu1 %v7928_v61  ;;  %v8057_v60 = vcombine.high %v434_v54, %v442_v55  ;;  %v449_v61 = vld [vmem:[#allocation5 + $0xb30] sm:$0xff] }
 0x214   :  { %3767 = vmatprep.subr.bf16.mxu0 %v7943_v62  ;;  %3849 = vmatprep.subr.bf16.mxu1 %v7945_v63  ;;  %v457_v62 = vld [vmem:[#allocation5 + $0xb70] sm:$0xff]  ;;  %v450_v63 = vld [vmem:[#allocation5 + $0xb38] sm:$0xff] }
 0x215   :  { %v8071_v3 = vcombine.high %v449_v61, %v457_v62  ;;  %v8072_v18 = vcombine.low %v450_v63, %v458_v0 }
 0x217   :  { %3768 = vmatpush1.bf16.msra.mxu0 %v7942_v4  ;;  %3850 = vmatpush1.bf16.msra.mxu1 %v7944_v5  ;;  %v8073_v5 = vcombine.high %v450_v63, %v458_v0 }
 0x218   :  { %3769 = vmatprep.subr.bf16.mxu0 %v7959_v6  ;;  %3851 = vmatprep.subr.bf16.mxu1 %v7961_v7  ;;  %v465_v6 = vld [vmem:[#allocation5 + $0xbb0] sm:$0xff] }
 0x219   :  { %v473_v7 = vld [vmem:[#allocation5 + $0xbf0] sm:$0xff] }
 0x21a   :  { %v8087_v19 = vcombine.high %v465_v6, %v473_v7  ;;  %v8086_v28 = vcombine.low %v465_v6, %v473_v7  ;;  %v562_v7 = vld [vmem:[#allocation5 + $0xeb8] sm:$0xff] }
 0x21b   :  { %3770 = vmatpush1.bf16.msra.mxu0 %v7958_v13  ;;  %3852 = vmatpush1.bf16.msra.mxu1 %v7960_v14 }
 0x21c   :  { %3780 = vmatprep.subr.bf16.mxu0 %v7975_v15  ;;  %3862 = vmatprep.subr.bf16.mxu1 %v7977_v16  ;;  %v8070_v15 = vcombine.low %v449_v61, %v457_v62  ;;  %v546_v61 = vld [vmem:[#allocation5 + $0xe38] sm:$0xff] }
 0x21d   :  { %v554_v62 = vld [vmem:[#allocation5 + $0xe78] sm:$0xff] }
 0x21e   :  { %3772 = vmatmul.mubr.bf16.vlgmr.msra.gmra.mrb[12].mxu0 %v9862_v12  ;;  %3854 = vmatmul.mubr.bf16.vlgmr.msra.gmra.mrb[12].mxu1 %v9862_v12  ;;  %v8008_v12 = vcombine.low %v386_v29, %v394_v30  ;;  %v8088_v29 = vcombine.low %v466_v10, %v474_v11 }
 0x21f   :  { %3781 = vmatpush1.bf16.msra.mxu0 %v7974_v21  ;;  %3863 = vmatpush1.bf16.msra.mxu1 %v7976_v22  ;;  %v8089_v21 = vcombine.high %v466_v10, %v474_v11  ;;  %v481_v22 = vld [vmem:[#allocation5 + $0xc30] sm:$0xff]  ;;  %v570_v10 = vld [vmem:[#allocation5 + $0xef8] sm:$0xff] }
 0x220   :  { %3782 = vmatprep.subr.bf16.mxu0 %v7991_v25  ;;  %3864 = vmatprep.subr.bf16.mxu1 %v7993_v26  ;;  %v489_v25 = vld [vmem:[#allocation5 + $0xc70] sm:$0xff]  ;;  %v482_v26 = vld [vmem:[#allocation5 + $0xc38] sm:$0xff] }
 0x221   :  { %3812 = vmatprep.mubr.bf16.mxu0 %v9864_v24  ;;  %3894 = vmatprep.mubr.bf16.mxu1 %v9864_v24  ;;  %v8041_v24 = vcombine.high %v418_v47, %v426_v48  ;;  %v8103_v30 = vcombine.high %v481_v22, %v489_v25  ;;  %v8102_v57 = vcombine.low %v481_v22, %v489_v25  ;;  %v9917_v22 = vld [vmem:[#allocation7] sm:$0xff] }
 0x222   :  { %v8104_v39 = vcombine.low %v482_v26, %v490_v27 }
 0x223   :  { %3783 = vmatpush1.bf16.msra.mxu0 %v7990_v31  ;;  %3865 = vmatpush1.bf16.msra.mxu1 %v7992_v33  ;;  %v8105_v31 = vcombine.high %v482_v26, %v490_v27  ;;  %v497_v33 = vld [vmem:[#allocation5 + $0xcb0] sm:$0xff]  ;;  %v8184_v26 = vcombine.low %v562_v7, %v570_v10 }
 0x224   :  { %3784 = vmatprep.subr.bf16.mxu0 %v8007_v34  ;;  %3866 = vmatprep.subr.bf16.mxu1 %v8009_v35  ;;  %v505_v34 = vld [vmem:[#allocation5 + $0xcf0] sm:$0xff]  ;;  %v498_v35 = vld [vmem:[#allocation5 + $0xcb8] sm:$0xff] }
 0x225   :  { %v8119_v41 = vcombine.high %v497_v33, %v505_v34  ;;  %v8118_v46 = vcombine.low %v497_v33, %v505_v34  ;;  %v8120_v47 = vcombine.low %v498_v35, %v506_v38  ;;  %v594_v33 = vld [vmem:[#allocation5 + $0xfb8] sm:$0xff] }
 0x226   :  { %v602_v34 = vld [vmem:[#allocation5 + $0xff8] sm:$0xff] }
 0x227   :  { %3785 = vmatpush1.bf16.msra.mxu0 %v8006_v42  ;;  %3867 = vmatpush1.bf16.msra.mxu1 %v8008_v12  ;;  %v8121_v42 = vcombine.high %v498_v35, %v506_v38  ;;  %v513_v12 = vld [vmem:[#allocation5 + $0xd30] sm:$0xff] }
 0x228   :  { %3786 = vmatprep.subr.bf16.mxu0 %v8023_v43  ;;  %3868 = vmatprep.subr.bf16.mxu1 %v8025_v44  ;;  %v521_v43 = vld [vmem:[#allocation5 + $0xd70] sm:$0xff]  ;;  %v514_v44 = vld [vmem:[#allocation5 + $0xd38] sm:$0xff] }
 0x229   :  { %v8135_v48 = vcombine.high %v513_v12, %v521_v43  ;;  %v8134_v53 = vcombine.low %v513_v12, %v521_v43  ;;  %v8136_v54 = vcombine.low %v514_v44, %v522_v45  ;;  %v8216_v12 = vcombine.low %v594_v33, %v602_v34  ;;  %v8850_v43 = vld [vmem:[#allocation8 + $0x4] ss:$16 sps:$4 sm:$0xff]  }
 0x22b   :  { %3787 = vmatpush1.bf16.msra.mxu0 %v8022_v49  ;;  %3869 = vmatpush1.bf16.msra.mxu1 %v8024_v50  ;;  %v8137_v49 = vcombine.high %v514_v44, %v522_v45  ;;  %v529_v50 = vld [vmem:[#allocation5 + $0xdb0] sm:$0xff]  ;;  %v8853_v44 = vld [vmem:[#allocation8 + $0xc] ss:$16 sps:$4 sm:$0xff]  }
 0x22c   :  { %3788 = vmatprep.subr.bf16.mxu0 %v8039_v51  ;;  %3870 = vmatprep.subr.bf16.mxu1 %v8041_v24  ;;  %v537_v51 = vld [vmem:[#allocation5 + $0xdf0] sm:$0xff]  ;;  %v530_v24 = vld [vmem:[#allocation5 + $0xdb8] sm:$0xff] }
 0x22d   :  { %v8151_v55 = vcombine.high %v529_v50, %v537_v51  ;;  %v8150_v63 = vcombine.low %v529_v50, %v537_v51  ;;  %v8152_v0 = vcombine.low %v530_v24, %v538_v52  ;;  %v8854_v50 = vld [vmem:[#allocation8 + $0x20] ss:$16 sps:$4 sm:$0xff]   ;;  %v8857_v51 = vld [vmem:[#allocation8 + $0x28] ss:$16 sps:$4 sm:$0xff]  }
 0x22f   :  { %3789 = vmatpush1.bf16.msra.mxu0 %v8038_v56  ;;  %3871 = vmatpush1.bf16.msra.mxu1 %v8040_v58  ;;  %v8153_v56 = vcombine.high %v530_v24, %v538_v52  ;;  %v545_v58 = vld [vmem:[#allocation5 + $0xe30] sm:$0xff]  ;;  %v8865_v52 = vld [vmem:[#allocation8 + $0x4c] ss:$16 sps:$4 sm:$0xff]  }
 0x230   :  { %3790 = vmatprep.subr.bf16.mxu0 %v8055_v59  ;;  %3872 = vmatprep.subr.bf16.mxu1 %v8057_v60  ;;  %v553_v59 = vld [vmem:[#allocation5 + $0xe70] sm:$0xff]  ;;  %v607_v60 = vlaneseq }
 0x231   :  { %v9904_v4 = vpop.f32.mrb[4].mxu0  ;;  %v9906_v8 = vpop.f32.mrb[4].mxu1  ;;  %v8166_v11 = vcombine.low %v545_v58, %v553_v59  ;;  %v8862_v24 = vld [vmem:[#allocation8 + $0x44] ss:$16 sps:$4 sm:$0xff]  }
 0x232   :  { %v9908_v9 = vpop.f32.mrb[5].mxu0  ;;  %v9910_v13 = vpop.f32.mrb[5].mxu1  ;;  %v9912_v6 = vshrl.u32 %v607_v60, 7  ;;  %v8877_v60 = vld [vmem:[#allocation8 + $0x8c] ss:$16 sps:$4 sm:$0xff]  }
 0x233   :  { %v3490_v14 = vpop.f32.mrb[6].mxu0  ;;  %3791 = vmatpush1.bf16.msra.mxu0 %v8054_v1  ;;  %v3572_v16 = vpop.f32.mrb[6].mxu1  ;;  %3873 = vmatpush1.bf16.msra.mxu1 %v8056_v2  ;;  %v8167_v1 = vcombine.high %v545_v58, %v553_v59  ;;  %v8169_v2 = vcombine.high %v546_v61, %v554_v62  ;;  %v8869_v58 = vld [vmem:[#allocation8 + $0x68] ss:$16 sps:$4 sm:$0xff]   ;;  %v8874_v59 = vld [vmem:[#allocation8 + $0x84] ss:$16 sps:$4 sm:$0xff]  }
 0x234   :  { %v3491_v17 = vpop.f32.mrb[7].mxu0  ;;  %3792 = vmatprep.subr.bf16.mxu0 %v8071_v3  ;;  %v3573_v20 = vpop.f32.mrb[7].mxu1  ;;  %3874 = vmatprep.subr.bf16.mxu1 %v8073_v5  ;;  %v561_v3 = vld [vmem:[#allocation5 + $0xeb0] sm:$0xff]  ;;  %v8168_v14 = vcombine.low %v546_v61, %v554_v62  ;;  %v8185_v16 = vcombine.high %v562_v7, %v570_v10  ;;  %v8875_v62 = vld [vmem:[#allocation8 + $0x88] ss:$16 sps:$4 sm:$0xff]  }
 0x235   :  { %v569_v5 = vld [vmem:[#allocation5 + $0xef0] sm:$0xff]  ;;  %v578_v20 = vld [vmem:[#allocation5 + $0xf38] sm:$0xff] }
 0x236   :  { %v577_v17 = vld [vmem:[#allocation5 + $0xf30] sm:$0xff]  ;;  %v8182_v25 = vcombine.low %v561_v3, %v569_v5  ;;  %v8887_v10 = vld [vmem:[#allocation8 + $0xc8] ss:$16 sps:$4 sm:$0xff]  }
 0x237   :  { %3793 = vmatpush1.bf16.msra.mxu0 %v8070_v15  ;;  %3875 = vmatpush1.bf16.msra.mxu1 %v8072_v18  ;;  %v8183_v15 = vcombine.high %v561_v3, %v569_v5  ;;  %v585_v18 = vld [vmem:[#allocation5 + $0xf70] sm:$0xff]  ;;  %v8889_v5 = vld [vmem:[#allocation8 + $0xcc] ss:$16 sps:$4 sm:$0xff]  }
 0x238   :  { %3794 = vmatprep.subr.bf16.mxu0 %v8087_v19  ;;  %3876 = vmatprep.subr.bf16.mxu1 %v8089_v21  ;;  %v9915_v19 = vsub.s32 1, %v9912_v6  ;;  %v586_v21 = vld [vmem:[#allocation5 + $0xf78] sm:$0xff]  ;;  %v8199_v27 = vcombine.high %v577_v17, %v585_v18  ;;  %v8198_v35 = vcombine.low %v577_v17, %v585_v18  ;;  %v8872_v61 = vld [vmem:[#allocation8 + $0x80] ss:$16 sps:$4 sm:$0xff]   ;;  %v8886_v3 = vld [vmem:[#allocation8 + $0xc4] ss:$16 sps:$4 sm:$0xff]  }
 0x239   :  { %v8200_v38 = vcombine.low %v578_v20, %v586_v21  ;;  %v8884_v7 = vld [vmem:[#allocation8 + $0xc0] ss:$16 sps:$4 sm:$0xff]   ;;  %v8898_v17 = vld [vmem:[#allocation8 + $0x104] ss:$16 sps:$4 sm:$0xff]   ;;  %v8901_v18 = vld [vmem:[#allocation8 + $0x10c] ss:$16 sps:$4 sm:$0xff]  }
 0x23b   :  { %3795 = vmatpush1.bf16.msra.mxu0 %v8086_v28  ;;  %3877 = vmatpush1.bf16.msra.mxu1 %v8088_v29  ;;  %v8201_v28 = vcombine.high %v578_v20, %v586_v21  ;;  %v593_v29 = vld [vmem:[#allocation5 + $0xfb0] sm:$0xff]  ;;  %v8899_v21 = vld [vmem:[#allocation8 + $0x108] ss:$16 sps:$4 sm:$0xff]  }
 0x23c   :  { %3796 = vmatprep.subr.bf16.mxu0 %v8103_v30  ;;  %3878 = vmatprep.subr.bf16.mxu1 %v8105_v31  ;;  %v601_v30 = vld [vmem:[#allocation5 + $0xff0] sm:$0xff]  ;;  %v614_v31 = vrot.slane %v9917_v22, %v9915_v19 }
 0x23d   :  { %v8896_v20 = vld [vmem:[#allocation8 + $0x100] ss:$16 sps:$4 sm:$0xff]  }
 0x23f   :  { %3797 = vmatpush1.bf16.msra.mxu0 %v8102_v57  ;;  %3879 = vmatpush1.bf16.msra.mxu1 %v8104_v39  ;;  %v8215_v57 = vcombine.high %v593_v29, %v601_v30  ;;  %v8217_v39 = vcombine.high %v594_v33, %v602_v34  ;;  %v8911_v33 = vld [vmem:[#allocation8 + $0x148] ss:$16 sps:$4 sm:$0xff]   ;;  %v8916_v34 = vld [vmem:[#allocation8 + $0x164] ss:$16 sps:$4 sm:$0xff]  }
 0x240   :  { %3798 = vmatprep.subr.bf16.mxu0 %v8119_v41  ;;  %3880 = vmatprep.subr.bf16.mxu1 %v8121_v42  ;;  %v8731_v41 = vadd.f32 %v9892_v37, %v614_v31  ;;  %v8214_v42 = vcombine.low %v593_v29, %v601_v30  ;;  %v8859_v37 = vld [vmem:[#allocation8 + $0x2c] ss:$16 sps:$4 sm:$0xff]   ;;  %v8910_v29 = vld [vmem:[#allocation8 + $0x144] ss:$16 sps:$4 sm:$0xff]   ;;  %v8908_v31 = vld [vmem:[#allocation8 + $0x140] ss:$16 sps:$4 sm:$0xff]  }
 0x241   :  { %v8913_v30 = vld [vmem:[#allocation8 + $0x14c] ss:$16 sps:$4 sm:$0xff]  }
 0x242   :  { %v3904_v45 = vmax.f32 %v8731_v41, 0.0  ;;  %v8925_v41 = vld [vmem:[#allocation8 + $0x18c] ss:$16 sps:$4 sm:$0xff]  }
 0x243   :  { %3799 = vmatpush1.bf16.msra.mxu0 %v8118_v46  ;;  %3881 = vmatpush1.bf16.msra.mxu1 %v8120_v47  ;;  %v8848_v46 = vld [vmem:[#allocation8] ss:$16 sps:$4 sm:$0xff]   ;;  %v8851_v47 = vld [vmem:[#allocation8 + $0x8] ss:$16 sps:$4 sm:$0xff]  }
 0x244   :  { %3800 = vmatprep.subr.bf16.mxu0 %v8135_v48  ;;  %3882 = vmatprep.subr.bf16.mxu1 %v8137_v49  ;;  %v8856_v48 = vld [vmem:[#allocation8 + $0x24] ss:$16 sps:$4 sm:$0xff]   ;;  %v3920_v49 = vpack.c.bf16 %v3904_v45, %v3904_v45  ;;  %v8931_v45 = vld [vmem:[#allocation8 + $0x1ac] ss:$16 sps:$4 sm:$0xff]  }
 0x247   :  { %3801 = vmatpush1.bf16.msra.mxu0 %v8134_v53  ;;  %3883 = vmatpush1.bf16.msra.mxu1 %v8136_v54  ;;  %v8860_v53 = vld [vmem:[#allocation8 + $0x40] ss:$16 sps:$4 sm:$0xff]   ;;  %v8863_v54 = vld [vmem:[#allocation8 + $0x48] ss:$16 sps:$4 sm:$0xff]  }
 0x248   :  { %3802 = vmatprep.subr.bf16.mxu0 %v8151_v55  ;;  %3884 = vmatprep.subr.bf16.mxu1 %v8153_v56  ;;  %v8868_v55 = vld [vmem:[#allocation8 + $0x64] ss:$16 sps:$4 sm:$0xff]   ;;  %v8871_v56 = vld [vmem:[#allocation8 + $0x6c] ss:$16 sps:$4 sm:$0xff]  }
 0x24b   :  { %3803 = vmatpush1.bf16.msra.mxu0 %v8150_v63  ;;  %3885 = vmatpush1.bf16.msra.mxu1 %v8152_v0  ;;  %v8880_v63 = vld [vmem:[#allocation8 + $0xa4] ss:$16 sps:$4 sm:$0xff]   ;;  %v8883_v0 = vld [vmem:[#allocation8 + $0xac] ss:$16 sps:$4 sm:$0xff]  }
 0x24c   :  { %3804 = vmatprep.subr.bf16.mxu0 %v8167_v1  ;;  %3886 = vmatprep.subr.bf16.mxu1 %v8169_v2  ;;  %v8878_v1 = vld [vmem:[#allocation8 + $0xa0] ss:$16 sps:$4 sm:$0xff]   ;;  %v8881_v2 = vld [vmem:[#allocation8 + $0xa8] ss:$16 sps:$4 sm:$0xff]  }
 0x24f   :  { %3805 = vmatpush1.bf16.msra.mxu0 %v8166_v11  ;;  %3887 = vmatpush1.bf16.msra.mxu1 %v8168_v14  ;;  %v8892_v11 = vld [vmem:[#allocation8 + $0xe4] ss:$16 sps:$4 sm:$0xff]   ;;  %v8895_v14 = vld [vmem:[#allocation8 + $0xec] ss:$16 sps:$4 sm:$0xff]  }
 0x250   :  { %3806 = vmatprep.subr.bf16.mxu0 %v8183_v15  ;;  %3888 = vmatprep.subr.bf16.mxu1 %v8185_v16  ;;  %v8890_v15 = vld [vmem:[#allocation8 + $0xe0] ss:$16 sps:$4 sm:$0xff]   ;;  %v8893_v16 = vld [vmem:[#allocation8 + $0xe8] ss:$16 sps:$4 sm:$0xff]  }
 0x253   :  { %3807 = vmatpush1.bf16.msra.mxu0 %v8182_v25  ;;  %3889 = vmatpush1.bf16.msra.mxu1 %v8184_v26  ;;  %v8904_v25 = vld [vmem:[#allocation8 + $0x124] ss:$16 sps:$4 sm:$0xff]   ;;  %v8907_v26 = vld [vmem:[#allocation8 + $0x12c] ss:$16 sps:$4 sm:$0xff]  }
 0x254   :  { %3808 = vmatprep.subr.bf16.mxu0 %v8199_v27  ;;  %3890 = vmatprep.subr.bf16.mxu1 %v8201_v28  ;;  %v8902_v27 = vld [vmem:[#allocation8 + $0x120] ss:$16 sps:$4 sm:$0xff]   ;;  %v8905_v28 = vld [vmem:[#allocation8 + $0x128] ss:$16 sps:$4 sm:$0xff]  }
 0x257   :  { %3809 = vmatpush1.bf16.msra.mxu0 %v8198_v35  ;;  %3891 = vmatpush1.bf16.msra.mxu1 %v8200_v38  ;;  %v8919_v35 = vld [vmem:[#allocation8 + $0x16c] ss:$16 sps:$4 sm:$0xff]   ;;  %v8914_v38 = vld [vmem:[#allocation8 + $0x160] ss:$16 sps:$4 sm:$0xff]  }
 0x258   :  { %3810 = vmatprep.subr.bf16.mxu0 %v8215_v57  ;;  %3892 = vmatprep.subr.bf16.mxu1 %v8217_v39  ;;  %v8917_v57 = vld [vmem:[#allocation8 + $0x168] ss:$16 sps:$4 sm:$0xff]   ;;  %v8922_v39 = vld [vmem:[#allocation8 + $0x184] ss:$16 sps:$4 sm:$0xff]  }
 0x25b   :  { %3811 = vmatpush1.bf16.msra.mxu0 %v8214_v42  ;;  %3893 = vmatpush1.bf16.msra.mxu1 %v8216_v12  ;;  %v8920_v42 = vld [vmem:[#allocation8 + $0x180] ss:$16 sps:$4 sm:$0xff]   ;;  %v9925_v12 = vsub.s32 0, %v9912_v6 }
 0x25c   :  { %7029 = vmatprep.subr.bf16.mxu0 %v8850_v43  ;;  %7357 = vmatprep.subr.bf16.mxu1 %v8853_v44  ;;  %v8923_v43 = vld [vmem:[#allocation8 + $0x188] ss:$16 sps:$4 sm:$0xff]   ;;  %v8928_v44 = vld [vmem:[#allocation8 + $0x1a4] ss:$16 sps:$4 sm:$0xff]  }
 0x25e   :  { %3813 = vmatmul.mubr.bf16.vlgmr.msra.gmra.mrb[12].mxu0 %v9870_v23  ;;  %3895 = vmatmul.mubr.bf16.vlgmr.msra.gmra.mrb[12].mxu1 %v9870_v23  ;;  %v8866_v23 = vld [vmem:[#allocation8 + $0x60] ss:$16 sps:$4 sm:$0xff]  }
 0x25f   :  { %7030 = vmatpush1.bf16.msra.mxu0 %v8848_v46  ;;  %7061 = vmatprep.mubr.bf16.mxu0 %v3920_v49  ;;  %v9928_v46 = vsub.s32 3, %v9912_v6 }
 0x260   :  { %7358 = vmatpush1.bf16.msra.mxu1 %v8851_v47  ;;  %7389 = vmatprep.mubr.bf16.mxu1 %v3920_v49  ;;  %v8926_v47 = vld [vmem:[#allocation8 + $0x1a0] ss:$16 sps:$4 sm:$0xff]   ;;  %v8929_v49 = vld [vmem:[#allocation8 + $0x1a8] ss:$16 sps:$4 sm:$0xff]  }
 0x261   :  { %7031 = vmatprep.subr.bf16.mxu0 %v8856_v48  ;;  %7359 = vmatprep.subr.bf16.mxu1 %v8859_v37  ;;  %v610_v48 = vrot.slane %v9917_v22, %v9925_v12  ;;  %v8934_v37 = vld [vmem:[#allocation8 + $0x1c4] ss:$16 sps:$4 sm:$0xff]  }
 0x263   :  { %7032 = vmatpush1.bf16.msra.mxu0 %v8854_v50  ;;  %v8937_v50 = vld [vmem:[#allocation8 + $0x1cc] ss:$16 sps:$4 sm:$0xff]  }
 0x264   :  { %7360 = vmatpush1.bf16.msra.mxu1 %v8857_v51  ;;  %7033 = vmatprep.subr.bf16.mxu0 %v8862_v24  ;;  %v622_v51 = vrot.slane %v9917_v22, %v9928_v46  ;;  %v8932_v24 = vld [vmem:[#allocation8 + $0x1c0] ss:$16 sps:$4 sm:$0xff]  }
 0x265   :  { %7361 = vmatprep.subr.bf16.mxu1 %v8865_v52  ;;  %v8730_v52 = vadd.f32 %v9888_v32, %v610_v48  ;;  %v8944_v32 = vld [vmem:[#allocation8 + $0x200] ss:$16 sps:$4 sm:$0xff]   ;;  %v8991_v48 = vld [vmem:[#allocation8 + $0x2ec] ss:$16 sps:$4 sm:$0xff]  }
 0x267   :  { %7034 = vmatpush1.bf16.msra.mxu0 %v8860_v53  ;;  %v8935_v53 = vld [vmem:[#allocation8 + $0x1c8] ss:$16 sps:$4 sm:$0xff]  }
 0x268   :  { %7362 = vmatpush1.bf16.msra.mxu1 %v8863_v54  ;;  %7035 = vmatprep.subr.bf16.mxu0 %v8868_v55  ;;  %v8940_v54 = vld [vmem:[#allocation8 + $0x1e4] ss:$16 sps:$4 sm:$0xff]   ;;  %v8943_v55 = vld [vmem:[#allocation8 + $0x1ec] ss:$16 sps:$4 sm:$0xff]  }
 0x269   :  { %7363 = vmatprep.subr.bf16.mxu1 %v8871_v56  ;;  %v8733_v56 = vadd.f32 %v9894_v40, %v622_v51  ;;  %v8955_v40 = vld [vmem:[#allocation8 + $0x22c] ss:$16 sps:$4 sm:$0xff]  }
 0x26a   :  { %v8997_v51 = vld [vmem:[#allocation8 + $0x30c] ss:$16 sps:$4 sm:$0xff]  }
 0x26b   :  { %7036 = vmatpush1.bf16.msra.mxu0 %v8866_v23  ;;  %v8938_v23 = vld [vmem:[#allocation8 + $0x1e0] ss:$16 sps:$4 sm:$0xff]  }
 0x26c   :  { %7364 = vmatpush1.bf16.msra.mxu1 %v8869_v58  ;;  %7037 = vmatprep.subr.bf16.mxu0 %v8874_v59  ;;  %v3903_v58 = vmax.f32 %v8730_v52, 0.0  ;;  %v8941_v59 = vld [vmem:[#allocation8 + $0x1e8] ss:$16 sps:$4 sm:$0xff]  }
 0x26d   :  { %7365 = vmatprep.subr.bf16.mxu1 %v8877_v60  ;;  %v8946_v60 = vld [vmem:[#allocation8 + $0x204] ss:$16 sps:$4 sm:$0xff]   ;;  %v8995_v52 = vld [vmem:[#allocation8 + $0x308] ss:$16 sps:$4 sm:$0xff]  }
 0x26f   :  { %7038 = vmatpush1.bf16.msra.mxu0 %v8872_v61  ;;  %v8949_v61 = vld [vmem:[#allocation8 + $0x20c] ss:$16 sps:$4 sm:$0xff]  }
 0x270   :  { %7366 = vmatpush1.bf16.msra.mxu1 %v8875_v62  ;;  %7039 = vmatprep.subr.bf16.mxu0 %v8880_v63  ;;  %v3906_v62 = vmax.f32 %v8733_v56, 0.0  ;;  %v3919_v63 = vpack.c.bf16 %v3903_v58, %v3903_v58  ;;  %v9001_v56 = vld [vmem:[#allocation8 + $0x328] ss:$16 sps:$4 sm:$0xff]   ;;  %v9009_v58 = vld [vmem:[#allocation8 + $0x34c] ss:$16 sps:$4 sm:$0xff]  }
 0x271   :  { %7367 = vmatprep.subr.bf16.mxu1 %v8883_v0  ;;  %v8947_v0 = vld [vmem:[#allocation8 + $0x208] ss:$16 sps:$4 sm:$0xff]  }
 0x273   :  { %7040 = vmatpush1.bf16.msra.mxu0 %v8878_v1  ;;  %v8952_v1 = vld [vmem:[#allocation8 + $0x224] ss:$16 sps:$4 sm:$0xff]  }
 0x274   :  { %7368 = vmatpush1.bf16.msra.mxu1 %v8881_v2  ;;  %7041 = vmatprep.subr.bf16.mxu0 %v8886_v3  ;;  %v3922_v2 = vpack.c.bf16 %v3906_v62, %v3906_v62  ;;  %v8950_v3 = vld [vmem:[#allocation8 + $0x220] ss:$16 sps:$4 sm:$0xff]   ;;  %v9015_v62 = vld [vmem:[#allocation8 + $0x36c] ss:$16 sps:$4 sm:$0xff]  }
 0x275   :  { %7369 = vmatprep.subr.bf16.mxu1 %v8889_v5  ;;  %v8953_v5 = vld [vmem:[#allocation8 + $0x228] ss:$16 sps:$4 sm:$0xff]  }
 0x277   :  { %7042 = vmatpush1.bf16.msra.mxu0 %v8884_v7  ;;  %v8958_v7 = vld [vmem:[#allocation8 + $0x244] ss:$16 sps:$4 sm:$0xff]  }
 0x278   :  { %7370 = vmatpush1.bf16.msra.mxu1 %v8887_v10  ;;  %7043 = vmatprep.subr.bf16.mxu0 %v8892_v11  ;;  %v8961_v10 = vld [vmem:[#allocation8 + $0x24c] ss:$16 sps:$4 sm:$0xff]   ;;  %v8956_v11 = vld [vmem:[#allocation8 + $0x240] ss:$16 sps:$4 sm:$0xff]  }
 0x279   :  { %7371 = vmatprep.subr.bf16.mxu1 %v8895_v14  ;;  %v8959_v14 = vld [vmem:[#allocation8 + $0x248] ss:$16 sps:$4 sm:$0xff]  }
 0x27b   :  { %7044 = vmatpush1.bf16.msra.mxu0 %v8890_v15  ;;  %v8964_v15 = vld [vmem:[#allocation8 + $0x264] ss:$16 sps:$4 sm:$0xff]  }
 0x27c   :  { %7372 = vmatpush1.bf16.msra.mxu1 %v8893_v16  ;;  %7045 = vmatprep.subr.bf16.mxu0 %v8898_v17  ;;  %v8967_v16 = vld [vmem:[#allocation8 + $0x26c] ss:$16 sps:$4 sm:$0xff]   ;;  %v8962_v17 = vld [vmem:[#allocation8 + $0x260] ss:$16 sps:$4 sm:$0xff]  }
 0x27d   :  { %7373 = vmatprep.subr.bf16.mxu1 %v8901_v18  ;;  %v8965_v18 = vld [vmem:[#allocation8 + $0x268] ss:$16 sps:$4 sm:$0xff]  }
 0x27f   :  { %7046 = vmatpush1.bf16.msra.mxu0 %v8896_v20  ;;  %v8970_v20 = vld [vmem:[#allocation8 + $0x284] ss:$16 sps:$4 sm:$0xff]  }
 0x280   :  { %7374 = vmatpush1.bf16.msra.mxu1 %v8899_v21  ;;  %7047 = vmatprep.subr.bf16.mxu0 %v8904_v25  ;;  %v8973_v21 = vld [vmem:[#allocation8 + $0x28c] ss:$16 sps:$4 sm:$0xff]   ;;  %v8968_v25 = vld [vmem:[#allocation8 + $0x280] ss:$16 sps:$4 sm:$0xff]  }
 0x281   :  { %7375 = vmatprep.subr.bf16.mxu1 %v8907_v26  ;;  %v8971_v26 = vld [vmem:[#allocation8 + $0x288] ss:$16 sps:$4 sm:$0xff]  }
 0x283   :  { %7048 = vmatpush1.bf16.msra.mxu0 %v8902_v27  ;;  %v8976_v27 = vld [vmem:[#allocation8 + $0x2a4] ss:$16 sps:$4 sm:$0xff]  }
 0x284   :  { %7376 = vmatpush1.bf16.msra.mxu1 %v8905_v28  ;;  %7049 = vmatprep.subr.bf16.mxu0 %v8910_v29  ;;  %v8979_v28 = vld [vmem:[#allocation8 + $0x2ac] ss:$16 sps:$4 sm:$0xff]   ;;  %v8974_v29 = vld [vmem:[#allocation8 + $0x2a0] ss:$16 sps:$4 sm:$0xff]  }
 0x285   :  { %7377 = vmatprep.subr.bf16.mxu1 %v8913_v30  ;;  %v8977_v30 = vld [vmem:[#allocation8 + $0x2a8] ss:$16 sps:$4 sm:$0xff]  }
 0x287   :  { %7050 = vmatpush1.bf16.msra.mxu0 %v8908_v31  ;;  %v8982_v31 = vld [vmem:[#allocation8 + $0x2c4] ss:$16 sps:$4 sm:$0xff]  }
 0x288   :  { %7378 = vmatpush1.bf16.msra.mxu1 %v8911_v33  ;;  %7051 = vmatprep.subr.bf16.mxu0 %v8916_v34  ;;  %v8985_v34 = vld [vmem:[#allocation8 + $0x2cc] ss:$16 sps:$4 sm:$0xff]  }
 0x289   :  { %7379 = vmatprep.subr.bf16.mxu1 %v8919_v35 }
 0x28b   :  { %7052 = vmatpush1.bf16.msra.mxu0 %v8914_v38 }
 0x28c   :  { %7380 = vmatpush1.bf16.msra.mxu1 %v8917_v57  ;;  %7053 = vmatprep.subr.bf16.mxu0 %v8922_v39 }
 0x28d   :  { %7381 = vmatprep.subr.bf16.mxu1 %v8925_v41  ;;  %v8980_v41 = vld [vmem:[#allocation8 + $0x2c0] ss:$16 sps:$4 sm:$0xff]  }
 0x28f   :  { %7054 = vmatpush1.bf16.msra.mxu0 %v8920_v42 }
 0x290   :  { %7382 = vmatpush1.bf16.msra.mxu1 %v8923_v43  ;;  %7055 = vmatprep.subr.bf16.mxu0 %v8928_v44  ;;  %v8983_v44 = vld [vmem:[#allocation8 + $0x2c8] ss:$16 sps:$4 sm:$0xff]  }
 0x291   :  { %7383 = vmatprep.subr.bf16.mxu1 %v8931_v45  ;;  %v8988_v45 = vld [vmem:[#allocation8 + $0x2e4] ss:$16 sps:$4 sm:$0xff]  }
 0x293   :  { %7056 = vmatpush1.bf16.msra.mxu0 %v8926_v47 }
 0x294   :  { %7384 = vmatpush1.bf16.msra.mxu1 %v8929_v49  ;;  %7057 = vmatprep.subr.bf16.mxu0 %v8934_v37  ;;  %v8986_v49 = vld [vmem:[#allocation8 + $0x2e0] ss:$16 sps:$4 sm:$0xff]   ;;  %v8989_v37 = vld [vmem:[#allocation8 + $0x2e8] ss:$16 sps:$4 sm:$0xff]  }
 0x295   :  { %7385 = vmatprep.subr.bf16.mxu1 %v8937_v50  ;;  %v8994_v50 = vld [vmem:[#allocation8 + $0x304] ss:$16 sps:$4 sm:$0xff]  }
 0x297   :  { %7058 = vmatpush1.bf16.msra.mxu0 %v8932_v24  ;;  %v8992_v24 = vld [vmem:[#allocation8 + $0x300] ss:$16 sps:$4 sm:$0xff]  }
 0x298   :  { %7386 = vmatpush1.bf16.msra.mxu1 %v8935_v53  ;;  %7059 = vmatprep.subr.bf16.mxu0 %v8940_v54  ;;  %v9000_v53 = vld [vmem:[#allocation8 + $0x324] ss:$16 sps:$4 sm:$0xff]   ;;  %v9003_v54 = vld [vmem:[#allocation8 + $0x32c] ss:$16 sps:$4 sm:$0xff]  }
 0x299   :  { %7387 = vmatprep.subr.bf16.mxu1 %v8943_v55  ;;  %v8998_v55 = vld [vmem:[#allocation8 + $0x320] ss:$16 sps:$4 sm:$0xff]  }
 0x29b   :  { %7060 = vmatpush1.bf16.msra.mxu0 %v8938_v23  ;;  %v9006_v23 = vld [vmem:[#allocation8 + $0x344] ss:$16 sps:$4 sm:$0xff]  }
 0x29c   :  { %7388 = vmatpush1.bf16.msra.mxu1 %v8941_v59  ;;  %7070 = vmatprep.subr.bf16.mxu0 %v8946_v60  ;;  %v9004_v59 = vld [vmem:[#allocation8 + $0x340] ss:$16 sps:$4 sm:$0xff]   ;;  %v9007_v60 = vld [vmem:[#allocation8 + $0x348] ss:$16 sps:$4 sm:$0xff]  }
 0x29d   :  { %7398 = vmatprep.subr.bf16.mxu1 %v8949_v61  ;;  %v9012_v61 = vld [vmem:[#allocation8 + $0x364] ss:$16 sps:$4 sm:$0xff]  }
 0x29e   :  { %7062 = vmatmul.mubr.bf16.vlgmr.msra.gmra.mrb[16].mxu0 %v3919_v63 }
 0x29f   :  { %7390 = vmatmul.mubr.bf16.vlgmr.msra.gmra.mrb[16].mxu1 %v3919_v63  ;;  %7071 = vmatpush1.bf16.msra.mxu0 %v8944_v32  ;;  %v9010_v32 = vld [vmem:[#allocation8 + $0x360] ss:$16 sps:$4 sm:$0xff]   ;;  %v9013_v63 = vld [vmem:[#allocation8 + $0x368] ss:$16 sps:$4 sm:$0xff]  }
 0x2a0   :  { %7102 = vmatprep.mubr.bf16.mxu0 %v3922_v2  ;;  %7399 = vmatpush1.bf16.msra.mxu1 %v8947_v0  ;;  %v9018_v0 = vld [vmem:[#allocation8 + $0x384] ss:$16 sps:$4 sm:$0xff]  }
 0x2a1   :  { %7430 = vmatprep.mubr.bf16.mxu1 %v3922_v2  ;;  %7072 = vmatprep.subr.bf16.mxu0 %v8952_v1  ;;  %v9021_v1 = vld [vmem:[#allocation8 + $0x38c] ss:$16 sps:$4 sm:$0xff]   ;;  %v9016_v2 = vld [vmem:[#allocation8 + $0x380] ss:$16 sps:$4 sm:$0xff]  }
 0x2a2   :  { %7400 = vmatprep.subr.bf16.mxu1 %v8955_v40  ;;  %v9945_v40 = vsub.s32 2, %v9912_v6 }
 0x2a3   :  { %7073 = vmatpush1.bf16.msra.mxu0 %v8950_v3  ;;  %v9019_v3 = vld [vmem:[#allocation8 + $0x388] ss:$16 sps:$4 sm:$0xff]  }
 0x2a4   :  { %7401 = vmatpush1.bf16.msra.mxu1 %v8953_v5  ;;  %7074 = vmatprep.subr.bf16.mxu0 %v8958_v7  ;;  %v9024_v5 = vld [vmem:[#allocation8 + $0x3a4] ss:$16 sps:$4 sm:$0xff]   ;;  %v9027_v7 = vld [vmem:[#allocation8 + $0x3ac] ss:$16 sps:$4 sm:$0xff]  }
 0x2a5   :  { %7402 = vmatprep.subr.bf16.mxu1 %v8961_v10  ;;  %v629_v10 = vsub.s32 5, %v9912_v6 }
 0x2a7   :  { %7075 = vmatpush1.bf16.msra.mxu0 %v8956_v11  ;;  %v9022_v11 = vld [vmem:[#allocation8 + $0x3a0] ss:$16 sps:$4 sm:$0xff]  }
 0x2a8   :  { %7403 = vmatpush1.bf16.msra.mxu1 %v8959_v14  ;;  %7076 = vmatprep.subr.bf16.mxu0 %v8964_v15  ;;  %v618_v14 = vrot.slane %v9917_v22, %v9945_v40  ;;  %v9025_v15 = vld [vmem:[#allocation8 + $0x3a8] ss:$16 sps:$4 sm:$0xff]  }
 0x2a9   :  { %7404 = vmatprep.subr.bf16.mxu1 %v8967_v16  ;;  %v9030_v16 = vld [vmem:[#allocation8 + $0x3c4] ss:$16 sps:$4 sm:$0xff]  }
 0x2ab   :  { %7077 = vmatpush1.bf16.msra.mxu0 %v8962_v17  ;;  %v9033_v17 = vld [vmem:[#allocation8 + $0x3cc] ss:$16 sps:$4 sm:$0xff]  }
 0x2ac   :  { %7405 = vmatpush1.bf16.msra.mxu1 %v8965_v18  ;;  %7078 = vmatprep.subr.bf16.mxu0 %v8970_v20  ;;  %v630_v18 = vrot.slane %v9917_v22, %v629_v10  ;;  %v9028_v20 = vld [vmem:[#allocation8 + $0x3c0] ss:$16 sps:$4 sm:$0xff]  }
 0x2ad   :  { %7406 = vmatprep.subr.bf16.mxu1 %v8973_v21  ;;  %v8732_v21 = vadd.f32 %v9890_v36, %v618_v14  ;;  %v9040_v36 = vld [vmem:[#allocation8 + $0x400] ss:$16 sps:$4 sm:$0xff]   ;;  %v9093_v14 = vld [vmem:[#allocation8 + $0x50c] ss:$16 sps:$4 sm:$0xff]  }
 0x2af   :  { %7079 = vmatpush1.bf16.msra.mxu0 %v8968_v25  ;;  %v9031_v25 = vld [vmem:[#allocation8 + $0x3c8] ss:$16 sps:$4 sm:$0xff]  }
 0x2b0   :  { %7407 = vmatpush1.bf16.msra.mxu1 %v8971_v26  ;;  %7080 = vmatprep.subr.bf16.mxu0 %v8976_v27  ;;  %v9036_v26 = vld [vmem:[#allocation8 + $0x3e4] ss:$16 sps:$4 sm:$0xff]   ;;  %v9039_v27 = vld [vmem:[#allocation8 + $0x3ec] ss:$16 sps:$4 sm:$0xff]  }
 0x2b1   :  { %v9936_v33 = vpop.f32.mrb[8].mxu0  ;;  %7408 = vmatprep.subr.bf16.mxu1 %v8979_v28  ;;  %v9938_v35 = vpop.f32.mrb[8].mxu1  ;;  %v8735_v28 = vadd.f32 %v9908_v9, %v630_v18  ;;  %v9051_v9 = vld [vmem:[#allocation8 + $0x42c] ss:$16 sps:$4 sm:$0xff]  }
 0x2b2   :  { %v9940_v38 = vpop.f32.mrb[9].mxu0  ;;  %v9942_v57 = vpop.f32.mrb[9].mxu1  ;;  %v9099_v18 = vld [vmem:[#allocation8 + $0x52c] ss:$16 sps:$4 sm:$0xff]  }
 0x2b3   :  { %v3654_v39 = vpop.f32.mrb[10].mxu0  ;;  %7081 = vmatpush1.bf16.msra.mxu0 %v8974_v29  ;;  %v3736_v42 = vpop.f32.mrb[10].mxu1  ;;  %v9034_v29 = vld [vmem:[#allocation8 + $0x3e0] ss:$16 sps:$4 sm:$0xff]  }
 0x2b4   :  { %7409 = vmatpush1.bf16.msra.mxu1 %v8977_v30  ;;  %v3655_v43 = vpop.f32.mrb[11].mxu0  ;;  %7082 = vmatprep.subr.bf16.mxu0 %v8982_v31  ;;  %v3737_v47 = vpop.f32.mrb[11].mxu1  ;;  %v3905_v30 = vmax.f32 %v8732_v21, 0.0  ;;  %v9037_v31 = vld [vmem:[#allocation8 + $0x3e8] ss:$16 sps:$4 sm:$0xff]  }
 0x2b5   :  { %7410 = vmatprep.subr.bf16.mxu1 %v8985_v34  ;;  %v9042_v34 = vld [vmem:[#allocation8 + $0x404] ss:$16 sps:$4 sm:$0xff]   ;;  %v9045_v39 = vld [vmem:[#allocation8 + $0x40c] ss:$16 sps:$4 sm:$0xff]   ;;  %v9043_v43 = vld [vmem:[#allocation8 + $0x408] ss:$16 sps:$4 sm:$0xff]  }
 0x2b6   :  { %v3921_v42 = vpack.c.bf16 %v3905_v30, %v3905_v30  ;;  %v9046_v47 = vld [vmem:[#allocation8 + $0x420] ss:$16 sps:$4 sm:$0xff]   ;;  %v9097_v21 = vld [vmem:[#allocation8 + $0x528] ss:$16 sps:$4 sm:$0xff]   ;;  %v9111_v30 = vld [vmem:[#allocation8 + $0x56c] ss:$16 sps:$4 sm:$0xff]  }
 0x2b7   :  { %7083 = vmatpush1.bf16.msra.mxu0 %v8980_v41  ;;  %v3908_v41 = vmax.f32 %v8735_v28, 0.0  ;;  %v9103_v28 = vld [vmem:[#allocation8 + $0x548] ss:$16 sps:$4 sm:$0xff]  }
 0x2b8   :  { %7411 = vmatpush1.bf16.msra.mxu1 %v8983_v44  ;;  %7084 = vmatprep.subr.bf16.mxu0 %v8988_v45  ;;  %v9048_v44 = vld [vmem:[#allocation8 + $0x424] ss:$16 sps:$4 sm:$0xff]  }
 0x2b9   :  { %7412 = vmatprep.subr.bf16.mxu1 %v8991_v48  ;;  %v3924_v45 = vpack.c.bf16 %v3908_v41, %v3908_v41  ;;  %v9049_v48 = vld [vmem:[#allocation8 + $0x428] ss:$16 sps:$4 sm:$0xff]   ;;  %v9117_v41 = vld [vmem:[#allocation8 + $0x58c] ss:$16 sps:$4 sm:$0xff]  }
 0x2bb   :  { %7085 = vmatpush1.bf16.msra.mxu0 %v8986_v49  ;;  %v9054_v49 = vld [vmem:[#allocation8 + $0x444] ss:$16 sps:$4 sm:$0xff]  }
 0x2bc   :  { %7413 = vmatpush1.bf16.msra.mxu1 %v8989_v37  ;;  %7086 = vmatprep.subr.bf16.mxu0 %v8994_v50  ;;  %v9057_v37 = vld [vmem:[#allocation8 + $0x44c] ss:$16 sps:$4 sm:$0xff]   ;;  %v9052_v50 = vld [vmem:[#allocation8 + $0x440] ss:$16 sps:$4 sm:$0xff]  }
 0x2bd   :  { %7414 = vmatprep.subr.bf16.mxu1 %v8997_v51  ;;  %v9055_v51 = vld [vmem:[#allocation8 + $0x448] ss:$16 sps:$4 sm:$0xff]  }
 0x2bf   :  { %7087 = vmatpush1.bf16.msra.mxu0 %v8992_v24  ;;  %v9060_v24 = vld [vmem:[#allocation8 + $0x464] ss:$16 sps:$4 sm:$0xff]  }
 0x2c0   :  { %7415 = vmatpush1.bf16.msra.mxu1 %v8995_v52  ;;  %7088 = vmatprep.subr.bf16.mxu0 %v9000_v53  ;;  %v9063_v52 = vld [vmem:[#allocation8 + $0x46c] ss:$16 sps:$4 sm:$0xff]   ;;  %v9058_v53 = vld [vmem:[#allocation8 + $0x460] ss:$16 sps:$4 sm:$0xff]  }
 0x2c1   :  { %7416 = vmatprep.subr.bf16.mxu1 %v9003_v54  ;;  %v9061_v54 = vld [vmem:[#allocation8 + $0x468] ss:$16 sps:$4 sm:$0xff]  }
 0x2c3   :  { %7089 = vmatpush1.bf16.msra.mxu0 %v8998_v55  ;;  %v9066_v55 = vld [vmem:[#allocation8 + $0x484] ss:$16 sps:$4 sm:$0xff]  }
 0x2c4   :  { %7417 = vmatpush1.bf16.msra.mxu1 %v9001_v56  ;;  %7090 = vmatprep.subr.bf16.mxu0 %v9006_v23  ;;  %v9069_v56 = vld [vmem:[#allocation8 + $0x48c] ss:$16 sps:$4 sm:$0xff]   ;;  %v9064_v23 = vld [vmem:[#allocation8 + $0x480] ss:$16 sps:$4 sm:$0xff]  }
 0x2c5   :  { %7418 = vmatprep.subr.bf16.mxu1 %v9009_v58  ;;  %v9067_v58 = vld [vmem:[#allocation8 + $0x488] ss:$16 sps:$4 sm:$0xff]  }
 0x2c7   :  { %7091 = vmatpush1.bf16.msra.mxu0 %v9004_v59  ;;  %v9072_v59 = vld [vmem:[#allocation8 + $0x4a4] ss:$16 sps:$4 sm:$0xff]  }
 0x2c8   :  { %7419 = vmatpush1.bf16.msra.mxu1 %v9007_v60  ;;  %7092 = vmatprep.subr.bf16.mxu0 %v9012_v61  ;;  %v9075_v60 = vld [vmem:[#allocation8 + $0x4ac] ss:$16 sps:$4 sm:$0xff]   ;;  %v9070_v61 = vld [vmem:[#allocation8 + $0x4a0] ss:$16 sps:$4 sm:$0xff]  }
 0x2c9   :  { %7420 = vmatprep.subr.bf16.mxu1 %v9015_v62  ;;  %v9073_v62 = vld [vmem:[#allocation8 + $0x4a8] ss:$16 sps:$4 sm:$0xff]  }
 0x2cb   :  { %7093 = vmatpush1.bf16.msra.mxu0 %v9010_v32  ;;  %v9078_v32 = vld [vmem:[#allocation8 + $0x4c4] ss:$16 sps:$4 sm:$0xff]  }
 0x2cc   :  { %7421 = vmatpush1.bf16.msra.mxu1 %v9013_v63  ;;  %7094 = vmatprep.subr.bf16.mxu0 %v9018_v0  ;;  %v9081_v63 = vld [vmem:[#allocation8 + $0x4cc] ss:$16 sps:$4 sm:$0xff]   ;;  %v9076_v0 = vld [vmem:[#allocation8 + $0x4c0] ss:$16 sps:$4 sm:$0xff]  }
 0x2cd   :  { %7422 = vmatprep.subr.bf16.mxu1 %v9021_v1  ;;  %v9079_v1 = vld [vmem:[#allocation8 + $0x4c8] ss:$16 sps:$4 sm:$0xff]  }
 0x2cf   :  { %7095 = vmatpush1.bf16.msra.mxu0 %v9016_v2  ;;  %v9084_v2 = vld [vmem:[#allocation8 + $0x4e4] ss:$16 sps:$4 sm:$0xff]  }
 0x2d0   :  { %7423 = vmatpush1.bf16.msra.mxu1 %v9019_v3  ;;  %7096 = vmatprep.subr.bf16.mxu0 %v9024_v5  ;;  %v9087_v3 = vld [vmem:[#allocation8 + $0x4ec] ss:$16 sps:$4 sm:$0xff]   ;;  %v9082_v5 = vld [vmem:[#allocation8 + $0x4e0] ss:$16 sps:$4 sm:$0xff]  }
 0x2d1   :  { %7424 = vmatprep.subr.bf16.mxu1 %v9027_v7  ;;  %v9085_v7 = vld [vmem:[#allocation8 + $0x4e8] ss:$16 sps:$4 sm:$0xff]  }
 0x2d3   :  { %7097 = vmatpush1.bf16.msra.mxu0 %v9022_v11  ;;  %v9090_v11 = vld [vmem:[#allocation8 + $0x504] ss:$16 sps:$4 sm:$0xff]  }
 0x2d4   :  { %7425 = vmatpush1.bf16.msra.mxu1 %v9025_v15  ;;  %7098 = vmatprep.subr.bf16.mxu0 %v9030_v16  ;;  %v9088_v15 = vld [vmem:[#allocation8 + $0x500] ss:$16 sps:$4 sm:$0xff]   ;;  %v9091_v16 = vld [vmem:[#allocation8 + $0x508] ss:$16 sps:$4 sm:$0xff]  }
 0x2d5   :  { %7426 = vmatprep.subr.bf16.mxu1 %v9033_v17  ;;  %v9096_v17 = vld [vmem:[#allocation8 + $0x524] ss:$16 sps:$4 sm:$0xff]  }
 0x2d7   :  { %7099 = vmatpush1.bf16.msra.mxu0 %v9028_v20  ;;  %v9094_v20 = vld [vmem:[#allocation8 + $0x520] ss:$16 sps:$4 sm:$0xff]  }
 0x2d8   :  { %7427 = vmatpush1.bf16.msra.mxu1 %v9031_v25  ;;  %7100 = vmatprep.subr.bf16.mxu0 %v9036_v26  ;;  %v9102_v25 = vld [vmem:[#allocation8 + $0x544] ss:$16 sps:$4 sm:$0xff]   ;;  %v9105_v26 = vld [vmem:[#allocation8 + $0x54c] ss:$16 sps:$4 sm:$0xff]  }
 0x2d9   :  { %7428 = vmatprep.subr.bf16.mxu1 %v9039_v27  ;;  %v9100_v27 = vld [vmem:[#allocation8 + $0x540] ss:$16 sps:$4 sm:$0xff]  }
 0x2db   :  { %7101 = vmatpush1.bf16.msra.mxu0 %v9034_v29  ;;  %v9108_v29 = vld [vmem:[#allocation8 + $0x564] ss:$16 sps:$4 sm:$0xff]  }
 0x2dc   :  { %7429 = vmatpush1.bf16.msra.mxu1 %v9037_v31  ;;  %7111 = vmatprep.subr.bf16.mxu0 %v9042_v34  ;;  %v9106_v31 = vld [vmem:[#allocation8 + $0x560] ss:$16 sps:$4 sm:$0xff]   ;;  %v9109_v34 = vld [vmem:[#allocation8 + $0x568] ss:$16 sps:$4 sm:$0xff]  }
 0x2dd   :  { %7439 = vmatprep.subr.bf16.mxu1 %v9045_v39  ;;  %v9114_v39 = vld [vmem:[#allocation8 + $0x584] ss:$16 sps:$4 sm:$0xff]  }
 0x2de   :  { %7103 = vmatmul.mubr.bf16.vlgmr.msra.gmra.mrb[16].mxu0 %v3921_v42 }
 0x2df   :  { %7431 = vmatmul.mubr.bf16.vlgmr.msra.gmra.mrb[16].mxu1 %v3921_v42  ;;  %7112 = vmatpush1.bf16.msra.mxu0 %v9040_v36  ;;  %v9112_v36 = vld [vmem:[#allocation8 + $0x580] ss:$16 sps:$4 sm:$0xff]   ;;  %v625_v42 = vsub.s32 4, %v9912_v6 }
 0x2e0   :  { %7143 = vmatprep.mubr.bf16.mxu0 %v3924_v45  ;;  %7440 = vmatpush1.bf16.msra.mxu1 %v9043_v43  ;;  %v9115_v43 = vld [vmem:[#allocation8 + $0x588] ss:$16 sps:$4 sm:$0xff]  }
 0x2e1   :  { %7471 = vmatprep.mubr.bf16.mxu1 %v3924_v45  ;;  %7113 = vmatprep.subr.bf16.mxu0 %v9048_v44  ;;  %v9120_v44 = vld [vmem:[#allocation8 + $0x5a4] ss:$16 sps:$4 sm:$0xff]   ;;  %v9123_v45 = vld [vmem:[#allocation8 + $0x5ac] ss:$16 sps:$4 sm:$0xff]  }
 0x2e2   :  { %7441 = vmatprep.subr.bf16.mxu1 %v9051_v9  ;;  %v637_v9 = vsub.s32 7, %v9912_v6 }
 0x2e3   :  { %7114 = vmatpush1.bf16.msra.mxu0 %v9046_v47  ;;  %v9118_v47 = vld [vmem:[#allocation8 + $0x5a0] ss:$16 sps:$4 sm:$0xff]  }
 0x2e4   :  { %7442 = vmatpush1.bf16.msra.mxu1 %v9049_v48  ;;  %7115 = vmatprep.subr.bf16.mxu0 %v9054_v49  ;;  %v626_v48 = vrot.slane %v9917_v22, %v625_v42  ;;  %v9121_v49 = vld [vmem:[#allocation8 + $0x5a8] ss:$16 sps:$4 sm:$0xff]  }
 0x2e5   :  { %7443 = vmatprep.subr.bf16.mxu1 %v9057_v37  ;;  %v9126_v37 = vld [vmem:[#allocation8 + $0x5c4] ss:$16 sps:$4 sm:$0xff]  }
 0x2e7   :  { %7116 = vmatpush1.bf16.msra.mxu0 %v9052_v50  ;;  %v9129_v50 = vld [vmem:[#allocation8 + $0x5cc] ss:$16 sps:$4 sm:$0xff]  }
 0x2e8   :  { %7444 = vmatpush1.bf16.msra.mxu1 %v9055_v51  ;;  %7117 = vmatprep.subr.bf16.mxu0 %v9060_v24  ;;  %v638_v51 = vrot.slane %v9917_v22, %v637_v9  ;;  %v9124_v24 = vld [vmem:[#allocation8 + $0x5c0] ss:$16 sps:$4 sm:$0xff]   ;;  %v9141_v22 = vld [vmem:[#allocation8 + $0x60c] ss:$16 sps:$4 sm:$0xff]  }
 0x2e9   :  { %7445 = vmatprep.subr.bf16.mxu1 %v9063_v52  ;;  %v8734_v52 = vadd.f32 %v9904_v4, %v626_v48  ;;  %v9136_v4 = vld [vmem:[#allocation8 + $0x600] ss:$16 sps:$4 sm:$0xff]   ;;  %v9175_v48 = vld [vmem:[#allocation8 + $0x6c8] ss:$16 sps:$4 sm:$0xff]  }
 0x2eb   :  { %7118 = vmatpush1.bf16.msra.mxu0 %v9058_v53  ;;  %v9127_v53 = vld [vmem:[#allocation8 + $0x5c8] ss:$16 sps:$4 sm:$0xff]  }
 0x2ec   :  { %7446 = vmatpush1.bf16.msra.mxu1 %v9061_v54  ;;  %7119 = vmatprep.subr.bf16.mxu0 %v9066_v55  ;;  %v9132_v54 = vld [vmem:[#allocation8 + $0x5e4] ss:$16 sps:$4 sm:$0xff]   ;;  %v9135_v55 = vld [vmem:[#allocation8 + $0x5ec] ss:$16 sps:$4 sm:$0xff]  }
 0x2ed   :  { %7447 = vmatprep.subr.bf16.mxu1 %v9069_v56  ;;  %v8737_v56 = vadd.f32 %v9910_v13, %v638_v51  ;;  %v9147_v13 = vld [vmem:[#allocation8 + $0x62c] ss:$16 sps:$4 sm:$0xff]   ;;  %v9178_v51 = vld [vmem:[#allocation8 + $0x6e0] ss:$16 sps:$4 sm:$0xff]  }
 0x2ef   :  { %7120 = vmatpush1.bf16.msra.mxu0 %v9064_v23  ;;  %v9130_v23 = vld [vmem:[#allocation8 + $0x5e0] ss:$16 sps:$4 sm:$0xff]  }
 0x2f0   :  { %7448 = vmatpush1.bf16.msra.mxu1 %v9067_v58  ;;  %7121 = vmatprep.subr.bf16.mxu0 %v9072_v59  ;;  %v3907_v58 = vmax.f32 %v8734_v52, 0.0  ;;  %v9133_v59 = vld [vmem:[#allocation8 + $0x5e8] ss:$16 sps:$4 sm:$0xff]   ;;  %v9186_v52 = vld [vmem:[#allocation8 + $0x704] ss:$16 sps:$4 sm:$0xff]  }
 0x2f1   :  { %7449 = vmatprep.subr.bf16.mxu1 %v9075_v60  ;;  %v9138_v60 = vld [vmem:[#allocation8 + $0x604] ss:$16 sps:$4 sm:$0xff]  }
 0x2f3   :  { %7122 = vmatpush1.bf16.msra.mxu0 %v9070_v61  ;;  %v3910_v61 = vmax.f32 %v8737_v56, 0.0  ;;  %v9192_v56 = vld [vmem:[#allocation8 + $0x724] ss:$16 sps:$4 sm:$0xff]  }
 0x2f4   :  { %7450 = vmatpush1.bf16.msra.mxu1 %v9073_v62  ;;  %7123 = vmatprep.subr.bf16.mxu0 %v9078_v32  ;;  %v3923_v62 = vpack.c.bf16 %v3907_v58, %v3907_v58  ;;  %v9139_v32 = vld [vmem:[#allocation8 + $0x608] ss:$16 sps:$4 sm:$0xff]   ;;  %v9190_v58 = vld [vmem:[#allocation8 + $0x720] ss:$16 sps:$4 sm:$0xff]  }
 0x2f5   :  { %7451 = vmatprep.subr.bf16.mxu1 %v9081_v63  ;;  %v9144_v63 = vld [vmem:[#allocation8 + $0x624] ss:$16 sps:$4 sm:$0xff]  }
 0x2f7   :  { %7124 = vmatpush1.bf16.msra.mxu0 %v9076_v0  ;;  %v3926_v0 = vpack.c.bf16 %v3910_v61, %v3910_v61  ;;  %v9196_v61 = vld [vmem:[#allocation8 + $0x740] ss:$16 sps:$4 sm:$0xff]  }
 0x2f8   :  { %7452 = vmatpush1.bf16.msra.mxu1 %v9079_v1  ;;  %7125 = vmatprep.subr.bf16.mxu0 %v9084_v2  ;;  %v9142_v1 = vld [vmem:[#allocation8 + $0x620] ss:$16 sps:$4 sm:$0xff]   ;;  %v9145_v2 = vld [vmem:[#allocation8 + $0x628] ss:$16 sps:$4 sm:$0xff]  }
 0x2f9   :  { %7453 = vmatprep.subr.bf16.mxu1 %v9087_v3  ;;  %v9150_v3 = vld [vmem:[#allocation8 + $0x644] ss:$16 sps:$4 sm:$0xff]  }
 0x2fb   :  { %7126 = vmatpush1.bf16.msra.mxu0 %v9082_v5  ;;  %v9153_v5 = vld [vmem:[#allocation8 + $0x64c] ss:$16 sps:$4 sm:$0xff]  }
 0x2fc   :  { %7454 = vmatpush1.bf16.msra.mxu1 %v9085_v7  ;;  %7127 = vmatprep.subr.bf16.mxu0 %v9090_v11  ;;  %v9148_v7 = vld [vmem:[#allocation8 + $0x640] ss:$16 sps:$4 sm:$0xff]   ;;  %v9151_v11 = vld [vmem:[#allocation8 + $0x648] ss:$16 sps:$4 sm:$0xff]  }
 0x2fd   :  { %7455 = vmatprep.subr.bf16.mxu1 %v9093_v14  ;;  %v9156_v14 = vld [vmem:[#allocation8 + $0x664] ss:$16 sps:$4 sm:$0xff]  }
 0x2ff   :  { %7128 = vmatpush1.bf16.msra.mxu0 %v9088_v15  ;;  %v9159_v15 = vld [vmem:[#allocation8 + $0x66c] ss:$16 sps:$4 sm:$0xff]  }
 0x300   :  { %7456 = vmatpush1.bf16.msra.mxu1 %v9091_v16  ;;  %7129 = vmatprep.subr.bf16.mxu0 %v9096_v17  ;;  %v9154_v16 = vld [vmem:[#allocation8 + $0x660] ss:$16 sps:$4 sm:$0xff]   ;;  %v9157_v17 = vld [vmem:[#allocation8 + $0x668] ss:$16 sps:$4 sm:$0xff]  }
 0x301   :  { %7457 = vmatprep.subr.bf16.mxu1 %v9099_v18  ;;  %v9162_v18 = vld [vmem:[#allocation8 + $0x684] ss:$16 sps:$4 sm:$0xff]  }
 0x303   :  { %7130 = vmatpush1.bf16.msra.mxu0 %v9094_v20  ;;  %v9165_v20 = vld [vmem:[#allocation8 + $0x68c] ss:$16 sps:$4 sm:$0xff]  }
 0x304   :  { %7458 = vmatpush1.bf16.msra.mxu1 %v9097_v21  ;;  %7131 = vmatprep.subr.bf16.mxu0 %v9102_v25  ;;  %v9160_v21 = vld [vmem:[#allocation8 + $0x680] ss:$16 sps:$4 sm:$0xff]   ;;  %v9163_v25 = vld [vmem:[#allocation8 + $0x688] ss:$16 sps:$4 sm:$0xff]  }
 0x305   :  { %7459 = vmatprep.subr.bf16.mxu1 %v9105_v26  ;;  %v9168_v26 = vld [vmem:[#allocation8 + $0x6a4] ss:$16 sps:$4 sm:$0xff]  }
 0x307   :  { %7132 = vmatpush1.bf16.msra.mxu0 %v9100_v27  ;;  %v9171_v27 = vld [vmem:[#allocation8 + $0x6ac] ss:$16 sps:$4 sm:$0xff]  }
 0x308   :  { %7460 = vmatpush1.bf16.msra.mxu1 %v9103_v28  ;;  %7133 = vmatprep.subr.bf16.mxu0 %v9108_v29  ;;  %v9166_v28 = vld [vmem:[#allocation8 + $0x6a0] ss:$16 sps:$4 sm:$0xff]   ;;  %v9169_v29 = vld [vmem:[#allocation8 + $0x6a8] ss:$16 sps:$4 sm:$0xff]  }
 0x309   :  { %7461 = vmatprep.subr.bf16.mxu1 %v9111_v30  ;;  %v9174_v30 = vld [vmem:[#allocation8 + $0x6c4] ss:$16 sps:$4 sm:$0xff]  }
 0x30b   :  { %7134 = vmatpush1.bf16.msra.mxu0 %v9106_v31 }
 0x30c   :  { %7462 = vmatpush1.bf16.msra.mxu1 %v9109_v34  ;;  %7135 = vmatprep.subr.bf16.mxu0 %v9114_v39  ;;  %v9177_v34 = vld [vmem:[#allocation8 + $0x6cc] ss:$16 sps:$4 sm:$0xff]  }
 0x30d   :  { %7463 = vmatprep.subr.bf16.mxu1 %v9117_v41 }
 0x30f   :  { %7136 = vmatpush1.bf16.msra.mxu0 %v9112_v36 }
 0x310   :  { %7464 = vmatpush1.bf16.msra.mxu1 %v9115_v43  ;;  %7137 = vmatprep.subr.bf16.mxu0 %v9120_v44  ;;  %v9172_v44 = vld [vmem:[#allocation8 + $0x6c0] ss:$16 sps:$4 sm:$0xff]  }
 0x311   :  { %7465 = vmatprep.subr.bf16.mxu1 %v9123_v45 }
 0x313   :  { %7138 = vmatpush1.bf16.msra.mxu0 %v9118_v47 }
 0x314   :  { %7466 = vmatpush1.bf16.msra.mxu1 %v9121_v49  ;;  %7139 = vmatprep.subr.bf16.mxu0 %v9126_v37  ;;  %v9180_v49 = vld [vmem:[#allocation8 + $0x6e4] ss:$16 sps:$4 sm:$0xff]  }
 0x315   :  { %7467 = vmatprep.subr.bf16.mxu1 %v9129_v50  ;;  %v9183_v50 = vld [vmem:[#allocation8 + $0x6ec] ss:$16 sps:$4 sm:$0xff]  }
 0x317   :  { %7140 = vmatpush1.bf16.msra.mxu0 %v9124_v24  ;;  %v9181_v24 = vld [vmem:[#allocation8 + $0x6e8] ss:$16 sps:$4 sm:$0xff]  }
 0x318   :  { %7468 = vmatpush1.bf16.msra.mxu1 %v9127_v53  ;;  %7141 = vmatprep.subr.bf16.mxu0 %v9132_v54  ;;  %v9189_v53 = vld [vmem:[#allocation8 + $0x70c] ss:$16 sps:$4 sm:$0xff]   ;;  %v9184_v54 = vld [vmem:[#allocation8 + $0x700] ss:$16 sps:$4 sm:$0xff]  }
 0x319   :  { %7469 = vmatprep.subr.bf16.mxu1 %v9135_v55  ;;  %v9187_v55 = vld [vmem:[#allocation8 + $0x708] ss:$16 sps:$4 sm:$0xff]  }
 0x31b   :  { %7142 = vmatpush1.bf16.msra.mxu0 %v9130_v23  ;;  %v9195_v23 = vld [vmem:[#allocation8 + $0x72c] ss:$16 sps:$4 sm:$0xff]  }
 0x31c   :  { %7470 = vmatpush1.bf16.msra.mxu1 %v9133_v59  ;;  %7152 = vmatprep.subr.bf16.mxu0 %v9138_v60  ;;  %v9193_v59 = vld [vmem:[#allocation8 + $0x728] ss:$16 sps:$4 sm:$0xff]   ;;  %v9198_v60 = vld [vmem:[#allocation8 + $0x744] ss:$16 sps:$4 sm:$0xff]  }
 0x31d   :  { %7480 = vmatprep.subr.bf16.mxu1 %v9141_v22  ;;  %v9201_v22 = vld [vmem:[#allocation8 + $0x74c] ss:$16 sps:$4 sm:$0xff]  }
 0x31e   :  { %7144 = vmatmul.mubr.bf16.vlgmr.msra.gmra.mrb[16].mxu0 %v3923_v62 }
 0x31f   :  { %7472 = vmatmul.mubr.bf16.vlgmr.msra.gmra.mrb[16].mxu1 %v3923_v62  ;;  %7153 = vmatpush1.bf16.msra.mxu0 %v9136_v4  ;;  %v9199_v4 = vld [vmem:[#allocation8 + $0x748] ss:$16 sps:$4 sm:$0xff]   ;;  %v9204_v62 = vld [vmem:[#allocation8 + $0x764] ss:$16 sps:$4 sm:$0xff]  }
 0x320   :  { %7184 = vmatprep.mubr.bf16.mxu0 %v3926_v0  ;;  %7481 = vmatpush1.bf16.msra.mxu1 %v9139_v32  ;;  %v9207_v32 = vld [vmem:[#allocation8 + $0x76c] ss:$16 sps:$4 sm:$0xff]  }
 0x321   :  { %7512 = vmatprep.mubr.bf16.mxu1 %v3926_v0  ;;  %7154 = vmatprep.subr.bf16.mxu0 %v9144_v63  ;;  %v9202_v63 = vld [vmem:[#allocation8 + $0x760] ss:$16 sps:$4 sm:$0xff]   ;;  %v9205_v0 = vld [vmem:[#allocation8 + $0x768] ss:$16 sps:$4 sm:$0xff]  }
 0x322   :  { %7482 = vmatprep.subr.bf16.mxu1 %v9147_v13  ;;  %v9210_v13 = vld [vmem:[#allocation8 + $0x784] ss:$16 sps:$4 sm:$0xff]  }
 0x323   :  { %7155 = vmatpush1.bf16.msra.mxu0 %v9142_v1  ;;  %v9213_v1 = vld [vmem:[#allocation8 + $0x78c] ss:$16 sps:$4 sm:$0xff]  }
 0x324   :  { %7483 = vmatpush1.bf16.msra.mxu1 %v9145_v2  ;;  %7156 = vmatprep.subr.bf16.mxu0 %v9150_v3  ;;  %v9208_v2 = vld [vmem:[#allocation8 + $0x780] ss:$16 sps:$4 sm:$0xff]   ;;  %v633_v3 = vsub.s32 6, %v9912_v6 }
 0x325   :  { %7484 = vmatprep.subr.bf16.mxu1 %v9153_v5  ;;  %v9211_v5 = vld [vmem:[#allocation8 + $0x788] ss:$16 sps:$4 sm:$0xff]  }
 0x327   :  { %7157 = vmatpush1.bf16.msra.mxu0 %v9148_v7  ;;  %v9216_v7 = vld [vmem:[#allocation8 + $0x7a4] ss:$16 sps:$4 sm:$0xff]  }
 0x328   :  { %7485 = vmatpush1.bf16.msra.mxu1 %v9151_v11  ;;  %7158 = vmatprep.subr.bf16.mxu0 %v9156_v14  ;;  %v9219_v11 = vld [vmem:[#allocation8 + $0x7ac] ss:$16 sps:$4 sm:$0xff]  }
 0x329   :  { %7486 = vmatprep.subr.bf16.mxu1 %v9159_v15  ;;  %v9974_v14 = vld [vmem:[#allocation7 + $0x8] sm:$0xff]  ;;  %v9214_v15 = vld [vmem:[#allocation8 + $0x7a0] ss:$16 sps:$4 sm:$0xff]  }
 0x32b   :  { %7159 = vmatpush1.bf16.msra.mxu0 %v9154_v16  ;;  %v9616_v16 = vld [vmem:[#allocation7] sm:$0xff] }
 0x32c   :  { %7487 = vmatpush1.bf16.msra.mxu1 %v9157_v17  ;;  %7160 = vmatprep.subr.bf16.mxu0 %v9162_v18  ;;  %v634_v17 = vrot.slane %v9616_v16, %v633_v3  ;;  %v9217_v18 = vld [vmem:[#allocation8 + $0x7a8] ss:$16 sps:$4 sm:$0xff]   ;;  %v9279_v16 = vld [vmem:[#allocation8 + $0x8ec] ss:$16 sps:$4 sm:$0xff]  }
 0x32d   :  { %7488 = vmatprep.subr.bf16.mxu1 %v9165_v20  ;;  %v9222_v20 = vld [vmem:[#allocation8 + $0x7c4] ss:$16 sps:$4 sm:$0xff]  }
 0x32f   :  { %7161 = vmatpush1.bf16.msra.mxu0 %v9160_v21  ;;  %v9225_v21 = vld [vmem:[#allocation8 + $0x7cc] ss:$16 sps:$4 sm:$0xff]  }
 0x330   :  { %7489 = vmatpush1.bf16.msra.mxu1 %v9163_v25  ;;  %7162 = vmatprep.subr.bf16.mxu0 %v9168_v26  ;;  %v646_v25 = vrot.slane %v9974_v14, %v9915_v19  ;;  %v9220_v26 = vld [vmem:[#allocation8 + $0x7c0] ss:$16 sps:$4 sm:$0xff]  }
 0x331   :  { %v9965_v31 = vpop.f32.mrb[12].mxu0  ;;  %7490 = vmatprep.subr.bf16.mxu1 %v9171_v27  ;;  %v9967_v39 = vpop.f32.mrb[12].mxu1  ;;  %v8736_v27 = vadd.f32 %v9906_v8, %v634_v17  ;;  %v9232_v8 = vld [vmem:[#allocation8 + $0x800] ss:$16 sps:$4 sm:$0xff]  }
 0x332   :  { %v9969_v41 = vpop.f32.mrb[13].mxu0  ;;  %v9971_v36 = vpop.f32.mrb[13].mxu1  ;;  %v9274_v17 = vld [vmem:[#allocation8 + $0x8e0] ss:$16 sps:$4 sm:$0xff]  }
 0x333   :  { %v3818_v43 = vpop.f32.mrb[14].mxu0  ;;  %7163 = vmatpush1.bf16.msra.mxu0 %v9166_v28  ;;  %v3900_v45 = vpop.f32.mrb[14].mxu1  ;;  %v9223_v28 = vld [vmem:[#allocation8 + $0x7c8] ss:$16 sps:$4 sm:$0xff]  }
 0x334   :  { %7491 = vmatpush1.bf16.msra.mxu1 %v9169_v29  ;;  %v3819_v47 = vpop.f32.mrb[15].mxu0  ;;  %7164 = vmatprep.subr.bf16.mxu0 %v9174_v30  ;;  %v3901_v37 = vpop.f32.mrb[15].mxu1  ;;  %v9228_v29 = vld [vmem:[#allocation8 + $0x7e4] ss:$16 sps:$4 sm:$0xff]   ;;  %v9231_v30 = vld [vmem:[#allocation8 + $0x7ec] ss:$16 sps:$4 sm:$0xff]  }
 0x335   :  { %7492 = vmatprep.subr.bf16.mxu1 %v9177_v34  ;;  %v8739_v34 = vadd.f32 %v9940_v38, %v646_v25  ;;  %v9226_v43 = vld [vmem:[#allocation8 + $0x7e0] ss:$16 sps:$4 sm:$0xff]   ;;  %v9229_v45 = vld [vmem:[#allocation8 + $0x7e8] ss:$16 sps:$4 sm:$0xff]   ;;  %v9234_v47 = vld [vmem:[#allocation8 + $0x804] ss:$16 sps:$4 sm:$0xff]  }
 0x336   :  { %v9243_v38 = vld [vmem:[#allocation8 + $0x82c] ss:$16 sps:$4 sm:$0xff]   ;;  %v9280_v25 = vld [vmem:[#allocation8 + $0x900] ss:$16 sps:$4 sm:$0xff]  }
 0x337   :  { %7165 = vmatpush1.bf16.msra.mxu0 %v9172_v44  ;;  %v3909_v44 = vmax.f32 %v8736_v27, 0.0  ;;  %v9288_v27 = vld [vmem:[#allocation8 + $0x924] ss:$16 sps:$4 sm:$0xff]  }
 0x338   :  { %7493 = vmatpush1.bf16.msra.mxu1 %v9175_v48  ;;  %7166 = vmatprep.subr.bf16.mxu0 %v9180_v49  ;;  %v9237_v48 = vld [vmem:[#allocation8 + $0x80c] ss:$16 sps:$4 sm:$0xff]   ;;  %v3912_v49 = vmax.f32 %v8739_v34, 0.0  ;;  %v9294_v34 = vld [vmem:[#allocation8 + $0x944] ss:$16 sps:$4 sm:$0xff]  }
 0x339   :  { %7494 = vmatprep.subr.bf16.mxu1 %v9183_v50  ;;  %v3925_v37 = vpack.c.bf16 %v3909_v44, %v3909_v44  ;;  %v9235_v50 = vld [vmem:[#allocation8 + $0x808] ss:$16 sps:$4 sm:$0xff]   ;;  %v9292_v44 = vld [vmem:[#allocation8 + $0x940] ss:$16 sps:$4 sm:$0xff]  }
 0x33b   :  { %7167 = vmatpush1.bf16.msra.mxu0 %v9178_v51  ;;  %v9240_v51 = vld [vmem:[#allocation8 + $0x824] ss:$16 sps:$4 sm:$0xff]  }
 0x33c   :  { %7495 = vmatpush1.bf16.msra.mxu1 %v9181_v24  ;;  %7168 = vmatprep.subr.bf16.mxu0 %v9186_v52  ;;  %v3928_v24 = vpack.c.bf16 %v3912_v49, %v3912_v49  ;;  %v9238_v52 = vld [vmem:[#allocation8 + $0x820] ss:$16 sps:$4 sm:$0xff]  }
 0x33d   :  { %7496 = vmatprep.subr.bf16.mxu1 %v9189_v53  ;;  %v9241_v53 = vld [vmem:[#allocation8 + $0x828] ss:$16 sps:$4 sm:$0xff]   ;;  %v9298_v49 = vld [vmem:[#allocation8 + $0x960] ss:$16 sps:$4 sm:$0xff]  }
 0x33f   :  { %7169 = vmatpush1.bf16.msra.mxu0 %v9184_v54  ;;  %v9246_v54 = vld [vmem:[#allocation8 + $0x844] ss:$16 sps:$4 sm:$0xff]  }
 0x340   :  { %7497 = vmatpush1.bf16.msra.mxu1 %v9187_v55  ;;  %7170 = vmatprep.subr.bf16.mxu0 %v9192_v56  ;;  %v9249_v55 = vld [vmem:[#allocation8 + $0x84c] ss:$16 sps:$4 sm:$0xff]   ;;  %v9244_v56 = vld [vmem:[#allocation8 + $0x840] ss:$16 sps:$4 sm:$0xff]  }
 0x341   :  { %7498 = vmatprep.subr.bf16.mxu1 %v9195_v23  ;;  %v9247_v23 = vld [vmem:[#allocation8 + $0x848] ss:$16 sps:$4 sm:$0xff]  }
 0x343   :  { %7171 = vmatpush1.bf16.msra.mxu0 %v9190_v58  ;;  %v9252_v58 = vld [vmem:[#allocation8 + $0x864] ss:$16 sps:$4 sm:$0xff]  }
 0x344   :  { %7499 = vmatpush1.bf16.msra.mxu1 %v9193_v59  ;;  %7172 = vmatprep.subr.bf16.mxu0 %v9198_v60  ;;  %v9255_v59 = vld [vmem:[#allocation8 + $0x86c] ss:$16 sps:$4 sm:$0xff]   ;;  %v9250_v60 = vld [vmem:[#allocation8 + $0x860] ss:$16 sps:$4 sm:$0xff]  }
 0x345   :  { %7500 = vmatprep.subr.bf16.mxu1 %v9201_v22  ;;  %v9253_v22 = vld [vmem:[#allocation8 + $0x868] ss:$16 sps:$4 sm:$0xff]  }
 0x347   :  { %7173 = vmatpush1.bf16.msra.mxu0 %v9196_v61  ;;  %v9258_v61 = vld [vmem:[#allocation8 + $0x884] ss:$16 sps:$4 sm:$0xff]  }
 0x348   :  { %7501 = vmatpush1.bf16.msra.mxu1 %v9199_v4  ;;  %7174 = vmatprep.subr.bf16.mxu0 %v9204_v62  ;;  %v9261_v4 = vld [vmem:[#allocation8 + $0x88c] ss:$16 sps:$4 sm:$0xff]   ;;  %v9256_v62 = vld [vmem:[#allocation8 + $0x880] ss:$16 sps:$4 sm:$0xff]  }
 0x349   :  { %7502 = vmatprep.subr.bf16.mxu1 %v9207_v32  ;;  %v9259_v32 = vld [vmem:[#allocation8 + $0x888] ss:$16 sps:$4 sm:$0xff]  }
 0x34b   :  { %7175 = vmatpush1.bf16.msra.mxu0 %v9202_v63  ;;  %v9264_v63 = vld [vmem:[#allocation8 + $0x8a4] ss:$16 sps:$4 sm:$0xff]  }
 0x34c   :  { %7503 = vmatpush1.bf16.msra.mxu1 %v9205_v0  ;;  %7176 = vmatprep.subr.bf16.mxu0 %v9210_v13  ;;  %v9267_v0 = vld [vmem:[#allocation8 + $0x8ac] ss:$16 sps:$4 sm:$0xff]   ;;  %v9262_v13 = vld [vmem:[#allocation8 + $0x8a0] ss:$16 sps:$4 sm:$0xff]  }
 0x34d   :  { %7504 = vmatprep.subr.bf16.mxu1 %v9213_v1  ;;  %v9265_v1 = vld [vmem:[#allocation8 + $0x8a8] ss:$16 sps:$4 sm:$0xff]  }
 0x34f   :  { %7177 = vmatpush1.bf16.msra.mxu0 %v9208_v2  ;;  %v9270_v2 = vld [vmem:[#allocation8 + $0x8c4] ss:$16 sps:$4 sm:$0xff]  }
 0x350   :  { %7505 = vmatpush1.bf16.msra.mxu1 %v9211_v5  ;;  %7178 = vmatprep.subr.bf16.mxu0 %v9216_v7  ;;  %v9273_v5 = vld [vmem:[#allocation8 + $0x8cc] ss:$16 sps:$4 sm:$0xff]   ;;  %v9268_v7 = vld [vmem:[#allocation8 + $0x8c0] ss:$16 sps:$4 sm:$0xff]  }
 0x351   :  { %7506 = vmatprep.subr.bf16.mxu1 %v9219_v11  ;;  %v9271_v11 = vld [vmem:[#allocation8 + $0x8c8] ss:$16 sps:$4 sm:$0xff]  }
 0x353   :  { %7179 = vmatpush1.bf16.msra.mxu0 %v9214_v15  ;;  %v9276_v15 = vld [vmem:[#allocation8 + $0x8e4] ss:$16 sps:$4 sm:$0xff]  }
 0x354   :  { %7507 = vmatpush1.bf16.msra.mxu1 %v9217_v18  ;;  %7180 = vmatprep.subr.bf16.mxu0 %v9222_v20  ;;  %v9277_v18 = vld [vmem:[#allocation8 + $0x8e8] ss:$16 sps:$4 sm:$0xff]   ;;  %v9282_v20 = vld [vmem:[#allocation8 + $0x904] ss:$16 sps:$4 sm:$0xff]  }
 0x355   :  { %7508 = vmatprep.subr.bf16.mxu1 %v9225_v21  ;;  %v9285_v21 = vld [vmem:[#allocation8 + $0x90c] ss:$16 sps:$4 sm:$0xff]  }
 0x357   :  { %7181 = vmatpush1.bf16.msra.mxu0 %v9220_v26  ;;  %v9283_v26 = vld [vmem:[#allocation8 + $0x908] ss:$16 sps:$4 sm:$0xff]  }
 0x358   :  { %7509 = vmatpush1.bf16.msra.mxu1 %v9223_v28  ;;  %7182 = vmatprep.subr.bf16.mxu0 %v9228_v29  ;;  %v9291_v28 = vld [vmem:[#allocation8 + $0x92c] ss:$16 sps:$4 sm:$0xff]   ;;  %v9286_v29 = vld [vmem:[#allocation8 + $0x920] ss:$16 sps:$4 sm:$0xff]  }
 0x359   :  { %7510 = vmatprep.subr.bf16.mxu1 %v9231_v30  ;;  %v9289_v30 = vld [vmem:[#allocation8 + $0x928] ss:$16 sps:$4 sm:$0xff]  }
 0x35b   :  { %7183 = vmatpush1.bf16.msra.mxu0 %v9226_v43  ;;  %v9297_v43 = vld [vmem:[#allocation8 + $0x94c] ss:$16 sps:$4 sm:$0xff]  }
 0x35c   :  { %7511 = vmatpush1.bf16.msra.mxu1 %v9229_v45  ;;  %7193 = vmatprep.subr.bf16.mxu0 %v9234_v47  ;;  %v9295_v45 = vld [vmem:[#allocation8 + $0x948] ss:$16 sps:$4 sm:$0xff]   ;;  %v9300_v47 = vld [vmem:[#allocation8 + $0x964] ss:$16 sps:$4 sm:$0xff]  }
 0x35d   :  { %7521 = vmatprep.subr.bf16.mxu1 %v9237_v48  ;;  %v9303_v48 = vld [vmem:[#allocation8 + $0x96c] ss:$16 sps:$4 sm:$0xff]  }
 0x35e   :  { %7185 = vmatmul.mubr.bf16.vlgmr.msra.gmra.mrb[16].mxu0 %v3925_v37 }
 0x35f   :  { %7513 = vmatmul.mubr.bf16.vlgmr.msra.gmra.mrb[16].mxu1 %v3925_v37  ;;  %7194 = vmatpush1.bf16.msra.mxu0 %v9232_v8  ;;  %v9301_v8 = vld [vmem:[#allocation8 + $0x968] ss:$16 sps:$4 sm:$0xff]   ;;  %v9306_v37 = vld [vmem:[#allocation8 + $0x984] ss:$16 sps:$4 sm:$0xff]  }
 0x360   :  { %7225 = vmatprep.mubr.bf16.mxu0 %v3928_v24  ;;  %7522 = vmatpush1.bf16.msra.mxu1 %v9235_v50  ;;  %v9309_v50 = vld [vmem:[#allocation8 + $0x98c] ss:$16 sps:$4 sm:$0xff]  }
 0x361   :  { %7553 = vmatprep.mubr.bf16.mxu1 %v3928_v24  ;;  %7195 = vmatprep.subr.bf16.mxu0 %v9240_v51  ;;  %v9304_v51 = vld [vmem:[#allocation8 + $0x980] ss:$16 sps:$4 sm:$0xff]   ;;  %v9307_v24 = vld [vmem:[#allocation8 + $0x988] ss:$16 sps:$4 sm:$0xff]  }
 0x362   :  { %7523 = vmatprep.subr.bf16.mxu1 %v9243_v38  ;;  %v9312_v38 = vld [vmem:[#allocation8 + $0x9a4] ss:$16 sps:$4 sm:$0xff]  }
 0x363   :  { %7196 = vmatpush1.bf16.msra.mxu0 %v9238_v52  ;;  %v9315_v52 = vld [vmem:[#allocation8 + $0x9ac] ss:$16 sps:$4 sm:$0xff]  }
 0x364   :  { %7524 = vmatpush1.bf16.msra.mxu1 %v9241_v53  ;;  %7197 = vmatprep.subr.bf16.mxu0 %v9246_v54  ;;  %v9310_v53 = vld [vmem:[#allocation8 + $0x9a0] ss:$16 sps:$4 sm:$0xff]   ;;  %v642_v54 = vrot.slane %v9974_v14, %v9925_v12 }
 0x365   :  { %7525 = vmatprep.subr.bf16.mxu1 %v9249_v55  ;;  %v9313_v55 = vld [vmem:[#allocation8 + $0x9a8] ss:$16 sps:$4 sm:$0xff]  }
 0x367   :  { %7198 = vmatpush1.bf16.msra.mxu0 %v9244_v56  ;;  %v9318_v56 = vld [vmem:[#allocation8 + $0x9c4] ss:$16 sps:$4 sm:$0xff]  }
 0x368   :  { %7526 = vmatpush1.bf16.msra.mxu1 %v9247_v23  ;;  %7199 = vmatprep.subr.bf16.mxu0 %v9252_v58  ;;  %v9321_v23 = vld [vmem:[#allocation8 + $0x9cc] ss:$16 sps:$4 sm:$0xff]   ;;  %v654_v58 = vrot.slane %v9974_v14, %v9928_v46 }
 0x369   :  { %7527 = vmatprep.subr.bf16.mxu1 %v9255_v59  ;;  %v9316_v59 = vld [vmem:[#allocation8 + $0x9c0] ss:$16 sps:$4 sm:$0xff]  }
 0x36b   :  { %7200 = vmatpush1.bf16.msra.mxu0 %v9250_v60  ;;  %v8738_v60 = vadd.f32 %v9936_v33, %v642_v54  ;;  %v9328_v33 = vld [vmem:[#allocation8 + $0xa00] ss:$16 sps:$4 sm:$0xff]   ;;  %v9378_v54 = vld [vmem:[#allocation8 + $0xb04] ss:$16 sps:$4 sm:$0xff]  }
 0x36c   :  { %7528 = vmatpush1.bf16.msra.mxu1 %v9253_v22  ;;  %7201 = vmatprep.subr.bf16.mxu0 %v9258_v61  ;;  %v9319_v22 = vld [vmem:[#allocation8 + $0x9c8] ss:$16 sps:$4 sm:$0xff]   ;;  %v9324_v61 = vld [vmem:[#allocation8 + $0x9e4] ss:$16 sps:$4 sm:$0xff]  }
 0x36d   :  { %7529 = vmatprep.subr.bf16.mxu1 %v9261_v4  ;;  %v9327_v4 = vld [vmem:[#allocation8 + $0x9ec] ss:$16 sps:$4 sm:$0xff]  }
 0x36f   :  { %7202 = vmatpush1.bf16.msra.mxu0 %v9256_v62  ;;  %v8741_v62 = vadd.f32 %v9942_v57, %v654_v58  ;;  %v9339_v57 = vld [vmem:[#allocation8 + $0xa2c] ss:$16 sps:$4 sm:$0xff]   ;;  %v9384_v58 = vld [vmem:[#allocation8 + $0xb24] ss:$16 sps:$4 sm:$0xff]  }
 0x370   :  { %7530 = vmatpush1.bf16.msra.mxu1 %v9259_v32  ;;  %7203 = vmatprep.subr.bf16.mxu0 %v9264_v63  ;;  %v9322_v32 = vld [vmem:[#allocation8 + $0x9e0] ss:$16 sps:$4 sm:$0xff]   ;;  %v3911_v63 = vmax.f32 %v8738_v60, 0.0 }
 0x371   :  { %7531 = vmatprep.subr.bf16.mxu1 %v9267_v0  ;;  %v9325_v0 = vld [vmem:[#allocation8 + $0x9e8] ss:$16 sps:$4 sm:$0xff]   ;;  %v9382_v60 = vld [vmem:[#allocation8 + $0xb20] ss:$16 sps:$4 sm:$0xff]  }
 0x373   :  { %7204 = vmatpush1.bf16.msra.mxu0 %v9262_v13  ;;  %v9330_v13 = vld [vmem:[#allocation8 + $0xa04] ss:$16 sps:$4 sm:$0xff]  }
 0x374   :  { %7532 = vmatpush1.bf16.msra.mxu1 %v9265_v1  ;;  %7205 = vmatprep.subr.bf16.mxu0 %v9270_v2  ;;  %v9333_v1 = vld [vmem:[#allocation8 + $0xa0c] ss:$16 sps:$4 sm:$0xff]   ;;  %v3914_v2 = vmax.f32 %v8741_v62, 0.0  ;;  %v9388_v62 = vld [vmem:[#allocation8 + $0xb40] ss:$16 sps:$4 sm:$0xff]  }
 0x375   :  { %7533 = vmatprep.subr.bf16.mxu1 %v9273_v5  ;;  %v3927_v5 = vpack.c.bf16 %v3911_v63, %v3911_v63  ;;  %v9396_v63 = vld [vmem:[#allocation8 + $0xb64] ss:$16 sps:$4 sm:$0xff]  }
 0x377   :  { %7206 = vmatpush1.bf16.msra.mxu0 %v9268_v7  ;;  %v9331_v7 = vld [vmem:[#allocation8 + $0xa08] ss:$16 sps:$4 sm:$0xff]  }
 0x378   :  { %7534 = vmatpush1.bf16.msra.mxu1 %v9271_v11  ;;  %7207 = vmatprep.subr.bf16.mxu0 %v9276_v15  ;;  %v9336_v11 = vld [vmem:[#allocation8 + $0xa24] ss:$16 sps:$4 sm:$0xff]   ;;  %v3930_v15 = vpack.c.bf16 %v3914_v2, %v3914_v2 }
 0x379   :  { %7535 = vmatprep.subr.bf16.mxu1 %v9279_v16  ;;  %v9334_v16 = vld [vmem:[#allocation8 + $0xa20] ss:$16 sps:$4 sm:$0xff]   ;;  %v9402_v2 = vld [vmem:[#allocation8 + $0xb84] ss:$16 sps:$4 sm:$0xff]  }
 0x37b   :  { %7208 = vmatpush1.bf16.msra.mxu0 %v9274_v17  ;;  %v9337_v17 = vld [vmem:[#allocation8 + $0xa28] ss:$16 sps:$4 sm:$0xff]  }
 0x37c   :  { %7536 = vmatpush1.bf16.msra.mxu1 %v9277_v18  ;;  %7209 = vmatprep.subr.bf16.mxu0 %v9282_v20  ;;  %v9342_v18 = vld [vmem:[#allocation8 + $0xa44] ss:$16 sps:$4 sm:$0xff]   ;;  %v9345_v20 = vld [vmem:[#allocation8 + $0xa4c] ss:$16 sps:$4 sm:$0xff]  }
 0x37d   :  { %7537 = vmatprep.subr.bf16.mxu1 %v9285_v21  ;;  %v9340_v21 = vld [vmem:[#allocation8 + $0xa40] ss:$16 sps:$4 sm:$0xff]  }
 0x37f   :  { %7210 = vmatpush1.bf16.msra.mxu0 %v9280_v25  ;;  %v9343_v25 = vld [vmem:[#allocation8 + $0xa48] ss:$16 sps:$4 sm:$0xff]  }
 0x380   :  { %7538 = vmatpush1.bf16.msra.mxu1 %v9283_v26  ;;  %7211 = vmatprep.subr.bf16.mxu0 %v9288_v27  ;;  %v9348_v26 = vld [vmem:[#allocation8 + $0xa64] ss:$16 sps:$4 sm:$0xff]   ;;  %v9351_v27 = vld [vmem:[#allocation8 + $0xa6c] ss:$16 sps:$4 sm:$0xff]  }
 0x381   :  { %7539 = vmatprep.subr.bf16.mxu1 %v9291_v28  ;;  %v9346_v28 = vld [vmem:[#allocation8 + $0xa60] ss:$16 sps:$4 sm:$0xff]  }
 0x383   :  { %7212 = vmatpush1.bf16.msra.mxu0 %v9286_v29  ;;  %v9349_v29 = vld [vmem:[#allocation8 + $0xa68] ss:$16 sps:$4 sm:$0xff]  }
 0x384   :  { %7540 = vmatpush1.bf16.msra.mxu1 %v9289_v30  ;;  %7213 = vmatprep.subr.bf16.mxu0 %v9294_v34  ;;  %v9354_v30 = vld [vmem:[#allocation8 + $0xa84] ss:$16 sps:$4 sm:$0xff]   ;;  %v9357_v34 = vld [vmem:[#allocation8 + $0xa8c] ss:$16 sps:$4 sm:$0xff]  }
 0x385   :  { %7541 = vmatprep.subr.bf16.mxu1 %v9297_v43  ;;  %v9352_v43 = vld [vmem:[#allocation8 + $0xa80] ss:$16 sps:$4 sm:$0xff]  }
 0x387   :  { %7214 = vmatpush1.bf16.msra.mxu0 %v9292_v44  ;;  %v9355_v44 = vld [vmem:[#allocation8 + $0xa88] ss:$16 sps:$4 sm:$0xff]  }
 0x388   :  { %7542 = vmatpush1.bf16.msra.mxu1 %v9295_v45  ;;  %7215 = vmatprep.subr.bf16.mxu0 %v9300_v47  ;;  %v9360_v45 = vld [vmem:[#allocation8 + $0xaa4] ss:$16 sps:$4 sm:$0xff]   ;;  %v9363_v47 = vld [vmem:[#allocation8 + $0xaac] ss:$16 sps:$4 sm:$0xff]  }
 0x389   :  { %7543 = vmatprep.subr.bf16.mxu1 %v9303_v48  ;;  %v9358_v48 = vld [vmem:[#allocation8 + $0xaa0] ss:$16 sps:$4 sm:$0xff]  }
 0x38b   :  { %7216 = vmatpush1.bf16.msra.mxu0 %v9298_v49  ;;  %v9361_v49 = vld [vmem:[#allocation8 + $0xaa8] ss:$16 sps:$4 sm:$0xff]  }
 0x38c   :  { %7544 = vmatpush1.bf16.msra.mxu1 %v9301_v8  ;;  %7217 = vmatprep.subr.bf16.mxu0 %v9306_v37  ;;  %v9366_v8 = vld [vmem:[#allocation8 + $0xac4] ss:$16 sps:$4 sm:$0xff]   ;;  %v9369_v37 = vld [vmem:[#allocation8 + $0xacc] ss:$16 sps:$4 sm:$0xff]  }
 0x38d   :  { %7545 = vmatprep.subr.bf16.mxu1 %v9309_v50  ;;  %v9364_v50 = vld [vmem:[#allocation8 + $0xac0] ss:$16 sps:$4 sm:$0xff]  }
 0x38f   :  { %7218 = vmatpush1.bf16.msra.mxu0 %v9304_v51  ;;  %v9367_v51 = vld [vmem:[#allocation8 + $0xac8] ss:$16 sps:$4 sm:$0xff]  }
 0x390   :  { %7546 = vmatpush1.bf16.msra.mxu1 %v9307_v24  ;;  %7219 = vmatprep.subr.bf16.mxu0 %v9312_v38  ;;  %v9372_v24 = vld [vmem:[#allocation8 + $0xae4] ss:$16 sps:$4 sm:$0xff]   ;;  %v9375_v38 = vld [vmem:[#allocation8 + $0xaec] ss:$16 sps:$4 sm:$0xff]  }
 0x391   :  { %7547 = vmatprep.subr.bf16.mxu1 %v9315_v52  ;;  %v9370_v52 = vld [vmem:[#allocation8 + $0xae0] ss:$16 sps:$4 sm:$0xff]  }
 0x393   :  { %7220 = vmatpush1.bf16.msra.mxu0 %v9310_v53  ;;  %v9373_v53 = vld [vmem:[#allocation8 + $0xae8] ss:$16 sps:$4 sm:$0xff]  }
 0x394   :  { %7548 = vmatpush1.bf16.msra.mxu1 %v9313_v55  ;;  %7221 = vmatprep.subr.bf16.mxu0 %v9318_v56  ;;  %v9381_v55 = vld [vmem:[#allocation8 + $0xb0c] ss:$16 sps:$4 sm:$0xff]   ;;  %v9376_v56 = vld [vmem:[#allocation8 + $0xb00] ss:$16 sps:$4 sm:$0xff]  }
 0x395   :  { %7549 = vmatprep.subr.bf16.mxu1 %v9321_v23  ;;  %v9379_v23 = vld [vmem:[#allocation8 + $0xb08] ss:$16 sps:$4 sm:$0xff]  }
 0x397   :  { %7222 = vmatpush1.bf16.msra.mxu0 %v9316_v59  ;;  %v9387_v59 = vld [vmem:[#allocation8 + $0xb2c] ss:$16 sps:$4 sm:$0xff]  }
 0x398   :  { %7550 = vmatpush1.bf16.msra.mxu1 %v9319_v22  ;;  %7223 = vmatprep.subr.bf16.mxu0 %v9324_v61  ;;  %v9385_v22 = vld [vmem:[#allocation8 + $0xb28] ss:$16 sps:$4 sm:$0xff]   ;;  %v9390_v61 = vld [vmem:[#allocation8 + $0xb44] ss:$16 sps:$4 sm:$0xff]  }
 0x399   :  { %7551 = vmatprep.subr.bf16.mxu1 %v9327_v4  ;;  %v9393_v4 = vld [vmem:[#allocation8 + $0xb4c] ss:$16 sps:$4 sm:$0xff]  }
 0x39b   :  { %7224 = vmatpush1.bf16.msra.mxu0 %v9322_v32  ;;  %v9391_v32 = vld [vmem:[#allocation8 + $0xb48] ss:$16 sps:$4 sm:$0xff]  }
 0x39c   :  { %7552 = vmatpush1.bf16.msra.mxu1 %v9325_v0  ;;  %7234 = vmatprep.subr.bf16.mxu0 %v9330_v13  ;;  %v9399_v0 = vld [vmem:[#allocation8 + $0xb6c] ss:$16 sps:$4 sm:$0xff]   ;;  %v9394_v13 = vld [vmem:[#allocation8 + $0xb60] ss:$16 sps:$4 sm:$0xff]  }
 0x39d   :  { %7562 = vmatprep.subr.bf16.mxu1 %v9333_v1  ;;  %v9397_v1 = vld [vmem:[#allocation8 + $0xb68] ss:$16 sps:$4 sm:$0xff]  }
 0x39e   :  { %7226 = vmatmul.mubr.bf16.vlgmr.msra.gmra.mrb[16].mxu0 %v3927_v5 }
 0x39f   :  { %7554 = vmatmul.mubr.bf16.vlgmr.msra.gmra.mrb[16].mxu1 %v3927_v5  ;;  %7235 = vmatpush1.bf16.msra.mxu0 %v9328_v33  ;;  %v9405_v33 = vld [vmem:[#allocation8 + $0xb8c] ss:$16 sps:$4 sm:$0xff]   ;;  %v9400_v5 = vld [vmem:[#allocation8 + $0xb80] ss:$16 sps:$4 sm:$0xff]  }
 0x3a0   :  { %7266 = vmatprep.mubr.bf16.mxu0 %v3930_v15  ;;  %7563 = vmatpush1.bf16.msra.mxu1 %v9331_v7  ;;  %v9403_v7 = vld [vmem:[#allocation8 + $0xb88] ss:$16 sps:$4 sm:$0xff]  }
 0x3a1   :  { %7594 = vmatprep.mubr.bf16.mxu1 %v3930_v15  ;;  %7236 = vmatprep.subr.bf16.mxu0 %v9336_v11  ;;  %v9408_v11 = vld [vmem:[#allocation8 + $0xba4] ss:$16 sps:$4 sm:$0xff]   ;;  %v9411_v15 = vld [vmem:[#allocation8 + $0xbac] ss:$16 sps:$4 sm:$0xff]  }
 0x3a2   :  { %7564 = vmatprep.subr.bf16.mxu1 %v9339_v57  ;;  %v9406_v57 = vld [vmem:[#allocation8 + $0xba0] ss:$16 sps:$4 sm:$0xff]  }
 0x3a3   :  { %7237 = vmatpush1.bf16.msra.mxu0 %v9334_v16  ;;  %v650_v16 = vrot.slane %v9974_v14, %v9945_v40 }
 0x3a4   :  { %7565 = vmatpush1.bf16.msra.mxu1 %v9337_v17  ;;  %7238 = vmatprep.subr.bf16.mxu0 %v9342_v18  ;;  %v9409_v17 = vld [vmem:[#allocation8 + $0xba8] ss:$16 sps:$4 sm:$0xff]   ;;  %v9414_v18 = vld [vmem:[#allocation8 + $0xbc4] ss:$16 sps:$4 sm:$0xff]  }
 0x3a5   :  { %7566 = vmatprep.subr.bf16.mxu1 %v9345_v20  ;;  %v9417_v20 = vld [vmem:[#allocation8 + $0xbcc] ss:$16 sps:$4 sm:$0xff]  }
 0x3a7   :  { %7239 = vmatpush1.bf16.msra.mxu0 %v9340_v21  ;;  %v662_v21 = vrot.slane %v9974_v14, %v629_v10  ;;  %v9429_v10 = vld [vmem:[#allocation8 + $0xc0c] ss:$16 sps:$4 sm:$0xff]  }
 0x3a8   :  { %7567 = vmatpush1.bf16.msra.mxu1 %v9343_v25  ;;  %7240 = vmatprep.subr.bf16.mxu0 %v9348_v26  ;;  %v9412_v25 = vld [vmem:[#allocation8 + $0xbc0] ss:$16 sps:$4 sm:$0xff]   ;;  %v8740_v26 = vadd.f32 %v9938_v35, %v650_v16  ;;  %v9475_v16 = vld [vmem:[#allocation8 + $0xd08] ss:$16 sps:$4 sm:$0xff]  }
 0x3a9   :  { %7568 = vmatprep.subr.bf16.mxu1 %v9351_v27  ;;  %v9415_v27 = vld [vmem:[#allocation8 + $0xbc8] ss:$16 sps:$4 sm:$0xff]   ;;  %v9424_v35 = vld [vmem:[#allocation8 + $0xc00] ss:$16 sps:$4 sm:$0xff]  }
 0x3ab   :  { %7241 = vmatpush1.bf16.msra.mxu0 %v9346_v28  ;;  %v9420_v28 = vld [vmem:[#allocation8 + $0xbe4] ss:$16 sps:$4 sm:$0xff]  }
 0x3ac   :  { %7569 = vmatpush1.bf16.msra.mxu1 %v9349_v29  ;;  %7242 = vmatprep.subr.bf16.mxu0 %v9354_v30  ;;  %v9423_v29 = vld [vmem:[#allocation8 + $0xbec] ss:$16 sps:$4 sm:$0xff]   ;;  %v8743_v30 = vadd.f32 %v9969_v41, %v662_v21  ;;  %v9481_v21 = vld [vmem:[#allocation8 + $0xd28] ss:$16 sps:$4 sm:$0xff]  }
 0x3ad   :  { %7570 = vmatprep.subr.bf16.mxu1 %v9357_v34  ;;  %v9418_v34 = vld [vmem:[#allocation8 + $0xbe0] ss:$16 sps:$4 sm:$0xff]   ;;  %v9435_v41 = vld [vmem:[#allocation8 + $0xc2c] ss:$16 sps:$4 sm:$0xff]  }
 0x3af   :  { %7243 = vmatpush1.bf16.msra.mxu0 %v9352_v43  ;;  %v3913_v43 = vmax.f32 %v8740_v26, 0.0  ;;  %v9489_v26 = vld [vmem:[#allocation8 + $0xd4c] ss:$16 sps:$4 sm:$0xff]  }
 0x3b0   :  { %7571 = vmatpush1.bf16.msra.mxu1 %v9355_v44  ;;  %7244 = vmatprep.subr.bf16.mxu0 %v9360_v45  ;;  %v9421_v44 = vld [vmem:[#allocation8 + $0xbe8] ss:$16 sps:$4 sm:$0xff]   ;;  %v9426_v45 = vld [vmem:[#allocation8 + $0xc04] ss:$16 sps:$4 sm:$0xff]  }
 0x3b1   :  { %7572 = vmatprep.subr.bf16.mxu1 %v9363_v47  ;;  %v3916_v47 = vmax.f32 %v8743_v30, 0.0  ;;  %v9495_v30 = vld [vmem:[#allocation8 + $0xd6c] ss:$16 sps:$4 sm:$0xff]  }
 0x3b3   :  { %7245 = vmatpush1.bf16.msra.mxu0 %v9358_v48  ;;  %v3929_v48 = vpack.c.bf16 %v3913_v43, %v3913_v43  ;;  %v9493_v43 = vld [vmem:[#allocation8 + $0xd68] ss:$16 sps:$4 sm:$0xff]  }
 0x3b4   :  { %7573 = vmatpush1.bf16.msra.mxu1 %v9361_v49  ;;  %7246 = vmatprep.subr.bf16.mxu0 %v9366_v8  ;;  %v9427_v49 = vld [vmem:[#allocation8 + $0xc08] ss:$16 sps:$4 sm:$0xff]   ;;  %v9432_v8 = vld [vmem:[#allocation8 + $0xc24] ss:$16 sps:$4 sm:$0xff]  }
 0x3b5   :  { %7574 = vmatprep.subr.bf16.mxu1 %v9369_v37  ;;  %v3932_v37 = vpack.c.bf16 %v3916_v47, %v3916_v47  ;;  %v9499_v47 = vld [vmem:[#allocation8 + $0xd88] ss:$16 sps:$4 sm:$0xff]  }
 0x3b7   :  { %7247 = vmatpush1.bf16.msra.mxu0 %v9364_v50  ;;  %v9430_v50 = vld [vmem:[#allocation8 + $0xc20] ss:$16 sps:$4 sm:$0xff]  }
 0x3b8   :  { %7575 = vmatpush1.bf16.msra.mxu1 %v9367_v51  ;;  %7248 = vmatprep.subr.bf16.mxu0 %v9372_v24  ;;  %v9433_v51 = vld [vmem:[#allocation8 + $0xc28] ss:$16 sps:$4 sm:$0xff]   ;;  %v9438_v24 = vld [vmem:[#allocation8 + $0xc44] ss:$16 sps:$4 sm:$0xff]  }
 0x3b9   :  { %7576 = vmatprep.subr.bf16.mxu1 %v9375_v38  ;;  %v9441_v38 = vld [vmem:[#allocation8 + $0xc4c] ss:$16 sps:$4 sm:$0xff]  }
 0x3bb   :  { %7249 = vmatpush1.bf16.msra.mxu0 %v9370_v52  ;;  %v9436_v52 = vld [vmem:[#allocation8 + $0xc40] ss:$16 sps:$4 sm:$0xff]  }
 0x3bc   :  { %7577 = vmatpush1.bf16.msra.mxu1 %v9373_v53  ;;  %7250 = vmatprep.subr.bf16.mxu0 %v9378_v54  ;;  %v9439_v53 = vld [vmem:[#allocation8 + $0xc48] ss:$16 sps:$4 sm:$0xff]   ;;  %v9444_v54 = vld [vmem:[#allocation8 + $0xc64] ss:$16 sps:$4 sm:$0xff]  }
 0x3bd   :  { %7578 = vmatprep.subr.bf16.mxu1 %v9381_v55  ;;  %v9447_v55 = vld [vmem:[#allocation8 + $0xc6c] ss:$16 sps:$4 sm:$0xff]  }
 0x3bf   :  { %7251 = vmatpush1.bf16.msra.mxu0 %v9376_v56  ;;  %v9442_v56 = vld [vmem:[#allocation8 + $0xc60] ss:$16 sps:$4 sm:$0xff]  }
 0x3c0   :  { %7579 = vmatpush1.bf16.msra.mxu1 %v9379_v23  ;;  %7252 = vmatprep.subr.bf16.mxu0 %v9384_v58  ;;  %v9445_v23 = vld [vmem:[#allocation8 + $0xc68] ss:$16 sps:$4 sm:$0xff]   ;;  %v9450_v58 = vld [vmem:[#allocation8 + $0xc84] ss:$16 sps:$4 sm:$0xff]  }
 0x3c1   :  { %7580 = vmatprep.subr.bf16.mxu1 %v9387_v59  ;;  %v9453_v59 = vld [vmem:[#allocation8 + $0xc8c] ss:$16 sps:$4 sm:$0xff]  }
 0x3c3   :  { %7253 = vmatpush1.bf16.msra.mxu0 %v9382_v60  ;;  %v9448_v60 = vld [vmem:[#allocation8 + $0xc80] ss:$16 sps:$4 sm:$0xff]  }
 0x3c4   :  { %7581 = vmatpush1.bf16.msra.mxu1 %v9385_v22  ;;  %7254 = vmatprep.subr.bf16.mxu0 %v9390_v61  ;;  %v9451_v22 = vld [vmem:[#allocation8 + $0xc88] ss:$16 sps:$4 sm:$0xff]   ;;  %v9456_v61 = vld [vmem:[#allocation8 + $0xca4] ss:$16 sps:$4 sm:$0xff]  }
 0x3c5   :  { %7582 = vmatprep.subr.bf16.mxu1 %v9393_v4  ;;  %v9459_v4 = vld [vmem:[#allocation8 + $0xcac] ss:$16 sps:$4 sm:$0xff]  }
 0x3c7   :  { %7255 = vmatpush1.bf16.msra.mxu0 %v9388_v62  ;;  %v9454_v62 = vld [vmem:[#allocation8 + $0xca0] ss:$16 sps:$4 sm:$0xff]  }
 0x3c8   :  { %7583 = vmatpush1.bf16.msra.mxu1 %v9391_v32  ;;  %7256 = vmatprep.subr.bf16.mxu0 %v9396_v63  ;;  %v9457_v32 = vld [vmem:[#allocation8 + $0xca8] ss:$16 sps:$4 sm:$0xff]   ;;  %v9462_v63 = vld [vmem:[#allocation8 + $0xcc4] ss:$16 sps:$4 sm:$0xff]  }
 0x3c9   :  { %7584 = vmatprep.subr.bf16.mxu1 %v9399_v0  ;;  %v9465_v0 = vld [vmem:[#allocation8 + $0xccc] ss:$16 sps:$4 sm:$0xff]  }
 0x3cb   :  { %7257 = vmatpush1.bf16.msra.mxu0 %v9394_v13  ;;  %v9460_v13 = vld [vmem:[#allocation8 + $0xcc0] ss:$16 sps:$4 sm:$0xff]  }
 0x3cc   :  { %7585 = vmatpush1.bf16.msra.mxu1 %v9397_v1  ;;  %7258 = vmatprep.subr.bf16.mxu0 %v9402_v2  ;;  %v9463_v1 = vld [vmem:[#allocation8 + $0xcc8] ss:$16 sps:$4 sm:$0xff]   ;;  %v9468_v2 = vld [vmem:[#allocation8 + $0xce4] ss:$16 sps:$4 sm:$0xff]  }
 0x3cd   :  { %7586 = vmatprep.subr.bf16.mxu1 %v9405_v33  ;;  %v9471_v33 = vld [vmem:[#allocation8 + $0xcec] ss:$16 sps:$4 sm:$0xff]  }
 0x3cf   :  { %7259 = vmatpush1.bf16.msra.mxu0 %v9400_v5  ;;  %v9466_v5 = vld [vmem:[#allocation8 + $0xce0] ss:$16 sps:$4 sm:$0xff]  }
 0x3d0   :  { %7587 = vmatpush1.bf16.msra.mxu1 %v9403_v7  ;;  %7260 = vmatprep.subr.bf16.mxu0 %v9408_v11  ;;  %v9469_v7 = vld [vmem:[#allocation8 + $0xce8] ss:$16 sps:$4 sm:$0xff]   ;;  %v9474_v11 = vld [vmem:[#allocation8 + $0xd04] ss:$16 sps:$4 sm:$0xff]  }
 0x3d1   :  { %7588 = vmatprep.subr.bf16.mxu1 %v9411_v15  ;;  %v9477_v15 = vld [vmem:[#allocation8 + $0xd0c] ss:$16 sps:$4 sm:$0xff]  }
 0x3d3   :  { %7261 = vmatpush1.bf16.msra.mxu0 %v9406_v57  ;;  %v9472_v57 = vld [vmem:[#allocation8 + $0xd00] ss:$16 sps:$4 sm:$0xff]  }
 0x3d4   :  { %7589 = vmatpush1.bf16.msra.mxu1 %v9409_v17  ;;  %7262 = vmatprep.subr.bf16.mxu0 %v9414_v18  ;;  %v9480_v17 = vld [vmem:[#allocation8 + $0xd24] ss:$16 sps:$4 sm:$0xff]   ;;  %v9483_v18 = vld [vmem:[#allocation8 + $0xd2c] ss:$16 sps:$4 sm:$0xff]  }
 0x3d5   :  { %7590 = vmatprep.subr.bf16.mxu1 %v9417_v20  ;;  %v9478_v20 = vld [vmem:[#allocation8 + $0xd20] ss:$16 sps:$4 sm:$0xff]  }
 0x3d7   :  { %7263 = vmatpush1.bf16.msra.mxu0 %v9412_v25  ;;  %v9486_v25 = vld [vmem:[#allocation8 + $0xd44] ss:$16 sps:$4 sm:$0xff]  }
 0x3d8   :  { %7591 = vmatpush1.bf16.msra.mxu1 %v9415_v27  ;;  %7264 = vmatprep.subr.bf16.mxu0 %v9420_v28  ;;  %v9484_v27 = vld [vmem:[#allocation8 + $0xd40] ss:$16 sps:$4 sm:$0xff]   ;;  %v9487_v28 = vld [vmem:[#allocation8 + $0xd48] ss:$16 sps:$4 sm:$0xff]  }
 0x3d9   :  { %7592 = vmatprep.subr.bf16.mxu1 %v9423_v29  ;;  %v9492_v29 = vld [vmem:[#allocation8 + $0xd64] ss:$16 sps:$4 sm:$0xff]  }
 0x3db   :  { %7265 = vmatpush1.bf16.msra.mxu0 %v9418_v34  ;;  %v9490_v34 = vld [vmem:[#allocation8 + $0xd60] ss:$16 sps:$4 sm:$0xff]  }
 0x3dc   :  { %7593 = vmatpush1.bf16.msra.mxu1 %v9421_v44  ;;  %7275 = vmatprep.subr.bf16.mxu0 %v9426_v45  ;;  %v9498_v44 = vld [vmem:[#allocation8 + $0xd84] ss:$16 sps:$4 sm:$0xff]   ;;  %v9501_v45 = vld [vmem:[#allocation8 + $0xd8c] ss:$16 sps:$4 sm:$0xff]  }
 0x3dd   :  { %7603 = vmatprep.subr.bf16.mxu1 %v9429_v10  ;;  %v9496_v10 = vld [vmem:[#allocation8 + $0xd80] ss:$16 sps:$4 sm:$0xff]  }
 0x3de   :  { %7267 = vmatmul.mubr.bf16.vlgmr.msra.gmra.mrb[16].mxu0 %v3929_v48 }
 0x3df   :  { %7595 = vmatmul.mubr.bf16.vlgmr.msra.gmra.mrb[16].mxu1 %v3929_v48  ;;  %7276 = vmatpush1.bf16.msra.mxu0 %v9424_v35  ;;  %v9504_v35 = vld [vmem:[#allocation8 + $0xda4] ss:$16 sps:$4 sm:$0xff]   ;;  %v9507_v48 = vld [vmem:[#allocation8 + $0xdac] ss:$16 sps:$4 sm:$0xff]  }
 0x3e0   :  { %7307 = vmatprep.mubr.bf16.mxu0 %v3932_v37  ;;  %7604 = vmatpush1.bf16.msra.mxu1 %v9427_v49  ;;  %v9502_v49 = vld [vmem:[#allocation8 + $0xda0] ss:$16 sps:$4 sm:$0xff]  }
 0x3e1   :  { %7635 = vmatprep.mubr.bf16.mxu1 %v3932_v37  ;;  %7277 = vmatprep.subr.bf16.mxu0 %v9432_v8  ;;  %v658_v8 = vrot.slane %v9974_v14, %v625_v42  ;;  %v9505_v37 = vld [vmem:[#allocation8 + $0xda8] ss:$16 sps:$4 sm:$0xff]   ;;  %v9519_v42 = vld [vmem:[#allocation8 + $0xdec] ss:$16 sps:$4 sm:$0xff]  }
 0x3e2   :  { %7605 = vmatprep.subr.bf16.mxu1 %v9435_v41  ;;  %v9510_v41 = vld [vmem:[#allocation8 + $0xdc4] ss:$16 sps:$4 sm:$0xff]  }
 0x3e3   :  { %7278 = vmatpush1.bf16.msra.mxu0 %v9430_v50  ;;  %v9513_v50 = vld [vmem:[#allocation8 + $0xdcc] ss:$16 sps:$4 sm:$0xff]  }
 0x3e4   :  { %7606 = vmatpush1.bf16.msra.mxu1 %v9433_v51  ;;  %7279 = vmatprep.subr.bf16.mxu0 %v9438_v24  ;;  %v670_v51 = vrot.slane %v9974_v14, %v637_v9  ;;  %v9508_v24 = vld [vmem:[#allocation8 + $0xdc0] ss:$16 sps:$4 sm:$0xff]   ;;  %v9525_v9 = vld [vmem:[#allocation8 + $0xe0c] ss:$16 sps:$4 sm:$0xff]  }
 0x3e5   :  { %7607 = vmatprep.subr.bf16.mxu1 %v9441_v38  ;;  %v8742_v38 = vadd.f32 %v9965_v31, %v658_v8  ;;  %v9520_v31 = vld [vmem:[#allocation8 + $0xe00] ss:$16 sps:$4 sm:$0xff]   ;;  %v9582_v8 = vld [vmem:[#allocation8 + $0xf44] ss:$16 sps:$4 sm:$0xff]  }
 0x3e7   :  { %7280 = vmatpush1.bf16.msra.mxu0 %v9436_v52  ;;  %v9511_v52 = vld [vmem:[#allocation8 + $0xdc8] ss:$16 sps:$4 sm:$0xff]  }
 0x3e8   :  { %7608 = vmatpush1.bf16.msra.mxu1 %v9439_v53  ;;  %7281 = vmatprep.subr.bf16.mxu0 %v9444_v54  ;;  %v9516_v53 = vld [vmem:[#allocation8 + $0xde4] ss:$16 sps:$4 sm:$0xff]   ;;  %v8745_v54 = vadd.f32 %v9971_v36, %v670_v51  ;;  %v9531_v36 = vld [vmem:[#allocation8 + $0xe2c] ss:$16 sps:$4 sm:$0xff]  }
 0x3e9   :  { %7609 = vmatprep.subr.bf16.mxu1 %v9447_v55  ;;  %v9514_v55 = vld [vmem:[#allocation8 + $0xde0] ss:$16 sps:$4 sm:$0xff]   ;;  %v9588_v51 = vld [vmem:[#allocation8 + $0xf64] ss:$16 sps:$4 sm:$0xff]  }
 0x3ea   :  { %v3918_v14 = vmax.f32 %v8745_v54, 0.0  ;;  %v9592_v54 = vld [vmem:[#allocation8 + $0xf80] ss:$16 sps:$4 sm:$0xff]  }
 0x3eb   :  { %7282 = vmatpush1.bf16.msra.mxu0 %v9442_v56  ;;  %v3915_v56 = vmax.f32 %v8742_v38, 0.0  ;;  %v9586_v38 = vld [vmem:[#allocation8 + $0xf60] ss:$16 sps:$4 sm:$0xff]  }
 0x3ec   :  { %7610 = vmatpush1.bf16.msra.mxu1 %v9445_v23  ;;  %7283 = vmatprep.subr.bf16.mxu0 %v9450_v58  ;;  %v9517_v23 = vld [vmem:[#allocation8 + $0xde8] ss:$16 sps:$4 sm:$0xff]   ;;  %v9522_v58 = vld [vmem:[#allocation8 + $0xe04] ss:$16 sps:$4 sm:$0xff]  }
 0x3ed   :  { %7611 = vmatprep.subr.bf16.mxu1 %v9453_v59  ;;  %v3931_v59 = vpack.c.bf16 %v3915_v56, %v3915_v56  ;;  %v9600_v56 = vld [vmem:[#allocation8 + $0xfa4] ss:$16 sps:$4 sm:$0xff]  }
 0x3ef   :  { %7284 = vmatpush1.bf16.msra.mxu0 %v9448_v60  ;;  %v9523_v60 = vld [vmem:[#allocation8 + $0xe08] ss:$16 sps:$4 sm:$0xff]  }
 0x3f0   :  { %7612 = vmatpush1.bf16.msra.mxu1 %v9451_v22  ;;  %7285 = vmatprep.subr.bf16.mxu0 %v9456_v61  ;;  %v9528_v22 = vld [vmem:[#allocation8 + $0xe24] ss:$16 sps:$4 sm:$0xff]   ;;  %v3934_v61 = vpack.c.bf16 %v3918_v14, %v3918_v14 }
 0x3f1   :  { %7613 = vmatprep.subr.bf16.mxu1 %v9459_v4  ;;  %v9526_v4 = vld [vmem:[#allocation8 + $0xe20] ss:$16 sps:$4 sm:$0xff]  }
 0x3f3   :  { %7286 = vmatpush1.bf16.msra.mxu0 %v9454_v62  ;;  %v9529_v62 = vld [vmem:[#allocation8 + $0xe28] ss:$16 sps:$4 sm:$0xff]  }
 0x3f4   :  { %7614 = vmatpush1.bf16.msra.mxu1 %v9457_v32  ;;  %7287 = vmatprep.subr.bf16.mxu0 %v9462_v63  ;;  %v9534_v32 = vld [vmem:[#allocation8 + $0xe44] ss:$16 sps:$4 sm:$0xff]   ;;  %v9537_v63 = vld [vmem:[#allocation8 + $0xe4c] ss:$16 sps:$4 sm:$0xff]  }
 0x3f5   :  { %7615 = vmatprep.subr.bf16.mxu1 %v9465_v0  ;;  %v9532_v0 = vld [vmem:[#allocation8 + $0xe40] ss:$16 sps:$4 sm:$0xff]  }
 0x3f7   :  { %7288 = vmatpush1.bf16.msra.mxu0 %v9460_v13  ;;  %v9535_v13 = vld [vmem:[#allocation8 + $0xe48] ss:$16 sps:$4 sm:$0xff]  }
 0x3f8   :  { %7616 = vmatpush1.bf16.msra.mxu1 %v9463_v1  ;;  %7289 = vmatprep.subr.bf16.mxu0 %v9468_v2  ;;  %v9540_v1 = vld [vmem:[#allocation8 + $0xe64] ss:$16 sps:$4 sm:$0xff]   ;;  %v9543_v2 = vld [vmem:[#allocation8 + $0xe6c] ss:$16 sps:$4 sm:$0xff]  }
 0x3f9   :  { %7617 = vmatprep.subr.bf16.mxu1 %v9471_v33  ;;  %v9538_v33 = vld [vmem:[#allocation8 + $0xe60] ss:$16 sps:$4 sm:$0xff]  }
 0x3fb   :  { %7290 = vmatpush1.bf16.msra.mxu0 %v9466_v5  ;;  %v9541_v5 = vld [vmem:[#allocation8 + $0xe68] ss:$16 sps:$4 sm:$0xff]  }
 0x3fc   :  { %7618 = vmatpush1.bf16.msra.mxu1 %v9469_v7  ;;  %7291 = vmatprep.subr.bf16.mxu0 %v9474_v11  ;;  %v9546_v7 = vld [vmem:[#allocation8 + $0xe84] ss:$16 sps:$4 sm:$0xff]   ;;  %v9549_v11 = vld [vmem:[#allocation8 + $0xe8c] ss:$16 sps:$4 sm:$0xff]  }
 0x3fd   :  { %7619 = vmatprep.subr.bf16.mxu1 %v9477_v15  ;;  %v9544_v15 = vld [vmem:[#allocation8 + $0xe80] ss:$16 sps:$4 sm:$0xff]  }
 0x3ff   :  { %7292 = vmatpush1.bf16.msra.mxu0 %v9472_v57  ;;  %v9547_v57 = vld [vmem:[#allocation8 + $0xe88] ss:$16 sps:$4 sm:$0xff]  }
 0x400   :  { %7620 = vmatpush1.bf16.msra.mxu1 %v9475_v16  ;;  %7293 = vmatprep.subr.bf16.mxu0 %v9480_v17  ;;  %v9552_v16 = vld [vmem:[#allocation8 + $0xea4] ss:$16 sps:$4 sm:$0xff]   ;;  %v9555_v17 = vld [vmem:[#allocation8 + $0xeac] ss:$16 sps:$4 sm:$0xff]  }
 0x401   :  { %7621 = vmatprep.subr.bf16.mxu1 %v9483_v18  ;;  %v9550_v18 = vld [vmem:[#allocation8 + $0xea0] ss:$16 sps:$4 sm:$0xff]  }
 0x403   :  { %7294 = vmatpush1.bf16.msra.mxu0 %v9478_v20  ;;  %v9553_v20 = vld [vmem:[#allocation8 + $0xea8] ss:$16 sps:$4 sm:$0xff]  }
 0x404   :  { %7622 = vmatpush1.bf16.msra.mxu1 %v9481_v21  ;;  %7295 = vmatprep.subr.bf16.mxu0 %v9486_v25  ;;  %v9558_v21 = vld [vmem:[#allocation8 + $0xec4] ss:$16 sps:$4 sm:$0xff]   ;;  %v9561_v25 = vld [vmem:[#allocation8 + $0xecc] ss:$16 sps:$4 sm:$0xff]  }
 0x405   :  { %7623 = vmatprep.subr.bf16.mxu1 %v9489_v26  ;;  %v9556_v26 = vld [vmem:[#allocation8 + $0xec0] ss:$16 sps:$4 sm:$0xff]  }
 0x407   :  { %7296 = vmatpush1.bf16.msra.mxu0 %v9484_v27  ;;  %v9559_v27 = vld [vmem:[#allocation8 + $0xec8] ss:$16 sps:$4 sm:$0xff]  }
 0x408   :  { %7624 = vmatpush1.bf16.msra.mxu1 %v9487_v28  ;;  %7297 = vmatprep.subr.bf16.mxu0 %v9492_v29  ;;  %v9564_v28 = vld [vmem:[#allocation8 + $0xee4] ss:$16 sps:$4 sm:$0xff]   ;;  %v9567_v29 = vld [vmem:[#allocation8 + $0xeec] ss:$16 sps:$4 sm:$0xff]  }
 0x409   :  { %7625 = vmatprep.subr.bf16.mxu1 %v9495_v30  ;;  %v9562_v30 = vld [vmem:[#allocation8 + $0xee0] ss:$16 sps:$4 sm:$0xff]  }
 0x40b   :  { %7298 = vmatpush1.bf16.msra.mxu0 %v9490_v34  ;;  %v9565_v34 = vld [vmem:[#allocation8 + $0xee8] ss:$16 sps:$4 sm:$0xff]  }
 0x40c   :  { %7626 = vmatpush1.bf16.msra.mxu1 %v9493_v43  ;;  %7299 = vmatprep.subr.bf16.mxu0 %v9498_v44  ;;  %v9570_v43 = vld [vmem:[#allocation8 + $0xf04] ss:$16 sps:$4 sm:$0xff]   ;;  %v9573_v44 = vld [vmem:[#allocation8 + $0xf0c] ss:$16 sps:$4 sm:$0xff]  }
 0x40d   :  { %7627 = vmatprep.subr.bf16.mxu1 %v9501_v45  ;;  %v9568_v45 = vld [vmem:[#allocation8 + $0xf00] ss:$16 sps:$4 sm:$0xff]  }
 0x40f   :  { %7300 = vmatpush1.bf16.msra.mxu0 %v9496_v10  ;;  %v9571_v10 = vld [vmem:[#allocation8 + $0xf08] ss:$16 sps:$4 sm:$0xff]  }
 0x410   :  { %7628 = vmatpush1.bf16.msra.mxu1 %v9499_v47  ;;  %7301 = vmatprep.subr.bf16.mxu0 %v9504_v35  ;;  %v9576_v47 = vld [vmem:[#allocation8 + $0xf24] ss:$16 sps:$4 sm:$0xff]   ;;  %v9579_v35 = vld [vmem:[#allocation8 + $0xf2c] ss:$16 sps:$4 sm:$0xff]  }
 0x411   :  { %7629 = vmatprep.subr.bf16.mxu1 %v9507_v48  ;;  %v9574_v48 = vld [vmem:[#allocation8 + $0xf20] ss:$16 sps:$4 sm:$0xff]  }
 0x413   :  { %7302 = vmatpush1.bf16.msra.mxu0 %v9502_v49  ;;  %v9577_v49 = vld [vmem:[#allocation8 + $0xf28] ss:$16 sps:$4 sm:$0xff]  }
 0x414   :  { %7630 = vmatpush1.bf16.msra.mxu1 %v9505_v37  ;;  %7303 = vmatprep.subr.bf16.mxu0 %v9510_v41  ;;  %v9585_v37 = vld [vmem:[#allocation8 + $0xf4c] ss:$16 sps:$4 sm:$0xff]   ;;  %v9580_v41 = vld [vmem:[#allocation8 + $0xf40] ss:$16 sps:$4 sm:$0xff]  }
 0x415   :  { %7631 = vmatprep.subr.bf16.mxu1 %v9513_v50  ;;  %v9583_v50 = vld [vmem:[#allocation8 + $0xf48] ss:$16 sps:$4 sm:$0xff]  }
 0x417   :  { %7304 = vmatpush1.bf16.msra.mxu0 %v9508_v24  ;;  %v9591_v24 = vld [vmem:[#allocation8 + $0xf6c] ss:$16 sps:$4 sm:$0xff]  }
 0x418   :  { %7632 = vmatpush1.bf16.msra.mxu1 %v9511_v52  ;;  %7305 = vmatprep.subr.bf16.mxu0 %v9516_v53  ;;  %v9589_v52 = vld [vmem:[#allocation8 + $0xf68] ss:$16 sps:$4 sm:$0xff]   ;;  %v9594_v53 = vld [vmem:[#allocation8 + $0xf84] ss:$16 sps:$4 sm:$0xff]  }
 0x419   :  { %7633 = vmatprep.subr.bf16.mxu1 %v9519_v42  ;;  %v9597_v42 = vld [vmem:[#allocation8 + $0xf8c] ss:$16 sps:$4 sm:$0xff]  }
 0x41b   :  { %7306 = vmatpush1.bf16.msra.mxu0 %v9514_v55  ;;  %v9595_v55 = vld [vmem:[#allocation8 + $0xf88] ss:$16 sps:$4 sm:$0xff]  }
 0x41c   :  { %7634 = vmatpush1.bf16.msra.mxu1 %v9517_v23  ;;  %7316 = vmatprep.subr.bf16.mxu0 %v9522_v58  ;;  %v9603_v23 = vld [vmem:[#allocation8 + $0xfac] ss:$16 sps:$4 sm:$0xff]   ;;  %v9598_v58 = vld [vmem:[#allocation8 + $0xfa0] ss:$16 sps:$4 sm:$0xff]  }
 0x41d   :  { %7644 = vmatprep.subr.bf16.mxu1 %v9525_v9  ;;  %v9617_v9 = vld [vmem:[#allocation7 + $0x8] sm:$0xff] }
 0x41e   :  { %7308 = vmatmul.mubr.bf16.vlgmr.msra.gmra.mrb[16].mxu0 %v3931_v59  ;;  %v666_v14 = vrot.slane %v9617_v9, %v633_v3  ;;  %v9613_v3 = vld [vmem:[#allocation8 + $0xfe8] ss:$16 sps:$4 sm:$0xff]  }
 0x41f   :  { %7636 = vmatmul.mubr.bf16.vlgmr.msra.gmra.mrb[16].mxu1 %v3931_v59  ;;  %7317 = vmatpush1.bf16.msra.mxu0 %v9520_v31  ;;  %v9601_v31 = vld [vmem:[#allocation8 + $0xfa8] ss:$16 sps:$4 sm:$0xff]   ;;  %v9606_v59 = vld [vmem:[#allocation8 + $0xfc4] ss:$16 sps:$4 sm:$0xff]  }
 0x420   :  { %7348 = vmatprep.mubr.bf16.mxu0 %v3934_v61  ;;  %7645 = vmatpush1.bf16.msra.mxu1 %v9523_v60  ;;  %v9609_v60 = vld [vmem:[#allocation8 + $0xfcc] ss:$16 sps:$4 sm:$0xff]  }
 0x421   :  { %7676 = vmatprep.mubr.bf16.mxu1 %v3934_v61  ;;  %7318 = vmatprep.subr.bf16.mxu0 %v9528_v22  ;;  %v9604_v22 = vld [vmem:[#allocation8 + $0xfc0] ss:$16 sps:$4 sm:$0xff]   ;;  %v8744_v61 = vadd.f32 %v9967_v39, %v666_v14 }
 0x422   :  { %7646 = vmatprep.subr.bf16.mxu1 %v9531_v36  ;;  %v9607_v36 = vld [vmem:[#allocation8 + $0xfc8] ss:$16 sps:$4 sm:$0xff]  }
 0x423   :  { %7319 = vmatpush1.bf16.msra.mxu0 %v9526_v4  ;;  %v9612_v4 = vld [vmem:[#allocation8 + $0xfe4] ss:$16 sps:$4 sm:$0xff]   ;;  %v3917_v6 = vmax.f32 %v8744_v61, 0.0 }
 0x424   :  { %7647 = vmatpush1.bf16.msra.mxu1 %v9529_v62  ;;  %7320 = vmatprep.subr.bf16.mxu0 %v9534_v32  ;;  %v9615_v62 = vld [vmem:[#allocation8 + $0xfec] ss:$16 sps:$4 sm:$0xff]   ;;  %v9610_v32 = vld [vmem:[#allocation8 + $0xfe0] ss:$16 sps:$4 sm:$0xff]  }
 0x425   :  { %7648 = vmatprep.subr.bf16.mxu1 %v9537_v63  ;;  %v3933_v63 = vpack.c.bf16 %v3917_v6, %v3917_v6 }
 0x427   :  { %7321 = vmatpush1.bf16.msra.mxu0 %v9532_v0  ;;  %v4447_v0 = vld [vmem:[#allocation10] sm:$0xf] }
 0x428   :  { %7649 = vmatpush1.bf16.msra.mxu1 %v9535_v13  ;;  %7322 = vmatprep.subr.bf16.mxu0 %v9540_v1  ;;  %v4452_v39 = vrot.slane %v4447_v0, %v9925_v12  ;;  %v4460_v13 = vrot.slane %v4447_v0, %v9945_v40  ;;  %v4456_v1 = vrot.slane %v4447_v0, %v9915_v19 }
 0x429   :  { %7650 = vmatprep.subr.bf16.mxu1 %v9543_v2  ;;  %v4464_v2 = vrot.slane %v4447_v0, %v9928_v46 }
 0x42b   :  { %7323 = vmatpush1.bf16.msra.mxu0 %v9538_v33 }
 0x42c   :  { %7651 = vmatpush1.bf16.msra.mxu1 %v9541_v5  ;;  %7324 = vmatprep.subr.bf16.mxu0 %v9546_v7 }
 0x42d   :  { %7652 = vmatprep.subr.bf16.mxu1 %v9549_v11 }
 0x42f   :  { %7325 = vmatpush1.bf16.msra.mxu0 %v9544_v15 }
 0x430   :  { %7653 = vmatpush1.bf16.msra.mxu1 %v9547_v57  ;;  %7326 = vmatprep.subr.bf16.mxu0 %v9552_v16 }
 0x431   :  { %7654 = vmatprep.subr.bf16.mxu1 %v9555_v17 }
 0x433   :  { %7327 = vmatpush1.bf16.msra.mxu0 %v9550_v18 }
 0x434   :  { %7655 = vmatpush1.bf16.msra.mxu1 %v9553_v20  ;;  %7328 = vmatprep.subr.bf16.mxu0 %v9558_v21 }
 0x435   :  { %7656 = vmatprep.subr.bf16.mxu1 %v9561_v25 }
 0x437   :  { %7329 = vmatpush1.bf16.msra.mxu0 %v9556_v26 }
 0x438   :  { %7657 = vmatpush1.bf16.msra.mxu1 %v9559_v27  ;;  %7330 = vmatprep.subr.bf16.mxu0 %v9564_v28 }
 0x439   :  { %7658 = vmatprep.subr.bf16.mxu1 %v9567_v29 }
 0x43b   :  { %7331 = vmatpush1.bf16.msra.mxu0 %v9562_v30 }
 0x43c   :  { %7659 = vmatpush1.bf16.msra.mxu1 %v9565_v34  ;;  %7332 = vmatprep.subr.bf16.mxu0 %v9570_v43 }
 0x43d   :  { %7660 = vmatprep.subr.bf16.mxu1 %v9573_v44 }
 0x43f   :  { %7333 = vmatpush1.bf16.msra.mxu0 %v9568_v45 }
 0x440   :  { %7661 = vmatpush1.bf16.msra.mxu1 %v9571_v10  ;;  %7334 = vmatprep.subr.bf16.mxu0 %v9576_v47 }
 0x441   :  { %7662 = vmatprep.subr.bf16.mxu1 %v9579_v35 }
 0x443   :  { %7335 = vmatpush1.bf16.msra.mxu0 %v9574_v48 }
 0x444   :  { %7663 = vmatpush1.bf16.msra.mxu1 %v9577_v49  ;;  %7336 = vmatprep.subr.bf16.mxu0 %v9582_v8 }
 0x445   :  { %7664 = vmatprep.subr.bf16.mxu1 %v9585_v37 }
 0x447   :  { %7337 = vmatpush1.bf16.msra.mxu0 %v9580_v41 }
 0x448   :  { %7665 = vmatpush1.bf16.msra.mxu1 %v9583_v50  ;;  %7338 = vmatprep.subr.bf16.mxu0 %v9588_v51 }
 0x449   :  { %7666 = vmatprep.subr.bf16.mxu1 %v9591_v24 }
 0x44b   :  { %7339 = vmatpush1.bf16.msra.mxu0 %v9586_v38 }
 0x44c   :  { %7667 = vmatpush1.bf16.msra.mxu1 %v9589_v52  ;;  %7340 = vmatprep.subr.bf16.mxu0 %v9594_v53 }
 0x44d   :  { %7668 = vmatprep.subr.bf16.mxu1 %v9597_v42 }
 0x44f   :  { %7341 = vmatpush1.bf16.msra.mxu0 %v9592_v54 }
 0x450   :  { %7669 = vmatpush1.bf16.msra.mxu1 %v9595_v55  ;;  %7342 = vmatprep.subr.bf16.mxu0 %v9600_v56 }
 0x451   :  { %7670 = vmatprep.subr.bf16.mxu1 %v9603_v23 }
 0x453   :  { %7343 = vmatpush1.bf16.msra.mxu0 %v9598_v58 }
 0x454   :  { %7671 = vmatpush1.bf16.msra.mxu1 %v9601_v31  ;;  %7344 = vmatprep.subr.bf16.mxu0 %v9606_v59 }
 0x455   :  { %7672 = vmatprep.subr.bf16.mxu1 %v9609_v60 }
 0x457   :  { %7345 = vmatpush1.bf16.msra.mxu0 %v9604_v22 }
 0x458   :  { %7673 = vmatpush1.bf16.msra.mxu1 %v9607_v36  ;;  %7346 = vmatprep.subr.bf16.mxu0 %v9612_v4 }
 0x459   :  { %7674 = vmatprep.subr.bf16.mxu1 %v9615_v62 }
 0x45b   :  { %7347 = vmatpush1.bf16.msra.mxu0 %v9610_v32 }
 0x45c   :  { %7675 = vmatpush1.bf16.msra.mxu1 %v9613_v3 }
 0x45e   :  { %7349 = vmatmul.mubr.bf16.vlgmr.msra.gmra.mrb[16].mxu0 %v3933_v63 }
 0x45f   :  { %7677 = vmatmul.mubr.bf16.vlgmr.msra.gmra.mrb[16].mxu1 %v3933_v63 }
 0x531   :  { %v7350_v33 = vpop.f32.mrb[16].mxu0 }
 0x532   :  { %v8746_v5 = vadd.f32 %v7350_v33, %v4452_v39  ;;  %v7678_v7 = vpop.f32.mrb[16].mxu1  ;;  %v7352_v11 = vpop.f32.mrb[17].mxu0 }
 0x533   :  { %v8748_v15 = vadd.f32 %v7678_v7, %v4460_v13  ;;  %v8747_v57 = vadd.f32 %v7352_v11, %v4456_v1  ;;  %v7680_v16 = vpop.f32.mrb[17].mxu1  ;;  %v7354_v17 = vpop.f32.mrb[18].mxu0 }
 0x534   :  { %7685 = vst [vmem:[#allocation11] sm:$0xff] %v8746_v5  ;;  %v8749_v18 = vadd.f32 %v7680_v16, %v4464_v2  ;;  %v7682_v20 = vpop.f32.mrb[18].mxu1  ;;  %v7355_v12 = vpop.f32.mrb[19].mxu0 }
 0x535   :  { %7687 = vst [vmem:[#allocation11 + $0x10] sm:$0xff] %v8748_v15  ;;  %7686 = vst [vmem:[#allocation11 + $0x8] sm:$0xff] %v8747_v57  ;;  %v7683_v19 = vpop.f32.mrb[19].mxu1 }
 0x536   :  { %7688 = vst [vmem:[#allocation11 + $0x18] sm:$0xff] %v8749_v18 }
 0x537   :  { %9739 = shalt.err (!%p9736_p2)
}
 0x538   :  { %s9740_s3 = scalar_lea.hbm %s10027_s5, 512 }
 0x539   :  { %p9741_p3 = scmp.ne.s32.totalorder %s10027_s5, %s9740_s3  ;;  %p9744_p4 = scmp.lt.u32.totalorder %s9740_s3, %s10027_s5 }
 0x53b   :  { %p9746_p5 = pnand %p9744_p4, %p9741_p3 }
 0x53d   :  { %9749 = shalt.err (!%p9746_p5)
}
 0x53e   :  { %7698 = dma.vmem_to_hbm [thread:$0]  %s7696_s27, 512, %s10027_s5, [#allocation4]  }
 0x53f   :  { %9756 = dma.done.wait [#allocation4], 512  }
 0x540   :  { %9757 = vsyncadd [#allocation4], 4294966784 }
 0x541   :  { %7702 = vsyncpa [#allocation3], 1 }
 0x542   :  { %7703 = vsyncpa [#allocation6], 1 }
 0x543   :  { %7704 = vsyncpa [#allocation9], 1 }
 0x544   :  { %7705 = vsyncpa [#allocation4], 1 }

// kernel: tpu_custom_call.1
= control target key start
LH: loop header
LB: loop body
LE: loop exit
PB: predicated region body
PF: predicated region fallthrough
CT: control target
= control target key end

     0   :  { %10 = vsyncpa [#allocation3], 0  ;;  %s10022_s0 = inlined_call_operand.hbm [shape: f32[8,512], index: 0, kind: input, shape index: {}]   ;;  %s10023_s1 = inlined_call_operand.hbm [shape: bf16[512,2048], index: 1, kind: input, shape index: {}]   ;;  %s10024_s2 = inlined_call_operand.hbm [shape: f32[1,2048], index: 2, kind: input, shape index: {}]   ;;  %s10025_s3 = inlined_call_operand.hbm [shape: bf16[2048,512], index: 3, kind: input, shape index: {}]   ;;  %s10026_s4 = inlined_call_operand.hbm [shape: f32[1,512], index: 4, kind: input, shape index: {}]   ;;  %s10027_s5 = inlined_call_operand.hbm [shape: f32[8,512], index: 5, kind: output, shape index: {}]  }
   0x1   :  { %11 = vsyncpa [#allocation6], 0 }
   0x2   :  { %12 = vsyncpa [#allocation9], 0 }
   0x3   :  { %13 = vsyncpa [#allocation4], 0  ;;  %s9758_s18 = smov [#allocation5]   ;;  %s9618_s22 = scalar_lea.hbm %s10023_s1, 65536 }
   0x4   :  { %s29_s19 = sshll.u32 %s9758_s18, 4  ;;  %p9619_p0 = scmp.ne.s32.totalorder %s10023_s1, %s9618_s22  ;;  %s30_s19 = int_to_ptr.vmem [resolvable:$true] %s29_s19 }
   0x5   :  { %p9622_p1 = scmp.lt.u32.totalorder %s9618_s22, %s10023_s1 }
   0x7   :  { %p9624_p2 = pnand %p9622_p1, %p9619_p0 }
   0x9   :  { %9627 = shalt.err (!%p9624_p2)
}
   0xa   :  { %s9628_s27 = scalar_lea.vmem %s30_s19, 65536  ;;  %p9633_p4 = scmp.lt.s32.totalorder %s30_s19, %s30_s19 }
   0xb   :  { %p9629_p3 = scmp.ne.s32.totalorder %s30_s19, %s9628_s27  ;;  %p9634_p5 = scmp.lt.s32.totalorder %s9628_s27, %s9628_s27 }
   0xd   :  { %p9635_p6 = por %p9634_p5, %p9633_p4 }
   0xf   :  { %p9636_p7 = pnand %p9635_p6, %p9629_p3 }
  0x11   :  { %9639 = shalt.err (!%p9636_p7)
}
  0x12   :  { %s9759_s28 = smov 1024   ;;  %s9760_s29 = smov 64  }
  0x13   :  { %35 = dma.hbm_to_vmem [thread:$0]  %s10023_s1, 65536, %s30_s19, [#allocation6], %s9759_s28, %s9759_s28, %s9760_s29  }
  0x14   :  { %s9761_s7 = smov [#allocation8]   ;;  %s9640_s11 = scalar_lea.hbm %s10025_s3, 65536 }
  0x15   :  { %s51_s8 = sshll.u32 %s9761_s7, 4  ;;  %p9641_p8 = scmp.ne.s32.totalorder %s10025_s3, %s9640_s11  ;;  %s52_s8 = int_to_ptr.vmem [resolvable:$true] %s51_s8 }
  0x16   :  { %p9644_p9 = scmp.lt.u32.totalorder %s9640_s11, %s10025_s3 }
  0x18   :  { %p9646_p10 = pnand %p9644_p9, %p9641_p8 }
  0x1a   :  { %9649 = shalt.err (!%p9646_p10)
}
  0x1b   :  { %s9650_s16 = scalar_lea.vmem %s52_s8, 65536  ;;  %p9655_p12 = scmp.lt.s32.totalorder %s52_s8, %s52_s8 }
  0x1c   :  { %p9651_p11 = scmp.ne.s32.totalorder %s52_s8, %s9650_s16  ;;  %p9656_p13 = scmp.lt.s32.totalorder %s9650_s16, %s9650_s16 }
  0x1e   :  { %p9657_p0 = por %p9656_p13, %p9655_p12 }
  0x20   :  { %p9658_p1 = pnand %p9657_p0, %p9651_p11 }
  0x22   :  { %9661 = shalt.err (!%p9658_p1)
}
  0x23   :  { %s9762_s1 = smov 256   ;;  %s9763_s17 = smov 16  }
  0x24   :  { %57 = dma.hbm_to_vmem [thread:$0]  %s10025_s3, 65536, %s52_s8, [#allocation9], %s9762_s1, %s9762_s1, %s9763_s17  }
  0x25   :  { %s9764_s20 = smov [#allocation2]   ;;  %s9765_s22 = smov [#allocation7]  }
  0x26   :  { %s20_s21 = sshll.u32 %s9764_s20, 4  ;;  %s42_s23 = sshll.u32 %s9765_s22, 4  ;;  %s21_s21 = int_to_ptr.vmem [resolvable:$true] %s20_s21  ;;  %s43_s23 = int_to_ptr.vmem [resolvable:$true] %s42_s23 }
  0x27   :  { %s9662_s26 = scalar_lea.hbm %s10022_s0, 512 }
  0x28   :  { %p9663_p2 = scmp.ne.s32.totalorder %s10022_s0, %s9662_s26  ;;  %p9666_p3 = scmp.lt.u32.totalorder %s9662_s26, %s10022_s0 }
  0x2a   :  { %p9668_p4 = pnand %p9666_p3, %p9663_p2 }
  0x2c   :  { %9671 = shalt.err (!%p9668_p4)
}
  0x2d   :  { %s9672_s3 = scalar_lea.vmem %s21_s21, 512  ;;  %p9677_p6 = scmp.lt.s32.totalorder %s21_s21, %s21_s21 }
  0x2e   :  { %p9673_p5 = scmp.ne.s32.totalorder %s21_s21, %s9672_s3  ;;  %p9678_p7 = scmp.lt.s32.totalorder %s9672_s3, %s9672_s3 }
  0x30   :  { %p9679_p8 = por %p9678_p7, %p9677_p6 }
  0x32   :  { %p9680_p9 = pnand %p9679_p8, %p9673_p5 }
  0x34   :  { %9683 = shalt.err (!%p9680_p9)
}
  0x35   :  { %23 = dma.hbm_to_vmem [thread:$0]  %s10022_s0, 512, %s21_s21, [#allocation3]  }
  0x36   :  { %s9684_s10 = scalar_lea.hbm %s10024_s2, 256 }
  0x37   :  { %p9685_p10 = scmp.ne.s32.totalorder %s10024_s2, %s9684_s10  ;;  %p9688_p11 = scmp.lt.u32.totalorder %s9684_s10, %s10024_s2 }
  0x39   :  { %p9690_p12 = pnand %p9688_p11, %p9685_p10 }
  0x3b   :  { %9693 = shalt.err (!%p9690_p12)
}
  0x3c   :  { %s9694_s15 = scalar_lea.vmem %s43_s23, 256  ;;  %p9699_p0 = scmp.lt.s32.totalorder %s43_s23, %s43_s23 }
  0x3d   :  { %p9695_p13 = scmp.ne.s32.totalorder %s43_s23, %s9694_s15  ;;  %p9700_p1 = scmp.lt.s32.totalorder %s9694_s15, %s9694_s15 }
  0x3f   :  { %p9701_p2 = por %p9700_p1, %p9699_p0 }
  0x41   :  { %p9702_p3 = pnand %p9701_p2, %p9695_p13 }
  0x43   :  { %9705 = shalt.err (!%p9702_p3)
}
  0x44   :  { %45 = dma.hbm_to_vmem [thread:$0]  %s10024_s2, 256, %s43_s23, [#allocation6]  }
  0x45   :  { %s9766_s1 = smov [#allocation10]   ;;  %s9706_s20 = scalar_lea.hbm %s10026_s4, 64 }
  0x46   :  { %s64_s17 = sshll.u32 %s9766_s1, 4  ;;  %p9707_p4 = scmp.ne.s32.totalorder %s10026_s4, %s9706_s20  ;;  %s65_s17 = int_to_ptr.vmem [resolvable:$true] %s64_s17 }
  0x47   :  { %p9710_p5 = scmp.lt.u32.totalorder %s9706_s20, %s10026_s4 }
  0x49   :  { %p9712_p6 = pnand %p9710_p5, %p9707_p4 }
  0x4b   :  { %9715 = shalt.err (!%p9712_p6)
}
  0x4c   :  { %s9716_s26 = scalar_lea.vmem %s65_s17, 64  ;;  %p9721_p8 = scmp.lt.s32.totalorder %s65_s17, %s65_s17 }
  0x4d   :  { %p9717_p7 = scmp.ne.s32.totalorder %s65_s17, %s9716_s26  ;;  %p9722_p9 = scmp.lt.s32.totalorder %s9716_s26, %s9716_s26 }
  0x4f   :  { %p9723_p10 = por %p9722_p9, %p9721_p8 }
  0x51   :  { %p9724_p11 = pnand %p9723_p10, %p9717_p7 }
  0x53   :  { %9727 = shalt.err (!%p9724_p11)
}
  0x54   :  { %67 = dma.hbm_to_vmem [thread:$0]  %s10026_s4, 64, %s65_s17, [#allocation9]  }
  0x55   :  { %9750 = dma.done.wait [#allocation3], 512  }
  0x56   :  { %9751 = vsyncadd [#allocation3], 4294966784 }
  0x57   :  { %9752 = dma.done.wait [#allocation6], 65792  }
  0x58   :  { %9753 = vsyncadd [#allocation6], 4294901504 }
  0x59   :  { %9754 = dma.done.wait [#allocation9], 65600  }
  0x5a   :  { %9755 = vsyncadd [#allocation9], 4294901696  ;;  %v91_v0 = vld [vmem:[#allocation5] sm:$0xff]  ;;  %v92_v2 = vld [vmem:[#allocation5 + $0x8] sm:$0xff]  ;;  %s9767_s4 = smov [#allocation11]  }
  0x5b   :  { %v99_v1 = vld [vmem:[#allocation5 + $0x40] sm:$0xff]  ;;  %v100_v4 = vld [vmem:[#allocation5 + $0x48] sm:$0xff]  ;;  %s7695_s27 = sshll.u32 %s9767_s4, 4  ;;  %s7696_s27 = int_to_ptr.vmem [resolvable:$true] %s7695_s27 }
  0x5c   :  { %v7707_v3 = vcombine.high %v91_v0, %v99_v1  ;;  %v7706_v5 = vcombine.low %v91_v0, %v99_v1  ;;  %v107_v6 = vld [vmem:[#allocation5 + $0x80] sm:$0xff]  ;;  %v7709_v8 = vcombine.high %v92_v2, %v100_v4  ;;  %v7708_v9 = vcombine.low %v92_v2, %v100_v4  ;;  %v108_v11 = vld [vmem:[#allocation5 + $0x88] sm:$0xff]  ;;  %s9728_s28 = scalar_lea.vmem %s7696_s27, 512  ;;  %p9733_p13 = scmp.lt.s32.totalorder %s7696_s27, %s7696_s27 }
  0x5d   :  { %v115_v7 = vld [vmem:[#allocation5 + $0xc0] sm:$0xff]  ;;  %v116_v12 = vld [vmem:[#allocation5 + $0xc8] sm:$0xff]  ;;  %p9729_p12 = scmp.ne.s32.totalorder %s7696_s27, %s9728_s28  ;;  %p9734_p0 = scmp.lt.s32.totalorder %s9728_s28, %s9728_s28 }
  0x5e   :  { %v7723_v10 = vcombine.high %v107_v6, %v115_v7  ;;  %v123_v13 = vld [vmem:[#allocation5 + $0x100] sm:$0xff]  ;;  %3247 = vmatprep.subr.bf16.mxu0 %v7707_v3  ;;  %v7725_v14 = vcombine.high %v108_v11, %v116_v12  ;;  %v124_v16 = vld [vmem:[#allocation5 + $0x108] sm:$0xff]  ;;  %3329 = vmatprep.subr.bf16.mxu1 %v7709_v8  ;;  %v7722_v18 = vcombine.low %v107_v6, %v115_v7 }
  0x5f   :  { %v131_v15 = vld [vmem:[#allocation5 + $0x140] sm:$0xff]  ;;  %v132_v17 = vld [vmem:[#allocation5 + $0x148] sm:$0xff]  ;;  %3248 = vmatpush1.bf16.msra.mxu0 %v7706_v5  ;;  %3330 = vmatpush1.bf16.msra.mxu1 %v7708_v9  ;;  %v7724_v19 = vcombine.low %v108_v11, %v116_v12  ;;  %p9735_p1 = por %p9734_p0, %p9733_p13 }
  0x60   :  { %3249 = vmatprep.subr.bf16.mxu0 %v7723_v10  ;;  %v7739_v20 = vcombine.high %v123_v13, %v131_v15  ;;  %3331 = vmatprep.subr.bf16.mxu1 %v7725_v14  ;;  %v7741_v21 = vcombine.high %v124_v16, %v132_v17  ;;  %v139_v22 = vld [vmem:[#allocation5 + $0x180] sm:$0xff]  ;;  %v140_v24 = vld [vmem:[#allocation5 + $0x188] sm:$0xff]  ;;  %v7738_v26 = vcombine.low %v123_v13, %v131_v15 }
  0x61   :  { %v147_v23 = vld [vmem:[#allocation5 + $0x1c0] sm:$0xff]  ;;  %v148_v25 = vld [vmem:[#allocation5 + $0x1c8] sm:$0xff]  ;;  %v7740_v27 = vcombine.low %v124_v16, %v132_v17  ;;  %p9736_p2 = pnand %p9735_p1, %p9729_p12 }
  0x62   :  { %v7755_v28 = vcombine.high %v139_v22, %v147_v23  ;;  %v7757_v29 = vcombine.high %v140_v24, %v148_v25  ;;  %v155_v30 = vld [vmem:[#allocation5 + $0x200] sm:$0xff]  ;;  %v156_v32 = vld [vmem:[#allocation5 + $0x208] sm:$0xff]  ;;  %v7754_v34 = vcombine.low %v139_v22, %v147_v23  ;;  %v7756_v35 = vcombine.low %v140_v24, %v148_v25 }
  0x63   :  { %3250 = vmatpush1.bf16.msra.mxu0 %v7722_v18  ;;  %3332 = vmatpush1.bf16.msra.mxu1 %v7724_v19  ;;  %v163_v31 = vld [vmem:[#allocation5 + $0x240] sm:$0xff]  ;;  %v164_v33 = vld [vmem:[#allocation5 + $0x248] sm:$0xff] }
  0x64   :  { %3251 = vmatprep.subr.bf16.mxu0 %v7739_v20  ;;  %3333 = vmatprep.subr.bf16.mxu1 %v7741_v21  ;;  %v7771_v36 = vcombine.high %v155_v30, %v163_v31  ;;  %v7773_v37 = vcombine.high %v156_v32, %v164_v33  ;;  %v171_v38 = vld [vmem:[#allocation5 + $0x280] sm:$0xff]  ;;  %v172_v40 = vld [vmem:[#allocation5 + $0x288] sm:$0xff]  ;;  %v7770_v42 = vcombine.low %v155_v30, %v163_v31 }
  0x65   :  { %v179_v39 = vld [vmem:[#allocation5 + $0x2c0] sm:$0xff]  ;;  %v180_v41 = vld [vmem:[#allocation5 + $0x2c8] sm:$0xff]  ;;  %v7772_v43 = vcombine.low %v156_v32, %v164_v33 }
  0x66   :  { %v7787_v44 = vcombine.high %v171_v38, %v179_v39  ;;  %v7789_v45 = vcombine.high %v172_v40, %v180_v41  ;;  %v187_v46 = vld [vmem:[#allocation5 + $0x300] sm:$0xff]  ;;  %v188_v48 = vld [vmem:[#allocation5 + $0x308] sm:$0xff]  ;;  %v7786_v50 = vcombine.low %v171_v38, %v179_v39  ;;  %v7788_v51 = vcombine.low %v172_v40, %v180_v41 }
  0x67   :  { %3252 = vmatpush1.bf16.msra.mxu0 %v7738_v26  ;;  %3334 = vmatpush1.bf16.msra.mxu1 %v7740_v27  ;;  %v195_v47 = vld [vmem:[#allocation5 + $0x340] sm:$0xff]  ;;  %v196_v49 = vld [vmem:[#allocation5 + $0x348] sm:$0xff] }
  0x68   :  { %3253 = vmatprep.subr.bf16.mxu0 %v7755_v28  ;;  %3335 = vmatprep.subr.bf16.mxu1 %v7757_v29  ;;  %v7803_v52 = vcombine.high %v187_v46, %v195_v47  ;;  %v84_v53 = vld [vmem:[#allocation2 + $0x8] sm:$0xff]  ;;  %v7805_v54 = vcombine.high %v188_v48, %v196_v49  ;;  %v203_v55 = vld [vmem:[#allocation5 + $0x380] sm:$0xff]  ;;  %v7802_v60 = vcombine.low %v187_v46, %v195_v47 }
  0x69   :  { %v211_v56 = vld [vmem:[#allocation5 + $0x3c0] sm:$0xff]  ;;  %v9858_v57 = vpack.c.bf16 %v84_v53, %v84_v53  ;;  %v204_v58 = vld [vmem:[#allocation5 + $0x388] sm:$0xff]  ;;  %v7804_v61 = vcombine.low %v188_v48, %v196_v49 }
  0x6a   :  { %v212_v59 = vld [vmem:[#allocation5 + $0x3c8] sm:$0xff]  ;;  %v7819_v62 = vcombine.high %v203_v55, %v211_v56  ;;  %v219_v0 = vld [vmem:[#allocation5 + $0x400] sm:$0xff]  ;;  %v7818_v4 = vcombine.low %v203_v55, %v211_v56 }
  0x6b   :  { %3254 = vmatpush1.bf16.msra.mxu0 %v7754_v34  ;;  %3336 = vmatpush1.bf16.msra.mxu1 %v7756_v35  ;;  %v7821_v63 = vcombine.high %v204_v58, %v212_v59  ;;  %v227_v1 = vld [vmem:[#allocation5 + $0x440] sm:$0xff]  ;;  %v220_v2 = vld [vmem:[#allocation5 + $0x408] sm:$0xff]  ;;  %v7820_v5 = vcombine.low %v204_v58, %v212_v59 }
  0x6c   :  { %3255 = vmatprep.subr.bf16.mxu0 %v7771_v36  ;;  %3337 = vmatprep.subr.bf16.mxu1 %v7773_v37  ;;  %v228_v3 = vld [vmem:[#allocation5 + $0x448] sm:$0xff]  ;;  %v7835_v6 = vcombine.high %v219_v0, %v227_v1  ;;  %v235_v8 = vld [vmem:[#allocation5 + $0x480] sm:$0xff]  ;;  %v7834_v12 = vcombine.low %v219_v0, %v227_v1 }
  0x6d   :  { %3279 = vmatprep.mubr.bf16.mxu0 %v9858_v57  ;;  %3361 = vmatprep.mubr.bf16.mxu1 %v9858_v57  ;;  %v7837_v7 = vcombine.high %v220_v2, %v228_v3  ;;  %v243_v9 = vld [vmem:[#allocation5 + $0x4c0] sm:$0xff]  ;;  %v236_v10 = vld [vmem:[#allocation5 + $0x488] sm:$0xff]  ;;  %v7836_v13 = vcombine.low %v220_v2, %v228_v3 }
  0x6e   :  { %v244_v11 = vld [vmem:[#allocation5 + $0x4c8] sm:$0xff]  ;;  %v7851_v14 = vcombine.high %v235_v8, %v243_v9  ;;  %v251_v16 = vld [vmem:[#allocation5 + $0x500] sm:$0xff]  ;;  %v7850_v20 = vcombine.low %v235_v8, %v243_v9 }
  0x6f   :  { %3256 = vmatpush1.bf16.msra.mxu0 %v7770_v42  ;;  %3338 = vmatpush1.bf16.msra.mxu1 %v7772_v43  ;;  %v7853_v15 = vcombine.high %v236_v10, %v244_v11  ;;  %v259_v17 = vld [vmem:[#allocation5 + $0x540] sm:$0xff]  ;;  %v252_v18 = vld [vmem:[#allocation5 + $0x508] sm:$0xff]  ;;  %v7852_v21 = vcombine.low %v236_v10, %v244_v11 }
  0x70   :  { %3257 = vmatprep.subr.bf16.mxu0 %v7787_v44  ;;  %3339 = vmatprep.subr.bf16.mxu1 %v7789_v45  ;;  %v260_v19 = vld [vmem:[#allocation5 + $0x548] sm:$0xff]  ;;  %v7867_v22 = vcombine.high %v251_v16, %v259_v17  ;;  %v267_v24 = vld [vmem:[#allocation5 + $0x580] sm:$0xff]  ;;  %v7866_v28 = vcombine.low %v251_v16, %v259_v17 }
  0x71   :  { %v7869_v23 = vcombine.high %v252_v18, %v260_v19  ;;  %v275_v25 = vld [vmem:[#allocation5 + $0x5c0] sm:$0xff]  ;;  %v268_v26 = vld [vmem:[#allocation5 + $0x588] sm:$0xff]  ;;  %v7868_v29 = vcombine.low %v252_v18, %v260_v19 }
  0x72   :  { %v276_v27 = vld [vmem:[#allocation5 + $0x5c8] sm:$0xff]  ;;  %v7883_v30 = vcombine.high %v267_v24, %v275_v25  ;;  %v283_v32 = vld [vmem:[#allocation5 + $0x600] sm:$0xff]  ;;  %v7882_v36 = vcombine.low %v267_v24, %v275_v25 }
  0x73   :  { %3258 = vmatpush1.bf16.msra.mxu0 %v7786_v50  ;;  %3340 = vmatpush1.bf16.msra.mxu1 %v7788_v51  ;;  %v7885_v31 = vcombine.high %v268_v26, %v276_v27  ;;  %v291_v33 = vld [vmem:[#allocation5 + $0x640] sm:$0xff]  ;;  %v284_v34 = vld [vmem:[#allocation5 + $0x608] sm:$0xff]  ;;  %v7884_v37 = vcombine.low %v268_v26, %v276_v27 }
  0x74   :  { %3259 = vmatprep.subr.bf16.mxu0 %v7803_v52  ;;  %3341 = vmatprep.subr.bf16.mxu1 %v7805_v54  ;;  %v292_v35 = vld [vmem:[#allocation5 + $0x648] sm:$0xff]  ;;  %v7899_v38 = vcombine.high %v283_v32, %v291_v33  ;;  %v299_v40 = vld [vmem:[#allocation5 + $0x680] sm:$0xff]  ;;  %v7898_v44 = vcombine.low %v283_v32, %v291_v33 }
  0x75   :  { %v7901_v39 = vcombine.high %v284_v34, %v292_v35  ;;  %v307_v41 = vld [vmem:[#allocation5 + $0x6c0] sm:$0xff]  ;;  %v300_v42 = vld [vmem:[#allocation5 + $0x688] sm:$0xff]  ;;  %v7900_v45 = vcombine.low %v284_v34, %v292_v35 }
  0x76   :  { %v308_v43 = vld [vmem:[#allocation5 + $0x6c8] sm:$0xff]  ;;  %v7915_v46 = vcombine.high %v299_v40, %v307_v41  ;;  %v315_v48 = vld [vmem:[#allocation5 + $0x700] sm:$0xff]  ;;  %v7914_v52 = vcombine.low %v299_v40, %v307_v41 }
  0x77   :  { %3260 = vmatpush1.bf16.msra.mxu0 %v7802_v60  ;;  %3342 = vmatpush1.bf16.msra.mxu1 %v7804_v61  ;;  %v7917_v47 = vcombine.high %v300_v42, %v308_v43  ;;  %v323_v49 = vld [vmem:[#allocation5 + $0x740] sm:$0xff]  ;;  %v316_v50 = vld [vmem:[#allocation5 + $0x708] sm:$0xff]  ;;  %v7916_v53 = vcombine.low %v300_v42, %v308_v43 }
  0x78   :  { %3261 = vmatprep.subr.bf16.mxu0 %v7819_v62  ;;  %3343 = vmatprep.subr.bf16.mxu1 %v7821_v63  ;;  %v324_v51 = vld [vmem:[#allocation5 + $0x748] sm:$0xff]  ;;  %v7931_v54 = vcombine.high %v315_v48, %v323_v49  ;;  %v331_v56 = vld [vmem:[#allocation5 + $0x780] sm:$0xff]  ;;  %v7930_v61 = vcombine.low %v315_v48, %v323_v49 }
  0x79   :  { %v7933_v55 = vcombine.high %v316_v50, %v324_v51  ;;  %v339_v58 = vld [vmem:[#allocation5 + $0x7c0] sm:$0xff]  ;;  %v332_v59 = vld [vmem:[#allocation5 + $0x788] sm:$0xff]  ;;  %v7932_v62 = vcombine.low %v316_v50, %v324_v51 }
  0x7a   :  { %v340_v60 = vld [vmem:[#allocation5 + $0x7c8] sm:$0xff]  ;;  %v7947_v63 = vcombine.high %v331_v56, %v339_v58  ;;  %v347_v1 = vld [vmem:[#allocation5 + $0x800] sm:$0xff] }
  0x7b   :  { %3262 = vmatpush1.bf16.msra.mxu0 %v7818_v4  ;;  %3344 = vmatpush1.bf16.msra.mxu1 %v7820_v5  ;;  %v7949_v0 = vcombine.high %v332_v59, %v340_v60  ;;  %v355_v2 = vld [vmem:[#allocation5 + $0x840] sm:$0xff]  ;;  %v348_v3 = vld [vmem:[#allocation5 + $0x808] sm:$0xff]  ;;  %v7946_v5 = vcombine.low %v331_v56, %v339_v58 }
  0x7c   :  { %3263 = vmatprep.subr.bf16.mxu0 %v7835_v6  ;;  %3345 = vmatprep.subr.bf16.mxu1 %v7837_v7  ;;  %v356_v4 = vld [vmem:[#allocation5 + $0x848] sm:$0xff]  ;;  %v83_v6 = vld [vmem:[#allocation2] sm:$0xff]  ;;  %v7948_v7 = vcombine.low %v332_v59, %v340_v60  ;;  %v7963_v8 = vcombine.high %v347_v1, %v355_v2  ;;  %v7962_v16 = vcombine.low %v347_v1, %v355_v2 }
  0x7d   :  { %v7965_v9 = vcombine.high %v348_v3, %v356_v4  ;;  %v363_v10 = vld [vmem:[#allocation5 + $0x880] sm:$0xff]  ;;  %v7964_v17 = vcombine.low %v348_v3, %v356_v4  ;;  %v404_v32 = vld [vmem:[#allocation5 + $0x9c8] sm:$0xff] }
  0x7e   :  { %v371_v11 = vld [vmem:[#allocation5 + $0x8c0] sm:$0xff]  ;;  %v420_v40 = vld [vmem:[#allocation5 + $0xa48] sm:$0xff] }
  0x7f   :  { %3264 = vmatpush1.bf16.msra.mxu0 %v7834_v12  ;;  %3346 = vmatpush1.bf16.msra.mxu1 %v7836_v13  ;;  %v9862_v12 = vpack.c.bf16 %v83_v6, %v83_v6  ;;  %v364_v13 = vld [vmem:[#allocation5 + $0x888] sm:$0xff]  ;;  %v7979_v18 = vcombine.high %v363_v10, %v371_v11  ;;  %v379_v19 = vld [vmem:[#allocation5 + $0x900] sm:$0xff]  ;;  %v7978_v25 = vcombine.low %v363_v10, %v371_v11 }
  0x80   :  { %3265 = vmatprep.subr.bf16.mxu0 %v7851_v14  ;;  %3347 = vmatprep.subr.bf16.mxu1 %v7853_v15  ;;  %v372_v14 = vld [vmem:[#allocation5 + $0x8c8] sm:$0xff]  ;;  %v86_v15 = vld [vmem:[#allocation2 + $0x18] sm:$0xff]  ;;  %v483_v6 = vld [vmem:[#allocation5 + $0xc40] sm:$0xff] }
  0x81   :  { %v9864_v24 = vpack.c.bf16 %v86_v15, %v86_v15  ;;  %v7980_v26 = vcombine.low %v364_v13, %v372_v14  ;;  %v436_v48 = vld [vmem:[#allocation5 + $0xac8] sm:$0xff]  ;;  %v499_v15 = vld [vmem:[#allocation5 + $0xcc0] sm:$0xff] }
  0x82   :  { %v452_v56 = vld [vmem:[#allocation5 + $0xb48] sm:$0xff] }
  0x83   :  { %3266 = vmatpush1.bf16.msra.mxu0 %v7850_v20  ;;  %3348 = vmatpush1.bf16.msra.mxu1 %v7852_v21  ;;  %v387_v20 = vld [vmem:[#allocation5 + $0x940] sm:$0xff]  ;;  %v7981_v21 = vcombine.high %v364_v13, %v372_v14  ;;  %v468_v1 = vld [vmem:[#allocation5 + $0xbc8] sm:$0xff] }
  0x84   :  { %3267 = vmatprep.subr.bf16.mxu0 %v7867_v22  ;;  %3349 = vmatprep.subr.bf16.mxu1 %v7869_v23  ;;  %v380_v22 = vld [vmem:[#allocation5 + $0x908] sm:$0xff]  ;;  %v7995_v27 = vcombine.high %v379_v19, %v387_v20  ;;  %v7994_v33 = vcombine.low %v379_v19, %v387_v20  ;;  %v491_v14 = vld [vmem:[#allocation5 + $0xc80] sm:$0xff] }
  0x85   :  { %v388_v23 = vld [vmem:[#allocation5 + $0x948] sm:$0xff] }
  0x86   :  { %v7996_v34 = vcombine.low %v380_v22, %v388_v23 }
  0x87   :  { %3268 = vmatpush1.bf16.msra.mxu0 %v7866_v28  ;;  %3350 = vmatpush1.bf16.msra.mxu1 %v7868_v29  ;;  %v395_v28 = vld [vmem:[#allocation5 + $0x980] sm:$0xff] }
  0x88   :  { %3269 = vmatprep.subr.bf16.mxu0 %v7883_v30  ;;  %3351 = vmatprep.subr.bf16.mxu1 %v7885_v31  ;;  %v403_v29 = vld [vmem:[#allocation5 + $0x9c0] sm:$0xff]  ;;  %v396_v30 = vld [vmem:[#allocation5 + $0x988] sm:$0xff]  ;;  %v7997_v31 = vcombine.high %v380_v22, %v388_v23 }
  0x89   :  { %v8011_v35 = vcombine.high %v395_v28, %v403_v29  ;;  %v8010_v41 = vcombine.low %v395_v28, %v403_v29  ;;  %v8012_v42 = vcombine.low %v396_v30, %v404_v32  ;;  %v507_v22 = vld [vmem:[#allocation5 + $0xd00] sm:$0xff]  ;;  %v8106_v28 = vcombine.low %v491_v14, %v499_v15 }
  0x8a   :  { %v515_v23 = vld [vmem:[#allocation5 + $0xd40] sm:$0xff] }
  0x8b   :  { %3270 = vmatpush1.bf16.msra.mxu0 %v7882_v36  ;;  %3352 = vmatpush1.bf16.msra.mxu1 %v7884_v37  ;;  %v411_v36 = vld [vmem:[#allocation5 + $0xa00] sm:$0xff] }
  0x8c   :  { %3271 = vmatprep.subr.bf16.mxu0 %v7899_v38  ;;  %3353 = vmatprep.subr.bf16.mxu1 %v7901_v39  ;;  %v419_v37 = vld [vmem:[#allocation5 + $0xa40] sm:$0xff]  ;;  %v412_v38 = vld [vmem:[#allocation5 + $0xa08] sm:$0xff]  ;;  %v8013_v39 = vcombine.high %v396_v30, %v404_v32  ;;  %v8123_v30 = vcombine.high %v507_v22, %v515_v23 }
  0x8d   :  { %v8027_v43 = vcombine.high %v411_v36, %v419_v37  ;;  %v8026_v49 = vcombine.low %v411_v36, %v419_v37  ;;  %v8028_v50 = vcombine.low %v412_v38, %v420_v40  ;;  %v531_v32 = vld [vmem:[#allocation5 + $0xdc0] sm:$0xff]  ;;  %v8122_v36 = vcombine.low %v507_v22, %v515_v23  ;;  %v118_v22 = vld [vmem:[#allocation5 + $0xd8] sm:$0xff] }
  0x8f   :  { %3272 = vmatpush1.bf16.msra.mxu0 %v7898_v44  ;;  %3354 = vmatpush1.bf16.msra.mxu1 %v7900_v45  ;;  %v427_v44 = vld [vmem:[#allocation5 + $0xa80] sm:$0xff] }
  0x90   :  { %3273 = vmatprep.subr.bf16.mxu0 %v7915_v46  ;;  %3355 = vmatprep.subr.bf16.mxu1 %v7917_v47  ;;  %v435_v45 = vld [vmem:[#allocation5 + $0xac0] sm:$0xff]  ;;  %v428_v46 = vld [vmem:[#allocation5 + $0xa88] sm:$0xff]  ;;  %v8029_v47 = vcombine.high %v412_v38, %v420_v40 }
  0x91   :  { %v8043_v51 = vcombine.high %v427_v44, %v435_v45  ;;  %v8042_v58 = vcombine.low %v427_v44, %v435_v45  ;;  %v8044_v59 = vcombine.low %v428_v46, %v436_v48  ;;  %v547_v40 = vld [vmem:[#allocation5 + $0xe40] sm:$0xff] }
  0x93   :  { %3274 = vmatpush1.bf16.msra.mxu0 %v7914_v52  ;;  %3356 = vmatpush1.bf16.msra.mxu1 %v7916_v53  ;;  %v443_v52 = vld [vmem:[#allocation5 + $0xb00] sm:$0xff] }
  0x94   :  { %3275 = vmatprep.subr.bf16.mxu0 %v7931_v54  ;;  %3357 = vmatprep.subr.bf16.mxu1 %v7933_v55  ;;  %v451_v53 = vld [vmem:[#allocation5 + $0xb40] sm:$0xff]  ;;  %v444_v54 = vld [vmem:[#allocation5 + $0xb08] sm:$0xff]  ;;  %v8045_v55 = vcombine.high %v428_v46, %v436_v48 }
  0x95   :  { %v8059_v60 = vcombine.high %v443_v52, %v451_v53  ;;  %v8058_v2 = vcombine.low %v443_v52, %v451_v53  ;;  %v8060_v3 = vcombine.low %v444_v54, %v452_v56  ;;  %v563_v48 = vld [vmem:[#allocation5 + $0xec0] sm:$0xff] }
  0x97   :  { %3276 = vmatpush1.bf16.msra.mxu0 %v7930_v61  ;;  %3358 = vmatpush1.bf16.msra.mxu1 %v7932_v62  ;;  %v459_v61 = vld [vmem:[#allocation5 + $0xb80] sm:$0xff] }
  0x98   :  { %3277 = vmatprep.subr.bf16.mxu0 %v7947_v63  ;;  %3359 = vmatprep.subr.bf16.mxu1 %v7949_v0  ;;  %v467_v62 = vld [vmem:[#allocation5 + $0xbc0] sm:$0xff]  ;;  %v460_v63 = vld [vmem:[#allocation5 + $0xb88] sm:$0xff]  ;;  %v8061_v0 = vcombine.high %v444_v54, %v452_v56 }
  0x99   :  { %v8075_v4 = vcombine.high %v459_v61, %v467_v62  ;;  %v8074_v10 = vcombine.low %v459_v61, %v467_v62  ;;  %v8076_v11 = vcombine.low %v460_v63, %v468_v1  ;;  %v579_v56 = vld [vmem:[#allocation5 + $0xf40] sm:$0xff] }
  0x9b   :  { %3278 = vmatpush1.bf16.msra.mxu0 %v7946_v5  ;;  %3360 = vmatpush1.bf16.msra.mxu1 %v7948_v7  ;;  %v475_v5 = vld [vmem:[#allocation5 + $0xc00] sm:$0xff]  ;;  %v476_v7 = vld [vmem:[#allocation5 + $0xc08] sm:$0xff] }
  0x9c   :  { %3288 = vmatprep.subr.bf16.mxu0 %v7963_v8  ;;  %3370 = vmatprep.subr.bf16.mxu1 %v7965_v9  ;;  %v8077_v8 = vcombine.high %v460_v63, %v468_v1  ;;  %v484_v9 = vld [vmem:[#allocation5 + $0xc48] sm:$0xff]  ;;  %v8091_v13 = vcombine.high %v475_v5, %v483_v6  ;;  %v8090_v19 = vcombine.low %v475_v5, %v483_v6  ;;  %v595_v1 = vld [vmem:[#allocation5 + $0xfc0] sm:$0xff] }
  0x9d   :  { %v8092_v20 = vcombine.low %v476_v7, %v484_v9 }
  0x9e   :  { %3280 = vmatmul.mubr.bf16.vlgmr.msra.gmra.mrb[0].mxu0 %v9862_v12  ;;  %3362 = vmatmul.mubr.bf16.vlgmr.msra.gmra.mrb[0].mxu1 %v9862_v12 }
  0x9f   :  { %3289 = vmatpush1.bf16.msra.mxu0 %v7962_v16  ;;  %3371 = vmatpush1.bf16.msra.mxu1 %v7964_v17  ;;  %v492_v16 = vld [vmem:[#allocation5 + $0xc88] sm:$0xff]  ;;  %v8093_v17 = vcombine.high %v476_v7, %v484_v9  ;;  %v101_v9 = vld [vmem:[#allocation5 + $0x50] sm:$0xff] }
  0xa0   :  { %3290 = vmatprep.subr.bf16.mxu0 %v7979_v18  ;;  %3372 = vmatprep.subr.bf16.mxu1 %v7981_v21  ;;  %v500_v18 = vld [vmem:[#allocation5 + $0xcc8] sm:$0xff]  ;;  %v8107_v21 = vcombine.high %v491_v14, %v499_v15  ;;  %v102_v14 = vld [vmem:[#allocation5 + $0x58] sm:$0xff] }
  0xa1   :  { %3320 = vmatprep.mubr.bf16.mxu0 %v9864_v24  ;;  %3402 = vmatprep.mubr.bf16.mxu1 %v9864_v24  ;;  %v8108_v29 = vcombine.low %v492_v16, %v500_v18 }
  0xa3   :  { %3291 = vmatpush1.bf16.msra.mxu0 %v7978_v25  ;;  %3373 = vmatpush1.bf16.msra.mxu1 %v7980_v26  ;;  %v508_v25 = vld [vmem:[#allocation5 + $0xd08] sm:$0xff]  ;;  %v8109_v26 = vcombine.high %v492_v16, %v500_v18  ;;  %v109_v18 = vld [vmem:[#allocation5 + $0x90] sm:$0xff] }
  0xa4   :  { %3292 = vmatprep.subr.bf16.mxu0 %v7995_v27  ;;  %3374 = vmatprep.subr.bf16.mxu1 %v7997_v31  ;;  %v516_v27 = vld [vmem:[#allocation5 + $0xd48] sm:$0xff]  ;;  %v523_v31 = vld [vmem:[#allocation5 + $0xd80] sm:$0xff] }
  0xa5   :  { %v8124_v37 = vcombine.low %v508_v25, %v516_v27  ;;  %v8139_v38 = vcombine.high %v523_v31, %v531_v32  ;;  %v8138_v44 = vcombine.low %v523_v31, %v531_v32  ;;  %v134_v32 = vld [vmem:[#allocation5 + $0x158] sm:$0xff] }
  0xa7   :  { %3293 = vmatpush1.bf16.msra.mxu0 %v7994_v33  ;;  %3375 = vmatpush1.bf16.msra.mxu1 %v7996_v34  ;;  %v524_v33 = vld [vmem:[#allocation5 + $0xd88] sm:$0xff]  ;;  %v8125_v34 = vcombine.high %v508_v25, %v516_v27 }
  0xa8   :  { %3294 = vmatprep.subr.bf16.mxu0 %v8011_v35  ;;  %3376 = vmatprep.subr.bf16.mxu1 %v8013_v39  ;;  %v532_v35 = vld [vmem:[#allocation5 + $0xdc8] sm:$0xff]  ;;  %v539_v39 = vld [vmem:[#allocation5 + $0xe00] sm:$0xff] }
  0xa9   :  { %v8140_v45 = vcombine.low %v524_v33, %v532_v35  ;;  %v8155_v46 = vcombine.high %v539_v39, %v547_v40  ;;  %v8154_v52 = vcombine.low %v539_v39, %v547_v40  ;;  %v150_v40 = vld [vmem:[#allocation5 + $0x1d8] sm:$0xff] }
  0xab   :  { %3295 = vmatpush1.bf16.msra.mxu0 %v8010_v41  ;;  %3377 = vmatpush1.bf16.msra.mxu1 %v8012_v42  ;;  %v540_v41 = vld [vmem:[#allocation5 + $0xe08] sm:$0xff]  ;;  %v8141_v42 = vcombine.high %v524_v33, %v532_v35 }
  0xac   :  { %3296 = vmatprep.subr.bf16.mxu0 %v8027_v43  ;;  %3378 = vmatprep.subr.bf16.mxu1 %v8029_v47  ;;  %v548_v43 = vld [vmem:[#allocation5 + $0xe48] sm:$0xff]  ;;  %v555_v47 = vld [vmem:[#allocation5 + $0xe80] sm:$0xff] }
  0xad   :  { %v8156_v53 = vcombine.low %v540_v41, %v548_v43  ;;  %v8171_v54 = vcombine.high %v555_v47, %v563_v48  ;;  %v8170_v61 = vcombine.low %v555_v47, %v563_v48  ;;  %v166_v48 = vld [vmem:[#allocation5 + $0x258] sm:$0xff] }
  0xaf   :  { %3297 = vmatpush1.bf16.msra.mxu0 %v8026_v49  ;;  %3379 = vmatpush1.bf16.msra.mxu1 %v8028_v50  ;;  %v556_v49 = vld [vmem:[#allocation5 + $0xe88] sm:$0xff]  ;;  %v8157_v50 = vcombine.high %v540_v41, %v548_v43 }
  0xb0   :  { %3298 = vmatprep.subr.bf16.mxu0 %v8043_v51  ;;  %3380 = vmatprep.subr.bf16.mxu1 %v8045_v55  ;;  %v564_v51 = vld [vmem:[#allocation5 + $0xec8] sm:$0xff]  ;;  %v571_v55 = vld [vmem:[#allocation5 + $0xf00] sm:$0xff] }
  0xb1   :  { %v8172_v62 = vcombine.low %v556_v49, %v564_v51  ;;  %v8187_v63 = vcombine.high %v571_v55, %v579_v56  ;;  %v8186_v5 = vcombine.low %v571_v55, %v579_v56  ;;  %v182_v56 = vld [vmem:[#allocation5 + $0x2d8] sm:$0xff] }
  0xb3   :  { %3299 = vmatpush1.bf16.msra.mxu0 %v8042_v58  ;;  %3381 = vmatpush1.bf16.msra.mxu1 %v8044_v59  ;;  %v572_v58 = vld [vmem:[#allocation5 + $0xf08] sm:$0xff]  ;;  %v8173_v59 = vcombine.high %v556_v49, %v564_v51 }
  0xb4   :  { %3300 = vmatprep.subr.bf16.mxu0 %v8059_v60  ;;  %3382 = vmatprep.subr.bf16.mxu1 %v8061_v0  ;;  %v580_v60 = vld [vmem:[#allocation5 + $0xf48] sm:$0xff]  ;;  %v587_v0 = vld [vmem:[#allocation5 + $0xf80] sm:$0xff] }
  0xb5   :  { %v8188_v6 = vcombine.low %v572_v58, %v580_v60  ;;  %v8203_v7 = vcombine.high %v587_v0, %v595_v1  ;;  %v8202_v15 = vcombine.low %v587_v0, %v595_v1  ;;  %v198_v1 = vld [vmem:[#allocation5 + $0x358] sm:$0xff] }
  0xb7   :  { %3301 = vmatpush1.bf16.msra.mxu0 %v8058_v2  ;;  %3383 = vmatpush1.bf16.msra.mxu1 %v8060_v3  ;;  %v588_v2 = vld [vmem:[#allocation5 + $0xf88] sm:$0xff]  ;;  %v8189_v3 = vcombine.high %v572_v58, %v580_v60 }
  0xb8   :  { %3302 = vmatprep.subr.bf16.mxu0 %v8075_v4  ;;  %3384 = vmatprep.subr.bf16.mxu1 %v8077_v8  ;;  %v596_v4 = vld [vmem:[#allocation5 + $0xfc8] sm:$0xff]  ;;  %v93_v8 = vld [vmem:[#allocation5 + $0x10] sm:$0xff] }
  0xb9   :  { %v8204_v16 = vcombine.low %v588_v2, %v596_v4  ;;  %v7710_v25 = vcombine.low %v93_v8, %v101_v9 }
  0xbb   :  { %3303 = vmatpush1.bf16.msra.mxu0 %v8074_v10  ;;  %3385 = vmatpush1.bf16.msra.mxu1 %v8076_v11  ;;  %v94_v10 = vld [vmem:[#allocation5 + $0x18] sm:$0xff]  ;;  %v8205_v11 = vcombine.high %v588_v2, %v596_v4 }
  0xbc   :  { %3304 = vmatprep.subr.bf16.mxu0 %v8091_v13  ;;  %3386 = vmatprep.subr.bf16.mxu1 %v8093_v17  ;;  %v85_v13 = vld [vmem:[#allocation2 + $0x10] sm:$0xff]  ;;  %v7711_v17 = vcombine.high %v93_v8, %v101_v9  ;;  %v214_v9 = vld [vmem:[#allocation5 + $0x3d8] sm:$0xff] }
  0xbd   :  { %v9870_v23 = vpack.c.bf16 %v85_v13, %v85_v13 }
  0xbf   :  { %3305 = vmatpush1.bf16.msra.mxu0 %v8090_v19  ;;  %3387 = vmatpush1.bf16.msra.mxu1 %v8092_v20  ;;  %v117_v19 = vld [vmem:[#allocation5 + $0xd0] sm:$0xff]  ;;  %v110_v20 = vld [vmem:[#allocation5 + $0x98] sm:$0xff] }
  0xc0   :  { %3306 = vmatprep.subr.bf16.mxu0 %v8107_v21  ;;  %3388 = vmatprep.subr.bf16.mxu1 %v8109_v26  ;;  %v7713_v21 = vcombine.high %v94_v10, %v102_v14  ;;  %v7712_v26 = vcombine.low %v94_v10, %v102_v14  ;;  %v7727_v27 = vcombine.high %v109_v18, %v117_v19  ;;  %v221_v14 = vld [vmem:[#allocation5 + $0x410] sm:$0xff] }
  0xc1   :  { %v7729_v31 = vcombine.high %v110_v20, %v118_v22  ;;  %v7726_v33 = vcombine.low %v109_v18, %v117_v19  ;;  %v230_v18 = vld [vmem:[#allocation5 + $0x458] sm:$0xff] }
  0xc3   :  { %3307 = vmatpush1.bf16.msra.mxu0 %v8106_v28  ;;  %3389 = vmatpush1.bf16.msra.mxu1 %v8108_v29  ;;  %v125_v28 = vld [vmem:[#allocation5 + $0x110] sm:$0xff] }
  0xc4   :  { %3308 = vmatprep.subr.bf16.mxu0 %v8123_v30  ;;  %3390 = vmatprep.subr.bf16.mxu1 %v8125_v34  ;;  %v133_v29 = vld [vmem:[#allocation5 + $0x150] sm:$0xff]  ;;  %v126_v30 = vld [vmem:[#allocation5 + $0x118] sm:$0xff]  ;;  %v7728_v34 = vcombine.low %v110_v20, %v118_v22 }
  0xc5   :  { %v7743_v35 = vcombine.high %v125_v28, %v133_v29  ;;  %v7745_v39 = vcombine.high %v126_v30, %v134_v32  ;;  %v7742_v41 = vcombine.low %v125_v28, %v133_v29  ;;  %v237_v22 = vld [vmem:[#allocation5 + $0x490] sm:$0xff]  ;;  %v246_v28 = vld [vmem:[#allocation5 + $0x4d8] sm:$0xff] }
  0xc7   :  { %3309 = vmatpush1.bf16.msra.mxu0 %v8122_v36  ;;  %3391 = vmatpush1.bf16.msra.mxu1 %v8124_v37  ;;  %v141_v36 = vld [vmem:[#allocation5 + $0x190] sm:$0xff] }
  0xc8   :  { %3310 = vmatprep.subr.bf16.mxu0 %v8139_v38  ;;  %3392 = vmatprep.subr.bf16.mxu1 %v8141_v42  ;;  %v149_v37 = vld [vmem:[#allocation5 + $0x1d0] sm:$0xff]  ;;  %v142_v38 = vld [vmem:[#allocation5 + $0x198] sm:$0xff]  ;;  %v7744_v42 = vcombine.low %v126_v30, %v134_v32 }
  0xc9   :  { %v7759_v43 = vcombine.high %v141_v36, %v149_v37  ;;  %v7761_v47 = vcombine.high %v142_v38, %v150_v40  ;;  %v7758_v49 = vcombine.low %v141_v36, %v149_v37  ;;  %v253_v32 = vld [vmem:[#allocation5 + $0x510] sm:$0xff]  ;;  %v262_v36 = vld [vmem:[#allocation5 + $0x558] sm:$0xff] }
  0xcb   :  { %3311 = vmatpush1.bf16.msra.mxu0 %v8138_v44  ;;  %3393 = vmatpush1.bf16.msra.mxu1 %v8140_v45  ;;  %v157_v44 = vld [vmem:[#allocation5 + $0x210] sm:$0xff] }
  0xcc   :  { %3312 = vmatprep.subr.bf16.mxu0 %v8155_v46  ;;  %3394 = vmatprep.subr.bf16.mxu1 %v8157_v50  ;;  %v165_v45 = vld [vmem:[#allocation5 + $0x250] sm:$0xff]  ;;  %v158_v46 = vld [vmem:[#allocation5 + $0x218] sm:$0xff]  ;;  %v7760_v50 = vcombine.low %v142_v38, %v150_v40 }
  0xcd   :  { %v7775_v51 = vcombine.high %v157_v44, %v165_v45  ;;  %v7777_v55 = vcombine.high %v158_v46, %v166_v48  ;;  %v7774_v58 = vcombine.low %v157_v44, %v165_v45  ;;  %v269_v40 = vld [vmem:[#allocation5 + $0x590] sm:$0xff]  ;;  %v278_v44 = vld [vmem:[#allocation5 + $0x5d8] sm:$0xff] }
  0xcf   :  { %3313 = vmatpush1.bf16.msra.mxu0 %v8154_v52  ;;  %3395 = vmatpush1.bf16.msra.mxu1 %v8156_v53  ;;  %v173_v52 = vld [vmem:[#allocation5 + $0x290] sm:$0xff] }
  0xd0   :  { %3314 = vmatprep.subr.bf16.mxu0 %v8171_v54  ;;  %3396 = vmatprep.subr.bf16.mxu1 %v8173_v59  ;;  %v181_v53 = vld [vmem:[#allocation5 + $0x2d0] sm:$0xff]  ;;  %v174_v54 = vld [vmem:[#allocation5 + $0x298] sm:$0xff]  ;;  %v7776_v59 = vcombine.low %v158_v46, %v166_v48 }
  0xd1   :  { %v7791_v60 = vcombine.high %v173_v52, %v181_v53  ;;  %v7793_v0 = vcombine.high %v174_v54, %v182_v56  ;;  %v7790_v2 = vcombine.low %v173_v52, %v181_v53  ;;  %v285_v48 = vld [vmem:[#allocation5 + $0x610] sm:$0xff]  ;;  %v294_v52 = vld [vmem:[#allocation5 + $0x658] sm:$0xff] }
  0xd3   :  { %3315 = vmatpush1.bf16.msra.mxu0 %v8170_v61  ;;  %3397 = vmatpush1.bf16.msra.mxu1 %v8172_v62  ;;  %v189_v61 = vld [vmem:[#allocation5 + $0x310] sm:$0xff] }
  0xd4   :  { %3316 = vmatprep.subr.bf16.mxu0 %v8187_v63  ;;  %3398 = vmatprep.subr.bf16.mxu1 %v8189_v3  ;;  %v197_v62 = vld [vmem:[#allocation5 + $0x350] sm:$0xff]  ;;  %v190_v63 = vld [vmem:[#allocation5 + $0x318] sm:$0xff]  ;;  %v7792_v3 = vcombine.low %v174_v54, %v182_v56 }
  0xd5   :  { %v7807_v4 = vcombine.high %v189_v61, %v197_v62  ;;  %v7809_v8 = vcombine.high %v190_v63, %v198_v1  ;;  %v7806_v10 = vcombine.low %v189_v61, %v197_v62  ;;  %v301_v56 = vld [vmem:[#allocation5 + $0x690] sm:$0xff]  ;;  %v310_v61 = vld [vmem:[#allocation5 + $0x6d8] sm:$0xff] }
  0xd7   :  { %3317 = vmatpush1.bf16.msra.mxu0 %v8186_v5  ;;  %3399 = vmatpush1.bf16.msra.mxu1 %v8188_v6  ;;  %v205_v5 = vld [vmem:[#allocation5 + $0x390] sm:$0xff] }
  0xd8   :  { %3318 = vmatprep.subr.bf16.mxu0 %v8203_v7  ;;  %3400 = vmatprep.subr.bf16.mxu1 %v8205_v11  ;;  %v213_v6 = vld [vmem:[#allocation5 + $0x3d0] sm:$0xff]  ;;  %v206_v7 = vld [vmem:[#allocation5 + $0x398] sm:$0xff]  ;;  %v7808_v11 = vcombine.low %v190_v63, %v198_v1 }
  0xd9   :  { %v7823_v13 = vcombine.high %v205_v5, %v213_v6  ;;  %v7822_v19 = vcombine.low %v205_v5, %v213_v6  ;;  %v7824_v20 = vcombine.low %v206_v7, %v214_v9  ;;  %v317_v1 = vld [vmem:[#allocation5 + $0x710] sm:$0xff]  ;;  %v326_v5 = vld [vmem:[#allocation5 + $0x758] sm:$0xff] }
  0xdb   :  { %3319 = vmatpush1.bf16.msra.mxu0 %v8202_v15  ;;  %3401 = vmatpush1.bf16.msra.mxu1 %v8204_v16  ;;  %v229_v15 = vld [vmem:[#allocation5 + $0x450] sm:$0xff]  ;;  %v222_v16 = vld [vmem:[#allocation5 + $0x418] sm:$0xff] }
  0xdc   :  { %3411 = vmatprep.subr.bf16.mxu0 %v7711_v17  ;;  %3493 = vmatprep.subr.bf16.mxu1 %v7713_v21  ;;  %v7825_v17 = vcombine.high %v206_v7, %v214_v9  ;;  %v7839_v21 = vcombine.high %v221_v14, %v229_v15  ;;  %v7838_v29 = vcombine.low %v221_v14, %v229_v15  ;;  %v333_v9 = vld [vmem:[#allocation5 + $0x790] sm:$0xff]  ;;  %v342_v14 = vld [vmem:[#allocation5 + $0x7d8] sm:$0xff] }
  0xdd   :  { %v7840_v30 = vcombine.low %v222_v16, %v230_v18 }
  0xde   :  { %3321 = vmatmul.mubr.bf16.vlgmr.msra.gmra.mrb[0].mxu0 %v9870_v23  ;;  %3403 = vmatmul.mubr.bf16.vlgmr.msra.gmra.mrb[0].mxu1 %v9870_v23 }
  0xdf   :  { %3412 = vmatpush1.bf16.msra.mxu0 %v7710_v25  ;;  %3494 = vmatpush1.bf16.msra.mxu1 %v7712_v26  ;;  %v245_v25 = vld [vmem:[#allocation5 + $0x4d0] sm:$0xff]  ;;  %v238_v26 = vld [vmem:[#allocation5 + $0x498] sm:$0xff] }
  0xe0   :  { %3413 = vmatprep.subr.bf16.mxu0 %v7727_v27  ;;  %3495 = vmatprep.subr.bf16.mxu1 %v7729_v31  ;;  %v7841_v27 = vcombine.high %v222_v16, %v230_v18  ;;  %v7855_v31 = vcombine.high %v237_v22, %v245_v25  ;;  %v7854_v37 = vcombine.low %v237_v22, %v245_v25  ;;  %v349_v18 = vld [vmem:[#allocation5 + $0x810] sm:$0xff]  ;;  %v358_v22 = vld [vmem:[#allocation5 + $0x858] sm:$0xff] }
  0xe1   :  { %3443 = vmatprep.mubr.bf16.mxu0 %v9858_v57  ;;  %3525 = vmatprep.mubr.bf16.mxu1 %v9858_v57  ;;  %v7856_v38 = vcombine.low %v238_v26, %v246_v28 }
  0xe3   :  { %3414 = vmatpush1.bf16.msra.mxu0 %v7726_v33  ;;  %3496 = vmatpush1.bf16.msra.mxu1 %v7728_v34  ;;  %v261_v33 = vld [vmem:[#allocation5 + $0x550] sm:$0xff]  ;;  %v254_v34 = vld [vmem:[#allocation5 + $0x518] sm:$0xff] }
  0xe4   :  { %3415 = vmatprep.subr.bf16.mxu0 %v7743_v35  ;;  %3497 = vmatprep.subr.bf16.mxu1 %v7745_v39  ;;  %v7857_v35 = vcombine.high %v238_v26, %v246_v28  ;;  %v7871_v39 = vcombine.high %v253_v32, %v261_v33  ;;  %v7870_v45 = vcombine.low %v253_v32, %v261_v33  ;;  %v365_v28 = vld [vmem:[#allocation5 + $0x890] sm:$0xff]  ;;  %v374_v32 = vld [vmem:[#allocation5 + $0x8d8] sm:$0xff] }
  0xe5   :  { %v7872_v46 = vcombine.low %v254_v34, %v262_v36 }
  0xe7   :  { %3416 = vmatpush1.bf16.msra.mxu0 %v7742_v41  ;;  %3498 = vmatpush1.bf16.msra.mxu1 %v7744_v42  ;;  %v277_v41 = vld [vmem:[#allocation5 + $0x5d0] sm:$0xff]  ;;  %v270_v42 = vld [vmem:[#allocation5 + $0x598] sm:$0xff] }
  0xe8   :  { %3417 = vmatprep.subr.bf16.mxu0 %v7759_v43  ;;  %3499 = vmatprep.subr.bf16.mxu1 %v7761_v47  ;;  %v7873_v43 = vcombine.high %v254_v34, %v262_v36  ;;  %v7887_v47 = vcombine.high %v269_v40, %v277_v41  ;;  %v7886_v53 = vcombine.low %v269_v40, %v277_v41  ;;  %v381_v36 = vld [vmem:[#allocation5 + $0x910] sm:$0xff]  ;;  %v390_v40 = vld [vmem:[#allocation5 + $0x958] sm:$0xff] }
  0xe9   :  { %v7888_v54 = vcombine.low %v270_v42, %v278_v44 }
  0xeb   :  { %3418 = vmatpush1.bf16.msra.mxu0 %v7758_v49  ;;  %3500 = vmatpush1.bf16.msra.mxu1 %v7760_v50  ;;  %v293_v49 = vld [vmem:[#allocation5 + $0x650] sm:$0xff]  ;;  %v286_v50 = vld [vmem:[#allocation5 + $0x618] sm:$0xff] }
  0xec   :  { %3419 = vmatprep.subr.bf16.mxu0 %v7775_v51  ;;  %3501 = vmatprep.subr.bf16.mxu1 %v7777_v55  ;;  %v7889_v51 = vcombine.high %v270_v42, %v278_v44  ;;  %v7903_v55 = vcombine.high %v285_v48, %v293_v49  ;;  %v7902_v62 = vcombine.low %v285_v48, %v293_v49  ;;  %v397_v44 = vld [vmem:[#allocation5 + $0x990] sm:$0xff]  ;;  %v406_v48 = vld [vmem:[#allocation5 + $0x9d8] sm:$0xff] }
  0xed   :  { %v7904_v63 = vcombine.low %v286_v50, %v294_v52 }
  0xef   :  { %3420 = vmatpush1.bf16.msra.mxu0 %v7774_v58  ;;  %3502 = vmatpush1.bf16.msra.mxu1 %v7776_v59  ;;  %v309_v58 = vld [vmem:[#allocation5 + $0x6d0] sm:$0xff]  ;;  %v302_v59 = vld [vmem:[#allocation5 + $0x698] sm:$0xff] }
  0xf0   :  { %3421 = vmatprep.subr.bf16.mxu0 %v7791_v60  ;;  %3503 = vmatprep.subr.bf16.mxu1 %v7793_v0  ;;  %v7905_v60 = vcombine.high %v286_v50, %v294_v52  ;;  %v7919_v0 = vcombine.high %v301_v56, %v309_v58  ;;  %v7918_v6 = vcombine.low %v301_v56, %v309_v58  ;;  %v413_v52 = vld [vmem:[#allocation5 + $0xa10] sm:$0xff]  ;;  %v422_v56 = vld [vmem:[#allocation5 + $0xa58] sm:$0xff] }
  0xf1   :  { %v7920_v7 = vcombine.low %v302_v59, %v310_v61 }
  0xf3   :  { %3422 = vmatpush1.bf16.msra.mxu0 %v7790_v2  ;;  %3504 = vmatpush1.bf16.msra.mxu1 %v7792_v3  ;;  %v325_v2 = vld [vmem:[#allocation5 + $0x750] sm:$0xff]  ;;  %v318_v3 = vld [vmem:[#allocation5 + $0x718] sm:$0xff] }
  0xf4   :  { %3423 = vmatprep.subr.bf16.mxu0 %v7807_v4  ;;  %3505 = vmatprep.subr.bf16.mxu1 %v7809_v8  ;;  %v7921_v4 = vcombine.high %v302_v59, %v310_v61  ;;  %v7935_v8 = vcombine.high %v317_v1, %v325_v2  ;;  %v7934_v15 = vcombine.low %v317_v1, %v325_v2  ;;  %v429_v61 = vld [vmem:[#allocation5 + $0xa90] sm:$0xff]  ;;  %v438_v1 = vld [vmem:[#allocation5 + $0xad8] sm:$0xff] }
  0xf5   :  { %v7936_v16 = vcombine.low %v318_v3, %v326_v5 }
  0xf7   :  { %3424 = vmatpush1.bf16.msra.mxu0 %v7806_v10  ;;  %3506 = vmatpush1.bf16.msra.mxu1 %v7808_v11  ;;  %v341_v10 = vld [vmem:[#allocation5 + $0x7d0] sm:$0xff]  ;;  %v334_v11 = vld [vmem:[#allocation5 + $0x798] sm:$0xff] }
  0xf8   :  { %3425 = vmatprep.subr.bf16.mxu0 %v7823_v13  ;;  %3507 = vmatprep.subr.bf16.mxu1 %v7825_v17  ;;  %v7937_v13 = vcombine.high %v318_v3, %v326_v5  ;;  %v7951_v17 = vcombine.high %v333_v9, %v341_v10  ;;  %v7950_v25 = vcombine.low %v333_v9, %v341_v10  ;;  %v445_v5 = vld [vmem:[#allocation5 + $0xb10] sm:$0xff]  ;;  %v454_v9 = vld [vmem:[#allocation5 + $0xb58] sm:$0xff] }
  0xf9   :  { %v7952_v26 = vcombine.low %v334_v11, %v342_v14 }
  0xfb   :  { %3426 = vmatpush1.bf16.msra.mxu0 %v7822_v19  ;;  %3508 = vmatpush1.bf16.msra.mxu1 %v7824_v20  ;;  %v357_v19 = vld [vmem:[#allocation5 + $0x850] sm:$0xff]  ;;  %v350_v20 = vld [vmem:[#allocation5 + $0x818] sm:$0xff] }
  0xfc   :  { %3427 = vmatprep.subr.bf16.mxu0 %v7839_v21  ;;  %3509 = vmatprep.subr.bf16.mxu1 %v7841_v27  ;;  %v7953_v21 = vcombine.high %v334_v11, %v342_v14  ;;  %v7967_v27 = vcombine.high %v349_v18, %v357_v19  ;;  %v7966_v33 = vcombine.low %v349_v18, %v357_v19  ;;  %v461_v14 = vld [vmem:[#allocation5 + $0xb90] sm:$0xff]  ;;  %v470_v18 = vld [vmem:[#allocation5 + $0xbd8] sm:$0xff] }
  0xfd   :  { %v7968_v34 = vcombine.low %v350_v20, %v358_v22 }
  0xff   :  { %3428 = vmatpush1.bf16.msra.mxu0 %v7838_v29  ;;  %3510 = vmatpush1.bf16.msra.mxu1 %v7840_v30  ;;  %v373_v29 = vld [vmem:[#allocation5 + $0x8d0] sm:$0xff]  ;;  %v366_v30 = vld [vmem:[#allocation5 + $0x898] sm:$0xff] }
 0x100   :  { %3429 = vmatprep.subr.bf16.mxu0 %v7855_v31  ;;  %3511 = vmatprep.subr.bf16.mxu1 %v7857_v35  ;;  %v7969_v31 = vcombine.high %v350_v20, %v358_v22  ;;  %v7983_v35 = vcombine.high %v365_v28, %v373_v29  ;;  %v7982_v41 = vcombine.low %v365_v28, %v373_v29  ;;  %v477_v22 = vld [vmem:[#allocation5 + $0xc10] sm:$0xff]  ;;  %v486_v28 = vld [vmem:[#allocation5 + $0xc58] sm:$0xff] }
 0x101   :  { %v7984_v42 = vcombine.low %v366_v30, %v374_v32 }
 0x103   :  { %3430 = vmatpush1.bf16.msra.mxu0 %v7854_v37  ;;  %3512 = vmatpush1.bf16.msra.mxu1 %v7856_v38  ;;  %v389_v37 = vld [vmem:[#allocation5 + $0x950] sm:$0xff]  ;;  %v382_v38 = vld [vmem:[#allocation5 + $0x918] sm:$0xff] }
 0x104   :  { %3431 = vmatprep.subr.bf16.mxu0 %v7871_v39  ;;  %3513 = vmatprep.subr.bf16.mxu1 %v7873_v43  ;;  %v7985_v39 = vcombine.high %v366_v30, %v374_v32  ;;  %v7999_v43 = vcombine.high %v381_v36, %v389_v37  ;;  %v7998_v49 = vcombine.low %v381_v36, %v389_v37  ;;  %v493_v32 = vld [vmem:[#allocation5 + $0xc90] sm:$0xff]  ;;  %v502_v36 = vld [vmem:[#allocation5 + $0xcd8] sm:$0xff] }
 0x105   :  { %v8000_v50 = vcombine.low %v382_v38, %v390_v40 }
 0x107   :  { %3432 = vmatpush1.bf16.msra.mxu0 %v7870_v45  ;;  %3514 = vmatpush1.bf16.msra.mxu1 %v7872_v46  ;;  %v405_v45 = vld [vmem:[#allocation5 + $0x9d0] sm:$0xff]  ;;  %v398_v46 = vld [vmem:[#allocation5 + $0x998] sm:$0xff] }
 0x108   :  { %3433 = vmatprep.subr.bf16.mxu0 %v7887_v47  ;;  %3515 = vmatprep.subr.bf16.mxu1 %v7889_v51  ;;  %v8001_v47 = vcombine.high %v382_v38, %v390_v40  ;;  %v8015_v51 = vcombine.high %v397_v44, %v405_v45  ;;  %v8014_v58 = vcombine.low %v397_v44, %v405_v45  ;;  %v509_v40 = vld [vmem:[#allocation5 + $0xd10] sm:$0xff]  ;;  %v518_v44 = vld [vmem:[#allocation5 + $0xd58] sm:$0xff] }
 0x109   :  { %v8016_v59 = vcombine.low %v398_v46, %v406_v48 }
 0x10b   :  { %3434 = vmatpush1.bf16.msra.mxu0 %v7886_v53  ;;  %3516 = vmatpush1.bf16.msra.mxu1 %v7888_v54  ;;  %v421_v53 = vld [vmem:[#allocation5 + $0xa50] sm:$0xff]  ;;  %v414_v54 = vld [vmem:[#allocation5 + $0xa18] sm:$0xff] }
 0x10c   :  { %3435 = vmatprep.subr.bf16.mxu0 %v7903_v55  ;;  %3517 = vmatprep.subr.bf16.mxu1 %v7905_v60  ;;  %v8017_v55 = vcombine.high %v398_v46, %v406_v48  ;;  %v8031_v60 = vcombine.high %v413_v52, %v421_v53  ;;  %v8030_v2 = vcombine.low %v413_v52, %v421_v53  ;;  %v525_v48 = vld [vmem:[#allocation5 + $0xd90] sm:$0xff]  ;;  %v534_v52 = vld [vmem:[#allocation5 + $0xdd8] sm:$0xff] }
 0x10d   :  { %v8032_v3 = vcombine.low %v414_v54, %v422_v56 }
 0x10f   :  { %3436 = vmatpush1.bf16.msra.mxu0 %v7902_v62  ;;  %3518 = vmatpush1.bf16.msra.mxu1 %v7904_v63  ;;  %v437_v62 = vld [vmem:[#allocation5 + $0xad0] sm:$0xff]  ;;  %v430_v63 = vld [vmem:[#allocation5 + $0xa98] sm:$0xff] }
 0x110   :  { %3437 = vmatprep.subr.bf16.mxu0 %v7919_v0  ;;  %3519 = vmatprep.subr.bf16.mxu1 %v7921_v4  ;;  %v8033_v0 = vcombine.high %v414_v54, %v422_v56  ;;  %v8047_v4 = vcombine.high %v429_v61, %v437_v62  ;;  %v8046_v10 = vcombine.low %v429_v61, %v437_v62  ;;  %v541_v56 = vld [vmem:[#allocation5 + $0xe10] sm:$0xff]  ;;  %v550_v61 = vld [vmem:[#allocation5 + $0xe58] sm:$0xff] }
 0x111   :  { %v8048_v11 = vcombine.low %v430_v63, %v438_v1 }
 0x113   :  { %3438 = vmatpush1.bf16.msra.mxu0 %v7918_v6  ;;  %3520 = vmatpush1.bf16.msra.mxu1 %v7920_v7  ;;  %v453_v6 = vld [vmem:[#allocation5 + $0xb50] sm:$0xff]  ;;  %v446_v7 = vld [vmem:[#allocation5 + $0xb18] sm:$0xff] }
 0x114   :  { %3439 = vmatprep.subr.bf16.mxu0 %v7935_v8  ;;  %3521 = vmatprep.subr.bf16.mxu1 %v7937_v13  ;;  %v8049_v8 = vcombine.high %v430_v63, %v438_v1  ;;  %v8063_v13 = vcombine.high %v445_v5, %v453_v6  ;;  %v8062_v19 = vcombine.low %v445_v5, %v453_v6  ;;  %v557_v1 = vld [vmem:[#allocation5 + $0xe90] sm:$0xff]  ;;  %v566_v5 = vld [vmem:[#allocation5 + $0xed8] sm:$0xff] }
 0x115   :  { %v8064_v20 = vcombine.low %v446_v7, %v454_v9 }
 0x117   :  { %3440 = vmatpush1.bf16.msra.mxu0 %v7934_v15  ;;  %3522 = vmatpush1.bf16.msra.mxu1 %v7936_v16  ;;  %v469_v15 = vld [vmem:[#allocation5 + $0xbd0] sm:$0xff]  ;;  %v8065_v16 = vcombine.high %v446_v7, %v454_v9 }
 0x118   :  { %3441 = vmatprep.subr.bf16.mxu0 %v7951_v17  ;;  %3523 = vmatprep.subr.bf16.mxu1 %v7953_v21  ;;  %v462_v17 = vld [vmem:[#allocation5 + $0xb98] sm:$0xff]  ;;  %v8079_v21 = vcombine.high %v461_v14, %v469_v15  ;;  %v8078_v29 = vcombine.low %v461_v14, %v469_v15  ;;  %v573_v9 = vld [vmem:[#allocation5 + $0xf10] sm:$0xff] }
 0x119   :  { %v8080_v30 = vcombine.low %v462_v17, %v470_v18  ;;  %v582_v14 = vld [vmem:[#allocation5 + $0xf58] sm:$0xff] }
 0x11b   :  { %3442 = vmatpush1.bf16.msra.mxu0 %v7950_v25  ;;  %3524 = vmatpush1.bf16.msra.mxu1 %v7952_v26  ;;  %v485_v25 = vld [vmem:[#allocation5 + $0xc50] sm:$0xff]  ;;  %v478_v26 = vld [vmem:[#allocation5 + $0xc18] sm:$0xff] }
 0x11c   :  { %3452 = vmatprep.subr.bf16.mxu0 %v7967_v27  ;;  %3534 = vmatprep.subr.bf16.mxu1 %v7969_v31  ;;  %v8081_v27 = vcombine.high %v462_v17, %v470_v18  ;;  %v8095_v31 = vcombine.high %v477_v22, %v485_v25  ;;  %v8094_v37 = vcombine.low %v477_v22, %v485_v25  ;;  %v589_v18 = vld [vmem:[#allocation5 + $0xf90] sm:$0xff]  ;;  %v598_v22 = vld [vmem:[#allocation5 + $0xfd8] sm:$0xff] }
 0x11d   :  { %v8096_v38 = vcombine.low %v478_v26, %v486_v28 }
 0x11e   :  { %3444 = vmatmul.mubr.bf16.vlgmr.msra.gmra.mrb[4].mxu0 %v9862_v12  ;;  %3526 = vmatmul.mubr.bf16.vlgmr.msra.gmra.mrb[4].mxu1 %v9862_v12 }
 0x11f   :  { %3453 = vmatpush1.bf16.msra.mxu0 %v7966_v33  ;;  %3535 = vmatpush1.bf16.msra.mxu1 %v7968_v34  ;;  %v501_v33 = vld [vmem:[#allocation5 + $0xcd0] sm:$0xff]  ;;  %v494_v34 = vld [vmem:[#allocation5 + $0xc98] sm:$0xff] }
 0x120   :  { %3454 = vmatprep.subr.bf16.mxu0 %v7983_v35  ;;  %3536 = vmatprep.subr.bf16.mxu1 %v7985_v39  ;;  %v8097_v35 = vcombine.high %v478_v26, %v486_v28  ;;  %v8111_v39 = vcombine.high %v493_v32, %v501_v33  ;;  %v8110_v45 = vcombine.low %v493_v32, %v501_v33  ;;  %v95_v28 = vld [vmem:[#allocation5 + $0x20] sm:$0xff]  ;;  %v104_v32 = vld [vmem:[#allocation5 + $0x68] sm:$0xff] }
 0x121   :  { %3484 = vmatprep.mubr.bf16.mxu0 %v9864_v24  ;;  %3566 = vmatprep.mubr.bf16.mxu1 %v9864_v24  ;;  %v8112_v46 = vcombine.low %v494_v34, %v502_v36 }
 0x123   :  { %3455 = vmatpush1.bf16.msra.mxu0 %v7982_v41  ;;  %3537 = vmatpush1.bf16.msra.mxu1 %v7984_v42  ;;  %v517_v41 = vld [vmem:[#allocation5 + $0xd50] sm:$0xff]  ;;  %v510_v42 = vld [vmem:[#allocation5 + $0xd18] sm:$0xff] }
 0x124   :  { %3456 = vmatprep.subr.bf16.mxu0 %v7999_v43  ;;  %3538 = vmatprep.subr.bf16.mxu1 %v8001_v47  ;;  %v8113_v43 = vcombine.high %v494_v34, %v502_v36  ;;  %v8127_v47 = vcombine.high %v509_v40, %v517_v41  ;;  %v8126_v53 = vcombine.low %v509_v40, %v517_v41  ;;  %v111_v36 = vld [vmem:[#allocation5 + $0xa0] sm:$0xff]  ;;  %v120_v40 = vld [vmem:[#allocation5 + $0xe8] sm:$0xff] }
 0x125   :  { %v8128_v54 = vcombine.low %v510_v42, %v518_v44 }
 0x127   :  { %3457 = vmatpush1.bf16.msra.mxu0 %v7998_v49  ;;  %3539 = vmatpush1.bf16.msra.mxu1 %v8000_v50  ;;  %v533_v49 = vld [vmem:[#allocation5 + $0xdd0] sm:$0xff]  ;;  %v526_v50 = vld [vmem:[#allocation5 + $0xd98] sm:$0xff] }
 0x128   :  { %3458 = vmatprep.subr.bf16.mxu0 %v8015_v51  ;;  %3540 = vmatprep.subr.bf16.mxu1 %v8017_v55  ;;  %v8129_v51 = vcombine.high %v510_v42, %v518_v44  ;;  %v8143_v55 = vcombine.high %v525_v48, %v533_v49  ;;  %v8142_v62 = vcombine.low %v525_v48, %v533_v49  ;;  %v127_v44 = vld [vmem:[#allocation5 + $0x120] sm:$0xff]  ;;  %v136_v48 = vld [vmem:[#allocation5 + $0x168] sm:$0xff] }
 0x129   :  { %v8144_v63 = vcombine.low %v526_v50, %v534_v52 }
 0x12b   :  { %3459 = vmatpush1.bf16.msra.mxu0 %v8014_v58  ;;  %3541 = vmatpush1.bf16.msra.mxu1 %v8016_v59  ;;  %v549_v58 = vld [vmem:[#allocation5 + $0xe50] sm:$0xff]  ;;  %v542_v59 = vld [vmem:[#allocation5 + $0xe18] sm:$0xff] }
 0x12c   :  { %3460 = vmatprep.subr.bf16.mxu0 %v8031_v60  ;;  %3542 = vmatprep.subr.bf16.mxu1 %v8033_v0  ;;  %v8145_v60 = vcombine.high %v526_v50, %v534_v52  ;;  %v8159_v0 = vcombine.high %v541_v56, %v549_v58  ;;  %v8158_v6 = vcombine.low %v541_v56, %v549_v58  ;;  %v143_v52 = vld [vmem:[#allocation5 + $0x1a0] sm:$0xff]  ;;  %v152_v56 = vld [vmem:[#allocation5 + $0x1e8] sm:$0xff] }
 0x12d   :  { %v8160_v7 = vcombine.low %v542_v59, %v550_v61 }
 0x12f   :  { %3461 = vmatpush1.bf16.msra.mxu0 %v8030_v2  ;;  %3543 = vmatpush1.bf16.msra.mxu1 %v8032_v3  ;;  %v565_v2 = vld [vmem:[#allocation5 + $0xed0] sm:$0xff]  ;;  %v558_v3 = vld [vmem:[#allocation5 + $0xe98] sm:$0xff] }
 0x130   :  { %3462 = vmatprep.subr.bf16.mxu0 %v8047_v4  ;;  %3544 = vmatprep.subr.bf16.mxu1 %v8049_v8  ;;  %v8161_v4 = vcombine.high %v542_v59, %v550_v61  ;;  %v8175_v8 = vcombine.high %v557_v1, %v565_v2  ;;  %v8174_v15 = vcombine.low %v557_v1, %v565_v2  ;;  %v159_v61 = vld [vmem:[#allocation5 + $0x220] sm:$0xff]  ;;  %v168_v1 = vld [vmem:[#allocation5 + $0x268] sm:$0xff] }
 0x133   :  { %3463 = vmatpush1.bf16.msra.mxu0 %v8046_v10  ;;  %3545 = vmatpush1.bf16.msra.mxu1 %v8048_v11  ;;  %v581_v10 = vld [vmem:[#allocation5 + $0xf50] sm:$0xff]  ;;  %v574_v11 = vld [vmem:[#allocation5 + $0xf18] sm:$0xff] }
 0x134   :  { %3464 = vmatprep.subr.bf16.mxu0 %v8063_v13  ;;  %3546 = vmatprep.subr.bf16.mxu1 %v8065_v16  ;;  %v8177_v13 = vcombine.high %v558_v3, %v566_v5  ;;  %v8176_v16 = vcombine.low %v558_v3, %v566_v5  ;;  %v8191_v17 = vcombine.high %v573_v9, %v581_v10  ;;  %v175_v5 = vld [vmem:[#allocation5 + $0x2a0] sm:$0xff] }
 0x135   :  { %v8190_v25 = vcombine.low %v573_v9, %v581_v10  ;;  %v8192_v26 = vcombine.low %v574_v11, %v582_v14  ;;  %v184_v9 = vld [vmem:[#allocation5 + $0x2e8] sm:$0xff] }
 0x137   :  { %3465 = vmatpush1.bf16.msra.mxu0 %v8062_v19  ;;  %3547 = vmatpush1.bf16.msra.mxu1 %v8064_v20  ;;  %v597_v19 = vld [vmem:[#allocation5 + $0xfd0] sm:$0xff]  ;;  %v590_v20 = vld [vmem:[#allocation5 + $0xf98] sm:$0xff] }
 0x138   :  { %3466 = vmatprep.subr.bf16.mxu0 %v8079_v21  ;;  %3548 = vmatprep.subr.bf16.mxu1 %v8081_v27  ;;  %v8193_v21 = vcombine.high %v574_v11, %v582_v14  ;;  %v8207_v27 = vcombine.high %v589_v18, %v597_v19  ;;  %v8206_v33 = vcombine.low %v589_v18, %v597_v19  ;;  %v191_v14 = vld [vmem:[#allocation5 + $0x320] sm:$0xff]  ;;  %v200_v18 = vld [vmem:[#allocation5 + $0x368] sm:$0xff] }
 0x139   :  { %v8208_v34 = vcombine.low %v590_v20, %v598_v22 }
 0x13b   :  { %3467 = vmatpush1.bf16.msra.mxu0 %v8078_v29  ;;  %3549 = vmatpush1.bf16.msra.mxu1 %v8080_v30  ;;  %v103_v29 = vld [vmem:[#allocation5 + $0x60] sm:$0xff]  ;;  %v96_v30 = vld [vmem:[#allocation5 + $0x28] sm:$0xff] }
 0x13c   :  { %3468 = vmatprep.subr.bf16.mxu0 %v8095_v31  ;;  %3550 = vmatprep.subr.bf16.mxu1 %v8097_v35  ;;  %v8209_v31 = vcombine.high %v590_v20, %v598_v22  ;;  %v7715_v35 = vcombine.high %v95_v28, %v103_v29  ;;  %v7714_v41 = vcombine.low %v95_v28, %v103_v29  ;;  %v207_v22 = vld [vmem:[#allocation5 + $0x3a0] sm:$0xff]  ;;  %v216_v28 = vld [vmem:[#allocation5 + $0x3e8] sm:$0xff] }
 0x13d   :  { %v7716_v42 = vcombine.low %v96_v30, %v104_v32 }
 0x13f   :  { %3469 = vmatpush1.bf16.msra.mxu0 %v8094_v37  ;;  %3551 = vmatpush1.bf16.msra.mxu1 %v8096_v38  ;;  %v119_v37 = vld [vmem:[#allocation5 + $0xe0] sm:$0xff]  ;;  %v112_v38 = vld [vmem:[#allocation5 + $0xa8] sm:$0xff] }
 0x140   :  { %3470 = vmatprep.subr.bf16.mxu0 %v8111_v39  ;;  %3552 = vmatprep.subr.bf16.mxu1 %v8113_v43  ;;  %v7717_v39 = vcombine.high %v96_v30, %v104_v32  ;;  %v7731_v43 = vcombine.high %v111_v36, %v119_v37  ;;  %v7730_v49 = vcombine.low %v111_v36, %v119_v37  ;;  %v223_v32 = vld [vmem:[#allocation5 + $0x420] sm:$0xff]  ;;  %v232_v36 = vld [vmem:[#allocation5 + $0x468] sm:$0xff] }
 0x141   :  { %v7732_v50 = vcombine.low %v112_v38, %v120_v40 }
 0x143   :  { %3471 = vmatpush1.bf16.msra.mxu0 %v8110_v45  ;;  %3553 = vmatpush1.bf16.msra.mxu1 %v8112_v46  ;;  %v135_v45 = vld [vmem:[#allocation5 + $0x160] sm:$0xff]  ;;  %v128_v46 = vld [vmem:[#allocation5 + $0x128] sm:$0xff] }
 0x144   :  { %3472 = vmatprep.subr.bf16.mxu0 %v8127_v47  ;;  %3554 = vmatprep.subr.bf16.mxu1 %v8129_v51  ;;  %v7733_v47 = vcombine.high %v112_v38, %v120_v40  ;;  %v7747_v51 = vcombine.high %v127_v44, %v135_v45  ;;  %v7746_v58 = vcombine.low %v127_v44, %v135_v45  ;;  %v239_v40 = vld [vmem:[#allocation5 + $0x4a0] sm:$0xff]  ;;  %v248_v44 = vld [vmem:[#allocation5 + $0x4e8] sm:$0xff] }
 0x145   :  { %v7748_v59 = vcombine.low %v128_v46, %v136_v48 }
 0x147   :  { %3473 = vmatpush1.bf16.msra.mxu0 %v8126_v53  ;;  %3555 = vmatpush1.bf16.msra.mxu1 %v8128_v54  ;;  %v151_v53 = vld [vmem:[#allocation5 + $0x1e0] sm:$0xff]  ;;  %v144_v54 = vld [vmem:[#allocation5 + $0x1a8] sm:$0xff] }
 0x148   :  { %3474 = vmatprep.subr.bf16.mxu0 %v8143_v55  ;;  %3556 = vmatprep.subr.bf16.mxu1 %v8145_v60  ;;  %v7749_v55 = vcombine.high %v128_v46, %v136_v48  ;;  %v7763_v60 = vcombine.high %v143_v52, %v151_v53  ;;  %v7762_v2 = vcombine.low %v143_v52, %v151_v53  ;;  %v255_v48 = vld [vmem:[#allocation5 + $0x520] sm:$0xff]  ;;  %v264_v52 = vld [vmem:[#allocation5 + $0x568] sm:$0xff] }
 0x149   :  { %v7764_v3 = vcombine.low %v144_v54, %v152_v56 }
 0x14b   :  { %3475 = vmatpush1.bf16.msra.mxu0 %v8142_v62  ;;  %3557 = vmatpush1.bf16.msra.mxu1 %v8144_v63  ;;  %v167_v62 = vld [vmem:[#allocation5 + $0x260] sm:$0xff]  ;;  %v160_v63 = vld [vmem:[#allocation5 + $0x228] sm:$0xff] }
 0x14c   :  { %3476 = vmatprep.subr.bf16.mxu0 %v8159_v0  ;;  %3558 = vmatprep.subr.bf16.mxu1 %v8161_v4  ;;  %v7765_v0 = vcombine.high %v144_v54, %v152_v56  ;;  %v7779_v4 = vcombine.high %v159_v61, %v167_v62  ;;  %v7778_v10 = vcombine.low %v159_v61, %v167_v62  ;;  %v271_v56 = vld [vmem:[#allocation5 + $0x5a0] sm:$0xff]  ;;  %v280_v61 = vld [vmem:[#allocation5 + $0x5e8] sm:$0xff] }
 0x14d   :  { %v7780_v11 = vcombine.low %v160_v63, %v168_v1 }
 0x14f   :  { %3477 = vmatpush1.bf16.msra.mxu0 %v8158_v6  ;;  %3559 = vmatpush1.bf16.msra.mxu1 %v8160_v7  ;;  %v183_v6 = vld [vmem:[#allocation5 + $0x2e0] sm:$0xff]  ;;  %v176_v7 = vld [vmem:[#allocation5 + $0x2a8] sm:$0xff] }
 0x150   :  { %3478 = vmatprep.subr.bf16.mxu0 %v8175_v8  ;;  %3560 = vmatprep.subr.bf16.mxu1 %v8177_v13  ;;  %v7781_v8 = vcombine.high %v160_v63, %v168_v1  ;;  %v7795_v13 = vcombine.high %v175_v5, %v183_v6  ;;  %v7794_v19 = vcombine.low %v175_v5, %v183_v6  ;;  %v287_v1 = vld [vmem:[#allocation5 + $0x620] sm:$0xff]  ;;  %v296_v5 = vld [vmem:[#allocation5 + $0x668] sm:$0xff] }
 0x151   :  { %v7796_v20 = vcombine.low %v176_v7, %v184_v9 }
 0x153   :  { %3479 = vmatpush1.bf16.msra.mxu0 %v8174_v15  ;;  %3561 = vmatpush1.bf16.msra.mxu1 %v8176_v16  ;;  %v199_v15 = vld [vmem:[#allocation5 + $0x360] sm:$0xff]  ;;  %v192_v16 = vld [vmem:[#allocation5 + $0x328] sm:$0xff] }
 0x154   :  { %3480 = vmatprep.subr.bf16.mxu0 %v8191_v17  ;;  %3562 = vmatprep.subr.bf16.mxu1 %v8193_v21  ;;  %v7797_v17 = vcombine.high %v176_v7, %v184_v9  ;;  %v7811_v21 = vcombine.high %v191_v14, %v199_v15  ;;  %v7810_v29 = vcombine.low %v191_v14, %v199_v15  ;;  %v303_v9 = vld [vmem:[#allocation5 + $0x6a0] sm:$0xff]  ;;  %v312_v14 = vld [vmem:[#allocation5 + $0x6e8] sm:$0xff] }
 0x155   :  { %v7812_v30 = vcombine.low %v192_v16, %v200_v18 }
 0x157   :  { %3481 = vmatpush1.bf16.msra.mxu0 %v8190_v25  ;;  %3563 = vmatpush1.bf16.msra.mxu1 %v8192_v26  ;;  %v215_v25 = vld [vmem:[#allocation5 + $0x3e0] sm:$0xff]  ;;  %v208_v26 = vld [vmem:[#allocation5 + $0x3a8] sm:$0xff] }
 0x158   :  { %3482 = vmatprep.subr.bf16.mxu0 %v8207_v27  ;;  %3564 = vmatprep.subr.bf16.mxu1 %v8209_v31  ;;  %v7813_v27 = vcombine.high %v192_v16, %v200_v18  ;;  %v7827_v31 = vcombine.high %v207_v22, %v215_v25  ;;  %v7826_v37 = vcombine.low %v207_v22, %v215_v25  ;;  %v319_v18 = vld [vmem:[#allocation5 + $0x720] sm:$0xff]  ;;  %v328_v22 = vld [vmem:[#allocation5 + $0x768] sm:$0xff] }
 0x159   :  { %v7828_v38 = vcombine.low %v208_v26, %v216_v28 }
 0x15b   :  { %3483 = vmatpush1.bf16.msra.mxu0 %v8206_v33  ;;  %3565 = vmatpush1.bf16.msra.mxu1 %v8208_v34  ;;  %v231_v33 = vld [vmem:[#allocation5 + $0x460] sm:$0xff]  ;;  %v224_v34 = vld [vmem:[#allocation5 + $0x428] sm:$0xff] }
 0x15c   :  { %3575 = vmatprep.subr.bf16.mxu0 %v7715_v35  ;;  %3657 = vmatprep.subr.bf16.mxu1 %v7717_v39  ;;  %v7829_v35 = vcombine.high %v208_v26, %v216_v28  ;;  %v7843_v39 = vcombine.high %v223_v32, %v231_v33  ;;  %v7842_v45 = vcombine.low %v223_v32, %v231_v33  ;;  %v335_v28 = vld [vmem:[#allocation5 + $0x7a0] sm:$0xff]  ;;  %v344_v32 = vld [vmem:[#allocation5 + $0x7e8] sm:$0xff] }
 0x15d   :  { %v7844_v46 = vcombine.low %v224_v34, %v232_v36 }
 0x15e   :  { %3485 = vmatmul.mubr.bf16.vlgmr.msra.gmra.mrb[4].mxu0 %v9870_v23  ;;  %3567 = vmatmul.mubr.bf16.vlgmr.msra.gmra.mrb[4].mxu1 %v9870_v23 }
 0x15f   :  { %3576 = vmatpush1.bf16.msra.mxu0 %v7714_v41  ;;  %3658 = vmatpush1.bf16.msra.mxu1 %v7716_v42  ;;  %v247_v41 = vld [vmem:[#allocation5 + $0x4e0] sm:$0xff]  ;;  %v240_v42 = vld [vmem:[#allocation5 + $0x4a8] sm:$0xff] }
 0x160   :  { %3577 = vmatprep.subr.bf16.mxu0 %v7731_v43  ;;  %3659 = vmatprep.subr.bf16.mxu1 %v7733_v47  ;;  %v7845_v43 = vcombine.high %v224_v34, %v232_v36  ;;  %v7859_v47 = vcombine.high %v239_v40, %v247_v41  ;;  %v7858_v53 = vcombine.low %v239_v40, %v247_v41  ;;  %v351_v36 = vld [vmem:[#allocation5 + $0x820] sm:$0xff]  ;;  %v360_v40 = vld [vmem:[#allocation5 + $0x868] sm:$0xff] }
 0x161   :  { %3607 = vmatprep.mubr.bf16.mxu0 %v9858_v57  ;;  %3689 = vmatprep.mubr.bf16.mxu1 %v9858_v57  ;;  %v7860_v54 = vcombine.low %v240_v42, %v248_v44 }
 0x163   :  { %3578 = vmatpush1.bf16.msra.mxu0 %v7730_v49  ;;  %3660 = vmatpush1.bf16.msra.mxu1 %v7732_v50  ;;  %v263_v49 = vld [vmem:[#allocation5 + $0x560] sm:$0xff]  ;;  %v256_v50 = vld [vmem:[#allocation5 + $0x528] sm:$0xff] }
 0x164   :  { %3579 = vmatprep.subr.bf16.mxu0 %v7747_v51  ;;  %3661 = vmatprep.subr.bf16.mxu1 %v7749_v55  ;;  %v7861_v51 = vcombine.high %v240_v42, %v248_v44  ;;  %v7875_v55 = vcombine.high %v255_v48, %v263_v49  ;;  %v7874_v62 = vcombine.low %v255_v48, %v263_v49  ;;  %v367_v44 = vld [vmem:[#allocation5 + $0x8a0] sm:$0xff]  ;;  %v376_v48 = vld [vmem:[#allocation5 + $0x8e8] sm:$0xff] }
 0x165   :  { %v7876_v63 = vcombine.low %v256_v50, %v264_v52 }
 0x167   :  { %3580 = vmatpush1.bf16.msra.mxu0 %v7746_v58  ;;  %3662 = vmatpush1.bf16.msra.mxu1 %v7748_v59  ;;  %v279_v58 = vld [vmem:[#allocation5 + $0x5e0] sm:$0xff]  ;;  %v272_v59 = vld [vmem:[#allocation5 + $0x5a8] sm:$0xff] }
 0x168   :  { %3581 = vmatprep.subr.bf16.mxu0 %v7763_v60  ;;  %3663 = vmatprep.subr.bf16.mxu1 %v7765_v0  ;;  %v7877_v60 = vcombine.high %v256_v50, %v264_v52  ;;  %v7891_v0 = vcombine.high %v271_v56, %v279_v58  ;;  %v7890_v6 = vcombine.low %v271_v56, %v279_v58  ;;  %v383_v52 = vld [vmem:[#allocation5 + $0x920] sm:$0xff]  ;;  %v392_v56 = vld [vmem:[#allocation5 + $0x968] sm:$0xff] }
 0x169   :  { %v7892_v7 = vcombine.low %v272_v59, %v280_v61 }
 0x16b   :  { %3582 = vmatpush1.bf16.msra.mxu0 %v7762_v2  ;;  %3664 = vmatpush1.bf16.msra.mxu1 %v7764_v3  ;;  %v295_v2 = vld [vmem:[#allocation5 + $0x660] sm:$0xff]  ;;  %v288_v3 = vld [vmem:[#allocation5 + $0x628] sm:$0xff] }
 0x16c   :  { %3583 = vmatprep.subr.bf16.mxu0 %v7779_v4  ;;  %3665 = vmatprep.subr.bf16.mxu1 %v7781_v8  ;;  %v7893_v4 = vcombine.high %v272_v59, %v280_v61  ;;  %v7907_v8 = vcombine.high %v287_v1, %v295_v2  ;;  %v7906_v15 = vcombine.low %v287_v1, %v295_v2  ;;  %v408_v1 = vld [vmem:[#allocation5 + $0x9e8] sm:$0xff] }
 0x16d   :  { %v7908_v16 = vcombine.low %v288_v3, %v296_v5 }
 0x16f   :  { %3584 = vmatpush1.bf16.msra.mxu0 %v7778_v10  ;;  %3666 = vmatpush1.bf16.msra.mxu1 %v7780_v11  ;;  %v311_v10 = vld [vmem:[#allocation5 + $0x6e0] sm:$0xff]  ;;  %v304_v11 = vld [vmem:[#allocation5 + $0x6a8] sm:$0xff] }
 0x170   :  { %3585 = vmatprep.subr.bf16.mxu0 %v7795_v13  ;;  %3667 = vmatprep.subr.bf16.mxu1 %v7797_v17  ;;  %v7909_v13 = vcombine.high %v288_v3, %v296_v5  ;;  %v7923_v17 = vcombine.high %v303_v9, %v311_v10  ;;  %v7922_v25 = vcombine.low %v303_v9, %v311_v10  ;;  %v424_v9 = vld [vmem:[#allocation5 + $0xa68] sm:$0xff] }
 0x171   :  { %v7924_v26 = vcombine.low %v304_v11, %v312_v14 }
 0x173   :  { %3586 = vmatpush1.bf16.msra.mxu0 %v7794_v19  ;;  %3668 = vmatpush1.bf16.msra.mxu1 %v7796_v20  ;;  %v327_v19 = vld [vmem:[#allocation5 + $0x760] sm:$0xff]  ;;  %v320_v20 = vld [vmem:[#allocation5 + $0x728] sm:$0xff] }
 0x174   :  { %3587 = vmatprep.subr.bf16.mxu0 %v7811_v21  ;;  %3669 = vmatprep.subr.bf16.mxu1 %v7813_v27  ;;  %v7925_v21 = vcombine.high %v304_v11, %v312_v14  ;;  %v7939_v27 = vcombine.high %v319_v18, %v327_v19  ;;  %v7938_v33 = vcombine.low %v319_v18, %v327_v19  ;;  %v440_v18 = vld [vmem:[#allocation5 + $0xae8] sm:$0xff] }
 0x175   :  { %v7940_v34 = vcombine.low %v320_v20, %v328_v22 }
 0x177   :  { %3588 = vmatpush1.bf16.msra.mxu0 %v7810_v29  ;;  %3670 = vmatpush1.bf16.msra.mxu1 %v7812_v30  ;;  %v343_v29 = vld [vmem:[#allocation5 + $0x7e0] sm:$0xff]  ;;  %v336_v30 = vld [vmem:[#allocation5 + $0x7a8] sm:$0xff] }
 0x178   :  { %3589 = vmatprep.subr.bf16.mxu0 %v7827_v31  ;;  %3671 = vmatprep.subr.bf16.mxu1 %v7829_v35  ;;  %v7941_v31 = vcombine.high %v320_v20, %v328_v22  ;;  %v7955_v35 = vcombine.high %v335_v28, %v343_v29  ;;  %v7954_v41 = vcombine.low %v335_v28, %v343_v29  ;;  %v456_v28 = vld [vmem:[#allocation5 + $0xb68] sm:$0xff] }
 0x179   :  { %v7956_v42 = vcombine.low %v336_v30, %v344_v32 }
 0x17b   :  { %3590 = vmatpush1.bf16.msra.mxu0 %v7826_v37  ;;  %3672 = vmatpush1.bf16.msra.mxu1 %v7828_v38  ;;  %v359_v37 = vld [vmem:[#allocation5 + $0x860] sm:$0xff]  ;;  %v352_v38 = vld [vmem:[#allocation5 + $0x828] sm:$0xff] }
 0x17c   :  { %3591 = vmatprep.subr.bf16.mxu0 %v7843_v39  ;;  %3673 = vmatprep.subr.bf16.mxu1 %v7845_v43  ;;  %v7957_v39 = vcombine.high %v336_v30, %v344_v32  ;;  %v7971_v43 = vcombine.high %v351_v36, %v359_v37  ;;  %v7970_v49 = vcombine.low %v351_v36, %v359_v37 }
 0x17d   :  { %v7972_v50 = vcombine.low %v352_v38, %v360_v40 }
 0x17f   :  { %3592 = vmatpush1.bf16.msra.mxu0 %v7842_v45  ;;  %3674 = vmatpush1.bf16.msra.mxu1 %v7844_v46  ;;  %v375_v45 = vld [vmem:[#allocation5 + $0x8e0] sm:$0xff]  ;;  %v368_v46 = vld [vmem:[#allocation5 + $0x8a8] sm:$0xff] }
 0x180   :  { %3593 = vmatprep.subr.bf16.mxu0 %v7859_v47  ;;  %3675 = vmatprep.subr.bf16.mxu1 %v7861_v51  ;;  %v7973_v47 = vcombine.high %v352_v38, %v360_v40  ;;  %v7987_v51 = vcombine.high %v367_v44, %v375_v45  ;;  %v7986_v58 = vcombine.low %v367_v44, %v375_v45  ;;  %v464_v38 = vld [vmem:[#allocation5 + $0xba8] sm:$0xff] }
 0x181   :  { %v7988_v59 = vcombine.low %v368_v46, %v376_v48 }
 0x183   :  { %3594 = vmatpush1.bf16.msra.mxu0 %v7858_v53  ;;  %3676 = vmatpush1.bf16.msra.mxu1 %v7860_v54  ;;  %v7989_v53 = vcombine.high %v368_v46, %v376_v48  ;;  %v391_v54 = vld [vmem:[#allocation5 + $0x960] sm:$0xff] }
 0x184   :  { %3595 = vmatprep.subr.bf16.mxu0 %v7875_v55  ;;  %3677 = vmatprep.subr.bf16.mxu1 %v7877_v60  ;;  %v384_v55 = vld [vmem:[#allocation5 + $0x928] sm:$0xff]  ;;  %v8003_v60 = vcombine.high %v383_v52, %v391_v54  ;;  %v8002_v2 = vcombine.low %v383_v52, %v391_v54 }
 0x185   :  { %v8005_v61 = vcombine.high %v384_v55, %v392_v56  ;;  %v8004_v3 = vcombine.low %v384_v55, %v392_v56  ;;  %v488_v52 = vld [vmem:[#allocation5 + $0xc68] sm:$0xff] }
 0x187   :  { %3596 = vmatpush1.bf16.msra.mxu0 %v7874_v62  ;;  %3678 = vmatpush1.bf16.msra.mxu1 %v7876_v63  ;;  %v399_v62 = vld [vmem:[#allocation5 + $0x9a0] sm:$0xff] }
 0x188   :  { %3597 = vmatprep.subr.bf16.mxu0 %v7891_v0  ;;  %3679 = vmatprep.subr.bf16.mxu1 %v7893_v4  ;;  %v407_v63 = vld [vmem:[#allocation5 + $0x9e0] sm:$0xff]  ;;  %v400_v0 = vld [vmem:[#allocation5 + $0x9a8] sm:$0xff] }
 0x189   :  { %v8019_v4 = vcombine.high %v399_v62, %v407_v63  ;;  %v8021_v5 = vcombine.high %v400_v0, %v408_v1  ;;  %v8018_v10 = vcombine.low %v399_v62, %v407_v63  ;;  %v8020_v11 = vcombine.low %v400_v0, %v408_v1 }
 0x18b   :  { %3598 = vmatpush1.bf16.msra.mxu0 %v7890_v6  ;;  %3680 = vmatpush1.bf16.msra.mxu1 %v7892_v7  ;;  %v415_v6 = vld [vmem:[#allocation5 + $0xa20] sm:$0xff] }
 0x18c   :  { %3599 = vmatprep.subr.bf16.mxu0 %v7907_v8  ;;  %3681 = vmatprep.subr.bf16.mxu1 %v7909_v13  ;;  %v423_v7 = vld [vmem:[#allocation5 + $0xa60] sm:$0xff]  ;;  %v416_v8 = vld [vmem:[#allocation5 + $0xa28] sm:$0xff] }
 0x18d   :  { %v8035_v13 = vcombine.high %v415_v6, %v423_v7  ;;  %v8037_v14 = vcombine.high %v416_v8, %v424_v9  ;;  %v8034_v19 = vcombine.low %v415_v6, %v423_v7  ;;  %v8036_v20 = vcombine.low %v416_v8, %v424_v9 }
 0x18f   :  { %3600 = vmatpush1.bf16.msra.mxu0 %v7906_v15  ;;  %3682 = vmatpush1.bf16.msra.mxu1 %v7908_v16  ;;  %v431_v15 = vld [vmem:[#allocation5 + $0xaa0] sm:$0xff] }
 0x190   :  { %3601 = vmatprep.subr.bf16.mxu0 %v7923_v17  ;;  %3683 = vmatprep.subr.bf16.mxu1 %v7925_v21  ;;  %v439_v16 = vld [vmem:[#allocation5 + $0xae0] sm:$0xff]  ;;  %v432_v17 = vld [vmem:[#allocation5 + $0xaa8] sm:$0xff] }
 0x191   :  { %v8051_v21 = vcombine.high %v431_v15, %v439_v16  ;;  %v8053_v22 = vcombine.high %v432_v17, %v440_v18  ;;  %v8050_v29 = vcombine.low %v431_v15, %v439_v16  ;;  %v8052_v30 = vcombine.low %v432_v17, %v440_v18 }
 0x193   :  { %3602 = vmatpush1.bf16.msra.mxu0 %v7922_v25  ;;  %3684 = vmatpush1.bf16.msra.mxu1 %v7924_v26  ;;  %v447_v25 = vld [vmem:[#allocation5 + $0xb20] sm:$0xff] }
 0x194   :  { %3603 = vmatprep.subr.bf16.mxu0 %v7939_v27  ;;  %3685 = vmatprep.subr.bf16.mxu1 %v7941_v31  ;;  %v455_v26 = vld [vmem:[#allocation5 + $0xb60] sm:$0xff]  ;;  %v448_v27 = vld [vmem:[#allocation5 + $0xb28] sm:$0xff] }
 0x195   :  { %v8067_v31 = vcombine.high %v447_v25, %v455_v26  ;;  %v8068_v45 = vcombine.low %v448_v27, %v456_v28 }
 0x197   :  { %3604 = vmatpush1.bf16.msra.mxu0 %v7938_v33  ;;  %3686 = vmatpush1.bf16.msra.mxu1 %v7940_v34  ;;  %v8069_v33 = vcombine.high %v448_v27, %v456_v28  ;;  %v463_v34 = vld [vmem:[#allocation5 + $0xba0] sm:$0xff] }
 0x198   :  { %3605 = vmatprep.subr.bf16.mxu0 %v7955_v35  ;;  %3687 = vmatprep.subr.bf16.mxu1 %v7957_v39  ;;  %v471_v35 = vld [vmem:[#allocation5 + $0xbe0] sm:$0xff]  ;;  %v472_v39 = vld [vmem:[#allocation5 + $0xbe8] sm:$0xff] }
 0x199   :  { %v8083_v46 = vcombine.high %v463_v34, %v471_v35  ;;  %v8085_v48 = vcombine.high %v464_v38, %v472_v39  ;;  %v8084_v54 = vcombine.low %v464_v38, %v472_v39 }
 0x19b   :  { %3606 = vmatpush1.bf16.msra.mxu0 %v7954_v41  ;;  %3688 = vmatpush1.bf16.msra.mxu1 %v7956_v42  ;;  %v8066_v42 = vcombine.low %v447_v25, %v455_v26 }
 0x19c   :  { %3616 = vmatprep.subr.bf16.mxu0 %v7971_v43  ;;  %3698 = vmatprep.subr.bf16.mxu1 %v7973_v47 }
 0x19e   :  { %3608 = vmatmul.mubr.bf16.vlgmr.msra.gmra.mrb[8].mxu0 %v9862_v12  ;;  %3690 = vmatmul.mubr.bf16.vlgmr.msra.gmra.mrb[8].mxu1 %v9862_v12 }
 0x19f   :  { %3617 = vmatpush1.bf16.msra.mxu0 %v7970_v49  ;;  %3699 = vmatpush1.bf16.msra.mxu1 %v7972_v50  ;;  %v479_v49 = vld [vmem:[#allocation5 + $0xc20] sm:$0xff] }
 0x1a0   :  { %3618 = vmatprep.subr.bf16.mxu0 %v7987_v51  ;;  %3700 = vmatprep.subr.bf16.mxu1 %v7989_v53  ;;  %v487_v50 = vld [vmem:[#allocation5 + $0xc60] sm:$0xff]  ;;  %v480_v51 = vld [vmem:[#allocation5 + $0xc28] sm:$0xff]  ;;  %v8082_v53 = vcombine.low %v463_v34, %v471_v35 }
 0x1a1   :  { %3648 = vmatprep.mubr.bf16.mxu0 %v9864_v24  ;;  %3730 = vmatprep.mubr.bf16.mxu1 %v9864_v24  ;;  %v8099_v55 = vcombine.high %v479_v49, %v487_v50  ;;  %v8101_v56 = vcombine.high %v480_v51, %v488_v52  ;;  %v8098_v62 = vcombine.low %v479_v49, %v487_v50  ;;  %v591_v49 = vld [vmem:[#allocation5 + $0xfa0] sm:$0xff] }
 0x1a2   :  { %v8100_v63 = vcombine.low %v480_v51, %v488_v52  ;;  %v599_v50 = vld [vmem:[#allocation5 + $0xfe0] sm:$0xff]  ;;  %v592_v51 = vld [vmem:[#allocation5 + $0xfa8] sm:$0xff] }
 0x1a3   :  { %3619 = vmatpush1.bf16.msra.mxu0 %v7986_v58  ;;  %3701 = vmatpush1.bf16.msra.mxu1 %v7988_v59  ;;  %v495_v58 = vld [vmem:[#allocation5 + $0xca0] sm:$0xff]  ;;  %v600_v52 = vld [vmem:[#allocation5 + $0xfe8] sm:$0xff] }
 0x1a4   :  { %3620 = vmatprep.subr.bf16.mxu0 %v8003_v60  ;;  %3702 = vmatprep.subr.bf16.mxu1 %v8005_v61  ;;  %v503_v59 = vld [vmem:[#allocation5 + $0xce0] sm:$0xff]  ;;  %v496_v60 = vld [vmem:[#allocation5 + $0xca8] sm:$0xff] }
 0x1a5   :  { %v504_v61 = vld [vmem:[#allocation5 + $0xce8] sm:$0xff]  ;;  %v8115_v0 = vcombine.high %v495_v58, %v503_v59  ;;  %v8114_v6 = vcombine.low %v495_v58, %v503_v59  ;;  %v97_v58 = vld [vmem:[#allocation5 + $0x30] sm:$0xff] }
 0x1a6   :  { %v8117_v1 = vcombine.high %v496_v60, %v504_v61  ;;  %v8116_v7 = vcombine.low %v496_v60, %v504_v61  ;;  %v105_v59 = vld [vmem:[#allocation5 + $0x70] sm:$0xff]  ;;  %v98_v60 = vld [vmem:[#allocation5 + $0x38] sm:$0xff] }
 0x1a7   :  { %3621 = vmatpush1.bf16.msra.mxu0 %v8002_v2  ;;  %3703 = vmatpush1.bf16.msra.mxu1 %v8004_v3  ;;  %v511_v2 = vld [vmem:[#allocation5 + $0xd20] sm:$0xff]  ;;  %v106_v61 = vld [vmem:[#allocation5 + $0x78] sm:$0xff] }
 0x1a8   :  { %3622 = vmatprep.subr.bf16.mxu0 %v8019_v4  ;;  %3704 = vmatprep.subr.bf16.mxu1 %v8021_v5  ;;  %v519_v3 = vld [vmem:[#allocation5 + $0xd60] sm:$0xff]  ;;  %v512_v4 = vld [vmem:[#allocation5 + $0xd28] sm:$0xff] }
 0x1a9   :  { %v520_v5 = vld [vmem:[#allocation5 + $0xd68] sm:$0xff]  ;;  %v8131_v8 = vcombine.high %v511_v2, %v519_v3  ;;  %v8130_v15 = vcombine.low %v511_v2, %v519_v3  ;;  %v113_v2 = vld [vmem:[#allocation5 + $0xb0] sm:$0xff] }
 0x1aa   :  { %v8133_v9 = vcombine.high %v512_v4, %v520_v5  ;;  %v8132_v16 = vcombine.low %v512_v4, %v520_v5  ;;  %v121_v3 = vld [vmem:[#allocation5 + $0xf0] sm:$0xff]  ;;  %v114_v4 = vld [vmem:[#allocation5 + $0xb8] sm:$0xff] }
 0x1ab   :  { %3623 = vmatpush1.bf16.msra.mxu0 %v8018_v10  ;;  %3705 = vmatpush1.bf16.msra.mxu1 %v8020_v11  ;;  %v527_v10 = vld [vmem:[#allocation5 + $0xda0] sm:$0xff]  ;;  %v122_v5 = vld [vmem:[#allocation5 + $0xf8] sm:$0xff] }
 0x1ac   :  { %3624 = vmatprep.subr.bf16.mxu0 %v8035_v13  ;;  %3706 = vmatprep.subr.bf16.mxu1 %v8037_v14  ;;  %v535_v11 = vld [vmem:[#allocation5 + $0xde0] sm:$0xff]  ;;  %v528_v13 = vld [vmem:[#allocation5 + $0xda8] sm:$0xff] }
 0x1ad   :  { %v536_v14 = vld [vmem:[#allocation5 + $0xde8] sm:$0xff]  ;;  %v8147_v17 = vcombine.high %v527_v10, %v535_v11  ;;  %v8146_v25 = vcombine.low %v527_v10, %v535_v11  ;;  %v129_v10 = vld [vmem:[#allocation5 + $0x130] sm:$0xff] }
 0x1ae   :  { %v8149_v18 = vcombine.high %v528_v13, %v536_v14  ;;  %v8148_v26 = vcombine.low %v528_v13, %v536_v14  ;;  %v137_v11 = vld [vmem:[#allocation5 + $0x170] sm:$0xff]  ;;  %v130_v13 = vld [vmem:[#allocation5 + $0x138] sm:$0xff] }
 0x1af   :  { %3625 = vmatpush1.bf16.msra.mxu0 %v8034_v19  ;;  %3707 = vmatpush1.bf16.msra.mxu1 %v8036_v20  ;;  %v543_v19 = vld [vmem:[#allocation5 + $0xe20] sm:$0xff]  ;;  %v138_v14 = vld [vmem:[#allocation5 + $0x178] sm:$0xff] }
 0x1b0   :  { %3626 = vmatprep.subr.bf16.mxu0 %v8051_v21  ;;  %3708 = vmatprep.subr.bf16.mxu1 %v8053_v22  ;;  %v551_v20 = vld [vmem:[#allocation5 + $0xe60] sm:$0xff]  ;;  %v544_v21 = vld [vmem:[#allocation5 + $0xe28] sm:$0xff] }
 0x1b1   :  { %v9888_v32 = vpop.f32.mrb[0].mxu0  ;;  %v9890_v36 = vpop.f32.mrb[0].mxu1  ;;  %v552_v22 = vld [vmem:[#allocation5 + $0xe68] sm:$0xff]  ;;  %v8163_v27 = vcombine.high %v543_v19, %v551_v20  ;;  %v8162_v34 = vcombine.low %v543_v19, %v551_v20  ;;  %v145_v19 = vld [vmem:[#allocation5 + $0x1b0] sm:$0xff] }
 0x1b2   :  { %v9892_v37 = vpop.f32.mrb[1].mxu0  ;;  %v9894_v40 = vpop.f32.mrb[1].mxu1  ;;  %v8165_v28 = vcombine.high %v544_v21, %v552_v22  ;;  %v8164_v35 = vcombine.low %v544_v21, %v552_v22  ;;  %v153_v20 = vld [vmem:[#allocation5 + $0x1f0] sm:$0xff]  ;;  %v146_v21 = vld [vmem:[#allocation5 + $0x1b8] sm:$0xff] }
 0x1b3   :  { %v3326_v41 = vpop.f32.mrb[2].mxu0  ;;  %3627 = vmatpush1.bf16.msra.mxu0 %v8050_v29  ;;  %v3408_v43 = vpop.f32.mrb[2].mxu1  ;;  %3709 = vmatpush1.bf16.msra.mxu1 %v8052_v30  ;;  %v559_v29 = vld [vmem:[#allocation5 + $0xea0] sm:$0xff]  ;;  %v154_v22 = vld [vmem:[#allocation5 + $0x1f8] sm:$0xff] }
 0x1b4   :  { %v3327_v44 = vpop.f32.mrb[3].mxu0  ;;  %3628 = vmatprep.subr.bf16.mxu0 %v8067_v31  ;;  %v3409_v47 = vpop.f32.mrb[3].mxu1  ;;  %3710 = vmatprep.subr.bf16.mxu1 %v8069_v33  ;;  %v567_v30 = vld [vmem:[#allocation5 + $0xee0] sm:$0xff]  ;;  %v560_v31 = vld [vmem:[#allocation5 + $0xea8] sm:$0xff] }
 0x1b5   :  { %v568_v33 = vld [vmem:[#allocation5 + $0xee8] sm:$0xff]  ;;  %v8179_v38 = vcombine.high %v559_v29, %v567_v30  ;;  %v575_v41 = vld [vmem:[#allocation5 + $0xf20] sm:$0xff] }
 0x1b6   :  { %v8181_v39 = vcombine.high %v560_v31, %v568_v33  ;;  %v576_v43 = vld [vmem:[#allocation5 + $0xf28] sm:$0xff] }
 0x1b7   :  { %3629 = vmatpush1.bf16.msra.mxu0 %v8066_v42  ;;  %3711 = vmatpush1.bf16.msra.mxu1 %v8068_v45  ;;  %v583_v42 = vld [vmem:[#allocation5 + $0xf60] sm:$0xff]  ;;  %v584_v44 = vld [vmem:[#allocation5 + $0xf68] sm:$0xff]  ;;  %v8178_v45 = vcombine.low %v559_v29, %v567_v30  ;;  %v161_v29 = vld [vmem:[#allocation5 + $0x230] sm:$0xff] }
 0x1b8   :  { %3630 = vmatprep.subr.bf16.mxu0 %v8083_v46  ;;  %3712 = vmatprep.subr.bf16.mxu1 %v8085_v48  ;;  %v8180_v46 = vcombine.low %v560_v31, %v568_v33  ;;  %v8195_v47 = vcombine.high %v575_v41, %v583_v42  ;;  %v8197_v48 = vcombine.high %v576_v43, %v584_v44  ;;  %v169_v30 = vld [vmem:[#allocation5 + $0x270] sm:$0xff]  ;;  %v162_v31 = vld [vmem:[#allocation5 + $0x238] sm:$0xff] }
 0x1b9   :  { %v170_v33 = vld [vmem:[#allocation5 + $0x278] sm:$0xff] }
 0x1bb   :  { %3631 = vmatpush1.bf16.msra.mxu0 %v8082_v53  ;;  %3713 = vmatpush1.bf16.msra.mxu1 %v8084_v54  ;;  %v8194_v53 = vcombine.low %v575_v41, %v583_v42  ;;  %v8196_v54 = vcombine.low %v576_v43, %v584_v44  ;;  %v185_v41 = vld [vmem:[#allocation5 + $0x2f0] sm:$0xff]  ;;  %v178_v42 = vld [vmem:[#allocation5 + $0x2b8] sm:$0xff]  ;;  %v7782_v44 = vcombine.low %v161_v29, %v169_v30 }
 0x1bc   :  { %3632 = vmatprep.subr.bf16.mxu0 %v8099_v55  ;;  %3714 = vmatprep.subr.bf16.mxu1 %v8101_v56  ;;  %v8211_v55 = vcombine.high %v591_v49, %v599_v50  ;;  %v8213_v56 = vcombine.high %v592_v51, %v600_v52  ;;  %v186_v43 = vld [vmem:[#allocation5 + $0x2f8] sm:$0xff] }
 0x1bf   :  { %3633 = vmatpush1.bf16.msra.mxu0 %v8098_v62  ;;  %3715 = vmatpush1.bf16.msra.mxu1 %v8100_v63  ;;  %v8210_v62 = vcombine.low %v591_v49, %v599_v50  ;;  %v8212_v63 = vcombine.low %v592_v51, %v600_v52  ;;  %v201_v49 = vld [vmem:[#allocation5 + $0x370] sm:$0xff]  ;;  %v194_v50 = vld [vmem:[#allocation5 + $0x338] sm:$0xff] }
 0x1c0   :  { %3634 = vmatprep.subr.bf16.mxu0 %v8115_v0  ;;  %3716 = vmatprep.subr.bf16.mxu1 %v8117_v1  ;;  %v7719_v0 = vcombine.high %v97_v58, %v105_v59  ;;  %v7721_v1 = vcombine.high %v98_v60, %v106_v61  ;;  %v202_v51 = vld [vmem:[#allocation5 + $0x378] sm:$0xff] }
 0x1c3   :  { %3635 = vmatpush1.bf16.msra.mxu0 %v8114_v6  ;;  %3717 = vmatpush1.bf16.msra.mxu1 %v8116_v7  ;;  %v7718_v6 = vcombine.low %v97_v58, %v105_v59  ;;  %v7720_v7 = vcombine.low %v98_v60, %v106_v61  ;;  %v217_v58 = vld [vmem:[#allocation5 + $0x3f0] sm:$0xff]  ;;  %v210_v59 = vld [vmem:[#allocation5 + $0x3b8] sm:$0xff] }
 0x1c4   :  { %3636 = vmatprep.subr.bf16.mxu0 %v8131_v8  ;;  %3718 = vmatprep.subr.bf16.mxu1 %v8133_v9  ;;  %v7735_v8 = vcombine.high %v113_v2, %v121_v3  ;;  %v7737_v9 = vcombine.high %v114_v4, %v122_v5  ;;  %v218_v60 = vld [vmem:[#allocation5 + $0x3f8] sm:$0xff] }
 0x1c7   :  { %3637 = vmatpush1.bf16.msra.mxu0 %v8130_v15  ;;  %3719 = vmatpush1.bf16.msra.mxu1 %v8132_v16  ;;  %v7734_v15 = vcombine.low %v113_v2, %v121_v3  ;;  %v7736_v16 = vcombine.low %v114_v4, %v122_v5  ;;  %v233_v2 = vld [vmem:[#allocation5 + $0x470] sm:$0xff]  ;;  %v226_v3 = vld [vmem:[#allocation5 + $0x438] sm:$0xff] }
 0x1c8   :  { %3638 = vmatprep.subr.bf16.mxu0 %v8147_v17  ;;  %3720 = vmatprep.subr.bf16.mxu1 %v8149_v18  ;;  %v7751_v17 = vcombine.high %v129_v10, %v137_v11  ;;  %v7753_v18 = vcombine.high %v130_v13, %v138_v14  ;;  %v234_v4 = vld [vmem:[#allocation5 + $0x478] sm:$0xff] }
 0x1cb   :  { %3639 = vmatpush1.bf16.msra.mxu0 %v8146_v25  ;;  %3721 = vmatpush1.bf16.msra.mxu1 %v8148_v26  ;;  %v7750_v25 = vcombine.low %v129_v10, %v137_v11  ;;  %v7752_v26 = vcombine.low %v130_v13, %v138_v14  ;;  %v249_v10 = vld [vmem:[#allocation5 + $0x4f0] sm:$0xff]  ;;  %v242_v11 = vld [vmem:[#allocation5 + $0x4b8] sm:$0xff] }
 0x1cc   :  { %3640 = vmatprep.subr.bf16.mxu0 %v8163_v27  ;;  %3722 = vmatprep.subr.bf16.mxu1 %v8165_v28  ;;  %v7767_v27 = vcombine.high %v145_v19, %v153_v20  ;;  %v7769_v28 = vcombine.high %v146_v21, %v154_v22  ;;  %v250_v13 = vld [vmem:[#allocation5 + $0x4f8] sm:$0xff] }
 0x1cf   :  { %3641 = vmatpush1.bf16.msra.mxu0 %v8162_v34  ;;  %3723 = vmatpush1.bf16.msra.mxu1 %v8164_v35  ;;  %v7766_v34 = vcombine.low %v145_v19, %v153_v20  ;;  %v7768_v35 = vcombine.low %v146_v21, %v154_v22  ;;  %v265_v19 = vld [vmem:[#allocation5 + $0x570] sm:$0xff]  ;;  %v258_v20 = vld [vmem:[#allocation5 + $0x538] sm:$0xff] }
 0x1d0   :  { %3642 = vmatprep.subr.bf16.mxu0 %v8179_v38  ;;  %3724 = vmatprep.subr.bf16.mxu1 %v8181_v39  ;;  %v7783_v38 = vcombine.high %v161_v29, %v169_v30  ;;  %v177_v39 = vld [vmem:[#allocation5 + $0x2b0] sm:$0xff]  ;;  %v266_v21 = vld [vmem:[#allocation5 + $0x578] sm:$0xff] }
 0x1d1   :  { %v7798_v52 = vcombine.low %v177_v39, %v185_v41  ;;  %v281_v29 = vld [vmem:[#allocation5 + $0x5f0] sm:$0xff]  ;;  %v274_v30 = vld [vmem:[#allocation5 + $0x5b8] sm:$0xff] }
 0x1d3   :  { %3643 = vmatpush1.bf16.msra.mxu0 %v8178_v45  ;;  %3725 = vmatpush1.bf16.msra.mxu1 %v8180_v46  ;;  %v7784_v45 = vcombine.low %v162_v31, %v170_v33  ;;  %v7799_v46 = vcombine.high %v177_v39, %v185_v41  ;;  %v297_v39 = vld [vmem:[#allocation5 + $0x670] sm:$0xff]  ;;  %v290_v41 = vld [vmem:[#allocation5 + $0x638] sm:$0xff] }
 0x1d4   :  { %3644 = vmatprep.subr.bf16.mxu0 %v8195_v47  ;;  %3726 = vmatprep.subr.bf16.mxu1 %v8197_v48  ;;  %v7801_v47 = vcombine.high %v178_v42, %v186_v43  ;;  %v193_v48 = vld [vmem:[#allocation5 + $0x330] sm:$0xff] }
 0x1d5   :  { %v7814_v61 = vcombine.low %v193_v48, %v201_v49 }
 0x1d7   :  { %3645 = vmatpush1.bf16.msra.mxu0 %v8194_v53  ;;  %3727 = vmatpush1.bf16.msra.mxu1 %v8196_v54  ;;  %v7800_v53 = vcombine.low %v178_v42, %v186_v43  ;;  %v7815_v54 = vcombine.high %v193_v48, %v201_v49  ;;  %v298_v42 = vld [vmem:[#allocation5 + $0x678] sm:$0xff]  ;;  %v313_v48 = vld [vmem:[#allocation5 + $0x6f0] sm:$0xff] }
 0x1d8   :  { %3646 = vmatprep.subr.bf16.mxu0 %v8211_v55  ;;  %3728 = vmatprep.subr.bf16.mxu1 %v8213_v56  ;;  %v7817_v55 = vcombine.high %v194_v50, %v202_v51  ;;  %v209_v56 = vld [vmem:[#allocation5 + $0x3b0] sm:$0xff]  ;;  %v306_v49 = vld [vmem:[#allocation5 + $0x6b8] sm:$0xff] }
 0x1d9   :  { %v7830_v5 = vcombine.low %v209_v56, %v217_v58 }
 0x1db   :  { %3647 = vmatpush1.bf16.msra.mxu0 %v8210_v62  ;;  %3729 = vmatpush1.bf16.msra.mxu1 %v8212_v63  ;;  %v7816_v62 = vcombine.low %v194_v50, %v202_v51  ;;  %v7831_v63 = vcombine.high %v209_v56, %v217_v58  ;;  %v314_v50 = vld [vmem:[#allocation5 + $0x6f8] sm:$0xff]  ;;  %v329_v56 = vld [vmem:[#allocation5 + $0x770] sm:$0xff] }
 0x1dc   :  { %3739 = vmatprep.subr.bf16.mxu0 %v7719_v0  ;;  %3821 = vmatprep.subr.bf16.mxu1 %v7721_v1  ;;  %v7833_v0 = vcombine.high %v210_v59, %v218_v60  ;;  %v225_v1 = vld [vmem:[#allocation5 + $0x430] sm:$0xff]  ;;  %v322_v58 = vld [vmem:[#allocation5 + $0x738] sm:$0xff] }
 0x1dd   :  { %v7846_v14 = vcombine.low %v225_v1, %v233_v2 }
 0x1de   :  { %3649 = vmatmul.mubr.bf16.vlgmr.msra.gmra.mrb[8].mxu0 %v9870_v23  ;;  %3731 = vmatmul.mubr.bf16.vlgmr.msra.gmra.mrb[8].mxu1 %v9870_v23 }
 0x1df   :  { %3740 = vmatpush1.bf16.msra.mxu0 %v7718_v6  ;;  %3822 = vmatpush1.bf16.msra.mxu1 %v7720_v7  ;;  %v7832_v6 = vcombine.low %v210_v59, %v218_v60  ;;  %v7847_v7 = vcombine.high %v225_v1, %v233_v2  ;;  %v330_v59 = vld [vmem:[#allocation5 + $0x778] sm:$0xff]  ;;  %v345_v1 = vld [vmem:[#allocation5 + $0x7f0] sm:$0xff] }
 0x1e0   :  { %3741 = vmatprep.subr.bf16.mxu0 %v7735_v8  ;;  %3823 = vmatprep.subr.bf16.mxu1 %v7737_v9  ;;  %v7849_v8 = vcombine.high %v226_v3, %v234_v4  ;;  %v241_v9 = vld [vmem:[#allocation5 + $0x4b0] sm:$0xff]  ;;  %v338_v2 = vld [vmem:[#allocation5 + $0x7b8] sm:$0xff] }
 0x1e1   :  { %3771 = vmatprep.mubr.bf16.mxu0 %v9858_v57  ;;  %3853 = vmatprep.mubr.bf16.mxu1 %v9858_v57  ;;  %v7785_v57 = vcombine.high %v162_v31, %v170_v33  ;;  %v7862_v22 = vcombine.low %v241_v9, %v249_v10  ;;  %v282_v31 = vld [vmem:[#allocation5 + $0x5f8] sm:$0xff] }
 0x1e3   :  { %3742 = vmatpush1.bf16.msra.mxu0 %v7734_v15  ;;  %3824 = vmatpush1.bf16.msra.mxu1 %v7736_v16  ;;  %v7848_v15 = vcombine.low %v226_v3, %v234_v4  ;;  %v7863_v16 = vcombine.high %v241_v9, %v249_v10  ;;  %v346_v3 = vld [vmem:[#allocation5 + $0x7f8] sm:$0xff]  ;;  %v361_v9 = vld [vmem:[#allocation5 + $0x870] sm:$0xff] }
 0x1e4   :  { %3743 = vmatprep.subr.bf16.mxu0 %v7751_v17  ;;  %3825 = vmatprep.subr.bf16.mxu1 %v7753_v18  ;;  %v7865_v17 = vcombine.high %v242_v11, %v250_v13  ;;  %v257_v18 = vld [vmem:[#allocation5 + $0x530] sm:$0xff]  ;;  %v354_v10 = vld [vmem:[#allocation5 + $0x838] sm:$0xff] }
 0x1e5   :  { %v7878_v33 = vcombine.low %v257_v18, %v265_v19 }
 0x1e7   :  { %3744 = vmatpush1.bf16.msra.mxu0 %v7750_v25  ;;  %3826 = vmatpush1.bf16.msra.mxu1 %v7752_v26  ;;  %v7864_v25 = vcombine.low %v242_v11, %v250_v13  ;;  %v7879_v26 = vcombine.high %v257_v18, %v265_v19  ;;  %v362_v11 = vld [vmem:[#allocation5 + $0x878] sm:$0xff]  ;;  %v377_v18 = vld [vmem:[#allocation5 + $0x8f0] sm:$0xff] }
 0x1e8   :  { %3745 = vmatprep.subr.bf16.mxu0 %v7767_v27  ;;  %3827 = vmatprep.subr.bf16.mxu1 %v7769_v28  ;;  %v7881_v27 = vcombine.high %v258_v20, %v266_v21  ;;  %v273_v28 = vld [vmem:[#allocation5 + $0x5b0] sm:$0xff]  ;;  %v370_v19 = vld [vmem:[#allocation5 + $0x8b8] sm:$0xff] }
 0x1e9   :  { %v7894_v43 = vcombine.low %v273_v28, %v281_v29 }
 0x1eb   :  { %3746 = vmatpush1.bf16.msra.mxu0 %v7766_v34  ;;  %3828 = vmatpush1.bf16.msra.mxu1 %v7768_v35  ;;  %v7880_v34 = vcombine.low %v258_v20, %v266_v21  ;;  %v7895_v35 = vcombine.high %v273_v28, %v281_v29  ;;  %v378_v20 = vld [vmem:[#allocation5 + $0x8f8] sm:$0xff]  ;;  %v393_v28 = vld [vmem:[#allocation5 + $0x970] sm:$0xff] }
 0x1ec   :  { %3747 = vmatprep.subr.bf16.mxu0 %v7783_v38  ;;  %3829 = vmatprep.subr.bf16.mxu1 %v7785_v57  ;;  %v7897_v38 = vcombine.high %v274_v30, %v282_v31  ;;  %v289_v57 = vld [vmem:[#allocation5 + $0x630] sm:$0xff]  ;;  %v386_v29 = vld [vmem:[#allocation5 + $0x938] sm:$0xff] }
 0x1ed   :  { %v7910_v51 = vcombine.low %v289_v57, %v297_v39 }
 0x1ef   :  { %3748 = vmatpush1.bf16.msra.mxu0 %v7782_v44  ;;  %3830 = vmatpush1.bf16.msra.mxu1 %v7784_v45  ;;  %v7896_v44 = vcombine.low %v274_v30, %v282_v31  ;;  %v7911_v45 = vcombine.high %v289_v57, %v297_v39  ;;  %v394_v30 = vld [vmem:[#allocation5 + $0x978] sm:$0xff]  ;;  %v409_v57 = vld [vmem:[#allocation5 + $0x9f0] sm:$0xff] }
 0x1f0   :  { %3749 = vmatprep.subr.bf16.mxu0 %v7799_v46  ;;  %3831 = vmatprep.subr.bf16.mxu1 %v7801_v47  ;;  %v7913_v46 = vcombine.high %v290_v41, %v298_v42  ;;  %v305_v47 = vld [vmem:[#allocation5 + $0x6b0] sm:$0xff]  ;;  %v402_v39 = vld [vmem:[#allocation5 + $0x9b8] sm:$0xff] }
 0x1f1   :  { %v7926_v60 = vcombine.low %v305_v47, %v313_v48 }
 0x1f3   :  { %3750 = vmatpush1.bf16.msra.mxu0 %v7798_v52  ;;  %3832 = vmatpush1.bf16.msra.mxu1 %v7800_v53  ;;  %v7912_v52 = vcombine.low %v290_v41, %v298_v42  ;;  %v7927_v53 = vcombine.high %v305_v47, %v313_v48  ;;  %v410_v41 = vld [vmem:[#allocation5 + $0x9f8] sm:$0xff] }
 0x1f4   :  { %3751 = vmatprep.subr.bf16.mxu0 %v7815_v54  ;;  %3833 = vmatprep.subr.bf16.mxu1 %v7817_v55  ;;  %v7929_v54 = vcombine.high %v306_v49, %v314_v50  ;;  %v321_v55 = vld [vmem:[#allocation5 + $0x730] sm:$0xff]  ;;  %v418_v47 = vld [vmem:[#allocation5 + $0xa38] sm:$0xff] }
 0x1f5   :  { %v7942_v4 = vcombine.low %v321_v55, %v329_v56  ;;  %v426_v48 = vld [vmem:[#allocation5 + $0xa78] sm:$0xff] }
 0x1f7   :  { %3752 = vmatpush1.bf16.msra.mxu0 %v7814_v61  ;;  %3834 = vmatpush1.bf16.msra.mxu1 %v7816_v62  ;;  %v7928_v61 = vcombine.low %v306_v49, %v314_v50  ;;  %v7943_v62 = vcombine.high %v321_v55, %v329_v56  ;;  %v8024_v50 = vcombine.low %v402_v39, %v410_v41  ;;  %v442_v55 = vld [vmem:[#allocation5 + $0xaf8] sm:$0xff] }
 0x1f8   :  { %3753 = vmatprep.subr.bf16.mxu0 %v7831_v63  ;;  %3835 = vmatprep.subr.bf16.mxu1 %v7833_v0  ;;  %v7945_v63 = vcombine.high %v322_v58, %v330_v59  ;;  %v337_v0 = vld [vmem:[#allocation5 + $0x7b0] sm:$0xff] }
 0x1f9   :  { %v7958_v13 = vcombine.low %v337_v0, %v345_v1 }
 0x1fb   :  { %3754 = vmatpush1.bf16.msra.mxu0 %v7830_v5  ;;  %3836 = vmatpush1.bf16.msra.mxu1 %v7832_v6  ;;  %v7944_v5 = vcombine.low %v322_v58, %v330_v59  ;;  %v7959_v6 = vcombine.high %v337_v0, %v345_v1  ;;  %v8040_v58 = vcombine.low %v418_v47, %v426_v48  ;;  %v458_v0 = vld [vmem:[#allocation5 + $0xb78] sm:$0xff] }
 0x1fc   :  { %3755 = vmatprep.subr.bf16.mxu0 %v7847_v7  ;;  %3837 = vmatprep.subr.bf16.mxu1 %v7849_v8  ;;  %v7961_v7 = vcombine.high %v338_v2, %v346_v3  ;;  %v353_v8 = vld [vmem:[#allocation5 + $0x830] sm:$0xff] }
 0x1fd   :  { %v7974_v21 = vcombine.low %v353_v8, %v361_v9 }
 0x1ff   :  { %3756 = vmatpush1.bf16.msra.mxu0 %v7846_v14  ;;  %3838 = vmatpush1.bf16.msra.mxu1 %v7848_v15  ;;  %v7960_v14 = vcombine.low %v338_v2, %v346_v3  ;;  %v7975_v15 = vcombine.high %v353_v8, %v361_v9 }
 0x200   :  { %3757 = vmatprep.subr.bf16.mxu0 %v7863_v16  ;;  %3839 = vmatprep.subr.bf16.mxu1 %v7865_v17  ;;  %v7977_v16 = vcombine.high %v354_v10, %v362_v11  ;;  %v369_v17 = vld [vmem:[#allocation5 + $0x8b0] sm:$0xff] }
 0x201   :  { %v7990_v31 = vcombine.low %v369_v17, %v377_v18 }
 0x203   :  { %3758 = vmatpush1.bf16.msra.mxu0 %v7862_v22  ;;  %3840 = vmatpush1.bf16.msra.mxu1 %v7864_v25  ;;  %v7976_v22 = vcombine.low %v354_v10, %v362_v11  ;;  %v7991_v25 = vcombine.high %v369_v17, %v377_v18  ;;  %v466_v10 = vld [vmem:[#allocation5 + $0xbb8] sm:$0xff] }
 0x204   :  { %3759 = vmatprep.subr.bf16.mxu0 %v7879_v26  ;;  %3841 = vmatprep.subr.bf16.mxu1 %v7881_v27  ;;  %v7993_v26 = vcombine.high %v370_v19, %v378_v20  ;;  %v385_v27 = vld [vmem:[#allocation5 + $0x930] sm:$0xff]  ;;  %v474_v11 = vld [vmem:[#allocation5 + $0xbf8] sm:$0xff] }
 0x205   :  { %v8006_v42 = vcombine.low %v385_v27, %v393_v28 }
 0x207   :  { %3760 = vmatpush1.bf16.msra.mxu0 %v7878_v33  ;;  %3842 = vmatpush1.bf16.msra.mxu1 %v7880_v34  ;;  %v7992_v33 = vcombine.low %v370_v19, %v378_v20  ;;  %v8007_v34 = vcombine.high %v385_v27, %v393_v28  ;;  %v490_v27 = vld [vmem:[#allocation5 + $0xc78] sm:$0xff] }
 0x208   :  { %3761 = vmatprep.subr.bf16.mxu0 %v7895_v35  ;;  %3843 = vmatprep.subr.bf16.mxu1 %v7897_v38  ;;  %v8009_v35 = vcombine.high %v386_v29, %v394_v30  ;;  %v401_v38 = vld [vmem:[#allocation5 + $0x9b0] sm:$0xff] }
 0x209   :  { %v8022_v49 = vcombine.low %v401_v38, %v409_v57 }
 0x20b   :  { %3762 = vmatpush1.bf16.msra.mxu0 %v7894_v43  ;;  %3844 = vmatpush1.bf16.msra.mxu1 %v7896_v44  ;;  %v8023_v43 = vcombine.high %v401_v38, %v409_v57  ;;  %v8025_v44 = vcombine.high %v402_v39, %v410_v41  ;;  %v506_v38 = vld [vmem:[#allocation5 + $0xcf8] sm:$0xff] }
 0x20c   :  { %3763 = vmatprep.subr.bf16.mxu0 %v7911_v45  ;;  %3845 = vmatprep.subr.bf16.mxu1 %v7913_v46  ;;  %v417_v45 = vld [vmem:[#allocation5 + $0xa30] sm:$0xff] }
 0x20d   :  { %v425_v46 = vld [vmem:[#allocation5 + $0xa70] sm:$0xff] }
 0x20e   :  { %v8038_v56 = vcombine.low %v417_v45, %v425_v46 }
 0x20f   :  { %3764 = vmatpush1.bf16.msra.mxu0 %v7910_v51  ;;  %3846 = vmatpush1.bf16.msra.mxu1 %v7912_v52  ;;  %v8039_v51 = vcombine.high %v417_v45, %v425_v46  ;;  %v433_v52 = vld [vmem:[#allocation5 + $0xab0] sm:$0xff]  ;;  %v522_v45 = vld [vmem:[#allocation5 + $0xd78] sm:$0xff] }
 0x210   :  { %3765 = vmatprep.subr.bf16.mxu0 %v7927_v53  ;;  %3847 = vmatprep.subr.bf16.mxu1 %v7929_v54  ;;  %v441_v53 = vld [vmem:[#allocation5 + $0xaf0] sm:$0xff]  ;;  %v434_v54 = vld [vmem:[#allocation5 + $0xab8] sm:$0xff] }
 0x211   :  { %v8055_v59 = vcombine.high %v433_v52, %v441_v53  ;;  %v8054_v1 = vcombine.low %v433_v52, %v441_v53  ;;  %v8056_v2 = vcombine.low %v434_v54, %v442_v55  ;;  %v538_v52 = vld [vmem:[#allocation5 + $0xdf8] sm:$0xff] }
 0x213   :  { %3766 = vmatpush1.bf16.msra.mxu0 %v7926_v60  ;;  %3848 = vmatpush1.bf16.msra.mxu1 %v7928_v61  ;;  %v8057_v60 = vcombine.high %v434_v54, %v442_v55  ;;  %v449_v61 = vld [vmem:[#allocation5 + $0xb30] sm:$0xff] }
 0x214   :  { %3767 = vmatprep.subr.bf16.mxu0 %v7943_v62  ;;  %3849 = vmatprep.subr.bf16.mxu1 %v7945_v63  ;;  %v457_v62 = vld [vmem:[#allocation5 + $0xb70] sm:$0xff]  ;;  %v450_v63 = vld [vmem:[#allocation5 + $0xb38] sm:$0xff] }
 0x215   :  { %v8071_v3 = vcombine.high %v449_v61, %v457_v62  ;;  %v8072_v18 = vcombine.low %v450_v63, %v458_v0 }
 0x217   :  { %3768 = vmatpush1.bf16.msra.mxu0 %v7942_v4  ;;  %3850 = vmatpush1.bf16.msra.mxu1 %v7944_v5  ;;  %v8073_v5 = vcombine.high %v450_v63, %v458_v0 }
 0x218   :  { %3769 = vmatprep.subr.bf16.mxu0 %v7959_v6  ;;  %3851 = vmatprep.subr.bf16.mxu1 %v7961_v7  ;;  %v465_v6 = vld [vmem:[#allocation5 + $0xbb0] sm:$0xff] }
 0x219   :  { %v473_v7 = vld [vmem:[#allocation5 + $0xbf0] sm:$0xff] }
 0x21a   :  { %v8087_v19 = vcombine.high %v465_v6, %v473_v7  ;;  %v8086_v28 = vcombine.low %v465_v6, %v473_v7  ;;  %v562_v7 = vld [vmem:[#allocation5 + $0xeb8] sm:$0xff] }
 0x21b   :  { %3770 = vmatpush1.bf16.msra.mxu0 %v7958_v13  ;;  %3852 = vmatpush1.bf16.msra.mxu1 %v7960_v14 }
 0x21c   :  { %3780 = vmatprep.subr.bf16.mxu0 %v7975_v15  ;;  %3862 = vmatprep.subr.bf16.mxu1 %v7977_v16  ;;  %v8070_v15 = vcombine.low %v449_v61, %v457_v62  ;;  %v546_v61 = vld [vmem:[#allocation5 + $0xe38] sm:$0xff] }
 0x21d   :  { %v554_v62 = vld [vmem:[#allocation5 + $0xe78] sm:$0xff] }
 0x21e   :  { %3772 = vmatmul.mubr.bf16.vlgmr.msra.gmra.mrb[12].mxu0 %v9862_v12  ;;  %3854 = vmatmul.mubr.bf16.vlgmr.msra.gmra.mrb[12].mxu1 %v9862_v12  ;;  %v8008_v12 = vcombine.low %v386_v29, %v394_v30  ;;  %v8088_v29 = vcombine.low %v466_v10, %v474_v11 }
 0x21f   :  { %3781 = vmatpush1.bf16.msra.mxu0 %v7974_v21  ;;  %3863 = vmatpush1.bf16.msra.mxu1 %v7976_v22  ;;  %v8089_v21 = vcombine.high %v466_v10, %v474_v11  ;;  %v481_v22 = vld [vmem:[#allocation5 + $0xc30] sm:$0xff]  ;;  %v570_v10 = vld [vmem:[#allocation5 + $0xef8] sm:$0xff] }
 0x220   :  { %3782 = vmatprep.subr.bf16.mxu0 %v7991_v25  ;;  %3864 = vmatprep.subr.bf16.mxu1 %v7993_v26  ;;  %v489_v25 = vld [vmem:[#allocation5 + $0xc70] sm:$0xff]  ;;  %v482_v26 = vld [vmem:[#allocation5 + $0xc38] sm:$0xff] }
 0x221   :  { %3812 = vmatprep.mubr.bf16.mxu0 %v9864_v24  ;;  %3894 = vmatprep.mubr.bf16.mxu1 %v9864_v24  ;;  %v8041_v24 = vcombine.high %v418_v47, %v426_v48  ;;  %v8103_v30 = vcombine.high %v481_v22, %v489_v25  ;;  %v8102_v57 = vcombine.low %v481_v22, %v489_v25  ;;  %v9917_v22 = vld [vmem:[#allocation7] sm:$0xff] }
 0x222   :  { %v8104_v39 = vcombine.low %v482_v26, %v490_v27 }
 0x223   :  { %3783 = vmatpush1.bf16.msra.mxu0 %v7990_v31  ;;  %3865 = vmatpush1.bf16.msra.mxu1 %v7992_v33  ;;  %v8105_v31 = vcombine.high %v482_v26, %v490_v27  ;;  %v497_v33 = vld [vmem:[#allocation5 + $0xcb0] sm:$0xff]  ;;  %v8184_v26 = vcombine.low %v562_v7, %v570_v10 }
 0x224   :  { %3784 = vmatprep.subr.bf16.mxu0 %v8007_v34  ;;  %3866 = vmatprep.subr.bf16.mxu1 %v8009_v35  ;;  %v505_v34 = vld [vmem:[#allocation5 + $0xcf0] sm:$0xff]  ;;  %v498_v35 = vld [vmem:[#allocation5 + $0xcb8] sm:$0xff] }
 0x225   :  { %v8119_v41 = vcombine.high %v497_v33, %v505_v34  ;;  %v8118_v46 = vcombine.low %v497_v33, %v505_v34  ;;  %v8120_v47 = vcombine.low %v498_v35, %v506_v38  ;;  %v594_v33 = vld [vmem:[#allocation5 + $0xfb8] sm:$0xff] }
 0x226   :  { %v602_v34 = vld [vmem:[#allocation5 + $0xff8] sm:$0xff] }
 0x227   :  { %3785 = vmatpush1.bf16.msra.mxu0 %v8006_v42  ;;  %3867 = vmatpush1.bf16.msra.mxu1 %v8008_v12  ;;  %v8121_v42 = vcombine.high %v498_v35, %v506_v38  ;;  %v513_v12 = vld [vmem:[#allocation5 + $0xd30] sm:$0xff] }
 0x228   :  { %3786 = vmatprep.subr.bf16.mxu0 %v8023_v43  ;;  %3868 = vmatprep.subr.bf16.mxu1 %v8025_v44  ;;  %v521_v43 = vld [vmem:[#allocation5 + $0xd70] sm:$0xff]  ;;  %v514_v44 = vld [vmem:[#allocation5 + $0xd38] sm:$0xff] }
 0x229   :  { %v8135_v48 = vcombine.high %v513_v12, %v521_v43  ;;  %v8134_v53 = vcombine.low %v513_v12, %v521_v43  ;;  %v8136_v54 = vcombine.low %v514_v44, %v522_v45  ;;  %v8216_v12 = vcombine.low %v594_v33, %v602_v34  ;;  %v8850_v43 = vld [vmem:[#allocation8 + $0x4] ss:$16 sps:$4 sm:$0xff]  }
 0x22b   :  { %3787 = vmatpush1.bf16.msra.mxu0 %v8022_v49  ;;  %3869 = vmatpush1.bf16.msra.mxu1 %v8024_v50  ;;  %v8137_v49 = vcombine.high %v514_v44, %v522_v45  ;;  %v529_v50 = vld [vmem:[#allocation5 + $0xdb0] sm:$0xff]  ;;  %v8853_v44 = vld [vmem:[#allocation8 + $0xc] ss:$16 sps:$4 sm:$0xff]  }
 0x22c   :  { %3788 = vmatprep.subr.bf16.mxu0 %v8039_v51  ;;  %3870 = vmatprep.subr.bf16.mxu1 %v8041_v24  ;;  %v537_v51 = vld [vmem:[#allocation5 + $0xdf0] sm:$0xff]  ;;  %v530_v24 = vld [vmem:[#allocation5 + $0xdb8] sm:$0xff] }
 0x22d   :  { %v8151_v55 = vcombine.high %v529_v50, %v537_v51  ;;  %v8150_v63 = vcombine.low %v529_v50, %v537_v51  ;;  %v8152_v0 = vcombine.low %v530_v24, %v538_v52  ;;  %v8854_v50 = vld [vmem:[#allocation8 + $0x20] ss:$16 sps:$4 sm:$0xff]   ;;  %v8857_v51 = vld [vmem:[#allocation8 + $0x28] ss:$16 sps:$4 sm:$0xff]  }
 0x22f   :  { %3789 = vmatpush1.bf16.msra.mxu0 %v8038_v56  ;;  %3871 = vmatpush1.bf16.msra.mxu1 %v8040_v58  ;;  %v8153_v56 = vcombine.high %v530_v24, %v538_v52  ;;  %v545_v58 = vld [vmem:[#allocation5 + $0xe30] sm:$0xff]  ;;  %v8865_v52 = vld [vmem:[#allocation8 + $0x4c] ss:$16 sps:$4 sm:$0xff]  }
 0x230   :  { %3790 = vmatprep.subr.bf16.mxu0 %v8055_v59  ;;  %3872 = vmatprep.subr.bf16.mxu1 %v8057_v60  ;;  %v553_v59 = vld [vmem:[#allocation5 + $0xe70] sm:$0xff]  ;;  %v607_v60 = vlaneseq }
 0x231   :  { %v9904_v4 = vpop.f32.mrb[4].mxu0  ;;  %v9906_v8 = vpop.f32.mrb[4].mxu1  ;;  %v8166_v11 = vcombine.low %v545_v58, %v553_v59  ;;  %v8862_v24 = vld [vmem:[#allocation8 + $0x44] ss:$16 sps:$4 sm:$0xff]  }
 0x232   :  { %v9908_v9 = vpop.f32.mrb[5].mxu0  ;;  %v9910_v13 = vpop.f32.mrb[5].mxu1  ;;  %v9912_v6 = vshrl.u32 %v607_v60, 7  ;;  %v8877_v60 = vld [vmem:[#allocation8 + $0x8c] ss:$16 sps:$4 sm:$0xff]  }
 0x233   :  { %v3490_v14 = vpop.f32.mrb[6].mxu0  ;;  %3791 = vmatpush1.bf16.msra.mxu0 %v8054_v1  ;;  %v3572_v16 = vpop.f32.mrb[6].mxu1  ;;  %3873 = vmatpush1.bf16.msra.mxu1 %v8056_v2  ;;  %v8167_v1 = vcombine.high %v545_v58, %v553_v59  ;;  %v8169_v2 = vcombine.high %v546_v61, %v554_v62  ;;  %v8869_v58 = vld [vmem:[#allocation8 + $0x68] ss:$16 sps:$4 sm:$0xff]   ;;  %v8874_v59 = vld [vmem:[#allocation8 + $0x84] ss:$16 sps:$4 sm:$0xff]  }
 0x234   :  { %v3491_v17 = vpop.f32.mrb[7].mxu0  ;;  %3792 = vmatprep.subr.bf16.mxu0 %v8071_v3  ;;  %v3573_v20 = vpop.f32.mrb[7].mxu1  ;;  %3874 = vmatprep.subr.bf16.mxu1 %v8073_v5  ;;  %v561_v3 = vld [vmem:[#allocation5 + $0xeb0] sm:$0xff]  ;;  %v8168_v14 = vcombine.low %v546_v61, %v554_v62  ;;  %v8185_v16 = vcombine.high %v562_v7, %v570_v10  ;;  %v8875_v62 = vld [vmem:[#allocation8 + $0x88] ss:$16 sps:$4 sm:$0xff]  }
 0x235   :  { %v569_v5 = vld [vmem:[#allocation5 + $0xef0] sm:$0xff]  ;;  %v578_v20 = vld [vmem:[#allocation5 + $0xf38] sm:$0xff] }
 0x236   :  { %v577_v17 = vld [vmem:[#allocation5 + $0xf30] sm:$0xff]  ;;  %v8182_v25 = vcombine.low %v561_v3, %v569_v5  ;;  %v8887_v10 = vld [vmem:[#allocation8 + $0xc8] ss:$16 sps:$4 sm:$0xff]  }
 0x237   :  { %3793 = vmatpush1.bf16.msra.mxu0 %v8070_v15  ;;  %3875 = vmatpush1.bf16.msra.mxu1 %v8072_v18  ;;  %v8183_v15 = vcombine.high %v561_v3, %v569_v5  ;;  %v585_v18 = vld [vmem:[#allocation5 + $0xf70] sm:$0xff]  ;;  %v8889_v5 = vld [vmem:[#allocation8 + $0xcc] ss:$16 sps:$4 sm:$0xff]  }
 0x238   :  { %3794 = vmatprep.subr.bf16.mxu0 %v8087_v19  ;;  %3876 = vmatprep.subr.bf16.mxu1 %v8089_v21  ;;  %v9915_v19 = vsub.s32 1, %v9912_v6  ;;  %v586_v21 = vld [vmem:[#allocation5 + $0xf78] sm:$0xff]  ;;  %v8199_v27 = vcombine.high %v577_v17, %v585_v18  ;;  %v8198_v35 = vcombine.low %v577_v17, %v585_v18  ;;  %v8872_v61 = vld [vmem:[#allocation8 + $0x80] ss:$16 sps:$4 sm:$0xff]   ;;  %v8886_v3 = vld [vmem:[#allocation8 + $0xc4] ss:$16 sps:$4 sm:$0xff]  }
 0x239   :  { %v8200_v38 = vcombine.low %v578_v20, %v586_v21  ;;  %v8884_v7 = vld [vmem:[#allocation8 + $0xc0] ss:$16 sps:$4 sm:$0xff]   ;;  %v8898_v17 = vld [vmem:[#allocation8 + $0x104] ss:$16 sps:$4 sm:$0xff]   ;;  %v8901_v18 = vld [vmem:[#allocation8 + $0x10c] ss:$16 sps:$4 sm:$0xff]  }
 0x23b   :  { %3795 = vmatpush1.bf16.msra.mxu0 %v8086_v28  ;;  %3877 = vmatpush1.bf16.msra.mxu1 %v8088_v29  ;;  %v8201_v28 = vcombine.high %v578_v20, %v586_v21  ;;  %v593_v29 = vld [vmem:[#allocation5 + $0xfb0] sm:$0xff]  ;;  %v8899_v21 = vld [vmem:[#allocation8 + $0x108] ss:$16 sps:$4 sm:$0xff]  }
 0x23c   :  { %3796 = vmatprep.subr.bf16.mxu0 %v8103_v30  ;;  %3878 = vmatprep.subr.bf16.mxu1 %v8105_v31  ;;  %v601_v30 = vld [vmem:[#allocation5 + $0xff0] sm:$0xff]  ;;  %v614_v31 = vrot.slane %v9917_v22, %v9915_v19 }
 0x23d   :  { %v8896_v20 = vld [vmem:[#allocation8 + $0x100] ss:$16 sps:$4 sm:$0xff]  }
 0x23f   :  { %3797 = vmatpush1.bf16.msra.mxu0 %v8102_v57  ;;  %3879 = vmatpush1.bf16.msra.mxu1 %v8104_v39  ;;  %v8215_v57 = vcombine.high %v593_v29, %v601_v30  ;;  %v8217_v39 = vcombine.high %v594_v33, %v602_v34  ;;  %v8911_v33 = vld [vmem:[#allocation8 + $0x148] ss:$16 sps:$4 sm:$0xff]   ;;  %v8916_v34 = vld [vmem:[#allocation8 + $0x164] ss:$16 sps:$4 sm:$0xff]  }
 0x240   :  { %3798 = vmatprep.subr.bf16.mxu0 %v8119_v41  ;;  %3880 = vmatprep.subr.bf16.mxu1 %v8121_v42  ;;  %v8731_v41 = vadd.f32 %v9892_v37, %v614_v31  ;;  %v8214_v42 = vcombine.low %v593_v29, %v601_v30  ;;  %v8859_v37 = vld [vmem:[#allocation8 + $0x2c] ss:$16 sps:$4 sm:$0xff]   ;;  %v8910_v29 = vld [vmem:[#allocation8 + $0x144] ss:$16 sps:$4 sm:$0xff]   ;;  %v8908_v31 = vld [vmem:[#allocation8 + $0x140] ss:$16 sps:$4 sm:$0xff]  }
 0x241   :  { %v8913_v30 = vld [vmem:[#allocation8 + $0x14c] ss:$16 sps:$4 sm:$0xff]  }
 0x242   :  { %v3904_v45 = vmax.f32 %v8731_v41, 0.0  ;;  %v8925_v41 = vld [vmem:[#allocation8 + $0x18c] ss:$16 sps:$4 sm:$0xff]  }
 0x243   :  { %3799 = vmatpush1.bf16.msra.mxu0 %v8118_v46  ;;  %3881 = vmatpush1.bf16.msra.mxu1 %v8120_v47  ;;  %v8848_v46 = vld [vmem:[#allocation8] ss:$16 sps:$4 sm:$0xff]   ;;  %v8851_v47 = vld [vmem:[#allocation8 + $0x8] ss:$16 sps:$4 sm:$0xff]  }
 0x244   :  { %3800 = vmatprep.subr.bf16.mxu0 %v8135_v48  ;;  %3882 = vmatprep.subr.bf16.mxu1 %v8137_v49  ;;  %v8856_v48 = vld [vmem:[#allocation8 + $0x24] ss:$16 sps:$4 sm:$0xff]   ;;  %v3920_v49 = vpack.c.bf16 %v3904_v45, %v3904_v45  ;;  %v8931_v45 = vld [vmem:[#allocation8 + $0x1ac] ss:$16 sps:$4 sm:$0xff]  }
 0x247   :  { %3801 = vmatpush1.bf16.msra.mxu0 %v8134_v53  ;;  %3883 = vmatpush1.bf16.msra.mxu1 %v8136_v54  ;;  %v8860_v53 = vld [vmem:[#allocation8 + $0x40] ss:$16 sps:$4 sm:$0xff]   ;;  %v8863_v54 = vld [vmem:[#allocation8 + $0x48] ss:$16 sps:$4 sm:$0xff]  }
 0x248   :  { %3802 = vmatprep.subr.bf16.mxu0 %v8151_v55  ;;  %3884 = vmatprep.subr.bf16.mxu1 %v8153_v56  ;;  %v8868_v55 = vld [vmem:[#allocation8 + $0x64] ss:$16 sps:$4 sm:$0xff]   ;;  %v8871_v56 = vld [vmem:[#allocation8 + $0x6c] ss:$16 sps:$4 sm:$0xff]  }
 0x24b   :  { %3803 = vmatpush1.bf16.msra.mxu0 %v8150_v63  ;;  %3885 = vmatpush1.bf16.msra.mxu1 %v8152_v0  ;;  %v8880_v63 = vld [vmem:[#allocation8 + $0xa4] ss:$16 sps:$4 sm:$0xff]   ;;  %v8883_v0 = vld [vmem:[#allocation8 + $0xac] ss:$16 sps:$4 sm:$0xff]  }
 0x24c   :  { %3804 = vmatprep.subr.bf16.mxu0 %v8167_v1  ;;  %3886 = vmatprep.subr.bf16.mxu1 %v8169_v2  ;;  %v8878_v1 = vld [vmem:[#allocation8 + $0xa0] ss:$16 sps:$4 sm:$0xff]   ;;  %v8881_v2 = vld [vmem:[#allocation8 + $0xa8] ss:$16 sps:$4 sm:$0xff]  }
 0x24f   :  { %3805 = vmatpush1.bf16.msra.mxu0 %v8166_v11  ;;  %3887 = vmatpush1.bf16.msra.mxu1 %v8168_v14  ;;  %v8892_v11 = vld [vmem:[#allocation8 + $0xe4] ss:$16 sps:$4 sm:$0xff]   ;;  %v8895_v14 = vld [vmem:[#allocation8 + $0xec] ss:$16 sps:$4 sm:$0xff]  }
 0x250   :  { %3806 = vmatprep.subr.bf16.mxu0 %v8183_v15  ;;  %3888 = vmatprep.subr.bf16.mxu1 %v8185_v16  ;;  %v8890_v15 = vld [vmem:[#allocation8 + $0xe0] ss:$16 sps:$4 sm:$0xff]   ;;  %v8893_v16 = vld [vmem:[#allocation8 + $0xe8] ss:$16 sps:$4 sm:$0xff]  }
 0x253   :  { %3807 = vmatpush1.bf16.msra.mxu0 %v8182_v25  ;;  %3889 = vmatpush1.bf16.msra.mxu1 %v8184_v26  ;;  %v8904_v25 = vld [vmem:[#allocation8 + $0x124] ss:$16 sps:$4 sm:$0xff]   ;;  %v8907_v26 = vld [vmem:[#allocation8 + $0x12c] ss:$16 sps:$4 sm:$0xff]  }
 0x254   :  { %3808 = vmatprep.subr.bf16.mxu0 %v8199_v27  ;;  %3890 = vmatprep.subr.bf16.mxu1 %v8201_v28  ;;  %v8902_v27 = vld [vmem:[#allocation8 + $0x120] ss:$16 sps:$4 sm:$0xff]   ;;  %v8905_v28 = vld [vmem:[#allocation8 + $0x128] ss:$16 sps:$4 sm:$0xff]  }
 0x257   :  { %3809 = vmatpush1.bf16.msra.mxu0 %v8198_v35  ;;  %3891 = vmatpush1.bf16.msra.mxu1 %v8200_v38  ;;  %v8919_v35 = vld [vmem:[#allocation8 + $0x16c] ss:$16 sps:$4 sm:$0xff]   ;;  %v8914_v38 = vld [vmem:[#allocation8 + $0x160] ss:$16 sps:$4 sm:$0xff]  }
 0x258   :  { %3810 = vmatprep.subr.bf16.mxu0 %v8215_v57  ;;  %3892 = vmatprep.subr.bf16.mxu1 %v8217_v39  ;;  %v8917_v57 = vld [vmem:[#allocation8 + $0x168] ss:$16 sps:$4 sm:$0xff]   ;;  %v8922_v39 = vld [vmem:[#allocation8 + $0x184] ss:$16 sps:$4 sm:$0xff]  }
 0x25b   :  { %3811 = vmatpush1.bf16.msra.mxu0 %v8214_v42  ;;  %3893 = vmatpush1.bf16.msra.mxu1 %v8216_v12  ;;  %v8920_v42 = vld [vmem:[#allocation8 + $0x180] ss:$16 sps:$4 sm:$0xff]   ;;  %v9925_v12 = vsub.s32 0, %v9912_v6 }
 0x25c   :  { %7029 = vmatprep.subr.bf16.mxu0 %v8850_v43  ;;  %7357 = vmatprep.subr.bf16.mxu1 %v8853_v44  ;;  %v8923_v43 = vld [vmem:[#allocation8 + $0x188] ss:$16 sps:$4 sm:$0xff]   ;;  %v8928_v44 = vld [vmem:[#allocation8 + $0x1a4] ss:$16 sps:$4 sm:$0xff]  }
 0x25e   :  { %3813 = vmatmul.mubr.bf16.vlgmr.msra.gmra.mrb[12].mxu0 %v9870_v23  ;;  %3895 = vmatmul.mubr.bf16.vlgmr.msra.gmra.mrb[12].mxu1 %v9870_v23  ;;  %v8866_v23 = vld [vmem:[#allocation8 + $0x60] ss:$16 sps:$4 sm:$0xff]  }
 0x25f   :  { %7030 = vmatpush1.bf16.msra.mxu0 %v8848_v46  ;;  %7061 = vmatprep.mubr.bf16.mxu0 %v3920_v49  ;;  %v9928_v46 = vsub.s32 3, %v9912_v6 }
 0x260   :  { %7358 = vmatpush1.bf16.msra.mxu1 %v8851_v47  ;;  %7389 = vmatprep.mubr.bf16.mxu1 %v3920_v49  ;;  %v8926_v47 = vld [vmem:[#allocation8 + $0x1a0] ss:$16 sps:$4 sm:$0xff]   ;;  %v8929_v49 = vld [vmem:[#allocation8 + $0x1a8] ss:$16 sps:$4 sm:$0xff]  }
 0x261   :  { %7031 = vmatprep.subr.bf16.mxu0 %v8856_v48  ;;  %7359 = vmatprep.subr.bf16.mxu1 %v8859_v37  ;;  %v610_v48 = vrot.slane %v9917_v22, %v9925_v12  ;;  %v8934_v37 = vld [vmem:[#allocation8 + $0x1c4] ss:$16 sps:$4 sm:$0xff]  }
 0x263   :  { %7032 = vmatpush1.bf16.msra.mxu0 %v8854_v50  ;;  %v8937_v50 = vld [vmem:[#allocation8 + $0x1cc] ss:$16 sps:$4 sm:$0xff]  }
 0x264   :  { %7360 = vmatpush1.bf16.msra.mxu1 %v8857_v51  ;;  %7033 = vmatprep.subr.bf16.mxu0 %v8862_v24  ;;  %v622_v51 = vrot.slane %v9917_v22, %v9928_v46  ;;  %v8932_v24 = vld [vmem:[#allocation8 + $0x1c0] ss:$16 sps:$4 sm:$0xff]  }
 0x265   :  { %7361 = vmatprep.subr.bf16.mxu1 %v8865_v52  ;;  %v8730_v52 = vadd.f32 %v9888_v32, %v610_v48  ;;  %v8944_v32 = vld [vmem:[#allocation8 + $0x200] ss:$16 sps:$4 sm:$0xff]   ;;  %v8991_v48 = vld [vmem:[#allocation8 + $0x2ec] ss:$16 sps:$4 sm:$0xff]  }
 0x267   :  { %7034 = vmatpush1.bf16.msra.mxu0 %v8860_v53  ;;  %v8935_v53 = vld [vmem:[#allocation8 + $0x1c8] ss:$16 sps:$4 sm:$0xff]  }
 0x268   :  { %7362 = vmatpush1.bf16.msra.mxu1 %v8863_v54  ;;  %7035 = vmatprep.subr.bf16.mxu0 %v8868_v55  ;;  %v8940_v54 = vld [vmem:[#allocation8 + $0x1e4] ss:$16 sps:$4 sm:$0xff]   ;;  %v8943_v55 = vld [vmem:[#allocation8 + $0x1ec] ss:$16 sps:$4 sm:$0xff]  }
 0x269   :  { %7363 = vmatprep.subr.bf16.mxu1 %v8871_v56  ;;  %v8733_v56 = vadd.f32 %v9894_v40, %v622_v51  ;;  %v8955_v40 = vld [vmem:[#allocation8 + $0x22c] ss:$16 sps:$4 sm:$0xff]  }
 0x26a   :  { %v8997_v51 = vld [vmem:[#allocation8 + $0x30c] ss:$16 sps:$4 sm:$0xff]  }
 0x26b   :  { %7036 = vmatpush1.bf16.msra.mxu0 %v8866_v23  ;;  %v8938_v23 = vld [vmem:[#allocation8 + $0x1e0] ss:$16 sps:$4 sm:$0xff]  }
 0x26c   :  { %7364 = vmatpush1.bf16.msra.mxu1 %v8869_v58  ;;  %7037 = vmatprep.subr.bf16.mxu0 %v8874_v59  ;;  %v3903_v58 = vmax.f32 %v8730_v52, 0.0  ;;  %v8941_v59 = vld [vmem:[#allocation8 + $0x1e8] ss:$16 sps:$4 sm:$0xff]  }
 0x26d   :  { %7365 = vmatprep.subr.bf16.mxu1 %v8877_v60  ;;  %v8946_v60 = vld [vmem:[#allocation8 + $0x204] ss:$16 sps:$4 sm:$0xff]   ;;  %v8995_v52 = vld [vmem:[#allocation8 + $0x308] ss:$16 sps:$4 sm:$0xff]  }
 0x26f   :  { %7038 = vmatpush1.bf16.msra.mxu0 %v8872_v61  ;;  %v8949_v61 = vld [vmem:[#allocation8 + $0x20c] ss:$16 sps:$4 sm:$0xff]  }
 0x270   :  { %7366 = vmatpush1.bf16.msra.mxu1 %v8875_v62  ;;  %7039 = vmatprep.subr.bf16.mxu0 %v8880_v63  ;;  %v3906_v62 = vmax.f32 %v8733_v56, 0.0  ;;  %v3919_v63 = vpack.c.bf16 %v3903_v58, %v3903_v58  ;;  %v9001_v56 = vld [vmem:[#allocation8 + $0x328] ss:$16 sps:$4 sm:$0xff]   ;;  %v9009_v58 = vld [vmem:[#allocation8 + $0x34c] ss:$16 sps:$4 sm:$0xff]  }
 0x271   :  { %7367 = vmatprep.subr.bf16.mxu1 %v8883_v0  ;;  %v8947_v0 = vld [vmem:[#allocation8 + $0x208] ss:$16 sps:$4 sm:$0xff]  }
 0x273   :  { %7040 = vmatpush1.bf16.msra.mxu0 %v8878_v1  ;;  %v8952_v1 = vld [vmem:[#allocation8 + $0x224] ss:$16 sps:$4 sm:$0xff]  }
 0x274   :  { %7368 = vmatpush1.bf16.msra.mxu1 %v8881_v2  ;;  %7041 = vmatprep.subr.bf16.mxu0 %v8886_v3  ;;  %v3922_v2 = vpack.c.bf16 %v3906_v62, %v3906_v62  ;;  %v8950_v3 = vld [vmem:[#allocation8 + $0x220] ss:$16 sps:$4 sm:$0xff]   ;;  %v9015_v62 = vld [vmem:[#allocation8 + $0x36c] ss:$16 sps:$4 sm:$0xff]  }
 0x275   :  { %7369 = vmatprep.subr.bf16.mxu1 %v8889_v5  ;;  %v8953_v5 = vld [vmem:[#allocation8 + $0x228] ss:$16 sps:$4 sm:$0xff]  }
 0x277   :  { %7042 = vmatpush1.bf16.msra.mxu0 %v8884_v7  ;;  %v8958_v7 = vld [vmem:[#allocation8 + $0x244] ss:$16 sps:$4 sm:$0xff]  }
 0x278   :  { %7370 = vmatpush1.bf16.msra.mxu1 %v8887_v10  ;;  %7043 = vmatprep.subr.bf16.mxu0 %v8892_v11  ;;  %v8961_v10 = vld [vmem:[#allocation8 + $0x24c] ss:$16 sps:$4 sm:$0xff]   ;;  %v8956_v11 = vld [vmem:[#allocation8 + $0x240] ss:$16 sps:$4 sm:$0xff]  }
 0x279   :  { %7371 = vmatprep.subr.bf16.mxu1 %v8895_v14  ;;  %v8959_v14 = vld [vmem:[#allocation8 + $0x248] ss:$16 sps:$4 sm:$0xff]  }
 0x27b   :  { %7044 = vmatpush1.bf16.msra.mxu0 %v8890_v15  ;;  %v8964_v15 = vld [vmem:[#allocation8 + $0x264] ss:$16 sps:$4 sm:$0xff]  }
 0x27c   :  { %7372 = vmatpush1.bf16.msra.mxu1 %v8893_v16  ;;  %7045 = vmatprep.subr.bf16.mxu0 %v8898_v17  ;;  %v8967_v16 = vld [vmem:[#allocation8 + $0x26c] ss:$16 sps:$4 sm:$0xff]   ;;  %v8962_v17 = vld [vmem:[#allocation8 + $0x260] ss:$16 sps:$4 sm:$0xff]  }
 0x27d   :  { %7373 = vmatprep.subr.bf16.mxu1 %v8901_v18  ;;  %v8965_v18 = vld [vmem:[#allocation8 + $0x268] ss:$16 sps:$4 sm:$0xff]  }
 0x27f   :  { %7046 = vmatpush1.bf16.msra.mxu0 %v8896_v20  ;;  %v8970_v20 = vld [vmem:[#allocation8 + $0x284] ss:$16 sps:$4 sm:$0xff]  }
 0x280   :  { %7374 = vmatpush1.bf16.msra.mxu1 %v8899_v21  ;;  %7047 = vmatprep.subr.bf16.mxu0 %v8904_v25  ;;  %v8973_v21 = vld [vmem:[#allocation8 + $0x28c] ss:$16 sps:$4 sm:$0xff]   ;;  %v8968_v25 = vld [vmem:[#allocation8 + $0x280] ss:$16 sps:$4 sm:$0xff]  }
 0x281   :  { %7375 = vmatprep.subr.bf16.mxu1 %v8907_v26  ;;  %v8971_v26 = vld [vmem:[#allocation8 + $0x288] ss:$16 sps:$4 sm:$0xff]  }
 0x283   :  { %7048 = vmatpush1.bf16.msra.mxu0 %v8902_v27  ;;  %v8976_v27 = vld [vmem:[#allocation8 + $0x2a4] ss:$16 sps:$4 sm:$0xff]  }
 0x284   :  { %7376 = vmatpush1.bf16.msra.mxu1 %v8905_v28  ;;  %7049 = vmatprep.subr.bf16.mxu0 %v8910_v29  ;;  %v8979_v28 = vld [vmem:[#allocation8 + $0x2ac] ss:$16 sps:$4 sm:$0xff]   ;;  %v8974_v29 = vld [vmem:[#allocation8 + $0x2a0] ss:$16 sps:$4 sm:$0xff]  }
 0x285   :  { %7377 = vmatprep.subr.bf16.mxu1 %v8913_v30  ;;  %v8977_v30 = vld [vmem:[#allocation8 + $0x2a8] ss:$16 sps:$4 sm:$0xff]  }
 0x287   :  { %7050 = vmatpush1.bf16.msra.mxu0 %v8908_v31  ;;  %v8982_v31 = vld [vmem:[#allocation8 + $0x2c4] ss:$16 sps:$4 sm:$0xff]  }
 0x288   :  { %7378 = vmatpush1.bf16.msra.mxu1 %v8911_v33  ;;  %7051 = vmatprep.subr.bf16.mxu0 %v8916_v34  ;;  %v8985_v34 = vld [vmem:[#allocation8 + $0x2cc] ss:$16 sps:$4 sm:$0xff]  }
 0x289   :  { %7379 = vmatprep.subr.bf16.mxu1 %v8919_v35 }
 0x28b   :  { %7052 = vmatpush1.bf16.msra.mxu0 %v8914_v38 }
 0x28c   :  { %7380 = vmatpush1.bf16.msra.mxu1 %v8917_v57  ;;  %7053 = vmatprep.subr.bf16.mxu0 %v8922_v39 }
 0x28d   :  { %7381 = vmatprep.subr.bf16.mxu1 %v8925_v41  ;;  %v8980_v41 = vld [vmem:[#allocation8 + $0x2c0] ss:$16 sps:$4 sm:$0xff]  }
 0x28f   :  { %7054 = vmatpush1.bf16.msra.mxu0 %v8920_v42 }
 0x290   :  { %7382 = vmatpush1.bf16.msra.mxu1 %v8923_v43  ;;  %7055 = vmatprep.subr.bf16.mxu0 %v8928_v44  ;;  %v8983_v44 = vld [vmem:[#allocation8 + $0x2c8] ss:$16 sps:$4 sm:$0xff]  }
 0x291   :  { %7383 = vmatprep.subr.bf16.mxu1 %v8931_v45  ;;  %v8988_v45 = vld [vmem:[#allocation8 + $0x2e4] ss:$16 sps:$4 sm:$0xff]  }
 0x293   :  { %7056 = vmatpush1.bf16.msra.mxu0 %v8926_v47 }
 0x294   :  { %7384 = vmatpush1.bf16.msra.mxu1 %v8929_v49  ;;  %7057 = vmatprep.subr.bf16.mxu0 %v8934_v37  ;;  %v8986_v49 = vld [vmem:[#allocation8 + $0x2e0] ss:$16 sps:$4 sm:$0xff]   ;;  %v8989_v37 = vld [vmem:[#allocation8 + $0x2e8] ss:$16 sps:$4 sm:$0xff]  }
 0x295   :  { %7385 = vmatprep.subr.bf16.mxu1 %v8937_v50  ;;  %v8994_v50 = vld [vmem:[#allocation8 + $0x304] ss:$16 sps:$4 sm:$0xff]  }
 0x297   :  { %7058 = vmatpush1.bf16.msra.mxu0 %v8932_v24  ;;  %v8992_v24 = vld [vmem:[#allocation8 + $0x300] ss:$16 sps:$4 sm:$0xff]  }
 0x298   :  { %7386 = vmatpush1.bf16.msra.mxu1 %v8935_v53  ;;  %7059 = vmatprep.subr.bf16.mxu0 %v8940_v54  ;;  %v9000_v53 = vld [vmem:[#allocation8 + $0x324] ss:$16 sps:$4 sm:$0xff]   ;;  %v9003_v54 = vld [vmem:[#allocation8 + $0x32c] ss:$16 sps:$4 sm:$0xff]  }
 0x299   :  { %7387 = vmatprep.subr.bf16.mxu1 %v8943_v55  ;;  %v8998_v55 = vld [vmem:[#allocation8 + $0x320] ss:$16 sps:$4 sm:$0xff]  }
 0x29b   :  { %7060 = vmatpush1.bf16.msra.mxu0 %v8938_v23  ;;  %v9006_v23 = vld [vmem:[#allocation8 + $0x344] ss:$16 sps:$4 sm:$0xff]  }
 0x29c   :  { %7388 = vmatpush1.bf16.msra.mxu1 %v8941_v59  ;;  %7070 = vmatprep.subr.bf16.mxu0 %v8946_v60  ;;  %v9004_v59 = vld [vmem:[#allocation8 + $0x340] ss:$16 sps:$4 sm:$0xff]   ;;  %v9007_v60 = vld [vmem:[#allocation8 + $0x348] ss:$16 sps:$4 sm:$0xff]  }
 0x29d   :  { %7398 = vmatprep.subr.bf16.mxu1 %v8949_v61  ;;  %v9012_v61 = vld [vmem:[#allocation8 + $0x364] ss:$16 sps:$4 sm:$0xff]  }
 0x29e   :  { %7062 = vmatmul.mubr.bf16.vlgmr.msra.gmra.mrb[16].mxu0 %v3919_v63 }
 0x29f   :  { %7390 = vmatmul.mubr.bf16.vlgmr.msra.gmra.mrb[16].mxu1 %v3919_v63  ;;  %7071 = vmatpush1.bf16.msra.mxu0 %v8944_v32  ;;  %v9010_v32 = vld [vmem:[#allocation8 + $0x360] ss:$16 sps:$4 sm:$0xff]   ;;  %v9013_v63 = vld [vmem:[#allocation8 + $0x368] ss:$16 sps:$4 sm:$0xff]  }
 0x2a0   :  { %7102 = vmatprep.mubr.bf16.mxu0 %v3922_v2  ;;  %7399 = vmatpush1.bf16.msra.mxu1 %v8947_v0  ;;  %v9018_v0 = vld [vmem:[#allocation8 + $0x384] ss:$16 sps:$4 sm:$0xff]  }
 0x2a1   :  { %7430 = vmatprep.mubr.bf16.mxu1 %v3922_v2  ;;  %7072 = vmatprep.subr.bf16.mxu0 %v8952_v1  ;;  %v9021_v1 = vld [vmem:[#allocation8 + $0x38c] ss:$16 sps:$4 sm:$0xff]   ;;  %v9016_v2 = vld [vmem:[#allocation8 + $0x380] ss:$16 sps:$4 sm:$0xff]  }
 0x2a2   :  { %7400 = vmatprep.subr.bf16.mxu1 %v8955_v40  ;;  %v9945_v40 = vsub.s32 2, %v9912_v6 }
 0x2a3   :  { %7073 = vmatpush1.bf16.msra.mxu0 %v8950_v3  ;;  %v9019_v3 = vld [vmem:[#allocation8 + $0x388] ss:$16 sps:$4 sm:$0xff]  }
 0x2a4   :  { %7401 = vmatpush1.bf16.msra.mxu1 %v8953_v5  ;;  %7074 = vmatprep.subr.bf16.mxu0 %v8958_v7  ;;  %v9024_v5 = vld [vmem:[#allocation8 + $0x3a4] ss:$16 sps:$4 sm:$0xff]   ;;  %v9027_v7 = vld [vmem:[#allocation8 + $0x3ac] ss:$16 sps:$4 sm:$0xff]  }
 0x2a5   :  { %7402 = vmatprep.subr.bf16.mxu1 %v8961_v10  ;;  %v629_v10 = vsub.s32 5, %v9912_v6 }
 0x2a7   :  { %7075 = vmatpush1.bf16.msra.mxu0 %v8956_v11  ;;  %v9022_v11 = vld [vmem:[#allocation8 + $0x3a0] ss:$16 sps:$4 sm:$0xff]  }
 0x2a8   :  { %7403 = vmatpush1.bf16.msra.mxu1 %v8959_v14  ;;  %7076 = vmatprep.subr.bf16.mxu0 %v8964_v15  ;;  %v618_v14 = vrot.slane %v9917_v22, %v9945_v40  ;;  %v9025_v15 = vld [vmem:[#allocation8 + $0x3a8] ss:$16 sps:$4 sm:$0xff]  }
 0x2a9   :  { %7404 = vmatprep.subr.bf16.mxu1 %v8967_v16  ;;  %v9030_v16 = vld [vmem:[#allocation8 + $0x3c4] ss:$16 sps:$4 sm:$0xff]  }
 0x2ab   :  { %7077 = vmatpush1.bf16.msra.mxu0 %v8962_v17  ;;  %v9033_v17 = vld [vmem:[#allocation8 + $0x3cc] ss:$16 sps:$4 sm:$0xff]  }
 0x2ac   :  { %7405 = vmatpush1.bf16.msra.mxu1 %v8965_v18  ;;  %7078 = vmatprep.subr.bf16.mxu0 %v8970_v20  ;;  %v630_v18 = vrot.slane %v9917_v22, %v629_v10  ;;  %v9028_v20 = vld [vmem:[#allocation8 + $0x3c0] ss:$16 sps:$4 sm:$0xff]  }
 0x2ad   :  { %7406 = vmatprep.subr.bf16.mxu1 %v8973_v21  ;;  %v8732_v21 = vadd.f32 %v9890_v36, %v618_v14  ;;  %v9040_v36 = vld [vmem:[#allocation8 + $0x400] ss:$16 sps:$4 sm:$0xff]   ;;  %v9093_v14 = vld [vmem:[#allocation8 + $0x50c] ss:$16 sps:$4 sm:$0xff]  }
 0x2af   :  { %7079 = vmatpush1.bf16.msra.mxu0 %v8968_v25  ;;  %v9031_v25 = vld [vmem:[#allocation8 + $0x3c8] ss:$16 sps:$4 sm:$0xff]  }
 0x2b0   :  { %7407 = vmatpush1.bf16.msra.mxu1 %v8971_v26  ;;  %7080 = vmatprep.subr.bf16.mxu0 %v8976_v27  ;;  %v9036_v26 = vld [vmem:[#allocation8 + $0x3e4] ss:$16 sps:$4 sm:$0xff]   ;;  %v9039_v27 = vld [vmem:[#allocation8 + $0x3ec] ss:$16 sps:$4 sm:$0xff]  }
 0x2b1   :  { %v9936_v33 = vpop.f32.mrb[8].mxu0  ;;  %7408 = vmatprep.subr.bf16.mxu1 %v8979_v28  ;;  %v9938_v35 = vpop.f32.mrb[8].mxu1  ;;  %v8735_v28 = vadd.f32 %v9908_v9, %v630_v18  ;;  %v9051_v9 = vld [vmem:[#allocation8 + $0x42c] ss:$16 sps:$4 sm:$0xff]  }
 0x2b2   :  { %v9940_v38 = vpop.f32.mrb[9].mxu0  ;;  %v9942_v57 = vpop.f32.mrb[9].mxu1  ;;  %v9099_v18 = vld [vmem:[#allocation8 + $0x52c] ss:$16 sps:$4 sm:$0xff]  }
 0x2b3   :  { %v3654_v39 = vpop.f32.mrb[10].mxu0  ;;  %7081 = vmatpush1.bf16.msra.mxu0 %v8974_v29  ;;  %v3736_v42 = vpop.f32.mrb[10].mxu1  ;;  %v9034_v29 = vld [vmem:[#allocation8 + $0x3e0] ss:$16 sps:$4 sm:$0xff]  }
 0x2b4   :  { %7409 = vmatpush1.bf16.msra.mxu1 %v8977_v30  ;;  %v3655_v43 = vpop.f32.mrb[11].mxu0  ;;  %7082 = vmatprep.subr.bf16.mxu0 %v8982_v31  ;;  %v3737_v47 = vpop.f32.mrb[11].mxu1  ;;  %v3905_v30 = vmax.f32 %v8732_v21, 0.0  ;;  %v9037_v31 = vld [vmem:[#allocation8 + $0x3e8] ss:$16 sps:$4 sm:$0xff]  }
 0x2b5   :  { %7410 = vmatprep.subr.bf16.mxu1 %v8985_v34  ;;  %v9042_v34 = vld [vmem:[#allocation8 + $0x404] ss:$16 sps:$4 sm:$0xff]   ;;  %v9045_v39 = vld [vmem:[#allocation8 + $0x40c] ss:$16 sps:$4 sm:$0xff]   ;;  %v9043_v43 = vld [vmem:[#allocation8 + $0x408] ss:$16 sps:$4 sm:$0xff]  }
 0x2b6   :  { %v3921_v42 = vpack.c.bf16 %v3905_v30, %v3905_v30  ;;  %v9046_v47 = vld [vmem:[#allocation8 + $0x420] ss:$16 sps:$4 sm:$0xff]   ;;  %v9097_v21 = vld [vmem:[#allocation8 + $0x528] ss:$16 sps:$4 sm:$0xff]   ;;  %v9111_v30 = vld [vmem:[#allocation8 + $0x56c] ss:$16 sps:$4 sm:$0xff]  }
 0x2b7   :  { %7083 = vmatpush1.bf16.msra.mxu0 %v8980_v41  ;;  %v3908_v41 = vmax.f32 %v8735_v28, 0.0  ;;  %v9103_v28 = vld [vmem:[#allocation8 + $0x548] ss:$16 sps:$4 sm:$0xff]  }
 0x2b8   :  { %7411 = vmatpush1.bf16.msra.mxu1 %v8983_v44  ;;  %7084 = vmatprep.subr.bf16.mxu0 %v8988_v45  ;;  %v9048_v44 = vld [vmem:[#allocation8 + $0x424] ss:$16 sps:$4 sm:$0xff]  }
 0x2b9   :  { %7412 = vmatprep.subr.bf16.mxu1 %v8991_v48  ;;  %v3924_v45 = vpack.c.bf16 %v3908_v41, %v3908_v41  ;;  %v9049_v48 = vld [vmem:[#allocation8 + $0x428] ss:$16 sps:$4 sm:$0xff]   ;;  %v9117_v41 = vld [vmem:[#allocation8 + $0x58c] ss:$16 sps:$4 sm:$0xff]  }
 0x2bb   :  { %7085 = vmatpush1.bf16.msra.mxu0 %v8986_v49  ;;  %v9054_v49 = vld [vmem:[#allocation8 + $0x444] ss:$16 sps:$4 sm:$0xff]  }
 0x2bc   :  { %7413 = vmatpush1.bf16.msra.mxu1 %v8989_v37  ;;  %7086 = vmatprep.subr.bf16.mxu0 %v8994_v50  ;;  %v9057_v37 = vld [vmem:[#allocation8 + $0x44c] ss:$16 sps:$4 sm:$0xff]   ;;  %v9052_v50 = vld [vmem:[#allocation8 + $0x440] ss:$16 sps:$4 sm:$0xff]  }
 0x2bd   :  { %7414 = vmatprep.subr.bf16.mxu1 %v8997_v51  ;;  %v9055_v51 = vld [vmem:[#allocation8 + $0x448] ss:$16 sps:$4 sm:$0xff]  }
 0x2bf   :  { %7087 = vmatpush1.bf16.msra.mxu0 %v8992_v24  ;;  %v9060_v24 = vld [vmem:[#allocation8 + $0x464] ss:$16 sps:$4 sm:$0xff]  }
 0x2c0   :  { %7415 = vmatpush1.bf16.msra.mxu1 %v8995_v52  ;;  %7088 = vmatprep.subr.bf16.mxu0 %v9000_v53  ;;  %v9063_v52 = vld [vmem:[#allocation8 + $0x46c] ss:$16 sps:$4 sm:$0xff]   ;;  %v9058_v53 = vld [vmem:[#allocation8 + $0x460] ss:$16 sps:$4 sm:$0xff]  }
 0x2c1   :  { %7416 = vmatprep.subr.bf16.mxu1 %v9003_v54  ;;  %v9061_v54 = vld [vmem:[#allocation8 + $0x468] ss:$16 sps:$4 sm:$0xff]  }
 0x2c3   :  { %7089 = vmatpush1.bf16.msra.mxu0 %v8998_v55  ;;  %v9066_v55 = vld [vmem:[#allocation8 + $0x484] ss:$16 sps:$4 sm:$0xff]  }
 0x2c4   :  { %7417 = vmatpush1.bf16.msra.mxu1 %v9001_v56  ;;  %7090 = vmatprep.subr.bf16.mxu0 %v9006_v23  ;;  %v9069_v56 = vld [vmem:[#allocation8 + $0x48c] ss:$16 sps:$4 sm:$0xff]   ;;  %v9064_v23 = vld [vmem:[#allocation8 + $0x480] ss:$16 sps:$4 sm:$0xff]  }
 0x2c5   :  { %7418 = vmatprep.subr.bf16.mxu1 %v9009_v58  ;;  %v9067_v58 = vld [vmem:[#allocation8 + $0x488] ss:$16 sps:$4 sm:$0xff]  }
 0x2c7   :  { %7091 = vmatpush1.bf16.msra.mxu0 %v9004_v59  ;;  %v9072_v59 = vld [vmem:[#allocation8 + $0x4a4] ss:$16 sps:$4 sm:$0xff]  }
 0x2c8   :  { %7419 = vmatpush1.bf16.msra.mxu1 %v9007_v60  ;;  %7092 = vmatprep.subr.bf16.mxu0 %v9012_v61  ;;  %v9075_v60 = vld [vmem:[#allocation8 + $0x4ac] ss:$16 sps:$4 sm:$0xff]   ;;  %v9070_v61 = vld [vmem:[#allocation8 + $0x4a0] ss:$16 sps:$4 sm:$0xff]  }
 0x2c9   :  { %7420 = vmatprep.subr.bf16.mxu1 %v9015_v62  ;;  %v9073_v62 = vld [vmem:[#allocation8 + $0x4a8] ss:$16 sps:$4 sm:$0xff]  }
 0x2cb   :  { %7093 = vmatpush1.bf16.msra.mxu0 %v9010_v32  ;;  %v9078_v32 = vld [vmem:[#allocation8 + $0x4c4] ss:$16 sps:$4 sm:$0xff]  }
 0x2cc   :  { %7421 = vmatpush1.bf16.msra.mxu1 %v9013_v63  ;;  %7094 = vmatprep.subr.bf16.mxu0 %v9018_v0  ;;  %v9081_v63 = vld [vmem:[#allocation8 + $0x4cc] ss:$16 sps:$4 sm:$0xff]   ;;  %v9076_v0 = vld [vmem:[#allocation8 + $0x4c0] ss:$16 sps:$4 sm:$0xff]  }
 0x2cd   :  { %7422 = vmatprep.subr.bf16.mxu1 %v9021_v1  ;;  %v9079_v1 = vld [vmem:[#allocation8 + $0x4c8] ss:$16 sps:$4 sm:$0xff]  }
 0x2cf   :  { %7095 = vmatpush1.bf16.msra.mxu0 %v9016_v2  ;;  %v9084_v2 = vld [vmem:[#allocation8 + $0x4e4] ss:$16 sps:$4 sm:$0xff]  }
 0x2d0   :  { %7423 = vmatpush1.bf16.msra.mxu1 %v9019_v3  ;;  %7096 = vmatprep.subr.bf16.mxu0 %v9024_v5  ;;  %v9087_v3 = vld [vmem:[#allocation8 + $0x4ec] ss:$16 sps:$4 sm:$0xff]   ;;  %v9082_v5 = vld [vmem:[#allocation8 + $0x4e0] ss:$16 sps:$4 sm:$0xff]  }
 0x2d1   :  { %7424 = vmatprep.subr.bf16.mxu1 %v9027_v7  ;;  %v9085_v7 = vld [vmem:[#allocation8 + $0x4e8] ss:$16 sps:$4 sm:$0xff]  }
 0x2d3   :  { %7097 = vmatpush1.bf16.msra.mxu0 %v9022_v11  ;;  %v9090_v11 = vld [vmem:[#allocation8 + $0x504] ss:$16 sps:$4 sm:$0xff]  }
 0x2d4   :  { %7425 = vmatpush1.bf16.msra.mxu1 %v9025_v15  ;;  %7098 = vmatprep.subr.bf16.mxu0 %v9030_v16  ;;  %v9088_v15 = vld [vmem:[#allocation8 + $0x500] ss:$16 sps:$4 sm:$0xff]   ;;  %v9091_v16 = vld [vmem:[#allocation8 + $0x508] ss:$16 sps:$4 sm:$0xff]  }
 0x2d5   :  { %7426 = vmatprep.subr.bf16.mxu1 %v9033_v17  ;;  %v9096_v17 = vld [vmem:[#allocation8 + $0x524] ss:$16 sps:$4 sm:$0xff]  }
 0x2d7   :  { %7099 = vmatpush1.bf16.msra.mxu0 %v9028_v20  ;;  %v9094_v20 = vld [vmem:[#allocation8 + $0x520] ss:$16 sps:$4 sm:$0xff]  }
 0x2d8   :  { %7427 = vmatpush1.bf16.msra.mxu1 %v9031_v25  ;;  %7100 = vmatprep.subr.bf16.mxu0 %v9036_v26  ;;  %v9102_v25 = vld [vmem:[#allocation8 + $0x544] ss:$16 sps:$4 sm:$0xff]   ;;  %v9105_v26 = vld [vmem:[#allocation8 + $0x54c] ss:$16 sps:$4 sm:$0xff]  }
 0x2d9   :  { %7428 = vmatprep.subr.bf16.mxu1 %v9039_v27  ;;  %v9100_v27 = vld [vmem:[#allocation8 + $0x540] ss:$16 sps:$4 sm:$0xff]  }
 0x2db   :  { %7101 = vmatpush1.bf16.msra.mxu0 %v9034_v29  ;;  %v9108_v29 = vld [vmem:[#allocation8 + $0x564] ss:$16 sps:$4 sm:$0xff]  }
 0x2dc   :  { %7429 = vmatpush1.bf16.msra.mxu1 %v9037_v31  ;;  %7111 = vmatprep.subr.bf16.mxu0 %v9042_v34  ;;  %v9106_v31 = vld [vmem:[#allocation8 + $0x560] ss:$16 sps:$4 sm:$0xff]   ;;  %v9109_v34 = vld [vmem:[#allocation8 + $0x568] ss:$16 sps:$4 sm:$0xff]  }
 0x2dd   :  { %7439 = vmatprep.subr.bf16.mxu1 %v9045_v39  ;;  %v9114_v39 = vld [vmem:[#allocation8 + $0x584] ss:$16 sps:$4 sm:$0xff]  }
 0x2de   :  { %7103 = vmatmul.mubr.bf16.vlgmr.msra.gmra.mrb[16].mxu0 %v3921_v42 }
 0x2df   :  { %7431 = vmatmul.mubr.bf16.vlgmr.msra.gmra.mrb[16].mxu1 %v3921_v42  ;;  %7112 = vmatpush1.bf16.msra.mxu0 %v9040_v36  ;;  %v9112_v36 = vld [vmem:[#allocation8 + $0x580] ss:$16 sps:$4 sm:$0xff]   ;;  %v625_v42 = vsub.s32 4, %v9912_v6 }
 0x2e0   :  { %7143 = vmatprep.mubr.bf16.mxu0 %v3924_v45  ;;  %7440 = vmatpush1.bf16.msra.mxu1 %v9043_v43  ;;  %v9115_v43 = vld [vmem:[#allocation8 + $0x588] ss:$16 sps:$4 sm:$0xff]  }
 0x2e1   :  { %7471 = vmatprep.mubr.bf16.mxu1 %v3924_v45  ;;  %7113 = vmatprep.subr.bf16.mxu0 %v9048_v44  ;;  %v9120_v44 = vld [vmem:[#allocation8 + $0x5a4] ss:$16 sps:$4 sm:$0xff]   ;;  %v9123_v45 = vld [vmem:[#allocation8 + $0x5ac] ss:$16 sps:$4 sm:$0xff]  }
 0x2e2   :  { %7441 = vmatprep.subr.bf16.mxu1 %v9051_v9  ;;  %v637_v9 = vsub.s32 7, %v9912_v6 }
 0x2e3   :  { %7114 = vmatpush1.bf16.msra.mxu0 %v9046_v47  ;;  %v9118_v47 = vld [vmem:[#allocation8 + $0x5a0] ss:$16 sps:$4 sm:$0xff]  }
 0x2e4   :  { %7442 = vmatpush1.bf16.msra.mxu1 %v9049_v48  ;;  %7115 = vmatprep.subr.bf16.mxu0 %v9054_v49  ;;  %v626_v48 = vrot.slane %v9917_v22, %v625_v42  ;;  %v9121_v49 = vld [vmem:[#allocation8 + $0x5a8] ss:$16 sps:$4 sm:$0xff]  }
 0x2e5   :  { %7443 = vmatprep.subr.bf16.mxu1 %v9057_v37  ;;  %v9126_v37 = vld [vmem:[#allocation8 + $0x5c4] ss:$16 sps:$4 sm:$0xff]  }
 0x2e7   :  { %7116 = vmatpush1.bf16.msra.mxu0 %v9052_v50  ;;  %v9129_v50 = vld [vmem:[#allocation8 + $0x5cc] ss:$16 sps:$4 sm:$0xff]  }
 0x2e8   :  { %7444 = vmatpush1.bf16.msra.mxu1 %v9055_v51  ;;  %7117 = vmatprep.subr.bf16.mxu0 %v9060_v24  ;;  %v638_v51 = vrot.slane %v9917_v22, %v637_v9  ;;  %v9124_v24 = vld [vmem:[#allocation8 + $0x5c0] ss:$16 sps:$4 sm:$0xff]   ;;  %v9141_v22 = vld [vmem:[#allocation8 + $0x60c] ss:$16 sps:$4 sm:$0xff]  }
 0x2e9   :  { %7445 = vmatprep.subr.bf16.mxu1 %v9063_v52  ;;  %v8734_v52 = vadd.f32 %v9904_v4, %v626_v48  ;;  %v9136_v4 = vld [vmem:[#allocation8 + $0x600] ss:$16 sps:$4 sm:$0xff]   ;;  %v9175_v48 = vld [vmem:[#allocation8 + $0x6c8] ss:$16 sps:$4 sm:$0xff]  }
 0x2eb   :  { %7118 = vmatpush1.bf16.msra.mxu0 %v9058_v53  ;;  %v9127_v53 = vld [vmem:[#allocation8 + $0x5c8] ss:$16 sps:$4 sm:$0xff]  }
 0x2ec   :  { %7446 = vmatpush1.bf16.msra.mxu1 %v9061_v54  ;;  %7119 = vmatprep.subr.bf16.mxu0 %v9066_v55  ;;  %v9132_v54 = vld [vmem:[#allocation8 + $0x5e4] ss:$16 sps:$4 sm:$0xff]   ;;  %v9135_v55 = vld [vmem:[#allocation8 + $0x5ec] ss:$16 sps:$4 sm:$0xff]  }
 0x2ed   :  { %7447 = vmatprep.subr.bf16.mxu1 %v9069_v56  ;;  %v8737_v56 = vadd.f32 %v9910_v13, %v638_v51  ;;  %v9147_v13 = vld [vmem:[#allocation8 + $0x62c] ss:$16 sps:$4 sm:$0xff]   ;;  %v9178_v51 = vld [vmem:[#allocation8 + $0x6e0] ss:$16 sps:$4 sm:$0xff]  }
 0x2ef   :  { %7120 = vmatpush1.bf16.msra.mxu0 %v9064_v23  ;;  %v9130_v23 = vld [vmem:[#allocation8 + $0x5e0] ss:$16 sps:$4 sm:$0xff]  }
 0x2f0   :  { %7448 = vmatpush1.bf16.msra.mxu1 %v9067_v58  ;;  %7121 = vmatprep.subr.bf16.mxu0 %v9072_v59  ;;  %v3907_v58 = vmax.f32 %v8734_v52, 0.0  ;;  %v9133_v59 = vld [vmem:[#allocation8 + $0x5e8] ss:$16 sps:$4 sm:$0xff]   ;;  %v9186_v52 = vld [vmem:[#allocation8 + $0x704] ss:$16 sps:$4 sm:$0xff]  }
 0x2f1   :  { %7449 = vmatprep.subr.bf16.mxu1 %v9075_v60  ;;  %v9138_v60 = vld [vmem:[#allocation8 + $0x604] ss:$16 sps:$4 sm:$0xff]  }
 0x2f3   :  { %7122 = vmatpush1.bf16.msra.mxu0 %v9070_v61  ;;  %v3910_v61 = vmax.f32 %v8737_v56, 0.0  ;;  %v9192_v56 = vld [vmem:[#allocation8 + $0x724] ss:$16 sps:$4 sm:$0xff]  }
 0x2f4   :  { %7450 = vmatpush1.bf16.msra.mxu1 %v9073_v62  ;;  %7123 = vmatprep.subr.bf16.mxu0 %v9078_v32  ;;  %v3923_v62 = vpack.c.bf16 %v3907_v58, %v3907_v58  ;;  %v9139_v32 = vld [vmem:[#allocation8 + $0x608] ss:$16 sps:$4 sm:$0xff]   ;;  %v9190_v58 = vld [vmem:[#allocation8 + $0x720] ss:$16 sps:$4 sm:$0xff]  }
 0x2f5   :  { %7451 = vmatprep.subr.bf16.mxu1 %v9081_v63  ;;  %v9144_v63 = vld [vmem:[#allocation8 + $0x624] ss:$16 sps:$4 sm:$0xff]  }
 0x2f7   :  { %7124 = vmatpush1.bf16.msra.mxu0 %v9076_v0  ;;  %v3926_v0 = vpack.c.bf16 %v3910_v61, %v3910_v61  ;;  %v9196_v61 = vld [vmem:[#allocation8 + $0x740] ss:$16 sps:$4 sm:$0xff]  }
 0x2f8   :  { %7452 = vmatpush1.bf16.msra.mxu1 %v9079_v1  ;;  %7125 = vmatprep.subr.bf16.mxu0 %v9084_v2  ;;  %v9142_v1 = vld [vmem:[#allocation8 + $0x620] ss:$16 sps:$4 sm:$0xff]   ;;  %v9145_v2 = vld [vmem:[#allocation8 + $0x628] ss:$16 sps:$4 sm:$0xff]  }
 0x2f9   :  { %7453 = vmatprep.subr.bf16.mxu1 %v9087_v3  ;;  %v9150_v3 = vld [vmem:[#allocation8 + $0x644] ss:$16 sps:$4 sm:$0xff]  }
 0x2fb   :  { %7126 = vmatpush1.bf16.msra.mxu0 %v9082_v5  ;;  %v9153_v5 = vld [vmem:[#allocation8 + $0x64c] ss:$16 sps:$4 sm:$0xff]  }
 0x2fc   :  { %7454 = vmatpush1.bf16.msra.mxu1 %v9085_v7  ;;  %7127 = vmatprep.subr.bf16.mxu0 %v9090_v11  ;;  %v9148_v7 = vld [vmem:[#allocation8 + $0x640] ss:$16 sps:$4 sm:$0xff]   ;;  %v9151_v11 = vld [vmem:[#allocation8 + $0x648] ss:$16 sps:$4 sm:$0xff]  }
 0x2fd   :  { %7455 = vmatprep.subr.bf16.mxu1 %v9093_v14  ;;  %v9156_v14 = vld [vmem:[#allocation8 + $0x664] ss:$16 sps:$4 sm:$0xff]  }
 0x2ff   :  { %7128 = vmatpush1.bf16.msra.mxu0 %v9088_v15  ;;  %v9159_v15 = vld [vmem:[#allocation8 + $0x66c] ss:$16 sps:$4 sm:$0xff]  }
 0x300   :  { %7456 = vmatpush1.bf16.msra.mxu1 %v9091_v16  ;;  %7129 = vmatprep.subr.bf16.mxu0 %v9096_v17  ;;  %v9154_v16 = vld [vmem:[#allocation8 + $0x660] ss:$16 sps:$4 sm:$0xff]   ;;  %v9157_v17 = vld [vmem:[#allocation8 + $0x668] ss:$16 sps:$4 sm:$0xff]  }
 0x301   :  { %7457 = vmatprep.subr.bf16.mxu1 %v9099_v18  ;;  %v9162_v18 = vld [vmem:[#allocation8 + $0x684] ss:$16 sps:$4 sm:$0xff]  }
 0x303   :  { %7130 = vmatpush1.bf16.msra.mxu0 %v9094_v20  ;;  %v9165_v20 = vld [vmem:[#allocation8 + $0x68c] ss:$16 sps:$4 sm:$0xff]  }
 0x304   :  { %7458 = vmatpush1.bf16.msra.mxu1 %v9097_v21  ;;  %7131 = vmatprep.subr.bf16.mxu0 %v9102_v25  ;;  %v9160_v21 = vld [vmem:[#allocation8 + $0x680] ss:$16 sps:$4 sm:$0xff]   ;;  %v9163_v25 = vld [vmem:[#allocation8 + $0x688] ss:$16 sps:$4 sm:$0xff]  }
 0x305   :  { %7459 = vmatprep.subr.bf16.mxu1 %v9105_v26  ;;  %v9168_v26 = vld [vmem:[#allocation8 + $0x6a4] ss:$16 sps:$4 sm:$0xff]  }
 0x307   :  { %7132 = vmatpush1.bf16.msra.mxu0 %v9100_v27  ;;  %v9171_v27 = vld [vmem:[#allocation8 + $0x6ac] ss:$16 sps:$4 sm:$0xff]  }
 0x308   :  { %7460 = vmatpush1.bf16.msra.mxu1 %v9103_v28  ;;  %7133 = vmatprep.subr.bf16.mxu0 %v9108_v29  ;;  %v9166_v28 = vld [vmem:[#allocation8 + $0x6a0] ss:$16 sps:$4 sm:$0xff]   ;;  %v9169_v29 = vld [vmem:[#allocation8 + $0x6a8] ss:$16 sps:$4 sm:$0xff]  }
 0x309   :  { %7461 = vmatprep.subr.bf16.mxu1 %v9111_v30  ;;  %v9174_v30 = vld [vmem:[#allocation8 + $0x6c4] ss:$16 sps:$4 sm:$0xff]  }
 0x30b   :  { %7134 = vmatpush1.bf16.msra.mxu0 %v9106_v31 }
 0x30c   :  { %7462 = vmatpush1.bf16.msra.mxu1 %v9109_v34  ;;  %7135 = vmatprep.subr.bf16.mxu0 %v9114_v39  ;;  %v9177_v34 = vld [vmem:[#allocation8 + $0x6cc] ss:$16 sps:$4 sm:$0xff]  }
 0x30d   :  { %7463 = vmatprep.subr.bf16.mxu1 %v9117_v41 }
 0x30f   :  { %7136 = vmatpush1.bf16.msra.mxu0 %v9112_v36 }
 0x310   :  { %7464 = vmatpush1.bf16.msra.mxu1 %v9115_v43  ;;  %7137 = vmatprep.subr.bf16.mxu0 %v9120_v44  ;;  %v9172_v44 = vld [vmem:[#allocation8 + $0x6c0] ss:$16 sps:$4 sm:$0xff]  }
 0x311   :  { %7465 = vmatprep.subr.bf16.mxu1 %v9123_v45 }
 0x313   :  { %7138 = vmatpush1.bf16.msra.mxu0 %v9118_v47 }
 0x314   :  { %7466 = vmatpush1.bf16.msra.mxu1 %v9121_v49  ;;  %7139 = vmatprep.subr.bf16.mxu0 %v9126_v37  ;;  %v9180_v49 = vld [vmem:[#allocation8 + $0x6e4] ss:$16 sps:$4 sm:$0xff]  }
 0x315   :  { %7467 = vmatprep.subr.bf16.mxu1 %v9129_v50  ;;  %v9183_v50 = vld [vmem:[#allocation8 + $0x6ec] ss:$16 sps:$4 sm:$0xff]  }
 0x317   :  { %7140 = vmatpush1.bf16.msra.mxu0 %v9124_v24  ;;  %v9181_v24 = vld [vmem:[#allocation8 + $0x6e8] ss:$16 sps:$4 sm:$0xff]  }
 0x318   :  { %7468 = vmatpush1.bf16.msra.mxu1 %v9127_v53  ;;  %7141 = vmatprep.subr.bf16.mxu0 %v9132_v54  ;;  %v9189_v53 = vld [vmem:[#allocation8 + $0x70c] ss:$16 sps:$4 sm:$0xff]   ;;  %v9184_v54 = vld [vmem:[#allocation8 + $0x700] ss:$16 sps:$4 sm:$0xff]  }
 0x319   :  { %7469 = vmatprep.subr.bf16.mxu1 %v9135_v55  ;;  %v9187_v55 = vld [vmem:[#allocation8 + $0x708] ss:$16 sps:$4 sm:$0xff]  }
 0x31b   :  { %7142 = vmatpush1.bf16.msra.mxu0 %v9130_v23  ;;  %v9195_v23 = vld [vmem:[#allocation8 + $0x72c] ss:$16 sps:$4 sm:$0xff]  }
 0x31c   :  { %7470 = vmatpush1.bf16.msra.mxu1 %v9133_v59  ;;  %7152 = vmatprep.subr.bf16.mxu0 %v9138_v60  ;;  %v9193_v59 = vld [vmem:[#allocation8 + $0x728] ss:$16 sps:$4 sm:$0xff]   ;;  %v9198_v60 = vld [vmem:[#allocation8 + $0x744] ss:$16 sps:$4 sm:$0xff]  }
 0x31d   :  { %7480 = vmatprep.subr.bf16.mxu1 %v9141_v22  ;;  %v9201_v22 = vld [vmem:[#allocation8 + $0x74c] ss:$16 sps:$4 sm:$0xff]  }
 0x31e   :  { %7144 = vmatmul.mubr.bf16.vlgmr.msra.gmra.mrb[16].mxu0 %v3923_v62 }
 0x31f   :  { %7472 = vmatmul.mubr.bf16.vlgmr.msra.gmra.mrb[16].mxu1 %v3923_v62  ;;  %7153 = vmatpush1.bf16.msra.mxu0 %v9136_v4  ;;  %v9199_v4 = vld [vmem:[#allocation8 + $0x748] ss:$16 sps:$4 sm:$0xff]   ;;  %v9204_v62 = vld [vmem:[#allocation8 + $0x764] ss:$16 sps:$4 sm:$0xff]  }
 0x320   :  { %7184 = vmatprep.mubr.bf16.mxu0 %v3926_v0  ;;  %7481 = vmatpush1.bf16.msra.mxu1 %v9139_v32  ;;  %v9207_v32 = vld [vmem:[#allocation8 + $0x76c] ss:$16 sps:$4 sm:$0xff]  }
 0x321   :  { %7512 = vmatprep.mubr.bf16.mxu1 %v3926_v0  ;;  %7154 = vmatprep.subr.bf16.mxu0 %v9144_v63  ;;  %v9202_v63 = vld [vmem:[#allocation8 + $0x760] ss:$16 sps:$4 sm:$0xff]   ;;  %v9205_v0 = vld [vmem:[#allocation8 + $0x768] ss:$16 sps:$4 sm:$0xff]  }
 0x322   :  { %7482 = vmatprep.subr.bf16.mxu1 %v9147_v13  ;;  %v9210_v13 = vld [vmem:[#allocation8 + $0x784] ss:$16 sps:$4 sm:$0xff]  }
 0x323   :  { %7155 = vmatpush1.bf16.msra.mxu0 %v9142_v1  ;;  %v9213_v1 = vld [vmem:[#allocation8 + $0x78c] ss:$16 sps:$4 sm:$0xff]  }
 0x324   :  { %7483 = vmatpush1.bf16.msra.mxu1 %v9145_v2  ;;  %7156 = vmatprep.subr.bf16.mxu0 %v9150_v3  ;;  %v9208_v2 = vld [vmem:[#allocation8 + $0x780] ss:$16 sps:$4 sm:$0xff]   ;;  %v633_v3 = vsub.s32 6, %v9912_v6 }
 0x325   :  { %7484 = vmatprep.subr.bf16.mxu1 %v9153_v5  ;;  %v9211_v5 = vld [vmem:[#allocation8 + $0x788] ss:$16 sps:$4 sm:$0xff]  }
 0x327   :  { %7157 = vmatpush1.bf16.msra.mxu0 %v9148_v7  ;;  %v9216_v7 = vld [vmem:[#allocation8 + $0x7a4] ss:$16 sps:$4 sm:$0xff]  }
 0x328   :  { %7485 = vmatpush1.bf16.msra.mxu1 %v9151_v11  ;;  %7158 = vmatprep.subr.bf16.mxu0 %v9156_v14  ;;  %v9219_v11 = vld [vmem:[#allocation8 + $0x7ac] ss:$16 sps:$4 sm:$0xff]  }
 0x329   :  { %7486 = vmatprep.subr.bf16.mxu1 %v9159_v15  ;;  %v9974_v14 = vld [vmem:[#allocation7 + $0x8] sm:$0xff]  ;;  %v9214_v15 = vld [vmem:[#allocation8 + $0x7a0] ss:$16 sps:$4 sm:$0xff]  }
 0x32b   :  { %7159 = vmatpush1.bf16.msra.mxu0 %v9154_v16  ;;  %v9616_v16 = vld [vmem:[#allocation7] sm:$0xff] }
 0x32c   :  { %7487 = vmatpush1.bf16.msra.mxu1 %v9157_v17  ;;  %7160 = vmatprep.subr.bf16.mxu0 %v9162_v18  ;;  %v634_v17 = vrot.slane %v9616_v16, %v633_v3  ;;  %v9217_v18 = vld [vmem:[#allocation8 + $0x7a8] ss:$16 sps:$4 sm:$0xff]   ;;  %v9279_v16 = vld [vmem:[#allocation8 + $0x8ec] ss:$16 sps:$4 sm:$0xff]  }
 0x32d   :  { %7488 = vmatprep.subr.bf16.mxu1 %v9165_v20  ;;  %v9222_v20 = vld [vmem:[#allocation8 + $0x7c4] ss:$16 sps:$4 sm:$0xff]  }
 0x32f   :  { %7161 = vmatpush1.bf16.msra.mxu0 %v9160_v21  ;;  %v9225_v21 = vld [vmem:[#allocation8 + $0x7cc] ss:$16 sps:$4 sm:$0xff]  }
 0x330   :  { %7489 = vmatpush1.bf16.msra.mxu1 %v9163_v25  ;;  %7162 = vmatprep.subr.bf16.mxu0 %v9168_v26  ;;  %v646_v25 = vrot.slane %v9974_v14, %v9915_v19  ;;  %v9220_v26 = vld [vmem:[#allocation8 + $0x7c0] ss:$16 sps:$4 sm:$0xff]  }
 0x331   :  { %v9965_v31 = vpop.f32.mrb[12].mxu0  ;;  %7490 = vmatprep.subr.bf16.mxu1 %v9171_v27  ;;  %v9967_v39 = vpop.f32.mrb[12].mxu1  ;;  %v8736_v27 = vadd.f32 %v9906_v8, %v634_v17  ;;  %v9232_v8 = vld [vmem:[#allocation8 + $0x800] ss:$16 sps:$4 sm:$0xff]  }
 0x332   :  { %v9969_v41 = vpop.f32.mrb[13].mxu0  ;;  %v9971_v36 = vpop.f32.mrb[13].mxu1  ;;  %v9274_v17 = vld [vmem:[#allocation8 + $0x8e0] ss:$16 sps:$4 sm:$0xff]  }
 0x333   :  { %v3818_v43 = vpop.f32.mrb[14].mxu0  ;;  %7163 = vmatpush1.bf16.msra.mxu0 %v9166_v28  ;;  %v3900_v45 = vpop.f32.mrb[14].mxu1  ;;  %v9223_v28 = vld [vmem:[#allocation8 + $0x7c8] ss:$16 sps:$4 sm:$0xff]  }
 0x334   :  { %7491 = vmatpush1.bf16.msra.mxu1 %v9169_v29  ;;  %v3819_v47 = vpop.f32.mrb[15].mxu0  ;;  %7164 = vmatprep.subr.bf16.mxu0 %v9174_v30  ;;  %v3901_v37 = vpop.f32.mrb[15].mxu1  ;;  %v9228_v29 = vld [vmem:[#allocation8 + $0x7e4] ss:$16 sps:$4 sm:$0xff]   ;;  %v9231_v30 = vld [vmem:[#allocation8 + $0x7ec] ss:$16 sps:$4 sm:$0xff]  }
 0x335   :  { %7492 = vmatprep.subr.bf16.mxu1 %v9177_v34  ;;  %v8739_v34 = vadd.f32 %v9940_v38, %v646_v25  ;;  %v9226_v43 = vld [vmem:[#allocation8 + $0x7e0] ss:$16 sps:$4 sm:$0xff]   ;;  %v9229_v45 = vld [vmem:[#allocation8 + $0x7e8] ss:$16 sps:$4 sm:$0xff]   ;;  %v9234_v47 = vld [vmem:[#allocation8 + $0x804] ss:$16 sps:$4 sm:$0xff]  }
 0x336   :  { %v9243_v38 = vld [vmem:[#allocation8 + $0x82c] ss:$16 sps:$4 sm:$0xff]   ;;  %v9280_v25 = vld [vmem:[#allocation8 + $0x900] ss:$16 sps:$4 sm:$0xff]  }
 0x337   :  { %7165 = vmatpush1.bf16.msra.mxu0 %v9172_v44  ;;  %v3909_v44 = vmax.f32 %v8736_v27, 0.0  ;;  %v9288_v27 = vld [vmem:[#allocation8 + $0x924] ss:$16 sps:$4 sm:$0xff]  }
 0x338   :  { %7493 = vmatpush1.bf16.msra.mxu1 %v9175_v48  ;;  %7166 = vmatprep.subr.bf16.mxu0 %v9180_v49  ;;  %v9237_v48 = vld [vmem:[#allocation8 + $0x80c] ss:$16 sps:$4 sm:$0xff]   ;;  %v3912_v49 = vmax.f32 %v8739_v34, 0.0  ;;  %v9294_v34 = vld [vmem:[#allocation8 + $0x944] ss:$16 sps:$4 sm:$0xff]  }
 0x339   :  { %7494 = vmatprep.subr.bf16.mxu1 %v9183_v50  ;;  %v3925_v37 = vpack.c.bf16 %v3909_v44, %v3909_v44  ;;  %v9235_v50 = vld [vmem:[#allocation8 + $0x808] ss:$16 sps:$4 sm:$0xff]   ;;  %v9292_v44 = vld [vmem:[#allocation8 + $0x940] ss:$16 sps:$4 sm:$0xff]  }
 0x33b   :  { %7167 = vmatpush1.bf16.msra.mxu0 %v9178_v51  ;;  %v9240_v51 = vld [vmem:[#allocation8 + $0x824] ss:$16 sps:$4 sm:$0xff]  }
 0x33c   :  { %7495 = vmatpush1.bf16.msra.mxu1 %v9181_v24  ;;  %7168 = vmatprep.subr.bf16.mxu0 %v9186_v52  ;;  %v3928_v24 = vpack.c.bf16 %v3912_v49, %v3912_v49  ;;  %v9238_v52 = vld [vmem:[#allocation8 + $0x820] ss:$16 sps:$4 sm:$0xff]  }
 0x33d   :  { %7496 = vmatprep.subr.bf16.mxu1 %v9189_v53  ;;  %v9241_v53 = vld [vmem:[#allocation8 + $0x828] ss:$16 sps:$4 sm:$0xff]   ;;  %v9298_v49 = vld [vmem:[#allocation8 + $0x960] ss:$16 sps:$4 sm:$0xff]  }
 0x33f   :  { %7169 = vmatpush1.bf16.msra.mxu0 %v9184_v54  ;;  %v9246_v54 = vld [vmem:[#allocation8 + $0x844] ss:$16 sps:$4 sm:$0xff]  }
 0x340   :  { %7497 = vmatpush1.bf16.msra.mxu1 %v9187_v55  ;;  %7170 = vmatprep.subr.bf16.mxu0 %v9192_v56  ;;  %v9249_v55 = vld [vmem:[#allocation8 + $0x84c] ss:$16 sps:$4 sm:$0xff]   ;;  %v9244_v56 = vld [vmem:[#allocation8 + $0x840] ss:$16 sps:$4 sm:$0xff]  }
 0x341   :  { %7498 = vmatprep.subr.bf16.mxu1 %v9195_v23  ;;  %v9247_v23 = vld [vmem:[#allocation8 + $0x848] ss:$16 sps:$4 sm:$0xff]  }
 0x343   :  { %7171 = vmatpush1.bf16.msra.mxu0 %v9190_v58  ;;  %v9252_v58 = vld [vmem:[#allocation8 + $0x864] ss:$16 sps:$4 sm:$0xff]  }
 0x344   :  { %7499 = vmatpush1.bf16.msra.mxu1 %v9193_v59  ;;  %7172 = vmatprep.subr.bf16.mxu0 %v9198_v60  ;;  %v9255_v59 = vld [vmem:[#allocation8 + $0x86c] ss:$16 sps:$4 sm:$0xff]   ;;  %v9250_v60 = vld [vmem:[#allocation8 + $0x860] ss:$16 sps:$4 sm:$0xff]  }
 0x345   :  { %7500 = vmatprep.subr.bf16.mxu1 %v9201_v22  ;;  %v9253_v22 = vld [vmem:[#allocation8 + $0x868] ss:$16 sps:$4 sm:$0xff]  }
 0x347   :  { %7173 = vmatpush1.bf16.msra.mxu0 %v9196_v61  ;;  %v9258_v61 = vld [vmem:[#allocation8 + $0x884] ss:$16 sps:$4 sm:$0xff]  }
 0x348   :  { %7501 = vmatpush1.bf16.msra.mxu1 %v9199_v4  ;;  %7174 = vmatprep.subr.bf16.mxu0 %v9204_v62  ;;  %v9261_v4 = vld [vmem:[#allocation8 + $0x88c] ss:$16 sps:$4 sm:$0xff]   ;;  %v9256_v62 = vld [vmem:[#allocation8 + $0x880] ss:$16 sps:$4 sm:$0xff]  }
 0x349   :  { %7502 = vmatprep.subr.bf16.mxu1 %v9207_v32  ;;  %v9259_v32 = vld [vmem:[#allocation8 + $0x888] ss:$16 sps:$4 sm:$0xff]  }
 0x34b   :  { %7175 = vmatpush1.bf16.msra.mxu0 %v9202_v63  ;;  %v9264_v63 = vld [vmem:[#allocation8 + $0x8a4] ss:$16 sps:$4 sm:$0xff]  }
 0x34c   :  { %7503 = vmatpush1.bf16.msra.mxu1 %v9205_v0  ;;  %7176 = vmatprep.subr.bf16.mxu0 %v9210_v13  ;;  %v9267_v0 = vld [vmem:[#allocation8 + $0x8ac] ss:$16 sps:$4 sm:$0xff]   ;;  %v9262_v13 = vld [vmem:[#allocation8 + $0x8a0] ss:$16 sps:$4 sm:$0xff]  }
 0x34d   :  { %7504 = vmatprep.subr.bf16.mxu1 %v9213_v1  ;;  %v9265_v1 = vld [vmem:[#allocation8 + $0x8a8] ss:$16 sps:$4 sm:$0xff]  }
 0x34f   :  { %7177 = vmatpush1.bf16.msra.mxu0 %v9208_v2  ;;  %v9270_v2 = vld [vmem:[#allocation8 + $0x8c4] ss:$16 sps:$4 sm:$0xff]  }
 0x350   :  { %7505 = vmatpush1.bf16.msra.mxu1 %v9211_v5  ;;  %7178 = vmatprep.subr.bf16.mxu0 %v9216_v7  ;;  %v9273_v5 = vld [vmem:[#allocation8 + $0x8cc] ss:$16 sps:$4 sm:$0xff]   ;;  %v9268_v7 = vld [vmem:[#allocation8 + $0x8c0] ss:$16 sps:$4 sm:$0xff]  }
 0x351   :  { %7506 = vmatprep.subr.bf16.mxu1 %v9219_v11  ;;  %v9271_v11 = vld [vmem:[#allocation8 + $0x8c8] ss:$16 sps:$4 sm:$0xff]  }
 0x353   :  { %7179 = vmatpush1.bf16.msra.mxu0 %v9214_v15  ;;  %v9276_v15 = vld [vmem:[#allocation8 + $0x8e4] ss:$16 sps:$4 sm:$0xff]  }
 0x354   :  { %7507 = vmatpush1.bf16.msra.mxu1 %v9217_v18  ;;  %7180 = vmatprep.subr.bf16.mxu0 %v9222_v20  ;;  %v9277_v18 = vld [vmem:[#allocation8 + $0x8e8] ss:$16 sps:$4 sm:$0xff]   ;;  %v9282_v20 = vld [vmem:[#allocation8 + $0x904] ss:$16 sps:$4 sm:$0xff]  }
 0x355   :  { %7508 = vmatprep.subr.bf16.mxu1 %v9225_v21  ;;  %v9285_v21 = vld [vmem:[#allocation8 + $0x90c] ss:$16 sps:$4 sm:$0xff]  }
 0x357   :  { %7181 = vmatpush1.bf16.msra.mxu0 %v9220_v26  ;;  %v9283_v26 = vld [vmem:[#allocation8 + $0x908] ss:$16 sps:$4 sm:$0xff]  }
 0x358   :  { %7509 = vmatpush1.bf16.msra.mxu1 %v9223_v28  ;;  %7182 = vmatprep.subr.bf16.mxu0 %v9228_v29  ;;  %v9291_v28 = vld [vmem:[#allocation8 + $0x92c] ss:$16 sps:$4 sm:$0xff]   ;;  %v9286_v29 = vld [vmem:[#allocation8 + $0x920] ss:$16 sps:$4 sm:$0xff]  }
 0x359   :  { %7510 = vmatprep.subr.bf16.mxu1 %v9231_v30  ;;  %v9289_v30 = vld [vmem:[#allocation8 + $0x928] ss:$16 sps:$4 sm:$0xff]  }
 0x35b   :  { %7183 = vmatpush1.bf16.msra.mxu0 %v9226_v43  ;;  %v9297_v43 = vld [vmem:[#allocation8 + $0x94c] ss:$16 sps:$4 sm:$0xff]  }
 0x35c   :  { %7511 = vmatpush1.bf16.msra.mxu1 %v9229_v45  ;;  %7193 = vmatprep.subr.bf16.mxu0 %v9234_v47  ;;  %v9295_v45 = vld [vmem:[#allocation8 + $0x948] ss:$16 sps:$4 sm:$0xff]   ;;  %v9300_v47 = vld [vmem:[#allocation8 + $0x964] ss:$16 sps:$4 sm:$0xff]  }
 0x35d   :  { %7521 = vmatprep.subr.bf16.mxu1 %v9237_v48  ;;  %v9303_v48 = vld [vmem:[#allocation8 + $0x96c] ss:$16 sps:$4 sm:$0xff]  }
 0x35e   :  { %7185 = vmatmul.mubr.bf16.vlgmr.msra.gmra.mrb[16].mxu0 %v3925_v37 }
 0x35f   :  { %7513 = vmatmul.mubr.bf16.vlgmr.msra.gmra.mrb[16].mxu1 %v3925_v37  ;;  %7194 = vmatpush1.bf16.msra.mxu0 %v9232_v8  ;;  %v9301_v8 = vld [vmem:[#allocation8 + $0x968] ss:$16 sps:$4 sm:$0xff]   ;;  %v9306_v37 = vld [vmem:[#allocation8 + $0x984] ss:$16 sps:$4 sm:$0xff]  }
 0x360   :  { %7225 = vmatprep.mubr.bf16.mxu0 %v3928_v24  ;;  %7522 = vmatpush1.bf16.msra.mxu1 %v9235_v50  ;;  %v9309_v50 = vld [vmem:[#allocation8 + $0x98c] ss:$16 sps:$4 sm:$0xff]  }
 0x361   :  { %7553 = vmatprep.mubr.bf16.mxu1 %v3928_v24  ;;  %7195 = vmatprep.subr.bf16.mxu0 %v9240_v51  ;;  %v9304_v51 = vld [vmem:[#allocation8 + $0x980] ss:$16 sps:$4 sm:$0xff]   ;;  %v9307_v24 = vld [vmem:[#allocation8 + $0x988] ss:$16 sps:$4 sm:$0xff]  }
 0x362   :  { %7523 = vmatprep.subr.bf16.mxu1 %v9243_v38  ;;  %v9312_v38 = vld [vmem:[#allocation8 + $0x9a4] ss:$16 sps:$4 sm:$0xff]  }
 0x363   :  { %7196 = vmatpush1.bf16.msra.mxu0 %v9238_v52  ;;  %v9315_v52 = vld [vmem:[#allocation8 + $0x9ac] ss:$16 sps:$4 sm:$0xff]  }
 0x364   :  { %7524 = vmatpush1.bf16.msra.mxu1 %v9241_v53  ;;  %7197 = vmatprep.subr.bf16.mxu0 %v9246_v54  ;;  %v9310_v53 = vld [vmem:[#allocation8 + $0x9a0] ss:$16 sps:$4 sm:$0xff]   ;;  %v642_v54 = vrot.slane %v9974_v14, %v9925_v12 }
 0x365   :  { %7525 = vmatprep.subr.bf16.mxu1 %v9249_v55  ;;  %v9313_v55 = vld [vmem:[#allocation8 + $0x9a8] ss:$16 sps:$4 sm:$0xff]  }
 0x367   :  { %7198 = vmatpush1.bf16.msra.mxu0 %v9244_v56  ;;  %v9318_v56 = vld [vmem:[#allocation8 + $0x9c4] ss:$16 sps:$4 sm:$0xff]  }
 0x368   :  { %7526 = vmatpush1.bf16.msra.mxu1 %v9247_v23  ;;  %7199 = vmatprep.subr.bf16.mxu0 %v9252_v58  ;;  %v9321_v23 = vld [vmem:[#allocation8 + $0x9cc] ss:$16 sps:$4 sm:$0xff]   ;;  %v654_v58 = vrot.slane %v9974_v14, %v9928_v46 }
 0x369   :  { %7527 = vmatprep.subr.bf16.mxu1 %v9255_v59  ;;  %v9316_v59 = vld [vmem:[#allocation8 + $0x9c0] ss:$16 sps:$4 sm:$0xff]  }
 0x36b   :  { %7200 = vmatpush1.bf16.msra.mxu0 %v9250_v60  ;;  %v8738_v60 = vadd.f32 %v9936_v33, %v642_v54  ;;  %v9328_v33 = vld [vmem:[#allocation8 + $0xa00] ss:$16 sps:$4 sm:$0xff]   ;;  %v9378_v54 = vld [vmem:[#allocation8 + $0xb04] ss:$16 sps:$4 sm:$0xff]  }
 0x36c   :  { %7528 = vmatpush1.bf16.msra.mxu1 %v9253_v22  ;;  %7201 = vmatprep.subr.bf16.mxu0 %v9258_v61  ;;  %v9319_v22 = vld [vmem:[#allocation8 + $0x9c8] ss:$16 sps:$4 sm:$0xff]   ;;  %v9324_v61 = vld [vmem:[#allocation8 + $0x9e4] ss:$16 sps:$4 sm:$0xff]  }
 0x36d   :  { %7529 = vmatprep.subr.bf16.mxu1 %v9261_v4  ;;  %v9327_v4 = vld [vmem:[#allocation8 + $0x9ec] ss:$16 sps:$4 sm:$0xff]  }
 0x36f   :  { %7202 = vmatpush1.bf16.msra.mxu0 %v9256_v62  ;;  %v8741_v62 = vadd.f32 %v9942_v57, %v654_v58  ;;  %v9339_v57 = vld [vmem:[#allocation8 + $0xa2c] ss:$16 sps:$4 sm:$0xff]   ;;  %v9384_v58 = vld [vmem:[#allocation8 + $0xb24] ss:$16 sps:$4 sm:$0xff]  }
 0x370   :  { %7530 = vmatpush1.bf16.msra.mxu1 %v9259_v32  ;;  %7203 = vmatprep.subr.bf16.mxu0 %v9264_v63  ;;  %v9322_v32 = vld [vmem:[#allocation8 + $0x9e0] ss:$16 sps:$4 sm:$0xff]   ;;  %v3911_v63 = vmax.f32 %v8738_v60, 0.0 }
 0x371   :  { %7531 = vmatprep.subr.bf16.mxu1 %v9267_v0  ;;  %v9325_v0 = vld [vmem:[#allocation8 + $0x9e8] ss:$16 sps:$4 sm:$0xff]   ;;  %v9382_v60 = vld [vmem:[#allocation8 + $0xb20] ss:$16 sps:$4 sm:$0xff]  }
 0x373   :  { %7204 = vmatpush1.bf16.msra.mxu0 %v9262_v13  ;;  %v9330_v13 = vld [vmem:[#allocation8 + $0xa04] ss:$16 sps:$4 sm:$0xff]  }
 0x374   :  { %7532 = vmatpush1.bf16.msra.mxu1 %v9265_v1  ;;  %7205 = vmatprep.subr.bf16.mxu0 %v9270_v2  ;;  %v9333_v1 = vld [vmem:[#allocation8 + $0xa0c] ss:$16 sps:$4 sm:$0xff]   ;;  %v3914_v2 = vmax.f32 %v8741_v62, 0.0  ;;  %v9388_v62 = vld [vmem:[#allocation8 + $0xb40] ss:$16 sps:$4 sm:$0xff]  }
 0x375   :  { %7533 = vmatprep.subr.bf16.mxu1 %v9273_v5  ;;  %v3927_v5 = vpack.c.bf16 %v3911_v63, %v3911_v63  ;;  %v9396_v63 = vld [vmem:[#allocation8 + $0xb64] ss:$16 sps:$4 sm:$0xff]  }
 0x377   :  { %7206 = vmatpush1.bf16.msra.mxu0 %v9268_v7  ;;  %v9331_v7 = vld [vmem:[#allocation8 + $0xa08] ss:$16 sps:$4 sm:$0xff]  }
 0x378   :  { %7534 = vmatpush1.bf16.msra.mxu1 %v9271_v11  ;;  %7207 = vmatprep.subr.bf16.mxu0 %v9276_v15  ;;  %v9336_v11 = vld [vmem:[#allocation8 + $0xa24] ss:$16 sps:$4 sm:$0xff]   ;;  %v3930_v15 = vpack.c.bf16 %v3914_v2, %v3914_v2 }
 0x379   :  { %7535 = vmatprep.subr.bf16.mxu1 %v9279_v16  ;;  %v9334_v16 = vld [vmem:[#allocation8 + $0xa20] ss:$16 sps:$4 sm:$0xff]   ;;  %v9402_v2 = vld [vmem:[#allocation8 + $0xb84] ss:$16 sps:$4 sm:$0xff]  }
 0x37b   :  { %7208 = vmatpush1.bf16.msra.mxu0 %v9274_v17  ;;  %v9337_v17 = vld [vmem:[#allocation8 + $0xa28] ss:$16 sps:$4 sm:$0xff]  }
 0x37c   :  { %7536 = vmatpush1.bf16.msra.mxu1 %v9277_v18  ;;  %7209 = vmatprep.subr.bf16.mxu0 %v9282_v20  ;;  %v9342_v18 = vld [vmem:[#allocation8 + $0xa44] ss:$16 sps:$4 sm:$0xff]   ;;  %v9345_v20 = vld [vmem:[#allocation8 + $0xa4c] ss:$16 sps:$4 sm:$0xff]  }
 0x37d   :  { %7537 = vmatprep.subr.bf16.mxu1 %v9285_v21  ;;  %v9340_v21 = vld [vmem:[#allocation8 + $0xa40] ss:$16 sps:$4 sm:$0xff]  }
 0x37f   :  { %7210 = vmatpush1.bf16.msra.mxu0 %v9280_v25  ;;  %v9343_v25 = vld [vmem:[#allocation8 + $0xa48] ss:$16 sps:$4 sm:$0xff]  }
 0x380   :  { %7538 = vmatpush1.bf16.msra.mxu1 %v9283_v26  ;;  %7211 = vmatprep.subr.bf16.mxu0 %v9288_v27  ;;  %v9348_v26 = vld [vmem:[#allocation8 + $0xa64] ss:$16 sps:$4 sm:$0xff]   ;;  %v9351_v27 = vld [vmem:[#allocation8 + $0xa6c] ss:$16 sps:$4 sm:$0xff]  }
 0x381   :  { %7539 = vmatprep.subr.bf16.mxu1 %v9291_v28  ;;  %v9346_v28 = vld [vmem:[#allocation8 + $0xa60] ss:$16 sps:$4 sm:$0xff]  }
 0x383   :  { %7212 = vmatpush1.bf16.msra.mxu0 %v9286_v29  ;;  %v9349_v29 = vld [vmem:[#allocation8 + $0xa68] ss:$16 sps:$4 sm:$0xff]  }
 0x384   :  { %7540 = vmatpush1.bf16.msra.mxu1 %v9289_v30  ;;  %7213 = vmatprep.subr.bf16.mxu0 %v9294_v34  ;;  %v9354_v30 = vld [vmem:[#allocation8 + $0xa84] ss:$16 sps:$4 sm:$0xff]   ;;  %v9357_v34 = vld [vmem:[#allocation8 + $0xa8c] ss:$16 sps:$4 sm:$0xff]  }
 0x385   :  { %7541 = vmatprep.subr.bf16.mxu1 %v9297_v43  ;;  %v9352_v43 = vld [vmem:[#allocation8 + $0xa80] ss:$16 sps:$4 sm:$0xff]  }
 0x387   :  { %7214 = vmatpush1.bf16.msra.mxu0 %v9292_v44  ;;  %v9355_v44 = vld [vmem:[#allocation8 + $0xa88] ss:$16 sps:$4 sm:$0xff]  }
 0x388   :  { %7542 = vmatpush1.bf16.msra.mxu1 %v9295_v45  ;;  %7215 = vmatprep.subr.bf16.mxu0 %v9300_v47  ;;  %v9360_v45 = vld [vmem:[#allocation8 + $0xaa4] ss:$16 sps:$4 sm:$0xff]   ;;  %v9363_v47 = vld [vmem:[#allocation8 + $0xaac] ss:$16 sps:$4 sm:$0xff]  }
 0x389   :  { %7543 = vmatprep.subr.bf16.mxu1 %v9303_v48  ;;  %v9358_v48 = vld [vmem:[#allocation8 + $0xaa0] ss:$16 sps:$4 sm:$0xff]  }
 0x38b   :  { %7216 = vmatpush1.bf16.msra.mxu0 %v9298_v49  ;;  %v9361_v49 = vld [vmem:[#allocation8 + $0xaa8] ss:$16 sps:$4 sm:$0xff]  }
 0x38c   :  { %7544 = vmatpush1.bf16.msra.mxu1 %v9301_v8  ;;  %7217 = vmatprep.subr.bf16.mxu0 %v9306_v37  ;;  %v9366_v8 = vld [vmem:[#allocation8 + $0xac4] ss:$16 sps:$4 sm:$0xff]   ;;  %v9369_v37 = vld [vmem:[#allocation8 + $0xacc] ss:$16 sps:$4 sm:$0xff]  }
 0x38d   :  { %7545 = vmatprep.subr.bf16.mxu1 %v9309_v50  ;;  %v9364_v50 = vld [vmem:[#allocation8 + $0xac0] ss:$16 sps:$4 sm:$0xff]  }
 0x38f   :  { %7218 = vmatpush1.bf16.msra.mxu0 %v9304_v51  ;;  %v9367_v51 = vld [vmem:[#allocation8 + $0xac8] ss:$16 sps:$4 sm:$0xff]  }
 0x390   :  { %7546 = vmatpush1.bf16.msra.mxu1 %v9307_v24  ;;  %7219 = vmatprep.subr.bf16.mxu0 %v9312_v38  ;;  %v9372_v24 = vld [vmem:[#allocation8 + $0xae4] ss:$16 sps:$4 sm:$0xff]   ;;  %v9375_v38 = vld [vmem:[#allocation8 + $0xaec] ss:$16 sps:$4 sm:$0xff]  }
 0x391   :  { %7547 = vmatprep.subr.bf16.mxu1 %v9315_v52  ;;  %v9370_v52 = vld [vmem:[#allocation8 + $0xae0] ss:$16 sps:$4 sm:$0xff]  }
 0x393   :  { %7220 = vmatpush1.bf16.msra.mxu0 %v9310_v53  ;;  %v9373_v53 = vld [vmem:[#allocation8 + $0xae8] ss:$16 sps:$4 sm:$0xff]  }
 0x394   :  { %7548 = vmatpush1.bf16.msra.mxu1 %v9313_v55  ;;  %7221 = vmatprep.subr.bf16.mxu0 %v9318_v56  ;;  %v9381_v55 = vld [vmem:[#allocation8 + $0xb0c] ss:$16 sps:$4 sm:$0xff]   ;;  %v9376_v56 = vld [vmem:[#allocation8 + $0xb00] ss:$16 sps:$4 sm:$0xff]  }
 0x395   :  { %7549 = vmatprep.subr.bf16.mxu1 %v9321_v23  ;;  %v9379_v23 = vld [vmem:[#allocation8 + $0xb08] ss:$16 sps:$4 sm:$0xff]  }
 0x397   :  { %7222 = vmatpush1.bf16.msra.mxu0 %v9316_v59  ;;  %v9387_v59 = vld [vmem:[#allocation8 + $0xb2c] ss:$16 sps:$4 sm:$0xff]  }
 0x398   :  { %7550 = vmatpush1.bf16.msra.mxu1 %v9319_v22  ;;  %7223 = vmatprep.subr.bf16.mxu0 %v9324_v61  ;;  %v9385_v22 = vld [vmem:[#allocation8 + $0xb28] ss:$16 sps:$4 sm:$0xff]   ;;  %v9390_v61 = vld [vmem:[#allocation8 + $0xb44] ss:$16 sps:$4 sm:$0xff]  }
 0x399   :  { %7551 = vmatprep.subr.bf16.mxu1 %v9327_v4  ;;  %v9393_v4 = vld [vmem:[#allocation8 + $0xb4c] ss:$16 sps:$4 sm:$0xff]  }
 0x39b   :  { %7224 = vmatpush1.bf16.msra.mxu0 %v9322_v32  ;;  %v9391_v32 = vld [vmem:[#allocation8 + $0xb48] ss:$16 sps:$4 sm:$0xff]  }
 0x39c   :  { %7552 = vmatpush1.bf16.msra.mxu1 %v9325_v0  ;;  %7234 = vmatprep.subr.bf16.mxu0 %v9330_v13  ;;  %v9399_v0 = vld [vmem:[#allocation8 + $0xb6c] ss:$16 sps:$4 sm:$0xff]   ;;  %v9394_v13 = vld [vmem:[#allocation8 + $0xb60] ss:$16 sps:$4 sm:$0xff]  }
 0x39d   :  { %7562 = vmatprep.subr.bf16.mxu1 %v9333_v1  ;;  %v9397_v1 = vld [vmem:[#allocation8 + $0xb68] ss:$16 sps:$4 sm:$0xff]  }
 0x39e   :  { %7226 = vmatmul.mubr.bf16.vlgmr.msra.gmra.mrb[16].mxu0 %v3927_v5 }
 0x39f   :  { %7554 = vmatmul.mubr.bf16.vlgmr.msra.gmra.mrb[16].mxu1 %v3927_v5  ;;  %7235 = vmatpush1.bf16.msra.mxu0 %v9328_v33  ;;  %v9405_v33 = vld [vmem:[#allocation8 + $0xb8c] ss:$16 sps:$4 sm:$0xff]   ;;  %v9400_v5 = vld [vmem:[#allocation8 + $0xb80] ss:$16 sps:$4 sm:$0xff]  }
 0x3a0   :  { %7266 = vmatprep.mubr.bf16.mxu0 %v3930_v15  ;;  %7563 = vmatpush1.bf16.msra.mxu1 %v9331_v7  ;;  %v9403_v7 = vld [vmem:[#allocation8 + $0xb88] ss:$16 sps:$4 sm:$0xff]  }
 0x3a1   :  { %7594 = vmatprep.mubr.bf16.mxu1 %v3930_v15  ;;  %7236 = vmatprep.subr.bf16.mxu0 %v9336_v11  ;;  %v9408_v11 = vld [vmem:[#allocation8 + $0xba4] ss:$16 sps:$4 sm:$0xff]   ;;  %v9411_v15 = vld [vmem:[#allocation8 + $0xbac] ss:$16 sps:$4 sm:$0xff]  }
 0x3a2   :  { %7564 = vmatprep.subr.bf16.mxu1 %v9339_v57  ;;  %v9406_v57 = vld [vmem:[#allocation8 + $0xba0] ss:$16 sps:$4 sm:$0xff]  }
 0x3a3   :  { %7237 = vmatpush1.bf16.msra.mxu0 %v9334_v16  ;;  %v650_v16 = vrot.slane %v9974_v14, %v9945_v40 }
 0x3a4   :  { %7565 = vmatpush1.bf16.msra.mxu1 %v9337_v17  ;;  %7238 = vmatprep.subr.bf16.mxu0 %v9342_v18  ;;  %v9409_v17 = vld [vmem:[#allocation8 + $0xba8] ss:$16 sps:$4 sm:$0xff]   ;;  %v9414_v18 = vld [vmem:[#allocation8 + $0xbc4] ss:$16 sps:$4 sm:$0xff]  }
 0x3a5   :  { %7566 = vmatprep.subr.bf16.mxu1 %v9345_v20  ;;  %v9417_v20 = vld [vmem:[#allocation8 + $0xbcc] ss:$16 sps:$4 sm:$0xff]  }
 0x3a7   :  { %7239 = vmatpush1.bf16.msra.mxu0 %v9340_v21  ;;  %v662_v21 = vrot.slane %v9974_v14, %v629_v10  ;;  %v9429_v10 = vld [vmem:[#allocation8 + $0xc0c] ss:$16 sps:$4 sm:$0xff]  }
 0x3a8   :  { %7567 = vmatpush1.bf16.msra.mxu1 %v9343_v25  ;;  %7240 = vmatprep.subr.bf16.mxu0 %v9348_v26  ;;  %v9412_v25 = vld [vmem:[#allocation8 + $0xbc0] ss:$16 sps:$4 sm:$0xff]   ;;  %v8740_v26 = vadd.f32 %v9938_v35, %v650_v16  ;;  %v9475_v16 = vld [vmem:[#allocation8 + $0xd08] ss:$16 sps:$4 sm:$0xff]  }
 0x3a9   :  { %7568 = vmatprep.subr.bf16.mxu1 %v9351_v27  ;;  %v9415_v27 = vld [vmem:[#allocation8 + $0xbc8] ss:$16 sps:$4 sm:$0xff]   ;;  %v9424_v35 = vld [vmem:[#allocation8 + $0xc00] ss:$16 sps:$4 sm:$0xff]  }
 0x3ab   :  { %7241 = vmatpush1.bf16.msra.mxu0 %v9346_v28  ;;  %v9420_v28 = vld [vmem:[#allocation8 + $0xbe4] ss:$16 sps:$4 sm:$0xff]  }
 0x3ac   :  { %7569 = vmatpush1.bf16.msra.mxu1 %v9349_v29  ;;  %7242 = vmatprep.subr.bf16.mxu0 %v9354_v30  ;;  %v9423_v29 = vld [vmem:[#allocation8 + $0xbec] ss:$16 sps:$4 sm:$0xff]   ;;  %v8743_v30 = vadd.f32 %v9969_v41, %v662_v21  ;;  %v9481_v21 = vld [vmem:[#allocation8 + $0xd28] ss:$16 sps:$4 sm:$0xff]  }
 0x3ad   :  { %7570 = vmatprep.subr.bf16.mxu1 %v9357_v34  ;;  %v9418_v34 = vld [vmem:[#allocation8 + $0xbe0] ss:$16 sps:$4 sm:$0xff]   ;;  %v9435_v41 = vld [vmem:[#allocation8 + $0xc2c] ss:$16 sps:$4 sm:$0xff]  }
 0x3af   :  { %7243 = vmatpush1.bf16.msra.mxu0 %v9352_v43  ;;  %v3913_v43 = vmax.f32 %v8740_v26, 0.0  ;;  %v9489_v26 = vld [vmem:[#allocation8 + $0xd4c] ss:$16 sps:$4 sm:$0xff]  }
 0x3b0   :  { %7571 = vmatpush1.bf16.msra.mxu1 %v9355_v44  ;;  %7244 = vmatprep.subr.bf16.mxu0 %v9360_v45  ;;  %v9421_v44 = vld [vmem:[#allocation8 + $0xbe8] ss:$16 sps:$4 sm:$0xff]   ;;  %v9426_v45 = vld [vmem:[#allocation8 + $0xc04] ss:$16 sps:$4 sm:$0xff]  }
 0x3b1   :  { %7572 = vmatprep.subr.bf16.mxu1 %v9363_v47  ;;  %v3916_v47 = vmax.f32 %v8743_v30, 0.0  ;;  %v9495_v30 = vld [vmem:[#allocation8 + $0xd6c] ss:$16 sps:$4 sm:$0xff]  }
 0x3b3   :  { %7245 = vmatpush1.bf16.msra.mxu0 %v9358_v48  ;;  %v3929_v48 = vpack.c.bf16 %v3913_v43, %v3913_v43  ;;  %v9493_v43 = vld [vmem:[#allocation8 + $0xd68] ss:$16 sps:$4 sm:$0xff]  }
 0x3b4   :  { %7573 = vmatpush1.bf16.msra.mxu1 %v9361_v49  ;;  %7246 = vmatprep.subr.bf16.mxu0 %v9366_v8  ;;  %v9427_v49 = vld [vmem:[#allocation8 + $0xc08] ss:$16 sps:$4 sm:$0xff]   ;;  %v9432_v8 = vld [vmem:[#allocation8 + $0xc24] ss:$16 sps:$4 sm:$0xff]  }
 0x3b5   :  { %7574 = vmatprep.subr.bf16.mxu1 %v9369_v37  ;;  %v3932_v37 = vpack.c.bf16 %v3916_v47, %v3916_v47  ;;  %v9499_v47 = vld [vmem:[#allocation8 + $0xd88] ss:$16 sps:$4 sm:$0xff]  }
 0x3b7   :  { %7247 = vmatpush1.bf16.msra.mxu0 %v9364_v50  ;;  %v9430_v50 = vld [vmem:[#allocation8 + $0xc20] ss:$16 sps:$4 sm:$0xff]  }
 0x3b8   :  { %7575 = vmatpush1.bf16.msra.mxu1 %v9367_v51  ;;  %7248 = vmatprep.subr.bf16.mxu0 %v9372_v24  ;;  %v9433_v51 = vld [vmem:[#allocation8 + $0xc28] ss:$16 sps:$4 sm:$0xff]   ;;  %v9438_v24 = vld [vmem:[#allocation8 + $0xc44] ss:$16 sps:$4 sm:$0xff]  }
 0x3b9   :  { %7576 = vmatprep.subr.bf16.mxu1 %v9375_v38  ;;  %v9441_v38 = vld [vmem:[#allocation8 + $0xc4c] ss:$16 sps:$4 sm:$0xff]  }
 0x3bb   :  { %7249 = vmatpush1.bf16.msra.mxu0 %v9370_v52  ;;  %v9436_v52 = vld [vmem:[#allocation8 + $0xc40] ss:$16 sps:$4 sm:$0xff]  }
 0x3bc   :  { %7577 = vmatpush1.bf16.msra.mxu1 %v9373_v53  ;;  %7250 = vmatprep.subr.bf16.mxu0 %v9378_v54  ;;  %v9439_v53 = vld [vmem:[#allocation8 + $0xc48] ss:$16 sps:$4 sm:$0xff]   ;;  %v9444_v54 = vld [vmem:[#allocation8 + $0xc64] ss:$16 sps:$4 sm:$0xff]  }
 0x3bd   :  { %7578 = vmatprep.subr.bf16.mxu1 %v9381_v55  ;;  %v9447_v55 = vld [vmem:[#allocation8 + $0xc6c] ss:$16 sps:$4 sm:$0xff]  }
 0x3bf   :  { %7251 = vmatpush1.bf16.msra.mxu0 %v9376_v56  ;;  %v9442_v56 = vld [vmem:[#allocation8 + $0xc60] ss:$16 sps:$4 sm:$0xff]  }
 0x3c0   :  { %7579 = vmatpush1.bf16.msra.mxu1 %v9379_v23  ;;  %7252 = vmatprep.subr.bf16.mxu0 %v9384_v58  ;;  %v9445_v23 = vld [vmem:[#allocation8 + $0xc68] ss:$16 sps:$4 sm:$0xff]   ;;  %v9450_v58 = vld [vmem:[#allocation8 + $0xc84] ss:$16 sps:$4 sm:$0xff]  }
 0x3c1   :  { %7580 = vmatprep.subr.bf16.mxu1 %v9387_v59  ;;  %v9453_v59 = vld [vmem:[#allocation8 + $0xc8c] ss:$16 sps:$4 sm:$0xff]  }
 0x3c3   :  { %7253 = vmatpush1.bf16.msra.mxu0 %v9382_v60  ;;  %v9448_v60 = vld [vmem:[#allocation8 + $0xc80] ss:$16 sps:$4 sm:$0xff]  }
 0x3c4   :  { %7581 = vmatpush1.bf16.msra.mxu1 %v9385_v22  ;;  %7254 = vmatprep.subr.bf16.mxu0 %v9390_v61  ;;  %v9451_v22 = vld [vmem:[#allocation8 + $0xc88] ss:$16 sps:$4 sm:$0xff]   ;;  %v9456_v61 = vld [vmem:[#allocation8 + $0xca4] ss:$16 sps:$4 sm:$0xff]  }
 0x3c5   :  { %7582 = vmatprep.subr.bf16.mxu1 %v9393_v4  ;;  %v9459_v4 = vld [vmem:[#allocation8 + $0xcac] ss:$16 sps:$4 sm:$0xff]  }
 0x3c7   :  { %7255 = vmatpush1.bf16.msra.mxu0 %v9388_v62  ;;  %v9454_v62 = vld [vmem:[#allocation8 + $0xca0] ss:$16 sps:$4 sm:$0xff]  }
 0x3c8   :  { %7583 = vmatpush1.bf16.msra.mxu1 %v9391_v32  ;;  %7256 = vmatprep.subr.bf16.mxu0 %v9396_v63  ;;  %v9457_v32 = vld [vmem:[#allocation8 + $0xca8] ss:$16 sps:$4 sm:$0xff]   ;;  %v9462_v63 = vld [vmem:[#allocation8 + $0xcc4] ss:$16 sps:$4 sm:$0xff]  }
 0x3c9   :  { %7584 = vmatprep.subr.bf16.mxu1 %v9399_v0  ;;  %v9465_v0 = vld [vmem:[#allocation8 + $0xccc] ss:$16 sps:$4 sm:$0xff]  }
 0x3cb   :  { %7257 = vmatpush1.bf16.msra.mxu0 %v9394_v13  ;;  %v9460_v13 = vld [vmem:[#allocation8 + $0xcc0] ss:$16 sps:$4 sm:$0xff]  }
 0x3cc   :  { %7585 = vmatpush1.bf16.msra.mxu1 %v9397_v1  ;;  %7258 = vmatprep.subr.bf16.mxu0 %v9402_v2  ;;  %v9463_v1 = vld [vmem:[#allocation8 + $0xcc8] ss:$16 sps:$4 sm:$0xff]   ;;  %v9468_v2 = vld [vmem:[#allocation8 + $0xce4] ss:$16 sps:$4 sm:$0xff]  }
 0x3cd   :  { %7586 = vmatprep.subr.bf16.mxu1 %v9405_v33  ;;  %v9471_v33 = vld [vmem:[#allocation8 + $0xcec] ss:$16 sps:$4 sm:$0xff]  }
 0x3cf   :  { %7259 = vmatpush1.bf16.msra.mxu0 %v9400_v5  ;;  %v9466_v5 = vld [vmem:[#allocation8 + $0xce0] ss:$16 sps:$4 sm:$0xff]  }
 0x3d0   :  { %7587 = vmatpush1.bf16.msra.mxu1 %v9403_v7  ;;  %7260 = vmatprep.subr.bf16.mxu0 %v9408_v11  ;;  %v9469_v7 = vld [vmem:[#allocation8 + $0xce8] ss:$16 sps:$4 sm:$0xff]   ;;  %v9474_v11 = vld [vmem:[#allocation8 + $0xd04] ss:$16 sps:$4 sm:$0xff]  }
 0x3d1   :  { %7588 = vmatprep.subr.bf16.mxu1 %v9411_v15  ;;  %v9477_v15 = vld [vmem:[#allocation8 + $0xd0c] ss:$16 sps:$4 sm:$0xff]  }
 0x3d3   :  { %7261 = vmatpush1.bf16.msra.mxu0 %v9406_v57  ;;  %v9472_v57 = vld [vmem:[#allocation8 + $0xd00] ss:$16 sps:$4 sm:$0xff]  }
 0x3d4   :  { %7589 = vmatpush1.bf16.msra.mxu1 %v9409_v17  ;;  %7262 = vmatprep.subr.bf16.mxu0 %v9414_v18  ;;  %v9480_v17 = vld [vmem:[#allocation8 + $0xd24] ss:$16 sps:$4 sm:$0xff]   ;;  %v9483_v18 = vld [vmem:[#allocation8 + $0xd2c] ss:$16 sps:$4 sm:$0xff]  }
 0x3d5   :  { %7590 = vmatprep.subr.bf16.mxu1 %v9417_v20  ;;  %v9478_v20 = vld [vmem:[#allocation8 + $0xd20] ss:$16 sps:$4 sm:$0xff]  }
 0x3d7   :  { %7263 = vmatpush1.bf16.msra.mxu0 %v9412_v25  ;;  %v9486_v25 = vld [vmem:[#allocation8 + $0xd44] ss:$16 sps:$4 sm:$0xff]  }
 0x3d8   :  { %7591 = vmatpush1.bf16.msra.mxu1 %v9415_v27  ;;  %7264 = vmatprep.subr.bf16.mxu0 %v9420_v28  ;;  %v9484_v27 = vld [vmem:[#allocation8 + $0xd40] ss:$16 sps:$4 sm:$0xff]   ;;  %v9487_v28 = vld [vmem:[#allocation8 + $0xd48] ss:$16 sps:$4 sm:$0xff]  }
 0x3d9   :  { %7592 = vmatprep.subr.bf16.mxu1 %v9423_v29  ;;  %v9492_v29 = vld [vmem:[#allocation8 + $0xd64] ss:$16 sps:$4 sm:$0xff]  }
 0x3db   :  { %7265 = vmatpush1.bf16.msra.mxu0 %v9418_v34  ;;  %v9490_v34 = vld [vmem:[#allocation8 + $0xd60] ss:$16 sps:$4 sm:$0xff]  }
 0x3dc   :  { %7593 = vmatpush1.bf16.msra.mxu1 %v9421_v44  ;;  %7275 = vmatprep.subr.bf16.mxu0 %v9426_v45  ;;  %v9498_v44 = vld [vmem:[#allocation8 + $0xd84] ss:$16 sps:$4 sm:$0xff]   ;;  %v9501_v45 = vld [vmem:[#allocation8 + $0xd8c] ss:$16 sps:$4 sm:$0xff]  }
 0x3dd   :  { %7603 = vmatprep.subr.bf16.mxu1 %v9429_v10  ;;  %v9496_v10 = vld [vmem:[#allocation8 + $0xd80] ss:$16 sps:$4 sm:$0xff]  }
 0x3de   :  { %7267 = vmatmul.mubr.bf16.vlgmr.msra.gmra.mrb[16].mxu0 %v3929_v48 }
 0x3df   :  { %7595 = vmatmul.mubr.bf16.vlgmr.msra.gmra.mrb[16].mxu1 %v3929_v48  ;;  %7276 = vmatpush1.bf16.msra.mxu0 %v9424_v35  ;;  %v9504_v35 = vld [vmem:[#allocation8 + $0xda4] ss:$16 sps:$4 sm:$0xff]   ;;  %v9507_v48 = vld [vmem:[#allocation8 + $0xdac] ss:$16 sps:$4 sm:$0xff]  }
 0x3e0   :  { %7307 = vmatprep.mubr.bf16.mxu0 %v3932_v37  ;;  %7604 = vmatpush1.bf16.msra.mxu1 %v9427_v49  ;;  %v9502_v49 = vld [vmem:[#allocation8 + $0xda0] ss:$16 sps:$4 sm:$0xff]  }
 0x3e1   :  { %7635 = vmatprep.mubr.bf16.mxu1 %v3932_v37  ;;  %7277 = vmatprep.subr.bf16.mxu0 %v9432_v8  ;;  %v658_v8 = vrot.slane %v9974_v14, %v625_v42  ;;  %v9505_v37 = vld [vmem:[#allocation8 + $0xda8] ss:$16 sps:$4 sm:$0xff]   ;;  %v9519_v42 = vld [vmem:[#allocation8 + $0xdec] ss:$16 sps:$4 sm:$0xff]  }
 0x3e2   :  { %7605 = vmatprep.subr.bf16.mxu1 %v9435_v41  ;;  %v9510_v41 = vld [vmem:[#allocation8 + $0xdc4] ss:$16 sps:$4 sm:$0xff]  }
 0x3e3   :  { %7278 = vmatpush1.bf16.msra.mxu0 %v9430_v50  ;;  %v9513_v50 = vld [vmem:[#allocation8 + $0xdcc] ss:$16 sps:$4 sm:$0xff]  }
 0x3e4   :  { %7606 = vmatpush1.bf16.msra.mxu1 %v9433_v51  ;;  %7279 = vmatprep.subr.bf16.mxu0 %v9438_v24  ;;  %v670_v51 = vrot.slane %v9974_v14, %v637_v9  ;;  %v9508_v24 = vld [vmem:[#allocation8 + $0xdc0] ss:$16 sps:$4 sm:$0xff]   ;;  %v9525_v9 = vld [vmem:[#allocation8 + $0xe0c] ss:$16 sps:$4 sm:$0xff]  }
 0x3e5   :  { %7607 = vmatprep.subr.bf16.mxu1 %v9441_v38  ;;  %v8742_v38 = vadd.f32 %v9965_v31, %v658_v8  ;;  %v9520_v31 = vld [vmem:[#allocation8 + $0xe00] ss:$16 sps:$4 sm:$0xff]   ;;  %v9582_v8 = vld [vmem:[#allocation8 + $0xf44] ss:$16 sps:$4 sm:$0xff]  }
 0x3e7   :  { %7280 = vmatpush1.bf16.msra.mxu0 %v9436_v52  ;;  %v9511_v52 = vld [vmem:[#allocation8 + $0xdc8] ss:$16 sps:$4 sm:$0xff]  }
 0x3e8   :  { %7608 = vmatpush1.bf16.msra.mxu1 %v9439_v53  ;;  %7281 = vmatprep.subr.bf16.mxu0 %v9444_v54  ;;  %v9516_v53 = vld [vmem:[#allocation8 + $0xde4] ss:$16 sps:$4 sm:$0xff]   ;;  %v8745_v54 = vadd.f32 %v9971_v36, %v670_v51  ;;  %v9531_v36 = vld [vmem:[#allocation8 + $0xe2c] ss:$16 sps:$4 sm:$0xff]  }
 0x3e9   :  { %7609 = vmatprep.subr.bf16.mxu1 %v9447_v55  ;;  %v9514_v55 = vld [vmem:[#allocation8 + $0xde0] ss:$16 sps:$4 sm:$0xff]   ;;  %v9588_v51 = vld [vmem:[#allocation8 + $0xf64] ss:$16 sps:$4 sm:$0xff]  }
 0x3ea   :  { %v3918_v14 = vmax.f32 %v8745_v54, 0.0  ;;  %v9592_v54 = vld [vmem:[#allocation8 + $0xf80] ss:$16 sps:$4 sm:$0xff]  }
 0x3eb   :  { %7282 = vmatpush1.bf16.msra.mxu0 %v9442_v56  ;;  %v3915_v56 = vmax.f32 %v8742_v38, 0.0  ;;  %v9586_v38 = vld [vmem:[#allocation8 + $0xf60] ss:$16 sps:$4 sm:$0xff]  }
 0x3ec   :  { %7610 = vmatpush1.bf16.msra.mxu1 %v9445_v23  ;;  %7283 = vmatprep.subr.bf16.mxu0 %v9450_v58  ;;  %v9517_v23 = vld [vmem:[#allocation8 + $0xde8] ss:$16 sps:$4 sm:$0xff]   ;;  %v9522_v58 = vld [vmem:[#allocation8 + $0xe04] ss:$16 sps:$4 sm:$0xff]  }
 0x3ed   :  { %7611 = vmatprep.subr.bf16.mxu1 %v9453_v59  ;;  %v3931_v59 = vpack.c.bf16 %v3915_v56, %v3915_v56  ;;  %v9600_v56 = vld [vmem:[#allocation8 + $0xfa4] ss:$16 sps:$4 sm:$0xff]  }
 0x3ef   :  { %7284 = vmatpush1.bf16.msra.mxu0 %v9448_v60  ;;  %v9523_v60 = vld [vmem:[#allocation8 + $0xe08] ss:$16 sps:$4 sm:$0xff]  }
 0x3f0   :  { %7612 = vmatpush1.bf16.msra.mxu1 %v9451_v22  ;;  %7285 = vmatprep.subr.bf16.mxu0 %v9456_v61  ;;  %v9528_v22 = vld [vmem:[#allocation8 + $0xe24] ss:$16 sps:$4 sm:$0xff]   ;;  %v3934_v61 = vpack.c.bf16 %v3918_v14, %v3918_v14 }
 0x3f1   :  { %7613 = vmatprep.subr.bf16.mxu1 %v9459_v4  ;;  %v9526_v4 = vld [vmem:[#allocation8 + $0xe20] ss:$16 sps:$4 sm:$0xff]  }
 0x3f3   :  { %7286 = vmatpush1.bf16.msra.mxu0 %v9454_v62  ;;  %v9529_v62 = vld [vmem:[#allocation8 + $0xe28] ss:$16 sps:$4 sm:$0xff]  }
 0x3f4   :  { %7614 = vmatpush1.bf16.msra.mxu1 %v9457_v32  ;;  %7287 = vmatprep.subr.bf16.mxu0 %v9462_v63  ;;  %v9534_v32 = vld [vmem:[#allocation8 + $0xe44] ss:$16 sps:$4 sm:$0xff]   ;;  %v9537_v63 = vld [vmem:[#allocation8 + $0xe4c] ss:$16 sps:$4 sm:$0xff]  }
 0x3f5   :  { %7615 = vmatprep.subr.bf16.mxu1 %v9465_v0  ;;  %v9532_v0 = vld [vmem:[#allocation8 + $0xe40] ss:$16 sps:$4 sm:$0xff]  }
 0x3f7   :  { %7288 = vmatpush1.bf16.msra.mxu0 %v9460_v13  ;;  %v9535_v13 = vld [vmem:[#allocation8 + $0xe48] ss:$16 sps:$4 sm:$0xff]  }
 0x3f8   :  { %7616 = vmatpush1.bf16.msra.mxu1 %v9463_v1  ;;  %7289 = vmatprep.subr.bf16.mxu0 %v9468_v2  ;;  %v9540_v1 = vld [vmem:[#allocation8 + $0xe64] ss:$16 sps:$4 sm:$0xff]   ;;  %v9543_v2 = vld [vmem:[#allocation8 + $0xe6c] ss:$16 sps:$4 sm:$0xff]  }
 0x3f9   :  { %7617 = vmatprep.subr.bf16.mxu1 %v9471_v33  ;;  %v9538_v33 = vld [vmem:[#allocation8 + $0xe60] ss:$16 sps:$4 sm:$0xff]  }
 0x3fb   :  { %7290 = vmatpush1.bf16.msra.mxu0 %v9466_v5  ;;  %v9541_v5 = vld [vmem:[#allocation8 + $0xe68] ss:$16 sps:$4 sm:$0xff]  }
 0x3fc   :  { %7618 = vmatpush1.bf16.msra.mxu1 %v9469_v7  ;;  %7291 = vmatprep.subr.bf16.mxu0 %v9474_v11  ;;  %v9546_v7 = vld [vmem:[#allocation8 + $0xe84] ss:$16 sps:$4 sm:$0xff]   ;;  %v9549_v11 = vld [vmem:[#allocation8 + $0xe8c] ss:$16 sps:$4 sm:$0xff]  }
 0x3fd   :  { %7619 = vmatprep.subr.bf16.mxu1 %v9477_v15  ;;  %v9544_v15 = vld [vmem:[#allocation8 + $0xe80] ss:$16 sps:$4 sm:$0xff]  }
 0x3ff   :  { %7292 = vmatpush1.bf16.msra.mxu0 %v9472_v57  ;;  %v9547_v57 = vld [vmem:[#allocation8 + $0xe88] ss:$16 sps:$4 sm:$0xff]  }
 0x400   :  { %7620 = vmatpush1.bf16.msra.mxu1 %v9475_v16  ;;  %7293 = vmatprep.subr.bf16.mxu0 %v9480_v17  ;;  %v9552_v16 = vld [vmem:[#allocation8 + $0xea4] ss:$16 sps:$4 sm:$0xff]   ;;  %v9555_v17 = vld [vmem:[#allocation8 + $0xeac] ss:$16 sps:$4 sm:$0xff]  }
 0x401   :  { %7621 = vmatprep.subr.bf16.mxu1 %v9483_v18  ;;  %v9550_v18 = vld [vmem:[#allocation8 + $0xea0] ss:$16 sps:$4 sm:$0xff]  }
 0x403   :  { %7294 = vmatpush1.bf16.msra.mxu0 %v9478_v20  ;;  %v9553_v20 = vld [vmem:[#allocation8 + $0xea8] ss:$16 sps:$4 sm:$0xff]  }
 0x404   :  { %7622 = vmatpush1.bf16.msra.mxu1 %v9481_v21  ;;  %7295 = vmatprep.subr.bf16.mxu0 %v9486_v25  ;;  %v9558_v21 = vld [vmem:[#allocation8 + $0xec4] ss:$16 sps:$4 sm:$0xff]   ;;  %v9561_v25 = vld [vmem:[#allocation8 + $0xecc] ss:$16 sps:$4 sm:$0xff]  }
 0x405   :  { %7623 = vmatprep.subr.bf16.mxu1 %v9489_v26  ;;  %v9556_v26 = vld [vmem:[#allocation8 + $0xec0] ss:$16 sps:$4 sm:$0xff]  }
 0x407   :  { %7296 = vmatpush1.bf16.msra.mxu0 %v9484_v27  ;;  %v9559_v27 = vld [vmem:[#allocation8 + $0xec8] ss:$16 sps:$4 sm:$0xff]  }
 0x408   :  { %7624 = vmatpush1.bf16.msra.mxu1 %v9487_v28  ;;  %7297 = vmatprep.subr.bf16.mxu0 %v9492_v29  ;;  %v9564_v28 = vld [vmem:[#allocation8 + $0xee4] ss:$16 sps:$4 sm:$0xff]   ;;  %v9567_v29 = vld [vmem:[#allocation8 + $0xeec] ss:$16 sps:$4 sm:$0xff]  }
 0x409   :  { %7625 = vmatprep.subr.bf16.mxu1 %v9495_v30  ;;  %v9562_v30 = vld [vmem:[#allocation8 + $0xee0] ss:$16 sps:$4 sm:$0xff]  }
 0x40b   :  { %7298 = vmatpush1.bf16.msra.mxu0 %v9490_v34  ;;  %v9565_v34 = vld [vmem:[#allocation8 + $0xee8] ss:$16 sps:$4 sm:$0xff]  }
 0x40c   :  { %7626 = vmatpush1.bf16.msra.mxu1 %v9493_v43  ;;  %7299 = vmatprep.subr.bf16.mxu0 %v9498_v44  ;;  %v9570_v43 = vld [vmem:[#allocation8 + $0xf04] ss:$16 sps:$4 sm:$0xff]   ;;  %v9573_v44 = vld [vmem:[#allocation8 + $0xf0c] ss:$16 sps:$4 sm:$0xff]  }
 0x40d   :  { %7627 = vmatprep.subr.bf16.mxu1 %v9501_v45  ;;  %v9568_v45 = vld [vmem:[#allocation8 + $0xf00] ss:$16 sps:$4 sm:$0xff]  }
 0x40f   :  { %7300 = vmatpush1.bf16.msra.mxu0 %v9496_v10  ;;  %v9571_v10 = vld [vmem:[#allocation8 + $0xf08] ss:$16 sps:$4 sm:$0xff]  }
 0x410   :  { %7628 = vmatpush1.bf16.msra.mxu1 %v9499_v47  ;;  %7301 = vmatprep.subr.bf16.mxu0 %v9504_v35  ;;  %v9576_v47 = vld [vmem:[#allocation8 + $0xf24] ss:$16 sps:$4 sm:$0xff]   ;;  %v9579_v35 = vld [vmem:[#allocation8 + $0xf2c] ss:$16 sps:$4 sm:$0xff]  }
 0x411   :  { %7629 = vmatprep.subr.bf16.mxu1 %v9507_v48  ;;  %v9574_v48 = vld [vmem:[#allocation8 + $0xf20] ss:$16 sps:$4 sm:$0xff]  }
 0x413   :  { %7302 = vmatpush1.bf16.msra.mxu0 %v9502_v49  ;;  %v9577_v49 = vld [vmem:[#allocation8 + $0xf28] ss:$16 sps:$4 sm:$0xff]  }
 0x414   :  { %7630 = vmatpush1.bf16.msra.mxu1 %v9505_v37  ;;  %7303 = vmatprep.subr.bf16.mxu0 %v9510_v41  ;;  %v9585_v37 = vld [vmem:[#allocation8 + $0xf4c] ss:$16 sps:$4 sm:$0xff]   ;;  %v9580_v41 = vld [vmem:[#allocation8 + $0xf40] ss:$16 sps:$4 sm:$0xff]  }
 0x415   :  { %7631 = vmatprep.subr.bf16.mxu1 %v9513_v50  ;;  %v9583_v50 = vld [vmem:[#allocation8 + $0xf48] ss:$16 sps:$4 sm:$0xff]  }
 0x417   :  { %7304 = vmatpush1.bf16.msra.mxu0 %v9508_v24  ;;  %v9591_v24 = vld [vmem:[#allocation8 + $0xf6c] ss:$16 sps:$4 sm:$0xff]  }
 0x418   :  { %7632 = vmatpush1.bf16.msra.mxu1 %v9511_v52  ;;  %7305 = vmatprep.subr.bf16.mxu0 %v9516_v53  ;;  %v9589_v52 = vld [vmem:[#allocation8 + $0xf68] ss:$16 sps:$4 sm:$0xff]   ;;  %v9594_v53 = vld [vmem:[#allocation8 + $0xf84] ss:$16 sps:$4 sm:$0xff]  }
 0x419   :  { %7633 = vmatprep.subr.bf16.mxu1 %v9519_v42  ;;  %v9597_v42 = vld [vmem:[#allocation8 + $0xf8c] ss:$16 sps:$4 sm:$0xff]  }
 0x41b   :  { %7306 = vmatpush1.bf16.msra.mxu0 %v9514_v55  ;;  %v9595_v55 = vld [vmem:[#allocation8 + $0xf88] ss:$16 sps:$4 sm:$0xff]  }
 0x41c   :  { %7634 = vmatpush1.bf16.msra.mxu1 %v9517_v23  ;;  %7316 = vmatprep.subr.bf16.mxu0 %v9522_v58  ;;  %v9603_v23 = vld [vmem:[#allocation8 + $0xfac] ss:$16 sps:$4 sm:$0xff]   ;;  %v9598_v58 = vld [vmem:[#allocation8 + $0xfa0] ss:$16 sps:$4 sm:$0xff]  }
 0x41d   :  { %7644 = vmatprep.subr.bf16.mxu1 %v9525_v9  ;;  %v9617_v9 = vld [vmem:[#allocation7 + $0x8] sm:$0xff] }
 0x41e   :  { %7308 = vmatmul.mubr.bf16.vlgmr.msra.gmra.mrb[16].mxu0 %v3931_v59  ;;  %v666_v14 = vrot.slane %v9617_v9, %v633_v3  ;;  %v9613_v3 = vld [vmem:[#allocation8 + $0xfe8] ss:$16 sps:$4 sm:$0xff]  }
 0x41f   :  { %7636 = vmatmul.mubr.bf16.vlgmr.msra.gmra.mrb[16].mxu1 %v3931_v59  ;;  %7317 = vmatpush1.bf16.msra.mxu0 %v9520_v31  ;;  %v9601_v31 = vld [vmem:[#allocation8 + $0xfa8] ss:$16 sps:$4 sm:$0xff]   ;;  %v9606_v59 = vld [vmem:[#allocation8 + $0xfc4] ss:$16 sps:$4 sm:$0xff]  }
 0x420   :  { %7348 = vmatprep.mubr.bf16.mxu0 %v3934_v61  ;;  %7645 = vmatpush1.bf16.msra.mxu1 %v9523_v60  ;;  %v9609_v60 = vld [vmem:[#allocation8 + $0xfcc] ss:$16 sps:$4 sm:$0xff]  }
 0x421   :  { %7676 = vmatprep.mubr.bf16.mxu1 %v3934_v61  ;;  %7318 = vmatprep.subr.bf16.mxu0 %v9528_v22  ;;  %v9604_v22 = vld [vmem:[#allocation8 + $0xfc0] ss:$16 sps:$4 sm:$0xff]   ;;  %v8744_v61 = vadd.f32 %v9967_v39, %v666_v14 }
 0x422   :  { %7646 = vmatprep.subr.bf16.mxu1 %v9531_v36  ;;  %v9607_v36 = vld [vmem:[#allocation8 + $0xfc8] ss:$16 sps:$4 sm:$0xff]  }
 0x423   :  { %7319 = vmatpush1.bf16.msra.mxu0 %v9526_v4  ;;  %v9612_v4 = vld [vmem:[#allocation8 + $0xfe4] ss:$16 sps:$4 sm:$0xff]   ;;  %v3917_v6 = vmax.f32 %v8744_v61, 0.0 }
 0x424   :  { %7647 = vmatpush1.bf16.msra.mxu1 %v9529_v62  ;;  %7320 = vmatprep.subr.bf16.mxu0 %v9534_v32  ;;  %v9615_v62 = vld [vmem:[#allocation8 + $0xfec] ss:$16 sps:$4 sm:$0xff]   ;;  %v9610_v32 = vld [vmem:[#allocation8 + $0xfe0] ss:$16 sps:$4 sm:$0xff]  }
 0x425   :  { %7648 = vmatprep.subr.bf16.mxu1 %v9537_v63  ;;  %v3933_v63 = vpack.c.bf16 %v3917_v6, %v3917_v6 }
 0x427   :  { %7321 = vmatpush1.bf16.msra.mxu0 %v9532_v0  ;;  %v4447_v0 = vld [vmem:[#allocation10] sm:$0xf] }
 0x428   :  { %7649 = vmatpush1.bf16.msra.mxu1 %v9535_v13  ;;  %7322 = vmatprep.subr.bf16.mxu0 %v9540_v1  ;;  %v4452_v39 = vrot.slane %v4447_v0, %v9925_v12  ;;  %v4460_v13 = vrot.slane %v4447_v0, %v9945_v40  ;;  %v4456_v1 = vrot.slane %v4447_v0, %v9915_v19 }
 0x429   :  { %7650 = vmatprep.subr.bf16.mxu1 %v9543_v2  ;;  %v4464_v2 = vrot.slane %v4447_v0, %v9928_v46 }
 0x42b   :  { %7323 = vmatpush1.bf16.msra.mxu0 %v9538_v33 }
 0x42c   :  { %7651 = vmatpush1.bf16.msra.mxu1 %v9541_v5  ;;  %7324 = vmatprep.subr.bf16.mxu0 %v9546_v7 }
 0x42d   :  { %7652 = vmatprep.subr.bf16.mxu1 %v9549_v11 }
 0x42f   :  { %7325 = vmatpush1.bf16.msra.mxu0 %v9544_v15 }
 0x430   :  { %7653 = vmatpush1.bf16.msra.mxu1 %v9547_v57  ;;  %7326 = vmatprep.subr.bf16.mxu0 %v9552_v16 }
 0x431   :  { %7654 = vmatprep.subr.bf16.mxu1 %v9555_v17 }
 0x433   :  { %7327 = vmatpush1.bf16.msra.mxu0 %v9550_v18 }
 0x434   :  { %7655 = vmatpush1.bf16.msra.mxu1 %v9553_v20  ;;  %7328 = vmatprep.subr.bf16.mxu0 %v9558_v21 }
 0x435   :  { %7656 = vmatprep.subr.bf16.mxu1 %v9561_v25 }
 0x437   :  { %7329 = vmatpush1.bf16.msra.mxu0 %v9556_v26 }
 0x438   :  { %7657 = vmatpush1.bf16.msra.mxu1 %v9559_v27  ;;  %7330 = vmatprep.subr.bf16.mxu0 %v9564_v28 }
 0x439   :  { %7658 = vmatprep.subr.bf16.mxu1 %v9567_v29 }
 0x43b   :  { %7331 = vmatpush1.bf16.msra.mxu0 %v9562_v30 }
 0x43c   :  { %7659 = vmatpush1.bf16.msra.mxu1 %v9565_v34  ;;  %7332 = vmatprep.subr.bf16.mxu0 %v9570_v43 }
 0x43d   :  { %7660 = vmatprep.subr.bf16.mxu1 %v9573_v44 }
 0x43f   :  { %7333 = vmatpush1.bf16.msra.mxu0 %v9568_v45 }
 0x440   :  { %7661 = vmatpush1.bf16.msra.mxu1 %v9571_v10  ;;  %7334 = vmatprep.subr.bf16.mxu0 %v9576_v47 }
 0x441   :  { %7662 = vmatprep.subr.bf16.mxu1 %v9579_v35 }
 0x443   :  { %7335 = vmatpush1.bf16.msra.mxu0 %v9574_v48 }
 0x444   :  { %7663 = vmatpush1.bf16.msra.mxu1 %v9577_v49  ;;  %7336 = vmatprep.subr.bf16.mxu0 %v9582_v8 }
 0x445   :  { %7664 = vmatprep.subr.bf16.mxu1 %v9585_v37 }
 0x447   :  { %7337 = vmatpush1.bf16.msra.mxu0 %v9580_v41 }
 0x448   :  { %7665 = vmatpush1.bf16.msra.mxu1 %v9583_v50  ;;  %7338 = vmatprep.subr.bf16.mxu0 %v9588_v51 }
 0x449   :  { %7666 = vmatprep.subr.bf16.mxu1 %v9591_v24 }
 0x44b   :  { %7339 = vmatpush1.bf16.msra.mxu0 %v9586_v38 }
 0x44c   :  { %7667 = vmatpush1.bf16.msra.mxu1 %v9589_v52  ;;  %7340 = vmatprep.subr.bf16.mxu0 %v9594_v53 }
 0x44d   :  { %7668 = vmatprep.subr.bf16.mxu1 %v9597_v42 }
 0x44f   :  { %7341 = vmatpush1.bf16.msra.mxu0 %v9592_v54 }
 0x450   :  { %7669 = vmatpush1.bf16.msra.mxu1 %v9595_v55  ;;  %7342 = vmatprep.subr.bf16.mxu0 %v9600_v56 }
 0x451   :  { %7670 = vmatprep.subr.bf16.mxu1 %v9603_v23 }
 0x453   :  { %7343 = vmatpush1.bf16.msra.mxu0 %v9598_v58 }
 0x454   :  { %7671 = vmatpush1.bf16.msra.mxu1 %v9601_v31  ;;  %7344 = vmatprep.subr.bf16.mxu0 %v9606_v59 }
 0x455   :  { %7672 = vmatprep.subr.bf16.mxu1 %v9609_v60 }
 0x457   :  { %7345 = vmatpush1.bf16.msra.mxu0 %v9604_v22 }
 0x458   :  { %7673 = vmatpush1.bf16.msra.mxu1 %v9607_v36  ;;  %7346 = vmatprep.subr.bf16.mxu0 %v9612_v4 }
 0x459   :  { %7674 = vmatprep.subr.bf16.mxu1 %v9615_v62 }
 0x45b   :  { %7347 = vmatpush1.bf16.msra.mxu0 %v9610_v32 }
 0x45c   :  { %7675 = vmatpush1.bf16.msra.mxu1 %v9613_v3 }
 0x45e   :  { %7349 = vmatmul.mubr.bf16.vlgmr.msra.gmra.mrb[16].mxu0 %v3933_v63 }
 0x45f   :  { %7677 = vmatmul.mubr.bf16.vlgmr.msra.gmra.mrb[16].mxu1 %v3933_v63 }
 0x531   :  { %v7350_v33 = vpop.f32.mrb[16].mxu0 }
 0x532   :  { %v8746_v5 = vadd.f32 %v7350_v33, %v4452_v39  ;;  %v7678_v7 = vpop.f32.mrb[16].mxu1  ;;  %v7352_v11 = vpop.f32.mrb[17].mxu0 }
 0x533   :  { %v8748_v15 = vadd.f32 %v7678_v7, %v4460_v13  ;;  %v8747_v57 = vadd.f32 %v7352_v11, %v4456_v1  ;;  %v7680_v16 = vpop.f32.mrb[17].mxu1  ;;  %v7354_v17 = vpop.f32.mrb[18].mxu0 }
 0x534   :  { %7685 = vst [vmem:[#allocation11] sm:$0xff] %v8746_v5  ;;  %v8749_v18 = vadd.f32 %v7680_v16, %v4464_v2  ;;  %v7682_v20 = vpop.f32.mrb[18].mxu1  ;;  %v7355_v12 = vpop.f32.mrb[19].mxu0 }
 0x535   :  { %7687 = vst [vmem:[#allocation11 + $0x10] sm:$0xff] %v8748_v15  ;;  %7686 = vst [vmem:[#allocation11 + $0x8] sm:$0xff] %v8747_v57  ;;  %v7683_v19 = vpop.f32.mrb[19].mxu1 }
 0x536   :  { %7688 = vst [vmem:[#allocation11 + $0x18] sm:$0xff] %v8749_v18 }
 0x537   :  { %9739 = shalt.err (!%p9736_p2)
}
 0x538   :  { %s9740_s3 = scalar_lea.hbm %s10027_s5, 512 }
 0x539   :  { %p9741_p3 = scmp.ne.s32.totalorder %s10027_s5, %s9740_s3  ;;  %p9744_p4 = scmp.lt.u32.totalorder %s9740_s3, %s10027_s5 }
 0x53b   :  { %p9746_p5 = pnand %p9744_p4, %p9741_p3 }
 0x53d   :  { %9749 = shalt.err (!%p9746_p5)
}
 0x53e   :  { %7698 = dma.vmem_to_hbm [thread:$0]  %s7696_s27, 512, %s10027_s5, [#allocation4]  }
 0x53f   :  { %9756 = dma.done.wait [#allocation4], 512  }
 0x540   :  { %9757 = vsyncadd [#allocation4], 4294966784 }
 0x541   :  { %7702 = vsyncpa [#allocation3], 1 }
 0x542   :  { %7703 = vsyncpa [#allocation6], 1 }
 0x543   :  { %7704 = vsyncpa [#allocation9], 1 }
 0x544   :  { %7705 = vsyncpa [#allocation4], 1 }

</bundles_post_ra>
